<compile_context>
chip_gen: v7x
topology: tpu7x:2x2x1
jax: 0.10.0
libtpu: 0.0.40
codegen_flags: <defaults>
</compile_context>

<pallas_src>
import functools

import jax
import jax.numpy as jnp
import numpy as np
from jax.experimental import pallas as pl
from jax.experimental.pallas import tpu as pltpu

D_MODEL = 768            # BERT hidden size
N_FILT = 256             # filters per conv branch
N_BRANCH = 3
FC_HID = 256             # fc1 output width
GPAD = 2                 # max one-sided reach of the k=3/4/5 'same' convs
N_OFF = 2 * GPAD + 1     # distinct row offsets 0..4


# --------------------------------------------------------------------------- #
# Fused kernel: TextCNN (3 convs + ReLU + global max-pool) + classifier head
# --------------------------------------------------------------------------- #
def fused_kernel(tok_ref, cls_ref, wc_ref, bc_ref, w1c_ref, w1n_ref, b1_ref,
                 w2_ref, b2_ref, out_ref, xscr, *, bb, seq_len):
    """One grid step processes `bb` examples end-to-end.

    tok_ref : (bb, L, 768)  bf16  token embeddings (no CLS / SEP)
    cls_ref : (1, bb, 768)  bf16  CLS embeddings
    wc_ref  : (5, 768, 768) bf16  combined per-offset conv weights [k3|k4|k5]
    bc_ref  : (1, 768)      f32   concatenated conv biases         [b3|b4|b5]
    w1c_ref : (768, 256)    bf16  fc1 weight rows for the CLS features
    w1n_ref : (768, 256)    bf16  fc1 weight rows for the CNN features
    b1_ref  : (1, 256)      f32
    w2_ref  : (256, Cp)     bf16  fc2 weight, class dim padded to 128-multiple
    b2_ref  : (1, Cp)       f32
    out_ref : (1, bb, Cp)   f32   sigmoid(fc2(...)) per example
    xscr    : (bb*(L+GPAD)+2*GPAD, 768) bf16  flat scratch: tokens with GPAD
              zero rows between / around examples (shared 'same' padding).
    """
    L = seq_len
    stride = L + GPAD
    m_tot = bb * stride

    # Lay out this step's tokens (and their zero padding) into the flat scratch.
    zpad = jnp.zeros((GPAD, D_MODEL), jnp.bfloat16)
    for b in range(bb):                                   # static, bb <= 8
        base = b * stride
        xscr[base:base + GPAD, :] = zpad                  # left pad of example b
        xscr[base + GPAD:base + GPAD + L, :] = tok_ref[b]
    xscr[m_tot:m_tot + 2 * GPAD, :] = jnp.zeros((2 * GPAD, D_MODEL), jnp.bfloat16)

    # All 3 conv branches for all bb examples = 5 shared offset matmuls.
    acc = jnp.zeros((m_tot, N_BRANCH * N_FILT), jnp.float32)
    for o in range(N_OFF):                                # static offsets 0..4
        acc = acc + jnp.dot(xscr[o:o + m_tot, :], wc_ref[o],
                            preferred_element_type=jnp.float32)

    # Per-example global max-pool over the L valid rows; bias + ReLU after the
    # max (per-channel constant + monotone ReLU => identical numerics).
    maxes = [jnp.max(acc[b * stride:b * stride + L, :], axis=0, keepdims=True)
             for b in range(bb)]
    m = maxes[0] if bb == 1 else jnp.concatenate(maxes, axis=0)   # (bb, 768)
    cnn_feat = jnp.maximum(m + bc_ref[...], 0.0)                  # f32

    # Classifier head: sigmoid(relu(cls @ W1a + cnn @ W1b + b1) @ W2 + b2).
    h = jnp.dot(cls_ref[0], w1c_ref[...], preferred_element_type=jnp.float32)
    h = h + jnp.dot(cnn_feat.astype(jnp.bfloat16), w1n_ref[...],
                    preferred_element_type=jnp.float32)
    h = jnp.maximum(h + b1_ref[...], 0.0)                         # (bb, 256) f32
    logits = jnp.dot(h.astype(jnp.bfloat16), w2_ref[...],
                     preferred_element_type=jnp.float32) + b2_ref[...]
    out_ref[0] = jax.nn.sigmoid(logits)


# --------------------------------------------------------------------------- #
# Wrapper
# --------------------------------------------------------------------------- #
def _combined_conv_weights(params):
    """Merge the 3 conv branches into per-offset (768, 768) weights (bf16)."""
    zero = jnp.zeros((D_MODEL, N_FILT), jnp.float32)
    slabs = []
    for o in range(N_OFF):
        w3 = params["w3"][o - 1] if 1 <= o <= 3 else zero   # k=3: left pad 1
        w4 = params["w4"][o - 1] if 1 <= o <= 4 else zero   # k=4: left pad 1
        w5 = params["w5"][o]                                # k=5: left pad 2
        slabs.append(jnp.concatenate([w3, w4, w5], axis=1))
    w_all = jnp.stack(slabs, axis=0).astype(jnp.bfloat16)   # (5, 768, 768)
    b_cat = jnp.concatenate([params["b3"], params["b4"], params["b5"]], axis=1)
    return w_all, b_cat                                     # bf16, f32 (1, 768)


@functools.partial(jax.jit, static_argnames=("class_nums",))
def bert_textcnn_forward(last_hidden, params, *, class_nums):
    """last_hidden: (B, S, 768) synthetic BERT last_hidden_state (f32)."""
    B, S, D = last_hidden.shape
    assert D == D_MODEL and S >= 3
    L = S - 2

    cls = last_hidden[:, 0, :].astype(jnp.bfloat16)          # (B, 768)
    tok = last_hidden[:, 1:-1, :].astype(jnp.bfloat16)       # (B, L, 768)

    # ---- batch blocking ---------------------------------------------------- #
    stride = L + GPAD
    row_cap = max(1, 1024 // stride)           # bound per-step f32 accumulator
    bb = max(1, min(8, B, row_cap))
    bp = ((B + bb - 1) // bb) * bb
    if bp != B:
        tok = jnp.pad(tok, ((0, bp - B), (0, 0), (0, 0)))
        cls = jnp.pad(cls, ((0, bp - B), (0, 0)))
    n_steps = bp // bb
    cls = cls.reshape(n_steps, bb, D_MODEL)    # block = full (bb, 768) trailing dims

    # ---- parameters in kernel-friendly layouts ----------------------------- #
    w_all, b_cat = _combined_conv_weights(params)
    c_pad = ((class_nums + 127) // 128) * 128            # lane-dense logits
    w1 = params["w1"].astype(jnp.bfloat16)
    w1_cls, w1_cnn = w1[:D_MODEL], w1[D_MODEL:]
    w2 = jnp.pad(params["w2"], ((0, 0), (0, c_pad - class_nums))).astype(jnp.bfloat16)
    b2 = jnp.pad(params["b2"], ((0, 0), (0, c_pad - class_nums)))

    scratch_rows = bb * stride + 2 * GPAD

    out = pl.pallas_call(
        functools.partial(fused_kernel, bb=bb, seq_len=L),
        out_shape=jax.ShapeDtypeStruct((n_steps, bb, c_pad), jnp.float32),
        grid=(n_steps,),
        in_specs=[
            pl.BlockSpec((bb, L, D_MODEL), lambda i: (i, 0, 0)),          # tokens
            pl.BlockSpec((1, bb, D_MODEL), lambda i: (i, 0, 0)),          # CLS
            pl.BlockSpec((N_OFF, D_MODEL, N_BRANCH * N_FILT),
                         lambda i: (0, 0, 0)),                            # conv W
            pl.BlockSpec((1, N_BRANCH * N_FILT), lambda i: (0, 0)),       # conv b
            pl.BlockSpec((D_MODEL, FC_HID), lambda i: (0, 0)),            # fc1 (cls)
            pl.BlockSpec((D_MODEL, FC_HID), lambda i: (0, 0)),            # fc1 (cnn)
            pl.BlockSpec((1, FC_HID), lambda i: (0, 0)),                  # fc1 bias
            pl.BlockSpec((FC_HID, c_pad), lambda i: (0, 0)),              # fc2
            pl.BlockSpec((1, c_pad), lambda i: (0, 0)),                   # fc2 bias
        ],
        out_specs=pl.BlockSpec((1, bb, c_pad), lambda i: (i, 0, 0)),
        scratch_shapes=[pltpu.VMEM((scratch_rows, D_MODEL), jnp.bfloat16)],
        compiler_params=pltpu.CompilerParams(
            dimension_semantics=("parallel",),
            vmem_limit_bytes=32 * 1024 * 1024),          # fits v5e/v6e/v7x budgets
    )(tok, cls, w_all, b_cat, w1_cls, w1_cnn, params["b1"], w2, b2)

    return out.reshape(bp, c_pad)[:B, :class_nums]                       # (B, C)


# --------------------------------------------------------------------------- #
# Parameter init (deterministic, shapes from the PyTorch module)
# --------------------------------------------------------------------------- #
def init_params(key, class_nums):
    ks = jax.random.split(key, 12)
    scale = 0.02
    return {
        # Conv1d(768, 256, k) weights stored tap-major as (k, D, 256)
        "w3": scale * jax.random.normal(ks[0], (3, D_MODEL, N_FILT), jnp.float32),
        "b3": scale * jax.random.normal(ks[1], (1, N_FILT), jnp.float32),
        "w4": scale * jax.random.normal(ks[2], (4, D_MODEL, N_FILT), jnp.float32),
        "b4": scale * jax.random.normal(ks[3], (1, N_FILT), jnp.float32),
        "w5": scale * jax.random.normal(ks[4], (5, D_MODEL, N_FILT), jnp.float32),
        "b5": scale * jax.random.normal(ks[5], (1, N_FILT), jnp.float32),
        # Linear(256*3 + 768, 256) stored as (in, out); Linear(256, class_nums)
        "w1": scale * jax.random.normal(ks[6], (N_BRANCH * N_FILT + D_MODEL, FC_HID),
                                        jnp.float32),
        "b1": scale * jax.random.normal(ks[7], (1, FC_HID), jnp.float32),
        "w2": scale * jax.random.normal(ks[8], (FC_HID, class_nums), jnp.float32),
        "b2": scale * jax.random.normal(ks[9], (1, class_nums), jnp.float32),
    }


# --------------------------------------------------------------------------- #
# Pure-JAX f32 reference (uses XLA conv) for a sanity check
# --------------------------------------------------------------------------- #
def reference_forward(last_hidden, p):
    cls = last_hidden[:, 0, :]
    toks = last_hidden[:, 1:-1, :]
    x_bcl = jnp.transpose(toks, (0, 2, 1))                    # NCL, like PyTorch

    def branch(w_kio, b, left, right):
        w_oik = jnp.transpose(w_kio, (2, 1, 0))               # (O, I, K)
        y = jax.lax.conv_general_dilated(
            x_bcl, w_oik, window_strides=(1,), padding=[(left, right)],
            dimension_numbers=("NCH", "OIH", "NCH"))
        y = jnp.maximum(y + b[0][None, :, None], 0.0)
        return jnp.max(y, axis=2)                             # (B, 256)

    c1 = branch(p["w3"], p["b3"], 1, 1)                       # k=3 'same'
    c2 = branch(p["w4"], p["b4"], 1, 2)                       # k=4 'same' (extra right pad)
    c3 = branch(p["w5"], p["b5"], 2, 2)                       # k=5 'same'
    feats = jnp.concatenate([cls, c1, c2, c3], axis=1)
    h = jnp.maximum(feats @ p["w1"] + p["b1"][0], 0.0)
    return jax.nn.sigmoid(h @ p["w2"] + p["b2"][0])


# --------------------------------------------------------------------------- #
if __name__ == "__main__":
    key = jax.random.PRNGKey(0)
    k_ids, k_hidden, k_params = jax.random.split(key, 3)

    B, S, CLASS_NUMS = 2, 10, 5                                # small shapes

    # Inputs the PyTorch module would take (attention_mask only feeds BERT).
    input_ids = jax.random.randint(k_ids, (B, S), 0, 21128, dtype=jnp.int32)
    attention_mask = jnp.ones((B, S), jnp.int32)

    # TODO(synk): stand-in for the pretrained BERT encoder output.
    last_hidden = jax.random.normal(k_hidden, (B, S, D_MODEL), jnp.float32)

    params = init_params(k_params, CLASS_NUMS)

    out = bert_textcnn_forward(last_hidden, params, class_nums=CLASS_NUMS)
    out = jax.block_until_ready(out)
    assert out.shape == (B, CLASS_NUMS), out.shape

    ref = jax.block_until_ready(reference_forward(last_hidden, params))
    np.testing.assert_allclose(np.asarray(out), np.asarray(ref),
                               atol=2e-2, rtol=2e-2)

    print("KERNEL_OK")
</pallas_src>

<mosaic_0001>
module attributes {stable_mosaic.version = 11 : i64} {
  func.func @fused_kernel(%arg0: i32, %arg1: memref<2x8x768xbf16, #tpu.memory_space<vmem>>, %arg2: memref<1x2x768xbf16, #tpu.memory_space<vmem>>, %arg3: memref<5x768x768xbf16, #tpu.memory_space<vmem>>, %arg4: memref<1x768xf32, #tpu.memory_space<vmem>>, %arg5: memref<768x256xbf16, #tpu.memory_space<vmem>>, %arg6: memref<768x256xbf16, #tpu.memory_space<vmem>>, %arg7: memref<1x256xf32, #tpu.memory_space<vmem>>, %arg8: memref<256x128xbf16, #tpu.memory_space<vmem>>, %arg9: memref<1x128xf32, #tpu.memory_space<vmem>>, %arg10: memref<1x2x128xf32, #tpu.memory_space<vmem>>, %arg11: memref<24x768xbf16, #tpu.memory_space<vmem>>) attributes {dimension_semantics = [#tpu.dimension_semantics<parallel>], iteration_bounds = array<i64: 1>, scalar_prefetch = 0 : i64, scratch_operands = 1 : i64, tpu.core_type = #tpu.core_type<tc>, window_params = [{transform_indices = @transform_0, window_bounds = array<i64: 2, 8, 768>}, {transform_indices = @transform_1, window_bounds = array<i64: 1, 2, 768>}, {pipeline_mode = #tpu.pipeline_mode<synchronous>, transform_indices = @transform_2, window_bounds = array<i64: 5, 768, 768>}, {pipeline_mode = #tpu.pipeline_mode<synchronous>, transform_indices = @transform_3, window_bounds = array<i64: 1, 768>}, {pipeline_mode = #tpu.pipeline_mode<synchronous>, transform_indices = @transform_4, window_bounds = array<i64: 768, 256>}, {pipeline_mode = #tpu.pipeline_mode<synchronous>, transform_indices = @transform_5, window_bounds = array<i64: 768, 256>}, {pipeline_mode = #tpu.pipeline_mode<synchronous>, transform_indices = @transform_6, window_bounds = array<i64: 1, 256>}, {pipeline_mode = #tpu.pipeline_mode<synchronous>, transform_indices = @transform_7, window_bounds = array<i64: 256, 128>}, {pipeline_mode = #tpu.pipeline_mode<synchronous>, transform_indices = @transform_8, window_bounds = array<i64: 1, 128>}, {transform_indices = @transform_9, window_bounds = array<i64: 1, 2, 128>}]} {
    %cst = arith.constant 0.000000e+00 : bf16
    %0 = vector.broadcast %cst : bf16 to vector<2x768xbf16>
    %c0 = arith.constant 0 : index
    %c0_0 = arith.constant 0 : index
    %1 = vector.load %arg11[%c0, %c0_0] : memref<24x768xbf16, #tpu.memory_space<vmem>>, vector<2x768xbf16>
    tpu.vector_store %arg11[%c0, %c0_0], %0 {strides = array<i32>} : memref<24x768xbf16, #tpu.memory_space<vmem>>, vector<2x768xbf16>,
    %c0_1 = arith.constant 0 : index
    %c0_2 = arith.constant 0 : index
    %c0_3 = arith.constant 0 : index
    %2 = vector.load %arg1[%c0_1, %c0_2, %c0_3] : memref<2x8x768xbf16, #tpu.memory_space<vmem>>, vector<1x8x768xbf16>
    %3 = vector.shape_cast %2 : vector<1x8x768xbf16> to vector<8x768xbf16>
    %c2 = arith.constant 2 : index
    %c0_4 = arith.constant 0 : index
    %4 = vector.load %arg11[%c2, %c0_4] : memref<24x768xbf16, #tpu.memory_space<vmem>>, vector<8x768xbf16>
    tpu.vector_store %arg11[%c2, %c0_4], %3 {strides = array<i32>} : memref<24x768xbf16, #tpu.memory_space<vmem>>, vector<8x768xbf16>,
    %c10 = arith.constant 10 : index
    %c0_5 = arith.constant 0 : index
    %5 = vector.load %arg11[%c10, %c0_5] : memref<24x768xbf16, #tpu.memory_space<vmem>>, vector<2x768xbf16>
    tpu.vector_store %arg11[%c10, %c0_5], %0 {strides = array<i32>} : memref<24x768xbf16, #tpu.memory_space<vmem>>, vector<2x768xbf16>,
    %c1 = arith.constant 1 : index
    %c0_6 = arith.constant 0 : index
    %c0_7 = arith.constant 0 : index
    %6 = vector.load %arg1[%c1, %c0_6, %c0_7] : memref<2x8x768xbf16, #tpu.memory_space<vmem>>, vector<1x8x768xbf16>
    %7 = vector.shape_cast %6 : vector<1x8x768xbf16> to vector<8x768xbf16>
    %c12 = arith.constant 12 : index
    %c0_8 = arith.constant 0 : index
    %8 = vector.load %arg11[%c12, %c0_8] : memref<24x768xbf16, #tpu.memory_space<vmem>>, vector<8x768xbf16>
    tpu.vector_store %arg11[%c12, %c0_8], %7 {strides = array<i32>} : memref<24x768xbf16, #tpu.memory_space<vmem>>, vector<8x768xbf16>,
    %cst_9 = arith.constant 0.000000e+00 : bf16
    %9 = vector.broadcast %cst_9 : bf16 to vector<4x768xbf16>
    %c20 = arith.constant 20 : index
    %c0_10 = arith.constant 0 : index
    %10 = vector.load %arg11[%c20, %c0_10] : memref<24x768xbf16, #tpu.memory_space<vmem>>, vector<4x768xbf16>
    tpu.vector_store %arg11[%c20, %c0_10], %9 {strides = array<i32>} : memref<24x768xbf16, #tpu.memory_space<vmem>>, vector<4x768xbf16>,
    %cst_11 = arith.constant 0.000000e+00 : f32
    %11 = vector.broadcast %cst_11 : f32 to vector<20x768xf32>
    %c0_12 = arith.constant 0 : index
    %c0_13 = arith.constant 0 : index
    %12 = vector.load %arg11[%c0_12, %c0_13] : memref<24x768xbf16, #tpu.memory_space<vmem>>, vector<20x768xbf16>
    %c0_14 = arith.constant 0 : index
    %c0_15 = arith.constant 0 : index
    %c0_16 = arith.constant 0 : index
    %13 = vector.load %arg3[%c0_14, %c0_15, %c0_16] : memref<5x768x768xbf16, #tpu.memory_space<vmem>>, vector<1x768x768xbf16>
    %14 = vector.shape_cast %13 : vector<1x768x768xbf16> to vector<768x768xbf16>
    %cst_17 = arith.constant dense<0.000000e+00> : vector<20x768xf32>
    %15 = tpu.matmul %12, %14, %cst_17 {dimension_numbers = #tpu.dot_dimension_numbers<[1], [0], [0], [1], [0, 0, 1, 1], [], []>} : vector<20x768xbf16>, vector<768x768xbf16>, vector<20x768xf32> -> vector<20x768xf32>
    %16 = arith.addf %11, %15 : vector<20x768xf32>
    %c1_18 = arith.constant 1 : index
    %c0_19 = arith.constant 0 : index
    %17 = vector.load %arg11[%c1_18, %c0_19] : memref<24x768xbf16, #tpu.memory_space<vmem>>, vector<20x768xbf16>
    %c1_20 = arith.constant 1 : index
    %c0_21 = arith.constant 0 : index
    %c0_22 = arith.constant 0 : index
    %18 = vector.load %arg3[%c1_20, %c0_21, %c0_22] : memref<5x768x768xbf16, #tpu.memory_space<vmem>>, vector<1x768x768xbf16>
    %19 = vector.shape_cast %18 : vector<1x768x768xbf16> to vector<768x768xbf16>
    %cst_23 = arith.constant dense<0.000000e+00> : vector<20x768xf32>
    %20 = tpu.matmul %17, %19, %cst_23 {dimension_numbers = #tpu.dot_dimension_numbers<[1], [0], [0], [1], [0, 0, 1, 1], [], []>} : vector<20x768xbf16>, vector<768x768xbf16>, vector<20x768xf32> -> vector<20x768xf32>
    %21 = arith.addf %16, %20 : vector<20x768xf32>
    %c2_24 = arith.constant 2 : index
    %c0_25 = arith.constant 0 : index
    %22 = vector.load %arg11[%c2_24, %c0_25] : memref<24x768xbf16, #tpu.memory_space<vmem>>, vector<20x768xbf16>
    %c2_26 = arith.constant 2 : index
    %c0_27 = arith.constant 0 : index
    %c0_28 = arith.constant 0 : index
    %23 = vector.load %arg3[%c2_26, %c0_27, %c0_28] : memref<5x768x768xbf16, #tpu.memory_space<vmem>>, vector<1x768x768xbf16>
    %24 = vector.shape_cast %23 : vector<1x768x768xbf16> to vector<768x768xbf16>
    %cst_29 = arith.constant dense<0.000000e+00> : vector<20x768xf32>
    %25 = tpu.matmul %22, %24, %cst_29 {dimension_numbers = #tpu.dot_dimension_numbers<[1], [0], [0], [1], [0, 0, 1, 1], [], []>} : vector<20x768xbf16>, vector<768x768xbf16>, vector<20x768xf32> -> vector<20x768xf32>
    %26 = arith.addf %21, %25 : vector<20x768xf32>
    %c3 = arith.constant 3 : index
    %c0_30 = arith.constant 0 : index
    %27 = vector.load %arg11[%c3, %c0_30] : memref<24x768xbf16, #tpu.memory_space<vmem>>, vector<20x768xbf16>
    %c3_31 = arith.constant 3 : index
    %c0_32 = arith.constant 0 : index
    %c0_33 = arith.constant 0 : index
    %28 = vector.load %arg3[%c3_31, %c0_32, %c0_33] : memref<5x768x768xbf16, #tpu.memory_space<vmem>>, vector<1x768x768xbf16>
    %29 = vector.shape_cast %28 : vector<1x768x768xbf16> to vector<768x768xbf16>
    %cst_34 = arith.constant dense<0.000000e+00> : vector<20x768xf32>
    %30 = tpu.matmul %27, %29, %cst_34 {dimension_numbers = #tpu.dot_dimension_numbers<[1], [0], [0], [1], [0, 0, 1, 1], [], []>} : vector<20x768xbf16>, vector<768x768xbf16>, vector<20x768xf32> -> vector<20x768xf32>
    %31 = arith.addf %26, %30 : vector<20x768xf32>
    %c4 = arith.constant 4 : index
    %c0_35 = arith.constant 0 : index
    %32 = vector.load %arg11[%c4, %c0_35] : memref<24x768xbf16, #tpu.memory_space<vmem>>, vector<20x768xbf16>
    %c4_36 = arith.constant 4 : index
    %c0_37 = arith.constant 0 : index
    %c0_38 = arith.constant 0 : index
    %33 = vector.load %arg3[%c4_36, %c0_37, %c0_38] : memref<5x768x768xbf16, #tpu.memory_space<vmem>>, vector<1x768x768xbf16>
    %34 = vector.shape_cast %33 : vector<1x768x768xbf16> to vector<768x768xbf16>
    %cst_39 = arith.constant dense<0.000000e+00> : vector<20x768xf32>
    %35 = tpu.matmul %32, %34, %cst_39 {dimension_numbers = #tpu.dot_dimension_numbers<[1], [0], [0], [1], [0, 0, 1, 1], [], []>} : vector<20x768xbf16>, vector<768x768xbf16>, vector<20x768xf32> -> vector<20x768xf32>
    %36 = arith.addf %31, %35 : vector<20x768xf32>
    %37 = vector.extract_strided_slice %36 {offsets = [0, 0], sizes = [8, 768], strides = [1, 1]} : vector<20x768xf32> to vector<8x768xf32>
    %cst_40 = arith.constant dense<0xFF800000> : vector<768xf32>
    %38 = vector.multi_reduction <maximumf>, %37, %cst_40 [0] : vector<8x768xf32> to vector<768xf32>
    %39 = vector.shape_cast %38 : vector<768xf32> to vector<1x768xf32>
    %40 = vector.extract_strided_slice %36 {offsets = [10, 0], sizes = [8, 768], strides = [1, 1]} : vector<20x768xf32> to vector<8x768xf32>
    %cst_41 = arith.constant dense<0xFF800000> : vector<768xf32>
    %41 = vector.multi_reduction <maximumf>, %40, %cst_41 [0] : vector<8x768xf32> to vector<768xf32>
    %42 = vector.shape_cast %41 : vector<768xf32> to vector<1x768xf32>
    %43 = tpu.concatenate %39, %42 in 0 : vector<1x768xf32>, vector<1x768xf32> -> vector<2x768xf32>
    %c0_42 = arith.constant 0 : index
    %c0_43 = arith.constant 0 : index
    %44 = vector.load %arg4[%c0_42, %c0_43] : memref<1x768xf32, #tpu.memory_space<vmem>>, vector<1x768xf32>
    %45 = vector.broadcast %44 : vector<1x768xf32> to vector<2x768xf32>
    %46 = arith.addf %43, %45 : vector<2x768xf32>
    %cst_44 = arith.constant 0.000000e+00 : f32
    %47 = vector.broadcast %cst_44 : f32 to vector<2x768xf32>
    %48 = arith.maximumf %46, %47 : vector<2x768xf32>
    %c0_45 = arith.constant 0 : index
    %c0_46 = arith.constant 0 : index
    %c0_47 = arith.constant 0 : index
    %49 = vector.load %arg2[%c0_45, %c0_46, %c0_47] : memref<1x2x768xbf16, #tpu.memory_space<vmem>>, vector<1x2x768xbf16>
    %50 = vector.shape_cast %49 : vector<1x2x768xbf16> to vector<2x768xbf16>
    %c0_48 = arith.constant 0 : index
    %c0_49 = arith.constant 0 : index
    %51 = vector.load %arg5[%c0_48, %c0_49] : memref<768x256xbf16, #tpu.memory_space<vmem>>, vector<768x256xbf16>
    %cst_50 = arith.constant dense<0.000000e+00> : vector<2x256xf32>
    %52 = tpu.matmul %50, %51, %cst_50 {dimension_numbers = #tpu.dot_dimension_numbers<[1], [0], [0], [1], [0, 0, 1, 1], [], []>} : vector<2x768xbf16>, vector<768x256xbf16>, vector<2x256xf32> -> vector<2x256xf32>
    %53 = arith.truncf %48 : vector<2x768xf32> to vector<2x768xbf16>
    %c0_51 = arith.constant 0 : index
    %c0_52 = arith.constant 0 : index
    %54 = vector.load %arg6[%c0_51, %c0_52] : memref<768x256xbf16, #tpu.memory_space<vmem>>, vector<768x256xbf16>
    %cst_53 = arith.constant dense<0.000000e+00> : vector<2x256xf32>
    %55 = tpu.matmul %53, %54, %cst_53 {dimension_numbers = #tpu.dot_dimension_numbers<[1], [0], [0], [1], [0, 0, 1, 1], [], []>} : vector<2x768xbf16>, vector<768x256xbf16>, vector<2x256xf32> -> vector<2x256xf32>
    %56 = arith.addf %52, %55 : vector<2x256xf32>
    %c0_54 = arith.constant 0 : index
    %c0_55 = arith.constant 0 : index
    %57 = vector.load %arg7[%c0_54, %c0_55] : memref<1x256xf32, #tpu.memory_space<vmem>>, vector<1x256xf32>
    %58 = vector.broadcast %57 : vector<1x256xf32> to vector<2x256xf32>
    %59 = arith.addf %56, %58 : vector<2x256xf32>
    %cst_56 = arith.constant 0.000000e+00 : f32
    %60 = vector.broadcast %cst_56 : f32 to vector<2x256xf32>
    %61 = arith.maximumf %59, %60 : vector<2x256xf32>
    %62 = arith.truncf %61 : vector<2x256xf32> to vector<2x256xbf16>
    %c0_57 = arith.constant 0 : index
    %c0_58 = arith.constant 0 : index
    %63 = vector.load %arg8[%c0_57, %c0_58] : memref<256x128xbf16, #tpu.memory_space<vmem>>, vector<256x128xbf16>
    %cst_59 = arith.constant dense<0.000000e+00> : vector<2x128xf32>
    %64 = tpu.matmul %62, %63, %cst_59 {dimension_numbers = #tpu.dot_dimension_numbers<[1], [0], [0], [1], [0, 0, 1, 1], [], []>} : vector<2x256xbf16>, vector<256x128xbf16>, vector<2x128xf32> -> vector<2x128xf32>
    %c0_60 = arith.constant 0 : index
    %c0_61 = arith.constant 0 : index
    %65 = vector.load %arg9[%c0_60, %c0_61] : memref<1x128xf32, #tpu.memory_space<vmem>>, vector<1x128xf32>
    %66 = vector.broadcast %65 : vector<1x128xf32> to vector<2x128xf32>
    %67 = arith.addf %64, %66 : vector<2x128xf32>
    %68 = arith.negf %67 : vector<2x128xf32>
    %69 = math.exp %68 : vector<2x128xf32>
    %cst_62 = arith.constant 1.000000e+00 : f32
    %70 = vector.broadcast %cst_62 : f32 to vector<2x128xf32>
    %71 = arith.addf %70, %69 : vector<2x128xf32>
    %72 = arith.divf %70, %71 : vector<2x128xf32>
    %c0_63 = arith.constant 0 : index
    %c0_64 = arith.constant 0 : index
    %c0_65 = arith.constant 0 : index
    %73 = vector.load %arg10[%c0_63, %c0_64, %c0_65] : memref<1x2x128xf32, #tpu.memory_space<vmem>>, vector<1x2x128xf32>
    %74 = vector.shape_cast %73 : vector<1x2x128xf32> to vector<2x128xf32>
    %75 = vector.shape_cast %72 : vector<2x128xf32> to vector<1x2x128xf32>
    tpu.vector_store %arg10[%c0_63, %c0_64, %c0_65], %75 {strides = array<i32>} : memref<1x2x128xf32, #tpu.memory_space<vmem>>, vector<1x2x128xf32>,
    return
  }
  func.func @transform_0(%arg0: i32) -> (i32, i32, i32) {
    %c0_i32 = arith.constant 0 : i32
    %c0_i32_0 = arith.constant 0 : i32
    %c0_i32_1 = arith.constant 0 : i32
    return %arg0, %c0_i32, %c0_i32_0 : i32, i32, i32
  }
  func.func @transform_1(%arg0: i32) -> (i32, i32, i32) {
    %c0_i32 = arith.constant 0 : i32
    %c0_i32_0 = arith.constant 0 : i32
    %c0_i32_1 = arith.constant 0 : i32
    return %arg0, %c0_i32, %c0_i32_0 : i32, i32, i32
  }
  func.func @transform_2(%arg0: i32) -> (i32, i32, i32) {
    %c0_i32 = arith.constant 0 : i32
    %c0_i32_0 = arith.constant 0 : i32
    %c0_i32_1 = arith.constant 0 : i32
    %c0_i32_2 = arith.constant 0 : i32
    return %c0_i32, %c0_i32_0, %c0_i32_1 : i32, i32, i32
  }
  func.func @transform_3(%arg0: i32) -> (i32, i32) {
    %c0_i32 = arith.constant 0 : i32
    %c0_i32_0 = arith.constant 0 : i32
    %c0_i32_1 = arith.constant 0 : i32
    return %c0_i32, %c0_i32_0 : i32, i32
  }
  func.func @transform_4(%arg0: i32) -> (i32, i32) {
    %c0_i32 = arith.constant 0 : i32
    %c0_i32_0 = arith.constant 0 : i32
    %c0_i32_1 = arith.constant 0 : i32
    return %c0_i32, %c0_i32_0 : i32, i32
  }
  func.func @transform_5(%arg0: i32) -> (i32, i32) {
    %c0_i32 = arith.constant 0 : i32
    %c0_i32_0 = arith.constant 0 : i32
    %c0_i32_1 = arith.constant 0 : i32
    return %c0_i32, %c0_i32_0 : i32, i32
  }
  func.func @transform_6(%arg0: i32) -> (i32, i32) {
    %c0_i32 = arith.constant 0 : i32
    %c0_i32_0 = arith.constant 0 : i32
    %c0_i32_1 = arith.constant 0 : i32
    return %c0_i32, %c0_i32_0 : i32, i32
  }
  func.func @transform_7(%arg0: i32) -> (i32, i32) {
    %c0_i32 = arith.constant 0 : i32
    %c0_i32_0 = arith.constant 0 : i32
    %c0_i32_1 = arith.constant 0 : i32
    return %c0_i32, %c0_i32_0 : i32, i32
  }
  func.func @transform_8(%arg0: i32) -> (i32, i32) {
    %c0_i32 = arith.constant 0 : i32
    %c0_i32_0 = arith.constant 0 : i32
    %c0_i32_1 = arith.constant 0 : i32
    return %c0_i32, %c0_i32_0 : i32, i32
  }
  func.func @transform_9(%arg0: i32) -> (i32, i32, i32) {
    %c0_i32 = arith.constant 0 : i32
    %c0_i32_0 = arith.constant 0 : i32
    %c0_i32_1 = arith.constant 0 : i32
    return %arg0, %c0_i32, %c0_i32_0 : i32, i32, i32
  }
}

</mosaic_0001>

<bundles_post_ra>
// kernel: bert_textcnn_forward.1
= control target key start
LH: loop header
LB: loop body
LE: loop exit
PB: predicated region body
PF: predicated region fallthrough
CT: control target
= control target key end

     0   :  { %v19046_v2 = vmov 0   ;;  %vm720_vm0 = vsmask.f32 7424  ;;  %vm4955_vm1 = vcmask 1046528   ;;  %vm7210_vm2 = vsmask.f32 6400  ;;  %s24725_s0 = inlined_call_operand.vmem [shape: bf16[2,8,768], index: 0, kind: input, shape index: {}]   ;;  %s24726_s1 = inlined_call_operand.vmem [shape: bf16[1,2,768], index: 1, kind: input, shape index: {}]   ;;  %s24727_s2 = inlined_call_operand.vmem [shape: bf16[5,768,768], index: 2, kind: input, shape index: {}]   ;;  %s24728_s3 = inlined_call_operand.vmem [shape: f32[1,768], index: 3, kind: input, shape index: {}]   ;;  %s24729_s4 = inlined_call_operand.vmem [shape: bf16[768,256], index: 4, kind: input, shape index: {}]   ;;  %s24730_s5 = inlined_call_operand.vmem [shape: bf16[768,256], index: 5, kind: input, shape index: {}]   ;;  %s24731_s6 = inlined_call_operand.vmem [shape: f32[1,256], index: 6, kind: input, shape index: {}]   ;;  %s24732_s7 = inlined_call_operand.vmem [shape: bf16[256,128], index: 7, kind: input, shape index: {}]   ;;  %s24733_s8 = inlined_call_operand.vmem [shape: f32[1,128], index: 8, kind: input, shape index: {}]   ;;  %s24734_s9 = inlined_call_operand.hbm [shape: f32[1,2,128], index: 9, kind: output, shape index: {}]  }
   0x1   :  { %v16511_v0 = vld [vmem:[%s24727_s2 + $0x904] ss:$24 sps:$4 sm:$0xff]   ;;  %v16513_v1 = vld [vmem:[%s24727_s2 + $0xc14] ss:$24 sps:$4 sm:$0xff]   ;;  %34 = vst [vmem:[#allocation2] sm:$0x11] %v19046_v2 }
   0x2   :  { %61 = vst [vmem:[#allocation2 + $0x18] sm:$0x22] %v19046_v2  ;;  %89 = vst [vmem:[#allocation2 + $0x30] sm:$0xcc] %v19046_v2  ;;  %2263 = vmatprep.subr.bf16.mxu1 %v16511_v0  ;;  %v16515_v3 = vld [vmem:[%s24727_s2 + $0x900] ss:$24 sps:$4 sm:$0xff]   ;;  %2620 = vmatprep.subr.bf16.mxu0 %v16513_v1 }
   0x3   :  { %35 = vst [vmem:[#allocation2 + $0x8] sm:$0x11] %v19046_v2  ;;  %36 = vst [vmem:[#allocation2 + $0x10] sm:$0x11] %v19046_v2  ;;  %v16516_v4 = vld [vmem:[%s24727_s2 + $0xc10] ss:$24 sps:$4 sm:$0xff]   ;;  %2264 = vmatpush1.bf16.msra.mxu1 %v16515_v3 }
   0x4   :  { %62 = vst [vmem:[#allocation2 + $0x20] sm:$0x22] %v19046_v2  ;;  %63 = vst [vmem:[#allocation2 + $0x28] sm:$0x22] %v19046_v2  ;;  %v16517_v5 = vld [vmem:[%s24727_s2 + $0x934] ss:$24 sps:$4 sm:$0xff]   ;;  %2621 = vmatpush1.bf16.msra.mxu0 %v16516_v4 }
   0x5   :  { %90 = vst [vmem:[#allocation2 + $0x38] sm:$0xcc] %v19046_v2  ;;  %91 = vst [vmem:[#allocation2 + $0x40] sm:$0xcc] %v19046_v2  ;;  %v16519_v6 = vld [vmem:[%s24727_s2 + $0xc44] ss:$24 sps:$4 sm:$0xff]   ;;  %2265 = vmatprep.subr.bf16.mxu1 %v16517_v5 }
   0x6   :  { %v16521_v7 = vld [vmem:[%s24727_s2 + $0x930] ss:$24 sps:$4 sm:$0xff]   ;;  %v16522_v8 = vld [vmem:[%s24727_s2 + $0xc40] ss:$24 sps:$4 sm:$0xff]   ;;  %2622 = vmatprep.subr.bf16.mxu0 %v16519_v6  ;;  %v16523_v9 = vld [vmem:[%s24727_s2 + $0x964] ss:$24 sps:$4 sm:$0xff]  }
   0x7   :  { %v16525_v10 = vld [vmem:[%s24727_s2 + $0xc74] ss:$24 sps:$4 sm:$0xff]   ;;  %v16527_v11 = vld [vmem:[%s24727_s2 + $0x960] ss:$24 sps:$4 sm:$0xff]   ;;  %v16528_v12 = vld [vmem:[%s24727_s2 + $0xc70] ss:$24 sps:$4 sm:$0xff]   ;;  %2266 = vmatpush1.bf16.msra.mxu1 %v16521_v7 }
   0x8   :  { %2623 = vmatpush1.bf16.msra.mxu0 %v16522_v8  ;;  %v16529_v13 = vld [vmem:[%s24727_s2 + $0x994] ss:$24 sps:$4 sm:$0xff]   ;;  %2267 = vmatprep.subr.bf16.mxu1 %v16523_v9  ;;  %v16531_v14 = vld [vmem:[%s24727_s2 + $0xca4] ss:$24 sps:$4 sm:$0xff]   ;;  %v16533_v15 = vld [vmem:[%s24727_s2 + $0x990] ss:$24 sps:$4 sm:$0xff]  }
   0x9   :  { %2624 = vmatprep.subr.bf16.mxu0 %v16525_v10  ;;  %v16534_v16 = vld [vmem:[%s24727_s2 + $0xca0] ss:$24 sps:$4 sm:$0xff]   ;;  %v16535_v17 = vld [vmem:[%s24727_s2 + $0x9c4] ss:$24 sps:$4 sm:$0xff]   ;;  %v16537_v18 = vld [vmem:[%s24727_s2 + $0xcd4] ss:$24 sps:$4 sm:$0xff]  }
   0xa   :  { %v16539_v19 = vld [vmem:[%s24727_s2 + $0x9c0] ss:$24 sps:$4 sm:$0xff]   ;;  %v16540_v20 = vld [vmem:[%s24727_s2 + $0xcd0] ss:$24 sps:$4 sm:$0xff]   ;;  %v16541_v21 = vld [vmem:[%s24727_s2 + $0x9f4] ss:$24 sps:$4 sm:$0xff]  }
   0xb   :  { %2268 = vmatpush1.bf16.msra.mxu1 %v16527_v11  ;;  %v16543_v22 = vld [vmem:[%s24727_s2 + $0xd04] ss:$24 sps:$4 sm:$0xff]   ;;  %v16545_v23 = vld [vmem:[%s24727_s2 + $0x9f0] ss:$24 sps:$4 sm:$0xff]   ;;  %v16546_v24 = vld [vmem:[%s24727_s2 + $0xd00] ss:$24 sps:$4 sm:$0xff]  }
   0xc   :  { %2625 = vmatpush1.bf16.msra.mxu0 %v16528_v12  ;;  %2269 = vmatprep.subr.bf16.mxu1 %v16529_v13  ;;  %v16547_v25 = vld [vmem:[%s24727_s2 + $0xa24] ss:$24 sps:$4 sm:$0xff]   ;;  %v16549_v26 = vld [vmem:[%s24727_s2 + $0xd34] ss:$24 sps:$4 sm:$0xff]   ;;  %v16551_v27 = vld [vmem:[%s24727_s2 + $0xa20] ss:$24 sps:$4 sm:$0xff]  }
   0xd   :  { %2626 = vmatprep.subr.bf16.mxu0 %v16531_v14  ;;  %v16552_v28 = vld [vmem:[%s24727_s2 + $0xd30] ss:$24 sps:$4 sm:$0xff]   ;;  %v16553_v29 = vld [vmem:[%s24727_s2 + $0xa54] ss:$24 sps:$4 sm:$0xff]   ;;  %v16555_v30 = vld [vmem:[%s24727_s2 + $0xd64] ss:$24 sps:$4 sm:$0xff]  }
   0xe   :  { %v16557_v31 = vld [vmem:[%s24727_s2 + $0xa50] ss:$24 sps:$4 sm:$0xff]   ;;  %v16558_v32 = vld [vmem:[%s24727_s2 + $0xd60] ss:$24 sps:$4 sm:$0xff]   ;;  %v16559_v33 = vld [vmem:[%s24727_s2 + $0xa84] ss:$24 sps:$4 sm:$0xff]  }
   0xf   :  { %2270 = vmatpush1.bf16.msra.mxu1 %v16533_v15  ;;  %v16561_v34 = vld [vmem:[%s24727_s2 + $0xd94] ss:$24 sps:$4 sm:$0xff]   ;;  %v16563_v35 = vld [vmem:[%s24727_s2 + $0xa80] ss:$24 sps:$4 sm:$0xff]   ;;  %v16564_v36 = vld [vmem:[%s24727_s2 + $0xd90] ss:$24 sps:$4 sm:$0xff]  }
  0x10   :  { %2627 = vmatpush1.bf16.msra.mxu0 %v16534_v16  ;;  %2271 = vmatprep.subr.bf16.mxu1 %v16535_v17  ;;  %v16565_v37 = vld [vmem:[%s24727_s2 + $0xab4] ss:$24 sps:$4 sm:$0xff]   ;;  %v16567_v38 = vld [vmem:[%s24727_s2 + $0xdc4] ss:$24 sps:$4 sm:$0xff]   ;;  %v16569_v39 = vld [vmem:[%s24727_s2 + $0xab0] ss:$24 sps:$4 sm:$0xff]  }
  0x11   :  { %2628 = vmatprep.subr.bf16.mxu0 %v16537_v18  ;;  %v16570_v40 = vld [vmem:[%s24727_s2 + $0xdc0] ss:$24 sps:$4 sm:$0xff]   ;;  %v16571_v41 = vld [vmem:[%s24727_s2 + $0xae4] ss:$24 sps:$4 sm:$0xff]   ;;  %v16573_v42 = vld [vmem:[%s24727_s2 + $0xdf4] ss:$24 sps:$4 sm:$0xff]  }
  0x12   :  { %v16575_v43 = vld [vmem:[%s24727_s2 + $0xae0] ss:$24 sps:$4 sm:$0xff]   ;;  %v16576_v44 = vld [vmem:[%s24727_s2 + $0xdf0] ss:$24 sps:$4 sm:$0xff]   ;;  %v16577_v45 = vld [vmem:[%s24727_s2 + $0xb14] ss:$24 sps:$4 sm:$0xff]  }
  0x13   :  { %2272 = vmatpush1.bf16.msra.mxu1 %v16539_v19  ;;  %v16579_v46 = vld [vmem:[%s24727_s2 + $0xe24] ss:$24 sps:$4 sm:$0xff]   ;;  %v16581_v47 = vld [vmem:[%s24727_s2 + $0xb10] ss:$24 sps:$4 sm:$0xff]   ;;  %v16582_v48 = vld [vmem:[%s24727_s2 + $0xe20] ss:$24 sps:$4 sm:$0xff]  }
  0x14   :  { %2629 = vmatpush1.bf16.msra.mxu0 %v16540_v20  ;;  %2273 = vmatprep.subr.bf16.mxu1 %v16541_v21  ;;  %v37_v49 = vld [vmem:[%s24725_s0] sm:$0xff]  ;;  %v13313_v51 = vld [vmem:[%s24725_s0 + $0x18] sm:$0xff]  ;;  %v16585_v53 = vld [vmem:[%s24727_s2 + $0xe54] ss:$24 sps:$4 sm:$0xff]  }
  0x15   :  { %2630 = vmatprep.subr.bf16.mxu0 %v16543_v22  ;;  %v43_v50 = vrot.slane %v37_v49, 7  ;;  %v16583_v52 = vld [vmem:[%s24727_s2 + $0xb44] ss:$24 sps:$4 sm:$0xff]   ;;  %v71_v54 = vrot.slane %v13313_v51, 6  ;;  %v38_v55 = vld [vmem:[%s24725_s0 + $0x8] sm:$0xff] }
  0x16   :  { %v44_v57 = vrot.slane %v38_v55, 7  ;;  %v13314_v58 = vld [vmem:[%s24725_s0 + $0x20] sm:$0xff]  ;;  %v16588_v63 = vld [vmem:[%s24727_s2 + $0xe50] ss:$24 sps:$4 sm:$0xff]   ;;  %v16589_v1 = vld [vmem:[%s24727_s2 + $0xb74] ss:$24 sps:$4 sm:$0xff]  }
  0x17   :  { %2274 = vmatpush1.bf16.msra.mxu1 %v16545_v23  ;;  %v46_v56 = vrot.slane %v43_v50, 4  ;;  %55 = vst [vmem:[#allocation2] sm:$0xee] %v43_v50  ;;  %v74_v59 = vrot.slane %v71_v54, 4  ;;  %83 = vst [vmem:[#allocation2 + $0x18] sm:$0xcc] %v71_v54 }
  0x18   :  { %2631 = vmatpush1.bf16.msra.mxu0 %v16546_v24  ;;  %2275 = vmatprep.subr.bf16.mxu1 %v16547_v25  ;;  %v72_v60 = vrot.slane %v13314_v58, 6  ;;  %v16587_v61 = vld [vmem:[%s24727_s2 + $0xb40] ss:$24 sps:$4 sm:$0xff]   ;;  %v47_v62 = vrot.slane %v44_v57, 4  ;;  %56 = vst [vmem:[#allocation2 + $0x8] sm:$0xee] %v44_v57 }
  0x19   :  { %2632 = vmatprep.subr.bf16.mxu0 %v16549_v26  ;;  %58 = vst [vmem:[#allocation2 + $0x18] sm:$0x11] %v46_v56  ;;  %86 = vst [vmem:[#allocation2 + $0x30] sm:$0x33] %v74_v59  ;;  %v16591_v2 = vld [vmem:[%s24727_s2 + $0xe84] ss:$24 sps:$4 sm:$0xff]  }
  0x1a   :  { %v75_v0 = vrot.slane %v72_v60, 4  ;;  %84 = vst [vmem:[#allocation2 + $0x20] sm:$0xcc] %v72_v60  ;;  %59 = vst [vmem:[#allocation2 + $0x20] sm:$0x11] %v47_v62 }
  0x1b   :  { %2276 = vmatpush1.bf16.msra.mxu1 %v16551_v27  ;;  %v16593_v3 = vld [vmem:[%s24727_s2 + $0xb70] ss:$24 sps:$4 sm:$0xff]   ;;  %v16594_v4 = vld [vmem:[%s24727_s2 + $0xe80] ss:$24 sps:$4 sm:$0xff]   ;;  %v16595_v6 = vld [vmem:[%s24727_s2 + $0xba4] ss:$24 sps:$4 sm:$0xff]  }
  0x1c   :  { %2633 = vmatpush1.bf16.msra.mxu0 %v16552_v28  ;;  %2277 = vmatprep.subr.bf16.mxu1 %v16553_v29  ;;  %87 = vst [vmem:[#allocation2 + $0x38] sm:$0x33] %v75_v0  ;;  %v16597_v7 = vld [vmem:[%s24727_s2 + $0xeb4] ss:$24 sps:$4 sm:$0xff]   ;;  %v16599_v8 = vld [vmem:[%s24727_s2 + $0xba0] ss:$24 sps:$4 sm:$0xff]  }
  0x1d   :  { %2634 = vmatprep.subr.bf16.mxu0 %v16555_v30  ;;  %v16600_v9 = vld [vmem:[%s24727_s2 + $0xeb0] ss:$24 sps:$4 sm:$0xff]   ;;  %v16601_v12 = vld [vmem:[%s24727_s2 + $0xbd4] ss:$24 sps:$4 sm:$0xff]   ;;  %v16603_v16 = vld [vmem:[%s24727_s2 + $0xee4] ss:$24 sps:$4 sm:$0xff]  }
  0x1e   :  { %v92_v5 = vld [vmem:[#allocation2] sm:$0xff]  ;;  %v16605_v29 = vld [vmem:[%s24727_s2 + $0xbd0] ss:$24 sps:$4 sm:$0xff]   ;;  %v16623_v58 = vld [vmem:[%s24727_s2 + $0xc34] ss:$24 sps:$4 sm:$0xff]  }
  0x1f   :  { %2278 = vmatpush1.bf16.msra.mxu1 %v16557_v31  ;;  %v93_v11 = vld [vmem:[#allocation2 + $0x8] sm:$0xff] }
  0x20   :  { %2635 = vmatpush1.bf16.msra.mxu0 %v16558_v32  ;;  %2279 = vmatprep.subr.bf16.mxu1 %v16559_v33  ;;  %v95_v10 = vld [vmem:[#allocation2 + $0x18] sm:$0xff]  ;;  %v389_v13 = vld [vmem:[#allocation2 + $0x30] sm:$0x77] }
  0x21   :  { %2636 = vmatprep.subr.bf16.mxu0 %v16561_v34  ;;  %v19294_v14 = vcombine.high %v92_v5, %v95_v10  ;;  %v19296_v15 = vcombine.low %v92_v5, %v95_v10  ;;  %v19301_v17 = vcombine.high %v389_v13, %v389_v13  ;;  %v96_v18 = vld [vmem:[#allocation2 + $0x20] sm:$0xff]  ;;  %v19303_v19 = vcombine.low %v389_v13, %v389_v13  ;;  %v16614_v60 = vld [vmem:[%s24727_s2 + $0xf10] ss:$24 sps:$4 sm:$0xff]  }
  0x22   :  { %v19307_v23 = vcombine.high %v93_v11, %v96_v18  ;;  %v19320_v33 = vcombine.low %v93_v11, %v96_v18  ;;  %v16606_v34 = vld [vmem:[%s24727_s2 + $0xee0] ss:$24 sps:$4 sm:$0xff]   ;;  %v16630_v11 = vld [vmem:[%s24727_s2 + $0xf70] ss:$24 sps:$4 sm:$0xff]  }
  0x23   :  { %2280 = vmatpush1.bf16.msra.mxu1 %v16563_v35  ;;  %v734_v20 = vshrl.u32 %v19294_v14, 16  ;;  %v736_v21 = vshll.u32 %v19294_v14, 16  ;;  %v390_v22 = vld [vmem:[#allocation2 + $0x38] sm:$0x77]  ;;  %v722_v24 = vshrl.u32 %v19296_v15, 16  ;;  %v741_v25 = vshll.u32 %v19301_v17, 16 }
  0x24   :  { %2637 = vmatpush1.bf16.msra.mxu0 %v16564_v36  ;;  %2281 = vmatprep.subr.bf16.mxu1 %v16565_v37  ;;  %v19311_v26 = vcombine.high %v390_v22, %v390_v22  ;;  %v724_v27 = vshll.u32 %v19296_v15, 16  ;;  %v729_v28 = vshll.u32 %v19303_v19, 16  ;;  %v758_v31 = vshrl.u32 %v19307_v23, 16  ;;  %v16624_v5 = vld [vmem:[%s24727_s2 + $0xf40] ss:$24 sps:$4 sm:$0xff]  }
  0x25   :  { %2638 = vmatprep.subr.bf16.mxu0 %v16567_v38  ;;  %v738_v30 = vrot.slane %v736_v21, 1  ;;  %v760_v32 = vshll.u32 %v19307_v23, 16  ;;  %v743_v35 = vrot.slane %v741_v25, 1  ;;  %v796_v51 = vshrl.u32 %v19301_v17, 16  ;;  %v16633_v13 = vld [vmem:[%s24727_s2 + $0xc90] ss:$24 sps:$4 sm:$0xff]  }
  0x26   :  { %v765_v36 = vshll.u32 %v19311_v26, 16  ;;  %v726_v37 = vrot.slane %v724_v27, 1  ;;  %v731_v38 = vrot.slane %v729_v28, 1  ;;  %v802_v55 = vshrl.u32 %v19311_v26, 16  ;;  %v16636_v18 = vld [vmem:[%s24727_s2 + $0xfa0] ss:$24 sps:$4 sm:$0xff]  }
  0x27   :  { %2282 = vmatpush1.bf16.msra.mxu1 %v16569_v39  ;;  %v739_v39 = vor.u32 %v738_v30, %v734_v20  ;;  %v19355_v59 = vor.u32 %v796_v51, %v743_v35  ;;  %v793_v0 = vshrl.u32 %v19303_v19, 16  ;;  %v16644_v20 = vld [vmem:[%s24727_s2 + $0xfd4] ss:$24 sps:$4 sm:$0xff]   ;;  %v16639_v21 = vld [vmem:[%s24727_s2 + $0xcc0] ss:$24 sps:$4 sm:$0xff]  }
  0x28   :  { %2639 = vmatpush1.bf16.msra.mxu0 %v16570_v40  ;;  %2283 = vmatprep.subr.bf16.mxu1 %v16571_v41  ;;  %v16611_v40 = vld [vmem:[%s24727_s2 + $0xc04] ss:$24 sps:$4 sm:$0xff]   ;;  %v762_v41 = vrot.slane %v760_v32, 1  ;;  %v16645_v27 = vld [vmem:[%s24727_s2 + $0xcf0] ss:$24 sps:$4 sm:$0xff]  }
  0x29   :  { %2640 = vmatprep.subr.bf16.mxu0 %v16573_v42  ;;  %v19329_v42 = vcombine.low %v390_v22, %v390_v22  ;;  %v16647_v22 = vld [vmem:[%s24727_s2 + $0xcf4] ss:$24 sps:$4 sm:$0xff]   ;;  %v16650_v25 = vld [vmem:[%s24727_s2 + $0x1004] ss:$24 sps:$4 sm:$0xff]  }
  0x2a   :  { %v763_v49 = vor.u32 %v762_v41, %v758_v31  ;;  %v16653_v28 = vld [vmem:[%s24727_s2 + $0xd24] ss:$24 sps:$4 sm:$0xff]   ;;  %v16656_v30 = vld [vmem:[%s24727_s2 + $0x1034] ss:$24 sps:$4 sm:$0xff]   ;;  %v16651_v31 = vld [vmem:[%s24727_s2 + $0xd20] ss:$24 sps:$4 sm:$0xff]  }
  0x2b   :  { %2284 = vmatpush1.bf16.msra.mxu1 %v16575_v43  ;;  %v767_v43 = vrot.slane %v765_v36, 1  ;;  %v753_v50 = vshll.u32 %v19329_v42, 16  ;;  %v16659_v32 = vld [vmem:[%s24727_s2 + $0xd54] ss:$24 sps:$4 sm:$0xff]   ;;  %v16657_v36 = vld [vmem:[%s24727_s2 + $0xd50] ss:$24 sps:$4 sm:$0xff]  }
  0x2c   :  { %2641 = vmatpush1.bf16.msra.mxu0 %v16576_v44  ;;  %2285 = vmatprep.subr.bf16.mxu1 %v16577_v45  ;;  %v16616_v44 = vld [vmem:[%s24727_s2 + $0xf14] ss:$24 sps:$4 sm:$0xff]   ;;  %v727_v45 = vor.u32 %v726_v37, %v722_v24  ;;  %v16642_v24 = vld [vmem:[%s24727_s2 + $0xfd0] ss:$24 sps:$4 sm:$0xff]   ;;  %v16674_v51 = vld [vmem:[%s24727_s2 + $0x10c4] ss:$24 sps:$4 sm:$0xff]  }
  0x2d   :  { %2642 = vmatprep.subr.bf16.mxu0 %v16579_v46  ;;  %v746_v46 = vshrl.u32 %v19320_v33, 16  ;;  %v19350_v56 = vsel %vm720_vm0, %v763_v49, %v767_v43  ;;  %v755_v57 = vrot.slane %v753_v50, 1  ;;  %v19361_v62 = vor.u32 %v802_v55, %v767_v43  ;;  %v39_v37 = vld [vmem:[%s24725_s0 + $0x10] sm:$0xff]  ;;  %v16660_v43 = vld [vmem:[%s24727_s2 + $0x1060] ss:$24 sps:$4 sm:$0xff]  }
  0x2e   :  { %2652 = vmatprep.mubr.bf16.mxu0 %v19350_v56  ;;  %v16671_v49 = vld [vmem:[%s24727_s2 + $0xdb4] ss:$24 sps:$4 sm:$0xff]   ;;  %v16666_v50 = vld [vmem:[%s24727_s2 + $0x1090] ss:$24 sps:$4 sm:$0xff]   ;;  %v16672_v55 = vld [vmem:[%s24727_s2 + $0x10c0] ss:$24 sps:$4 sm:$0xff]  }
  0x2f   :  { %2286 = vmatpush1.bf16.msra.mxu1 %v16581_v47  ;;  %v748_v47 = vshll.u32 %v19320_v33, 16 }
  0x30   :  { %2643 = vmatpush1.bf16.msra.mxu0 %v16582_v48  ;;  %2287 = vmatprep.subr.bf16.mxu1 %v16583_v52  ;;  %v19337_v48 = vsel %vm720_vm0, %v739_v39, %v743_v35  ;;  %v16609_v52 = vld [vmem:[%s24727_s2 + $0xc00] ss:$24 sps:$4 sm:$0xff]   ;;  %v16662_v35 = vld [vmem:[%s24727_s2 + $0x1064] ss:$24 sps:$4 sm:$0xff]  }
  0x31   :  { %2644 = vmatprep.subr.bf16.mxu0 %v16585_v53  ;;  %v19345_v53 = vsel %vm720_vm0, %v727_v45, %v731_v38  ;;  %v750_v54 = vrot.slane %v748_v47, 1  ;;  %2295 = vmatprep.mubr.bf16.mxu1 %v19337_v48  ;;  %v16665_v39 = vld [vmem:[%s24727_s2 + $0xd84] ss:$24 sps:$4 sm:$0xff]   ;;  %v16663_v47 = vld [vmem:[%s24727_s2 + $0xd80] ss:$24 sps:$4 sm:$0xff]  }
  0x33   :  { %2288 = vmatpush1.bf16.msra.mxu1 %v16587_v61  ;;  %v751_v61 = vor.u32 %v750_v54, %v746_v46  ;;  %v16677_v54 = vld [vmem:[%s24727_s2 + $0xde4] ss:$24 sps:$4 sm:$0xff]  }
  0x34   :  { %2645 = vmatpush1.bf16.msra.mxu0 %v16588_v63  ;;  %2289 = vmatprep.subr.bf16.mxu1 %v16589_v1  ;;  %v16626_v63 = vld [vmem:[%s24727_s2 + $0xf44] ss:$24 sps:$4 sm:$0xff]  }
  0x35   :  { %2646 = vmatprep.subr.bf16.mxu0 %v16591_v2  ;;  %v19369_v1 = vsel %vm720_vm0, %v751_v61, %v755_v57  ;;  %v16621_v2 = vld [vmem:[%s24727_s2 + $0xc30] ss:$24 sps:$4 sm:$0xff]  }
  0x37   :  { %2290 = vmatpush1.bf16.msra.mxu1 %v16593_v3  ;;  %v16629_v3 = vld [vmem:[%s24727_s2 + $0xc64] ss:$24 sps:$4 sm:$0xff]  }
  0x38   :  { %2647 = vmatpush1.bf16.msra.mxu0 %v16594_v4  ;;  %2291 = vmatprep.subr.bf16.mxu1 %v16595_v6  ;;  %v799_v4 = vshrl.u32 %v19329_v42, 16  ;;  %v16632_v6 = vld [vmem:[%s24727_s2 + $0xf74] ss:$24 sps:$4 sm:$0xff]  }
  0x39   :  { %2648 = vmatprep.subr.bf16.mxu0 %v16597_v7  ;;  %v19387_v7 = vor.u32 %v793_v0, %v731_v38  ;;  %v13315_v38 = vld [vmem:[%s24725_s0 + $0x28] sm:$0xff] }
  0x3a   :  { %v19395_v10 = vor.u32 %v799_v4, %v755_v57  ;;  %v73_v41 = vrot.slane %v13315_v38, 6  ;;  %v16683_v0 = vld [vmem:[%s24727_s2 + $0xe14] ss:$24 sps:$4 sm:$0xff]   ;;  %v16678_v4 = vld [vmem:[%s24727_s2 + $0x10f0] ss:$24 sps:$4 sm:$0xff]  }
  0x3b   :  { %2292 = vmatpush1.bf16.msra.mxu1 %v16599_v8  ;;  %v16627_v8 = vld [vmem:[%s24727_s2 + $0xc60] ss:$24 sps:$4 sm:$0xff]   ;;  %v16702_v38 = vld [vmem:[%s24727_s2 + $0x11b0] ss:$24 sps:$4 sm:$0xff]  }
  0x3c   :  { %2649 = vmatpush1.bf16.msra.mxu0 %v16600_v9  ;;  %2293 = vmatprep.subr.bf16.mxu1 %v16601_v12  ;;  %v16635_v9 = vld [vmem:[%s24727_s2 + $0xc94] ss:$24 sps:$4 sm:$0xff]   ;;  %v16638_v12 = vld [vmem:[%s24727_s2 + $0xfa4] ss:$24 sps:$4 sm:$0xff]   ;;  %v76_v46 = vrot.slane %v73_v41, 4 }
  0x3d   :  { %2650 = vmatprep.subr.bf16.mxu0 %v16603_v16  ;;  %v16641_v16 = vld [vmem:[%s24727_s2 + $0xcc4] ss:$24 sps:$4 sm:$0xff]   ;;  %85 = vst [vmem:[#allocation2 + $0x28] sm:$0xcc] %v73_v41 }
  0x3e   :  { %88 = vst [vmem:[#allocation2 + $0x40] sm:$0x33] %v76_v46  ;;  %v16713_v46 = vld [vmem:[%s24727_s2 + $0xf04] ss:$24 sps:$4 sm:$0xff]  }
  0x3f   :  { %2294 = vmatpush1.bf16.msra.mxu1 %v16605_v29  ;;  %v16648_v29 = vld [vmem:[%s24727_s2 + $0x1000] ss:$24 sps:$4 sm:$0xff]  }
  0x40   :  { %2651 = vmatpush1.bf16.msra.mxu0 %v16606_v34  ;;  %2314 = vmatprep.subr.bf16.mxu1 %v16611_v40  ;;  %v16654_v34 = vld [vmem:[%s24727_s2 + $0x1030] ss:$24 sps:$4 sm:$0xff]   ;;  %v45_v40 = vrot.slane %v39_v37, 7  ;;  %v16699_v37 = vld [vmem:[%s24727_s2 + $0xea0] ss:$24 sps:$4 sm:$0xff]  }
  0x41   :  { %2671 = vmatprep.subr.bf16.mxu0 %v16616_v44  ;;  %v16668_v44 = vld [vmem:[%s24727_s2 + $0x1094] ss:$24 sps:$4 sm:$0xff]  }
  0x42   :  { %2296 = vmatmul.mubr.bf16.vlgmr.msra.gmra.mrb[0].mxu1 %v19345_v53  ;;  %v48_v45 = vrot.slane %v45_v40, 4  ;;  %57 = vst [vmem:[#allocation2 + $0x10] sm:$0xee] %v45_v40 }
  0x43   :  { %2315 = vmatpush1.bf16.msra.mxu1 %v16609_v52  ;;  %2305 = vmatprep.mubr.bf16.mxu1 %v19355_v59  ;;  %v16669_v52 = vld [vmem:[%s24727_s2 + $0xdb0] ss:$24 sps:$4 sm:$0xff]  }
  0x44   :  { %2653 = vmatmul.mubr.bf16.vlgmr.msra.gmra.mrb[0].mxu0 %v19369_v1  ;;  %2316 = vmatprep.subr.bf16.mxu1 %v16623_v58  ;;  %60 = vst [vmem:[#allocation2 + $0x28] sm:$0x11] %v48_v45  ;;  %v16680_v58 = vld [vmem:[%s24727_s2 + $0x10f4] ss:$24 sps:$4 sm:$0xff]   ;;  %v16705_v45 = vld [vmem:[%s24727_s2 + $0xed0] ss:$24 sps:$4 sm:$0xff]  }
  0x45   :  { %2672 = vmatpush1.bf16.msra.mxu0 %v16614_v60  ;;  %2662 = vmatprep.mubr.bf16.mxu0 %v19361_v62  ;;  %v16675_v60 = vld [vmem:[%s24727_s2 + $0xde0] ss:$24 sps:$4 sm:$0xff]  }
  0x46   :  { %2673 = vmatprep.subr.bf16.mxu0 %v16626_v63  ;;  %v391_v63 = vld [vmem:[#allocation2 + $0x40] sm:$0x77] }
  0x47   :  { %2317 = vmatpush1.bf16.msra.mxu1 %v16621_v2 }
  0x48   :  { %2318 = vmatprep.subr.bf16.mxu1 %v16629_v3  ;;  %v19504_v3 = vcombine.high %v391_v63, %v391_v63 }
  0x49   :  { %2674 = vmatpush1.bf16.msra.mxu0 %v16624_v5  ;;  %v94_v57 = vld [vmem:[#allocation2 + $0x10] sm:$0xff]  ;;  %v16686_v5 = vld [vmem:[%s24727_s2 + $0x1124] ss:$24 sps:$4 sm:$0xff]  }
  0x4a   :  { %2675 = vmatprep.subr.bf16.mxu0 %v16632_v6  ;;  %2306 = vmatmul.mubr.bf16.gmra.mrb[4].mxu1 %v19387_v7 }
  0x4b   :  { %2319 = vmatpush1.bf16.msra.mxu1 %v16627_v8  ;;  %2346 = vmatprep.mubr.bf16.mxu1 %v19350_v56  ;;  %v97_v61 = vld [vmem:[#allocation2 + $0x28] sm:$0xff] }
  0x4c   :  { %2320 = vmatprep.subr.bf16.mxu1 %v16635_v9  ;;  %2663 = vmatmul.mubr.bf16.gmra.mrb[4].mxu0 %v19395_v10  ;;  %v19502_v2 = vcombine.high %v94_v57, %v97_v61  ;;  %v789_v9 = vshll.u32 %v19504_v3, 16 }
  0x4d   :  { %2676 = vmatpush1.bf16.msra.mxu0 %v16630_v11  ;;  %v16681_v11 = vld [vmem:[%s24727_s2 + $0xe10] ss:$24 sps:$4 sm:$0xff]  }
  0x4e   :  { %2677 = vmatprep.subr.bf16.mxu0 %v16638_v12  ;;  %v782_v6 = vshrl.u32 %v19502_v2, 16  ;;  %v784_v8 = vshll.u32 %v19502_v2, 16  ;;  %v16689_v12 = vld [vmem:[%s24727_s2 + $0xe44] ss:$24 sps:$4 sm:$0xff]  }
  0x4f   :  { %2321 = vmatpush1.bf16.msra.mxu1 %v16633_v13 }
  0x50   :  { %2322 = vmatprep.subr.bf16.mxu1 %v16641_v16  ;;  %v786_v13 = vrot.slane %v784_v8, 1  ;;  %v791_v16 = vrot.slane %v789_v9, 1  ;;  %v16727_v8 = vld [vmem:[%s24727_s2 + $0xf60] ss:$24 sps:$4 sm:$0xff]   ;;  %v16735_v9 = vld [vmem:[%s24727_s2 + $0xf94] ss:$24 sps:$4 sm:$0xff]  }
  0x51   :  { %2678 = vmatpush1.bf16.msra.mxu0 %v16636_v18  ;;  %v16684_v18 = vld [vmem:[%s24727_s2 + $0x1120] ss:$24 sps:$4 sm:$0xff]  }
  0x52   :  { %2679 = vmatprep.subr.bf16.mxu0 %v16644_v20  ;;  %v16692_v20 = vld [vmem:[%s24727_s2 + $0x1154] ss:$24 sps:$4 sm:$0xff]  }
  0x53   :  { %2323 = vmatpush1.bf16.msra.mxu1 %v16639_v21  ;;  %v787_v21 = vor.u32 %v786_v13, %v782_v6  ;;  %v16732_v6 = vld [vmem:[%s24727_s2 + $0x64] ss:$24 sps:$4 sm:$0xff]   ;;  %v16738_v13 = vld [vmem:[%s24727_s2 + $0x94] ss:$24 sps:$4 sm:$0xff]  }
  0x54   :  { %2324 = vmatprep.subr.bf16.mxu1 %v16647_v22  ;;  %v16687_v22 = vld [vmem:[%s24727_s2 + $0xe40] ss:$24 sps:$4 sm:$0xff]  }
  0x55   :  { %2680 = vmatpush1.bf16.msra.mxu0 %v16642_v24  ;;  %v16695_v24 = vld [vmem:[%s24727_s2 + $0xe74] ss:$24 sps:$4 sm:$0xff]  }
  0x56   :  { %2681 = vmatprep.subr.bf16.mxu0 %v16650_v25  ;;  %v19534_v25 = vsel %vm720_vm0, %v787_v21, %v791_v16  ;;  %v16744_v21 = vld [vmem:[%s24727_s2 + $0xc4] ss:$24 sps:$4 sm:$0xff]  }
  0x57   :  { %2325 = vmatpush1.bf16.msra.mxu1 %v16645_v27  ;;  %v16690_v27 = vld [vmem:[%s24727_s2 + $0x1150] ss:$24 sps:$4 sm:$0xff]   ;;  %2703 = vmatprep.mubr.bf16.mxu0 %v19534_v25 }
  0x58   :  { %2326 = vmatprep.subr.bf16.mxu1 %v16653_v28  ;;  %v19539_v28 = vcombine.low %v94_v57, %v97_v61  ;;  %v16718_v57 = vld [vmem:[%s24727_s2] ss:$24 sps:$4 sm:$0xff]   ;;  %v16726_v61 = vld [vmem:[%s24727_s2 + $0x34] ss:$24 sps:$4 sm:$0xff]  }
  0x59   :  { %2682 = vmatpush1.bf16.msra.mxu0 %v16648_v29  ;;  %v16698_v29 = vld [vmem:[%s24727_s2 + $0x1184] ss:$24 sps:$4 sm:$0xff]  }
  0x5a   :  { %2683 = vmatprep.subr.bf16.mxu0 %v16656_v30  ;;  %v16693_v30 = vld [vmem:[%s24727_s2 + $0xe70] ss:$24 sps:$4 sm:$0xff]   ;;  %v770_v40 = vshrl.u32 %v19539_v28, 16 }
  0x5b   :  { %2327 = vmatpush1.bf16.msra.mxu1 %v16651_v31  ;;  %v16701_v31 = vld [vmem:[%s24727_s2 + $0xea4] ss:$24 sps:$4 sm:$0xff]  }
  0x5c   :  { %2328 = vmatprep.subr.bf16.mxu1 %v16659_v32  ;;  %v16696_v32 = vld [vmem:[%s24727_s2 + $0x1180] ss:$24 sps:$4 sm:$0xff]  }
  0x5d   :  { %2684 = vmatpush1.bf16.msra.mxu0 %v16654_v34  ;;  %v19554_v34 = vcombine.low %v391_v63, %v391_v63  ;;  %v16721_v63 = vld [vmem:[%s24727_s2 + $0xf30] ss:$24 sps:$4 sm:$0xff]  }
  0x5e   :  { %2685 = vmatprep.subr.bf16.mxu0 %v16662_v35  ;;  %v772_v35 = vshll.u32 %v19539_v28, 16 }
  0x5f   :  { %2329 = vmatpush1.bf16.msra.mxu1 %v16657_v36  ;;  %v16704_v36 = vld [vmem:[%s24727_s2 + $0x11b4] ss:$24 sps:$4 sm:$0xff]  }
  0x60   :  { %2330 = vmatprep.subr.bf16.mxu1 %v16665_v39  ;;  %v16707_v39 = vld [vmem:[%s24727_s2 + $0xed4] ss:$24 sps:$4 sm:$0xff]   ;;  %v774_v41 = vrot.slane %v772_v35, 1  ;;  %v16756_v35 = vld [vmem:[%s24727_s2 + $0x124] ss:$24 sps:$4 sm:$0xff]  }
  0x61   :  { %2686 = vmatpush1.bf16.msra.mxu0 %v16660_v43  ;;  %v777_v43 = vshll.u32 %v19554_v34, 16 }
  0x62   :  { %2687 = vmatprep.subr.bf16.mxu0 %v16668_v44  ;;  %v16710_v44 = vld [vmem:[%s24727_s2 + $0x11e4] ss:$24 sps:$4 sm:$0xff]  }
  0x63   :  { %2331 = vmatpush1.bf16.msra.mxu1 %v16663_v47  ;;  %v16708_v47 = vld [vmem:[%s24727_s2 + $0x11e0] ss:$24 sps:$4 sm:$0xff]  }
  0x64   :  { %2332 = vmatprep.subr.bf16.mxu1 %v16671_v49  ;;  %v775_v49 = vor.u32 %v774_v41, %v770_v40  ;;  %v16757_v40 = vld [vmem:[%s24727_s2 + $0x1050] ss:$24 sps:$4 sm:$0xff]   ;;  %v16765_v41 = vld [vmem:[%s24727_s2 + $0x1084] ss:$24 sps:$4 sm:$0xff]  }
  0x65   :  { %2688 = vmatpush1.bf16.msra.mxu0 %v16666_v50  ;;  %v779_v50 = vrot.slane %v777_v43, 1  ;;  %v16760_v43 = vld [vmem:[%s24727_s2 + $0x150] ss:$24 sps:$4 sm:$0xff]  }
  0x66   :  { %2689 = vmatprep.subr.bf16.mxu0 %v16674_v51  ;;  %v808_v51 = vshrl.u32 %v19504_v3, 16 }
  0x67   :  { %2333 = vmatpush1.bf16.msra.mxu1 %v16669_v52  ;;  %v16720_v52 = vld [vmem:[%s24727_s2 + $0x4] ss:$24 sps:$4 sm:$0xff]  }
  0x68   :  { %2334 = vmatprep.subr.bf16.mxu1 %v16677_v54  ;;  %v16711_v54 = vld [vmem:[%s24727_s2 + $0xf00] ss:$24 sps:$4 sm:$0xff]  }
  0x69   :  { %2690 = vmatpush1.bf16.msra.mxu0 %v16672_v55  ;;  %v16723_v55 = vld [vmem:[%s24727_s2 + $0xf34] ss:$24 sps:$4 sm:$0xff]  }
  0x6a   :  { %2691 = vmatprep.subr.bf16.mxu0 %v16680_v58  ;;  %v19597_v58 = vsel %vm720_vm0, %v775_v49, %v779_v50  ;;  %v16774_v49 = vld [vmem:[%s24727_s2 + $0x1b4] ss:$24 sps:$4 sm:$0xff]  }
  0x6b   :  { %2335 = vmatpush1.bf16.msra.mxu1 %v16675_v60  ;;  %v19599_v60 = vor.u32 %v808_v51, %v791_v16  ;;  %v16733_v16 = vld [vmem:[%s24727_s2 + $0xf90] ss:$24 sps:$4 sm:$0xff]   ;;  %v16777_v51 = vld [vmem:[%s24727_s2 + $0x10e4] ss:$24 sps:$4 sm:$0xff]  }
  0x6c   :  { %2336 = vmatprep.subr.bf16.mxu1 %v16683_v0  ;;  %v16729_v0 = vld [vmem:[%s24727_s2 + $0xf64] ss:$24 sps:$4 sm:$0xff]  }
  0x6d   :  { %2692 = vmatpush1.bf16.msra.mxu0 %v16678_v4  ;;  %v805_v4 = vshrl.u32 %v19554_v34, 16 }
  0x6e   :  { %2693 = vmatprep.subr.bf16.mxu0 %v16686_v5  ;;  %v16724_v5 = vld [vmem:[%s24727_s2 + $0x30] ss:$24 sps:$4 sm:$0xff]  }
  0x6f   :  { %2337 = vmatpush1.bf16.msra.mxu1 %v16681_v11  ;;  %v19627_v11 = vor.u32 %v805_v4, %v779_v50  ;;  %v16769_v50 = vld [vmem:[%s24727_s2 + $0x10b0] ss:$24 sps:$4 sm:$0xff]   ;;  %v16789_v4 = vld [vmem:[%s24727_s2 + $0x1144] ss:$24 sps:$4 sm:$0xff]  }
  0x70   :  { %2338 = vmatprep.subr.bf16.mxu1 %v16689_v12  ;;  %v16730_v12 = vld [vmem:[%s24727_s2 + $0x60] ss:$24 sps:$4 sm:$0xff]  }
  0x71   :  { %2694 = vmatpush1.bf16.msra.mxu0 %v16684_v18  ;;  %v16741_v18 = vld [vmem:[%s24727_s2 + $0xfc4] ss:$24 sps:$4 sm:$0xff]  }
  0x72   :  { %2695 = vmatprep.subr.bf16.mxu0 %v16692_v20  ;;  %v16736_v20 = vld [vmem:[%s24727_s2 + $0x90] ss:$24 sps:$4 sm:$0xff]  }
  0x73   :  { %2339 = vmatpush1.bf16.msra.mxu1 %v16687_v22  ;;  %v16739_v22 = vld [vmem:[%s24727_s2 + $0xfc0] ss:$24 sps:$4 sm:$0xff]  }
  0x74   :  { %2340 = vmatprep.subr.bf16.mxu1 %v16695_v24  ;;  %v16747_v24 = vld [vmem:[%s24727_s2 + $0xff4] ss:$24 sps:$4 sm:$0xff]  }
  0x75   :  { %2696 = vmatpush1.bf16.msra.mxu0 %v16690_v27  ;;  %v16742_v27 = vld [vmem:[%s24727_s2 + $0xc0] ss:$24 sps:$4 sm:$0xff]  }
  0x76   :  { %2697 = vmatprep.subr.bf16.mxu0 %v16698_v29  ;;  %v16750_v29 = vld [vmem:[%s24727_s2 + $0xf4] ss:$24 sps:$4 sm:$0xff]  }
  0x77   :  { %2341 = vmatpush1.bf16.msra.mxu1 %v16693_v30  ;;  %v16745_v30 = vld [vmem:[%s24727_s2 + $0xff0] ss:$24 sps:$4 sm:$0xff]  }
  0x78   :  { %2342 = vmatprep.subr.bf16.mxu1 %v16701_v31  ;;  %v16753_v31 = vld [vmem:[%s24727_s2 + $0x1024] ss:$24 sps:$4 sm:$0xff]  }
  0x79   :  { %2698 = vmatpush1.bf16.msra.mxu0 %v16696_v32  ;;  %v16748_v32 = vld [vmem:[%s24727_s2 + $0xf0] ss:$24 sps:$4 sm:$0xff]  }
  0x7a   :  { %2699 = vmatprep.subr.bf16.mxu0 %v16704_v36  ;;  %v16751_v36 = vld [vmem:[%s24727_s2 + $0x1020] ss:$24 sps:$4 sm:$0xff]  }
  0x7b   :  { %2343 = vmatpush1.bf16.msra.mxu1 %v16699_v37  ;;  %v16759_v37 = vld [vmem:[%s24727_s2 + $0x1054] ss:$24 sps:$4 sm:$0xff]  }
  0x7c   :  { %2344 = vmatprep.subr.bf16.mxu1 %v16707_v39  ;;  %v16762_v39 = vld [vmem:[%s24727_s2 + $0x154] ss:$24 sps:$4 sm:$0xff]  }
  0x7d   :  { %2700 = vmatpush1.bf16.msra.mxu0 %v16702_v38  ;;  %v16754_v38 = vld [vmem:[%s24727_s2 + $0x120] ss:$24 sps:$4 sm:$0xff]  }
  0x7e   :  { %2701 = vmatprep.subr.bf16.mxu0 %v16710_v44  ;;  %v16768_v44 = vld [vmem:[%s24727_s2 + $0x184] ss:$24 sps:$4 sm:$0xff]  }
  0x7f   :  { %2345 = vmatpush1.bf16.msra.mxu1 %v16705_v45  ;;  %v16763_v45 = vld [vmem:[%s24727_s2 + $0x1080] ss:$24 sps:$4 sm:$0xff]  }
  0x80   :  { %2365 = vmatprep.subr.bf16.mxu1 %v16713_v46  ;;  %v16771_v46 = vld [vmem:[%s24727_s2 + $0x10b4] ss:$24 sps:$4 sm:$0xff]  }
  0x81   :  { %2702 = vmatpush1.bf16.msra.mxu0 %v16708_v47  ;;  %v16766_v47 = vld [vmem:[%s24727_s2 + $0x180] ss:$24 sps:$4 sm:$0xff]  }
  0x82   :  { %4189 = vmatprep.subr.bf16.mxu0 %v16720_v52  ;;  %2347 = vmatmul.mubr.bf16.vlgmr.msra.gmra.mrb[0].mxu1 %v19369_v1  ;;  %v16772_v52 = vld [vmem:[%s24727_s2 + $0x1b0] ss:$24 sps:$4 sm:$0xff]  }
  0x83   :  { %2366 = vmatpush1.bf16.msra.mxu1 %v16711_v54  ;;  %2356 = vmatprep.mubr.bf16.mxu1 %v19361_v62  ;;  %v16780_v54 = vld [vmem:[%s24727_s2 + $0x1e4] ss:$24 sps:$4 sm:$0xff]  }
  0x84   :  { %2704 = vmatmul.mubr.bf16.vlgmr.msra.gmra.mrb[0].mxu0 %v19597_v58  ;;  %2367 = vmatprep.subr.bf16.mxu1 %v16723_v55  ;;  %v16775_v55 = vld [vmem:[%s24727_s2 + $0x10e0] ss:$24 sps:$4 sm:$0xff]  }
  0x85   :  { %4190 = vmatpush1.bf16.msra.mxu0 %v16718_v57  ;;  %2713 = vmatprep.mubr.bf16.mxu0 %v19599_v60  ;;  %v16783_v57 = vld [vmem:[%s24727_s2 + $0x1114] ss:$24 sps:$4 sm:$0xff]  }
  0x86   :  { %4191 = vmatprep.subr.bf16.mxu0 %v16726_v61  ;;  %v16778_v61 = vld [vmem:[%s24727_s2 + $0x1e0] ss:$24 sps:$4 sm:$0xff]  }
  0x87   :  { %2368 = vmatpush1.bf16.msra.mxu1 %v16721_v63  ;;  %v16786_v63 = vld [vmem:[%s24727_s2 + $0x214] ss:$24 sps:$4 sm:$0xff]  }
  0x88   :  { %2369 = vmatprep.subr.bf16.mxu1 %v16729_v0  ;;  %v16781_v0 = vld [vmem:[%s24727_s2 + $0x1110] ss:$24 sps:$4 sm:$0xff]  }
  0x89   :  { %4192 = vmatpush1.bf16.msra.mxu0 %v16724_v5  ;;  %v16784_v5 = vld [vmem:[%s24727_s2 + $0x210] ss:$24 sps:$4 sm:$0xff]  }
  0x8a   :  { %4193 = vmatprep.subr.bf16.mxu0 %v16732_v6  ;;  %2357 = vmatmul.mubr.bf16.gmra.mrb[4].mxu1 %v19395_v10  ;;  %v16792_v6 = vld [vmem:[%s24727_s2 + $0x244] ss:$24 sps:$4 sm:$0xff]  }
  0x8b   :  { %2370 = vmatpush1.bf16.msra.mxu1 %v16727_v8  ;;  %2397 = vmatprep.mubr.bf16.mxu1 %v19534_v25  ;;  %v16787_v8 = vld [vmem:[%s24727_s2 + $0x1140] ss:$24 sps:$4 sm:$0xff]  }
  0x8c   :  { %2371 = vmatprep.subr.bf16.mxu1 %v16735_v9  ;;  %2714 = vmatmul.mubr.bf16.gmra.mrb[4].mxu0 %v19627_v11  ;;  %v16795_v9 = vld [vmem:[%s24727_s2 + $0x1174] ss:$24 sps:$4 sm:$0xff]  }
  0x8d   :  { %4194 = vmatpush1.bf16.msra.mxu0 %v16730_v12  ;;  %4221 = vmatprep.mubr.bf16.mxu0 %v19294_v14  ;;  %v16790_v12 = vld [vmem:[%s24727_s2 + $0x240] ss:$24 sps:$4 sm:$0xff]  }
  0x8e   :  { %4195 = vmatprep.subr.bf16.mxu0 %v16738_v13  ;;  %v16798_v13 = vld [vmem:[%s24727_s2 + $0x274] ss:$24 sps:$4 sm:$0xff]  }
  0x8f   :  { %2372 = vmatpush1.bf16.msra.mxu1 %v16733_v16  ;;  %v16793_v16 = vld [vmem:[%s24727_s2 + $0x1170] ss:$24 sps:$4 sm:$0xff]  }
  0x90   :  { %2373 = vmatprep.subr.bf16.mxu1 %v16741_v18  ;;  %v16801_v18 = vld [vmem:[%s24727_s2 + $0x11a4] ss:$24 sps:$4 sm:$0xff]  }
  0x91   :  { %4196 = vmatpush1.bf16.msra.mxu0 %v16736_v20  ;;  %v16796_v20 = vld [vmem:[%s24727_s2 + $0x270] ss:$24 sps:$4 sm:$0xff]  }
  0x92   :  { %4197 = vmatprep.subr.bf16.mxu0 %v16744_v21  ;;  %v16804_v21 = vld [vmem:[%s24727_s2 + $0x2a4] ss:$24 sps:$4 sm:$0xff]  }
  0x93   :  { %2374 = vmatpush1.bf16.msra.mxu1 %v16739_v22  ;;  %v16799_v22 = vld [vmem:[%s24727_s2 + $0x11a0] ss:$24 sps:$4 sm:$0xff]  }
  0x94   :  { %2375 = vmatprep.subr.bf16.mxu1 %v16747_v24  ;;  %v16807_v24 = vld [vmem:[%s24727_s2 + $0x11d4] ss:$24 sps:$4 sm:$0xff]  }
  0x95   :  { %4198 = vmatpush1.bf16.msra.mxu0 %v16742_v27  ;;  %v16802_v27 = vld [vmem:[%s24727_s2 + $0x2a0] ss:$24 sps:$4 sm:$0xff]  }
  0x96   :  { %4199 = vmatprep.subr.bf16.mxu0 %v16750_v29  ;;  %v16810_v29 = vld [vmem:[%s24727_s2 + $0x2d4] ss:$24 sps:$4 sm:$0xff]  }
  0x97   :  { %2376 = vmatpush1.bf16.msra.mxu1 %v16745_v30  ;;  %v16805_v30 = vld [vmem:[%s24727_s2 + $0x11d0] ss:$24 sps:$4 sm:$0xff]  }
  0x98   :  { %2377 = vmatprep.subr.bf16.mxu1 %v16753_v31  ;;  %v16813_v31 = vld [vmem:[%s24727_s2 + $0x90c] ss:$24 sps:$4 sm:$0xff]  }
  0x99   :  { %4200 = vmatpush1.bf16.msra.mxu0 %v16748_v32  ;;  %v16808_v32 = vld [vmem:[%s24727_s2 + $0x2d0] ss:$24 sps:$4 sm:$0xff]  }
  0x9a   :  { %4201 = vmatprep.subr.bf16.mxu0 %v16756_v35  ;;  %v16816_v35 = vld [vmem:[%s24727_s2 + $0x304] ss:$24 sps:$4 sm:$0xff]  }
  0x9b   :  { %2378 = vmatpush1.bf16.msra.mxu1 %v16751_v36  ;;  %v98_v36 = vld [vmem:[#allocation2 + $0x30] sm:$0x33] }
  0x9c   :  { %2379 = vmatprep.subr.bf16.mxu1 %v16759_v37  ;;  %v16811_v37 = vld [vmem:[%s24727_s2 + $0x908] ss:$24 sps:$4 sm:$0xff]  }
  0x9d   :  { %4202 = vmatpush1.bf16.msra.mxu0 %v16754_v38  ;;  %v16819_v38 = vld [vmem:[%s24727_s2 + $0x93c] ss:$24 sps:$4 sm:$0xff]  }
  0x9e   :  { %4203 = vmatprep.subr.bf16.mxu0 %v16762_v39  ;;  %v16814_v39 = vld [vmem:[%s24727_s2 + $0x300] ss:$24 sps:$4 sm:$0xff]  }
  0x9f   :  { %2380 = vmatpush1.bf16.msra.mxu1 %v16757_v40  ;;  %v19804_v40 = vcombine.high %v98_v36, %v98_v36 }
  0xa0   :  { %2381 = vmatprep.subr.bf16.mxu1 %v16765_v41  ;;  %v16822_v41 = vld [vmem:[%s24727_s2 + $0x334] ss:$24 sps:$4 sm:$0xff]  }
  0xa1   :  { %4204 = vmatpush1.bf16.msra.mxu0 %v16760_v43  ;;  %v16817_v43 = vld [vmem:[%s24727_s2 + $0x938] ss:$24 sps:$4 sm:$0xff]  }
  0xa2   :  { %4205 = vmatprep.subr.bf16.mxu0 %v16768_v44  ;;  %v16825_v44 = vld [vmem:[%s24727_s2 + $0x96c] ss:$24 sps:$4 sm:$0xff]  }
  0xa3   :  { %2382 = vmatpush1.bf16.msra.mxu1 %v16763_v45  ;;  %v16820_v45 = vld [vmem:[%s24727_s2 + $0x330] ss:$24 sps:$4 sm:$0xff]  }
  0xa4   :  { %2383 = vmatprep.subr.bf16.mxu1 %v16771_v46  ;;  %v16828_v46 = vld [vmem:[%s24727_s2 + $0x364] ss:$24 sps:$4 sm:$0xff]  }
  0xa5   :  { %4206 = vmatpush1.bf16.msra.mxu0 %v16766_v47  ;;  %v16823_v47 = vld [vmem:[%s24727_s2 + $0x968] ss:$24 sps:$4 sm:$0xff]  }
  0xa6   :  { %4207 = vmatprep.subr.bf16.mxu0 %v16774_v49  ;;  %v16831_v49 = vld [vmem:[%s24727_s2 + $0x99c] ss:$24 sps:$4 sm:$0xff]  }
  0xa7   :  { %2384 = vmatpush1.bf16.msra.mxu1 %v16769_v50  ;;  %v19831_v50 = vcombine.low %v98_v36, %v98_v36  ;;  %v16873_v36 = vld [vmem:[%s24727_s2 + $0xaec] ss:$24 sps:$4 sm:$0xff]  }
  0xa8   :  { %2385 = vmatprep.subr.bf16.mxu1 %v16777_v51  ;;  %v16826_v51 = vld [vmem:[%s24727_s2 + $0x360] ss:$24 sps:$4 sm:$0xff]  }
  0xa9   :  { %4208 = vmatpush1.bf16.msra.mxu0 %v16772_v52  ;;  %v16834_v52 = vld [vmem:[%s24727_s2 + $0x394] ss:$24 sps:$4 sm:$0xff]  }
  0xaa   :  { %4209 = vmatprep.subr.bf16.mxu0 %v16780_v54  ;;  %v16829_v54 = vld [vmem:[%s24727_s2 + $0x998] ss:$24 sps:$4 sm:$0xff]  }
  0xab   :  { %2386 = vmatpush1.bf16.msra.mxu1 %v16775_v55  ;;  %v16837_v55 = vld [vmem:[%s24727_s2 + $0x9cc] ss:$24 sps:$4 sm:$0xff]  }
  0xac   :  { %2387 = vmatprep.subr.bf16.mxu1 %v16783_v57  ;;  %v16832_v57 = vld [vmem:[%s24727_s2 + $0x390] ss:$24 sps:$4 sm:$0xff]  }
  0xad   :  { %4210 = vmatpush1.bf16.msra.mxu0 %v16778_v61  ;;  %v16840_v61 = vld [vmem:[%s24727_s2 + $0x3c4] ss:$24 sps:$4 sm:$0xff]  }
  0xae   :  { %4211 = vmatprep.subr.bf16.mxu0 %v16786_v63  ;;  %v16835_v63 = vld [vmem:[%s24727_s2 + $0x9c8] ss:$24 sps:$4 sm:$0xff]  }
  0xaf   :  { %2388 = vmatpush1.bf16.msra.mxu1 %v16781_v0  ;;  %v16843_v0 = vld [vmem:[%s24727_s2 + $0x9fc] ss:$24 sps:$4 sm:$0xff]  }
  0xb0   :  { %2389 = vmatprep.subr.bf16.mxu1 %v16789_v4  ;;  %v16838_v4 = vld [vmem:[%s24727_s2 + $0x3c0] ss:$24 sps:$4 sm:$0xff]  }
  0xb1   :  { %4212 = vmatpush1.bf16.msra.mxu0 %v16784_v5  ;;  %v16846_v5 = vld [vmem:[%s24727_s2 + $0x3f4] ss:$24 sps:$4 sm:$0xff]  }
  0xb2   :  { %4213 = vmatprep.subr.bf16.mxu0 %v16792_v6  ;;  %v16841_v6 = vld [vmem:[%s24727_s2 + $0x9f8] ss:$24 sps:$4 sm:$0xff]  }
  0xb3   :  { %2390 = vmatpush1.bf16.msra.mxu1 %v16787_v8  ;;  %v16849_v8 = vld [vmem:[%s24727_s2 + $0xa2c] ss:$24 sps:$4 sm:$0xff]  }
  0xb4   :  { %2391 = vmatprep.subr.bf16.mxu1 %v16795_v9  ;;  %v16844_v9 = vld [vmem:[%s24727_s2 + $0x3f0] ss:$24 sps:$4 sm:$0xff]  }
  0xb5   :  { %4214 = vmatpush1.bf16.msra.mxu0 %v16790_v12  ;;  %v16852_v12 = vld [vmem:[%s24727_s2 + $0x424] ss:$24 sps:$4 sm:$0xff]  }
  0xb6   :  { %4215 = vmatprep.subr.bf16.mxu0 %v16798_v13  ;;  %v16847_v13 = vld [vmem:[%s24727_s2 + $0xa28] ss:$24 sps:$4 sm:$0xff]  }
  0xb7   :  { %2392 = vmatpush1.bf16.msra.mxu1 %v16793_v16  ;;  %v16855_v16 = vld [vmem:[%s24727_s2 + $0xa5c] ss:$24 sps:$4 sm:$0xff]  }
  0xb8   :  { %2393 = vmatprep.subr.bf16.mxu1 %v16801_v18  ;;  %v16850_v18 = vld [vmem:[%s24727_s2 + $0x420] ss:$24 sps:$4 sm:$0xff]  }
  0xb9   :  { %4216 = vmatpush1.bf16.msra.mxu0 %v16796_v20  ;;  %v16858_v20 = vld [vmem:[%s24727_s2 + $0x454] ss:$24 sps:$4 sm:$0xff]  }
  0xba   :  { %4217 = vmatprep.subr.bf16.mxu0 %v16804_v21  ;;  %v16853_v21 = vld [vmem:[%s24727_s2 + $0xa58] ss:$24 sps:$4 sm:$0xff]  }
  0xbb   :  { %2394 = vmatpush1.bf16.msra.mxu1 %v16799_v22  ;;  %v16861_v22 = vld [vmem:[%s24727_s2 + $0xa8c] ss:$24 sps:$4 sm:$0xff]  }
  0xbc   :  { %2395 = vmatprep.subr.bf16.mxu1 %v16807_v24  ;;  %v16856_v24 = vld [vmem:[%s24727_s2 + $0x450] ss:$24 sps:$4 sm:$0xff]  }
  0xbd   :  { %4218 = vmatpush1.bf16.msra.mxu0 %v16802_v27  ;;  %v16864_v27 = vld [vmem:[%s24727_s2 + $0x484] ss:$24 sps:$4 sm:$0xff]  }
  0xbe   :  { %4219 = vmatprep.subr.bf16.mxu0 %v16810_v29  ;;  %v16859_v29 = vld [vmem:[%s24727_s2 + $0xa88] ss:$24 sps:$4 sm:$0xff]  }
  0xbf   :  { %2396 = vmatpush1.bf16.msra.mxu1 %v16805_v30  ;;  %v16867_v30 = vld [vmem:[%s24727_s2 + $0xabc] ss:$24 sps:$4 sm:$0xff]  }
  0xc0   :  { %2416 = vmatprep.subr.bf16.mxu1 %v16813_v31  ;;  %v16862_v31 = vld [vmem:[%s24727_s2 + $0x480] ss:$24 sps:$4 sm:$0xff]  }
  0xc1   :  { %4220 = vmatpush1.bf16.msra.mxu0 %v16808_v32  ;;  %v16870_v32 = vld [vmem:[%s24727_s2 + $0x4b4] ss:$24 sps:$4 sm:$0xff]  }
  0xc2   :  { %4240 = vmatprep.subr.bf16.mxu0 %v16816_v35  ;;  %2398 = vmatmul.mubr.bf16.vlgmr.msra.gmra.mrb[0].mxu1 %v19597_v58  ;;  %v16865_v35 = vld [vmem:[%s24727_s2 + $0xab8] ss:$24 sps:$4 sm:$0xff]  }
  0xc3   :  { %2417 = vmatpush1.bf16.msra.mxu1 %v16811_v37  ;;  %2407 = vmatprep.mubr.bf16.mxu1 %v19599_v60  ;;  %v16868_v37 = vld [vmem:[%s24727_s2 + $0x4b0] ss:$24 sps:$4 sm:$0xff]  }
  0xc4   :  { %4222 = vmatmul.mubr.bf16.vlgmr.msra.gmra.mrb[8].mxu0 %v19296_v15  ;;  %2418 = vmatprep.subr.bf16.mxu1 %v16819_v38  ;;  %v16876_v38 = vld [vmem:[%s24727_s2 + $0x4e4] ss:$24 sps:$4 sm:$0xff]  }
  0xc5   :  { %4241 = vmatpush1.bf16.msra.mxu0 %v16814_v39  ;;  %4231 = vmatprep.mubr.bf16.mxu0 %v19804_v40  ;;  %v16871_v39 = vld [vmem:[%s24727_s2 + $0xae8] ss:$24 sps:$4 sm:$0xff]  }
  0xc6   :  { %4242 = vmatprep.subr.bf16.mxu0 %v16822_v41  ;;  %v16879_v41 = vld [vmem:[%s24727_s2 + $0xb1c] ss:$24 sps:$4 sm:$0xff]  }
  0xc7   :  { %2419 = vmatpush1.bf16.msra.mxu1 %v16817_v43  ;;  %v16874_v43 = vld [vmem:[%s24727_s2 + $0x4e0] ss:$24 sps:$4 sm:$0xff]  }
  0xc8   :  { %2420 = vmatprep.subr.bf16.mxu1 %v16825_v44  ;;  %v16882_v44 = vld [vmem:[%s24727_s2 + $0x514] ss:$24 sps:$4 sm:$0xff]  }
  0xc9   :  { %4243 = vmatpush1.bf16.msra.mxu0 %v16820_v45  ;;  %v16877_v45 = vld [vmem:[%s24727_s2 + $0xb18] ss:$24 sps:$4 sm:$0xff]  }
  0xca   :  { %4244 = vmatprep.subr.bf16.mxu0 %v16828_v46  ;;  %2408 = vmatmul.mubr.bf16.gmra.mrb[4].mxu1 %v19627_v11  ;;  %v16885_v46 = vld [vmem:[%s24727_s2 + $0xb4c] ss:$24 sps:$4 sm:$0xff]  }
  0xcb   :  { %2421 = vmatpush1.bf16.msra.mxu1 %v16823_v47  ;;  %2448 = vmatprep.mubr.bf16.mxu1 %v19337_v48  ;;  %v16880_v47 = vld [vmem:[%s24727_s2 + $0x510] ss:$24 sps:$4 sm:$0xff]  }
  0xcc   :  { %2422 = vmatprep.subr.bf16.mxu1 %v16831_v49  ;;  %4232 = vmatmul.mubr.bf16.gmra.mrb[12].mxu0 %v19831_v50  ;;  %v16888_v49 = vld [vmem:[%s24727_s2 + $0x544] ss:$24 sps:$4 sm:$0xff]  }
  0xcd   :  { %4245 = vmatpush1.bf16.msra.mxu0 %v16826_v51  ;;  %4272 = vmatprep.mubr.bf16.mxu0 %v19307_v23  ;;  %v16883_v51 = vld [vmem:[%s24727_s2 + $0xb48] ss:$24 sps:$4 sm:$0xff]  }
  0xce   :  { %4246 = vmatprep.subr.bf16.mxu0 %v16834_v52  ;;  %v16891_v52 = vld [vmem:[%s24727_s2 + $0xb7c] ss:$24 sps:$4 sm:$0xff]  }
  0xcf   :  { %2423 = vmatpush1.bf16.msra.mxu1 %v16829_v54  ;;  %v16886_v54 = vld [vmem:[%s24727_s2 + $0x540] ss:$24 sps:$4 sm:$0xff]  }
  0xd0   :  { %2424 = vmatprep.subr.bf16.mxu1 %v16837_v55  ;;  %v16894_v55 = vld [vmem:[%s24727_s2 + $0x574] ss:$24 sps:$4 sm:$0xff]  }
  0xd1   :  { %4247 = vmatpush1.bf16.msra.mxu0 %v16832_v57  ;;  %v16889_v57 = vld [vmem:[%s24727_s2 + $0xb78] ss:$24 sps:$4 sm:$0xff]  }
  0xd2   :  { %4248 = vmatprep.subr.bf16.mxu0 %v16840_v61  ;;  %v16897_v61 = vld [vmem:[%s24727_s2 + $0xbac] ss:$24 sps:$4 sm:$0xff]  }
  0xd3   :  { %2425 = vmatpush1.bf16.msra.mxu1 %v16835_v63  ;;  %v16892_v63 = vld [vmem:[%s24727_s2 + $0x570] ss:$24 sps:$4 sm:$0xff]  }
  0xd4   :  { %2426 = vmatprep.subr.bf16.mxu1 %v16843_v0  ;;  %v16901_v0 = vld [vmem:[%s24727_s2 + $0x5a4] ss:$24 sps:$4 sm:$0xff]  }
  0xd5   :  { %4249 = vmatpush1.bf16.msra.mxu0 %v16838_v4  ;;  %v16895_v4 = vld [vmem:[%s24727_s2 + $0xba8] ss:$24 sps:$4 sm:$0xff]  }
  0xd6   :  { %4250 = vmatprep.subr.bf16.mxu0 %v16846_v5  ;;  %v16905_v5 = vld [vmem:[%s24727_s2 + $0xbdc] ss:$24 sps:$4 sm:$0xff]  }
  0xd7   :  { %2427 = vmatpush1.bf16.msra.mxu1 %v16841_v6  ;;  %v16899_v6 = vld [vmem:[%s24727_s2 + $0x5a0] ss:$24 sps:$4 sm:$0xff]  }
  0xd8   :  { %2428 = vmatprep.subr.bf16.mxu1 %v16849_v8  ;;  %v16908_v8 = vld [vmem:[%s24727_s2 + $0x5d4] ss:$24 sps:$4 sm:$0xff]  }
  0xd9   :  { %4251 = vmatpush1.bf16.msra.mxu0 %v16844_v9  ;;  %v16903_v9 = vld [vmem:[%s24727_s2 + $0xbd8] ss:$24 sps:$4 sm:$0xff]  }
  0xda   :  { %4252 = vmatprep.subr.bf16.mxu0 %v16852_v12  ;;  %v16911_v12 = vld [vmem:[%s24727_s2 + $0xc0c] ss:$24 sps:$4 sm:$0xff]  }
  0xdb   :  { %2429 = vmatpush1.bf16.msra.mxu1 %v16847_v13  ;;  %v16906_v13 = vld [vmem:[%s24727_s2 + $0x5d0] ss:$24 sps:$4 sm:$0xff]  }
  0xdc   :  { %2430 = vmatprep.subr.bf16.mxu1 %v16855_v16  ;;  %v16914_v16 = vld [vmem:[%s24727_s2 + $0x604] ss:$24 sps:$4 sm:$0xff]  }
  0xdd   :  { %4253 = vmatpush1.bf16.msra.mxu0 %v16850_v18  ;;  %v99_v18 = vld [vmem:[#allocation2 + $0x38] sm:$0x33] }
  0xde   :  { %4254 = vmatprep.subr.bf16.mxu0 %v16858_v20  ;;  %v16909_v20 = vld [vmem:[%s24727_s2 + $0xc08] ss:$24 sps:$4 sm:$0xff]  }
  0xdf   :  { %2431 = vmatpush1.bf16.msra.mxu1 %v16853_v21  ;;  %v16917_v21 = vld [vmem:[%s24727_s2 + $0xc3c] ss:$24 sps:$4 sm:$0xff]  }
  0xe0   :  { %2432 = vmatprep.subr.bf16.mxu1 %v16861_v22  ;;  %v16912_v22 = vld [vmem:[%s24727_s2 + $0x600] ss:$24 sps:$4 sm:$0xff]  }
  0xe1   :  { %4255 = vmatpush1.bf16.msra.mxu0 %v16856_v24  ;;  %v20008_v24 = vcombine.high %v99_v18, %v99_v18 }
  0xe2   :  { %4256 = vmatprep.subr.bf16.mxu0 %v16864_v27  ;;  %v16920_v27 = vld [vmem:[%s24727_s2 + $0x634] ss:$24 sps:$4 sm:$0xff]  }
  0xe3   :  { %2433 = vmatpush1.bf16.msra.mxu1 %v16859_v29  ;;  %v16915_v29 = vld [vmem:[%s24727_s2 + $0xc38] ss:$24 sps:$4 sm:$0xff]  }
  0xe4   :  { %2434 = vmatprep.subr.bf16.mxu1 %v16867_v30  ;;  %v16923_v30 = vld [vmem:[%s24727_s2 + $0xc6c] ss:$24 sps:$4 sm:$0xff]  }
  0xe5   :  { %4257 = vmatpush1.bf16.msra.mxu0 %v16862_v31  ;;  %v16918_v31 = vld [vmem:[%s24727_s2 + $0x630] ss:$24 sps:$4 sm:$0xff]  }
  0xe6   :  { %4258 = vmatprep.subr.bf16.mxu0 %v16870_v32  ;;  %v16926_v32 = vld [vmem:[%s24727_s2 + $0x664] ss:$24 sps:$4 sm:$0xff]  }
  0xe7   :  { %2435 = vmatpush1.bf16.msra.mxu1 %v16865_v35  ;;  %v16921_v35 = vld [vmem:[%s24727_s2 + $0xc68] ss:$24 sps:$4 sm:$0xff]  }
  0xe8   :  { %2436 = vmatprep.subr.bf16.mxu1 %v16873_v36  ;;  %v16929_v36 = vld [vmem:[%s24727_s2 + $0xc9c] ss:$24 sps:$4 sm:$0xff]  }
  0xe9   :  { %4259 = vmatpush1.bf16.msra.mxu0 %v16868_v37  ;;  %v20035_v37 = vcombine.low %v99_v18, %v99_v18  ;;  %v16968_v18 = vld [vmem:[%s24727_s2 + $0x7b4] ss:$24 sps:$4 sm:$0xff]  }
  0xea   :  { %4260 = vmatprep.subr.bf16.mxu0 %v16876_v38  ;;  %v16924_v38 = vld [vmem:[%s24727_s2 + $0x660] ss:$24 sps:$4 sm:$0xff]  }
  0xeb   :  { %2437 = vmatpush1.bf16.msra.mxu1 %v16871_v39  ;;  %v16932_v39 = vld [vmem:[%s24727_s2 + $0x694] ss:$24 sps:$4 sm:$0xff]  }
  0xec   :  { %2438 = vmatprep.subr.bf16.mxu1 %v16879_v41  ;;  %v16927_v41 = vld [vmem:[%s24727_s2 + $0xc98] ss:$24 sps:$4 sm:$0xff]  }
  0xed   :  { %4261 = vmatpush1.bf16.msra.mxu0 %v16874_v43  ;;  %v16935_v43 = vld [vmem:[%s24727_s2 + $0xccc] ss:$24 sps:$4 sm:$0xff]  }
  0xee   :  { %4262 = vmatprep.subr.bf16.mxu0 %v16882_v44  ;;  %v16930_v44 = vld [vmem:[%s24727_s2 + $0x690] ss:$24 sps:$4 sm:$0xff]  }
  0xef   :  { %2439 = vmatpush1.bf16.msra.mxu1 %v16877_v45  ;;  %v16938_v45 = vld [vmem:[%s24727_s2 + $0x6c4] ss:$24 sps:$4 sm:$0xff]  }
  0xf0   :  { %2440 = vmatprep.subr.bf16.mxu1 %v16885_v46  ;;  %v16941_v46 = vld [vmem:[%s24727_s2 + $0xcfc] ss:$24 sps:$4 sm:$0xff]  }
  0xf1   :  { %4263 = vmatpush1.bf16.msra.mxu0 %v16880_v47  ;;  %v16936_v47 = vld [vmem:[%s24727_s2 + $0x6c0] ss:$24 sps:$4 sm:$0xff]  }
  0xf2   :  { %4264 = vmatprep.subr.bf16.mxu0 %v16888_v49  ;;  %v16944_v49 = vld [vmem:[%s24727_s2 + $0x6f4] ss:$24 sps:$4 sm:$0xff]  }
  0xf3   :  { %2441 = vmatpush1.bf16.msra.mxu1 %v16883_v51  ;;  %v16939_v51 = vld [vmem:[%s24727_s2 + $0xcf8] ss:$24 sps:$4 sm:$0xff]  }
  0xf4   :  { %2442 = vmatprep.subr.bf16.mxu1 %v16891_v52  ;;  %v16947_v52 = vld [vmem:[%s24727_s2 + $0xd2c] ss:$24 sps:$4 sm:$0xff]  }
  0xf5   :  { %4265 = vmatpush1.bf16.msra.mxu0 %v16886_v54  ;;  %v16942_v54 = vld [vmem:[%s24727_s2 + $0x6f0] ss:$24 sps:$4 sm:$0xff]  }
  0xf6   :  { %4266 = vmatprep.subr.bf16.mxu0 %v16894_v55  ;;  %v16950_v55 = vld [vmem:[%s24727_s2 + $0x724] ss:$24 sps:$4 sm:$0xff]  }
  0xf7   :  { %2443 = vmatpush1.bf16.msra.mxu1 %v16889_v57  ;;  %v16945_v57 = vld [vmem:[%s24727_s2 + $0xd28] ss:$24 sps:$4 sm:$0xff]  }
  0xf8   :  { %2444 = vmatprep.subr.bf16.mxu1 %v16897_v61  ;;  %v16953_v61 = vld [vmem:[%s24727_s2 + $0xd5c] ss:$24 sps:$4 sm:$0xff]  }
  0xf9   :  { %4267 = vmatpush1.bf16.msra.mxu0 %v16892_v63  ;;  %v16948_v63 = vld [vmem:[%s24727_s2 + $0x720] ss:$24 sps:$4 sm:$0xff]  }
  0xfa   :  { %4268 = vmatprep.subr.bf16.mxu0 %v16901_v0  ;;  %v16951_v0 = vld [vmem:[%s24727_s2 + $0xd58] ss:$24 sps:$4 sm:$0xff]  }
  0xfb   :  { %2445 = vmatpush1.bf16.msra.mxu1 %v16895_v4  ;;  %v16956_v4 = vld [vmem:[%s24727_s2 + $0x754] ss:$24 sps:$4 sm:$0xff]  }
  0xfc   :  { %2446 = vmatprep.subr.bf16.mxu1 %v16905_v5  ;;  %v16959_v5 = vld [vmem:[%s24727_s2 + $0xd8c] ss:$24 sps:$4 sm:$0xff]  }
  0xfd   :  { %4269 = vmatpush1.bf16.msra.mxu0 %v16899_v6  ;;  %v16954_v6 = vld [vmem:[%s24727_s2 + $0x750] ss:$24 sps:$4 sm:$0xff]  }
  0xfe   :  { %4270 = vmatprep.subr.bf16.mxu0 %v16908_v8  ;;  %v16957_v8 = vld [vmem:[%s24727_s2 + $0xd88] ss:$24 sps:$4 sm:$0xff]  }
  0xff   :  { %2447 = vmatpush1.bf16.msra.mxu1 %v16903_v9  ;;  %v16962_v9 = vld [vmem:[%s24727_s2 + $0x784] ss:$24 sps:$4 sm:$0xff]  }
 0x100   :  { %2467 = vmatprep.subr.bf16.mxu1 %v16911_v12  ;;  %v16965_v12 = vld [vmem:[%s24727_s2 + $0xdbc] ss:$24 sps:$4 sm:$0xff]  }
 0x101   :  { %4271 = vmatpush1.bf16.msra.mxu0 %v16906_v13  ;;  %v16960_v13 = vld [vmem:[%s24727_s2 + $0x780] ss:$24 sps:$4 sm:$0xff]  }
 0x102   :  { %4291 = vmatprep.subr.bf16.mxu0 %v16914_v16  ;;  %2449 = vmatmul.mubr.bf16.vlgmr.msra.gmra.mrb[8].mxu1 %v19345_v53  ;;  %v16963_v16 = vld [vmem:[%s24727_s2 + $0xdb8] ss:$24 sps:$4 sm:$0xff]  }
 0x103   :  { %2468 = vmatpush1.bf16.msra.mxu1 %v16909_v20  ;;  %2458 = vmatprep.mubr.bf16.mxu1 %v19355_v59  ;;  %v16971_v20 = vld [vmem:[%s24727_s2 + $0xdec] ss:$24 sps:$4 sm:$0xff]  }
 0x104   :  { %4273 = vmatmul.mubr.bf16.vlgmr.msra.gmra.mrb[8].mxu0 %v19320_v33  ;;  %2469 = vmatprep.subr.bf16.mxu1 %v16917_v21  ;;  %v16966_v21 = vld [vmem:[%s24727_s2 + $0x7b0] ss:$24 sps:$4 sm:$0xff]  }
 0x105   :  { %4292 = vmatpush1.bf16.msra.mxu0 %v16912_v22  ;;  %4282 = vmatprep.mubr.bf16.mxu0 %v20008_v24  ;;  %v16969_v22 = vld [vmem:[%s24727_s2 + $0xde8] ss:$24 sps:$4 sm:$0xff]  }
 0x106   :  { %4293 = vmatprep.subr.bf16.mxu0 %v16920_v27  ;;  %v16974_v27 = vld [vmem:[%s24727_s2 + $0x7e4] ss:$24 sps:$4 sm:$0xff]  }
 0x107   :  { %2470 = vmatpush1.bf16.msra.mxu1 %v16915_v29  ;;  %v16977_v29 = vld [vmem:[%s24727_s2 + $0xe1c] ss:$24 sps:$4 sm:$0xff]  }
 0x108   :  { %2471 = vmatprep.subr.bf16.mxu1 %v16923_v30  ;;  %v16972_v30 = vld [vmem:[%s24727_s2 + $0x7e0] ss:$24 sps:$4 sm:$0xff]  }
 0x109   :  { %4294 = vmatpush1.bf16.msra.mxu0 %v16918_v31  ;;  %v16975_v31 = vld [vmem:[%s24727_s2 + $0xe18] ss:$24 sps:$4 sm:$0xff]  }
 0x10a   :  { %4295 = vmatprep.subr.bf16.mxu0 %v16926_v32  ;;  %2459 = vmatmul.mubr.bf16.gmra.mrb[12].mxu1 %v19387_v7  ;;  %v16980_v32 = vld [vmem:[%s24727_s2 + $0x814] ss:$24 sps:$4 sm:$0xff]  }
 0x10b   :  { %2472 = vmatpush1.bf16.msra.mxu1 %v16921_v35  ;;  %2499 = vmatprep.mubr.bf16.mxu1 %v19350_v56  ;;  %v16933_v56 = vld [vmem:[%s24727_s2 + $0xcc8] ss:$24 sps:$4 sm:$0xff]   ;;  %v16983_v35 = vld [vmem:[%s24727_s2 + $0xe4c] ss:$24 sps:$4 sm:$0xff]  }
 0x10c   :  { %2473 = vmatprep.subr.bf16.mxu1 %v16929_v36  ;;  %4283 = vmatmul.mubr.bf16.gmra.mrb[12].mxu0 %v20035_v37  ;;  %v16978_v36 = vld [vmem:[%s24727_s2 + $0x810] ss:$24 sps:$4 sm:$0xff]  }
 0x10d   :  { %4296 = vmatpush1.bf16.msra.mxu0 %v16924_v38  ;;  %4323 = vmatprep.mubr.bf16.mxu0 %v19502_v2  ;;  %v16981_v38 = vld [vmem:[%s24727_s2 + $0xe48] ss:$24 sps:$4 sm:$0xff]  }
 0x10e   :  { %4297 = vmatprep.subr.bf16.mxu0 %v16932_v39  ;;  %v16986_v39 = vld [vmem:[%s24727_s2 + $0x844] ss:$24 sps:$4 sm:$0xff]  }
 0x10f   :  { %2474 = vmatpush1.bf16.msra.mxu1 %v16927_v41  ;;  %v16989_v41 = vld [vmem:[%s24727_s2 + $0xe7c] ss:$24 sps:$4 sm:$0xff]  }
 0x110   :  { %2475 = vmatprep.subr.bf16.mxu1 %v16935_v43  ;;  %v16984_v43 = vld [vmem:[%s24727_s2 + $0x840] ss:$24 sps:$4 sm:$0xff]  }
 0x111   :  { %4298 = vmatpush1.bf16.msra.mxu0 %v16930_v44  ;;  %v16987_v44 = vld [vmem:[%s24727_s2 + $0xe78] ss:$24 sps:$4 sm:$0xff]  }
 0x112   :  { %4299 = vmatprep.subr.bf16.mxu0 %v16938_v45  ;;  %v16992_v45 = vld [vmem:[%s24727_s2 + $0x874] ss:$24 sps:$4 sm:$0xff]  }
 0x113   :  { %2476 = vmatpush1.bf16.msra.mxu1 %v16933_v56  ;;  %v16995_v56 = vld [vmem:[%s24727_s2 + $0xeac] ss:$24 sps:$4 sm:$0xff]  }
 0x114   :  { %2477 = vmatprep.subr.bf16.mxu1 %v16941_v46  ;;  %v16990_v46 = vld [vmem:[%s24727_s2 + $0x870] ss:$24 sps:$4 sm:$0xff]  }
 0x115   :  { %4300 = vmatpush1.bf16.msra.mxu0 %v16936_v47  ;;  %v16993_v47 = vld [vmem:[%s24727_s2 + $0xea8] ss:$24 sps:$4 sm:$0xff]  }
 0x116   :  { %4301 = vmatprep.subr.bf16.mxu0 %v16944_v49  ;;  %v16999_v49 = vld [vmem:[%s24727_s2 + $0x8a4] ss:$24 sps:$4 sm:$0xff]  }
 0x117   :  { %2478 = vmatpush1.bf16.msra.mxu1 %v16939_v51  ;;  %v17003_v51 = vld [vmem:[%s24727_s2 + $0xedc] ss:$24 sps:$4 sm:$0xff]  }
 0x118   :  { %2479 = vmatprep.subr.bf16.mxu1 %v16947_v52  ;;  %v16997_v52 = vld [vmem:[%s24727_s2 + $0x8a0] ss:$24 sps:$4 sm:$0xff]  }
 0x119   :  { %4302 = vmatpush1.bf16.msra.mxu0 %v16942_v54  ;;  %v17001_v54 = vld [vmem:[%s24727_s2 + $0xed8] ss:$24 sps:$4 sm:$0xff]  }
 0x11a   :  { %4303 = vmatprep.subr.bf16.mxu0 %v16950_v55  ;;  %v17006_v55 = vld [vmem:[%s24727_s2 + $0x8d4] ss:$24 sps:$4 sm:$0xff]  }
 0x11b   :  { %2480 = vmatpush1.bf16.msra.mxu1 %v16945_v57  ;;  %v17009_v57 = vld [vmem:[%s24727_s2 + $0xf0c] ss:$24 sps:$4 sm:$0xff]  }
 0x11c   :  { %2481 = vmatprep.subr.bf16.mxu1 %v16953_v61  ;;  %v17004_v61 = vld [vmem:[%s24727_s2 + $0x8d0] ss:$24 sps:$4 sm:$0xff]  }
 0x11d   :  { %4304 = vmatpush1.bf16.msra.mxu0 %v16948_v63  ;;  %v17007_v63 = vld [vmem:[%s24727_s2 + $0xf08] ss:$24 sps:$4 sm:$0xff]  }
 0x11e   :  { %4305 = vmatprep.subr.bf16.mxu0 %v16956_v4  ;;  %v17015_v4 = vld [vmem:[%s24727_s2 + $0xf3c] ss:$24 sps:$4 sm:$0xff]  }
 0x11f   :  { %2482 = vmatpush1.bf16.msra.mxu1 %v16951_v0  ;;  %v17012_v0 = vld [vmem:[%s24727_s2 + $0x14] ss:$24 sps:$4 sm:$0xff]  }
 0x120   :  { %2483 = vmatprep.subr.bf16.mxu1 %v16959_v5  ;;  %v100_v5 = vld [vmem:[#allocation2 + $0x40] sm:$0x33] }
 0x121   :  { %4306 = vmatpush1.bf16.msra.mxu0 %v16954_v6  ;;  %v17010_v6 = vld [vmem:[%s24727_s2 + $0x10] ss:$24 sps:$4 sm:$0xff]  }
 0x122   :  { %4307 = vmatprep.subr.bf16.mxu0 %v16962_v9  ;;  %v17018_v9 = vld [vmem:[%s24727_s2 + $0x44] ss:$24 sps:$4 sm:$0xff]  }
 0x123   :  { %2484 = vmatpush1.bf16.msra.mxu1 %v16957_v8  ;;  %v17013_v8 = vld [vmem:[%s24727_s2 + $0xf38] ss:$24 sps:$4 sm:$0xff]  }
 0x124   :  { %2485 = vmatprep.subr.bf16.mxu1 %v16965_v12  ;;  %v20218_v12 = vcombine.high %v100_v5, %v100_v5 }
 0x125   :  { %4308 = vmatpush1.bf16.msra.mxu0 %v16960_v13  ;;  %v17021_v13 = vld [vmem:[%s24727_s2 + $0xf6c] ss:$24 sps:$4 sm:$0xff]  }
 0x126   :  { %4309 = vmatprep.subr.bf16.mxu0 %v16968_v18  ;;  %v17019_v18 = vld [vmem:[%s24727_s2 + $0xf68] ss:$24 sps:$4 sm:$0xff]  }
 0x127   :  { %2486 = vmatpush1.bf16.msra.mxu1 %v16963_v16  ;;  %v17016_v16 = vld [vmem:[%s24727_s2 + $0x40] ss:$24 sps:$4 sm:$0xff]  }
 0x128   :  { %2487 = vmatprep.subr.bf16.mxu1 %v16971_v20  ;;  %v20239_v20 = vcombine.low %v100_v5, %v100_v5  ;;  %v17072_v5 = vld [vmem:[%s24727_s2 + $0x1f4] ss:$24 sps:$4 sm:$0xff]  }
 0x129   :  { %4310 = vmatpush1.bf16.msra.mxu0 %v16966_v21  ;;  %v17022_v21 = vld [vmem:[%s24727_s2 + $0x70] ss:$24 sps:$4 sm:$0xff]  }
 0x12a   :  { %4311 = vmatprep.subr.bf16.mxu0 %v16974_v27  ;;  %v17030_v27 = vld [vmem:[%s24727_s2 + $0xa4] ss:$24 sps:$4 sm:$0xff]  }
 0x12b   :  { %2488 = vmatpush1.bf16.msra.mxu1 %v16969_v22  ;;  %v17025_v22 = vld [vmem:[%s24727_s2 + $0xf98] ss:$24 sps:$4 sm:$0xff]  }
 0x12c   :  { %2489 = vmatprep.subr.bf16.mxu1 %v16977_v29  ;;  %v17033_v29 = vld [vmem:[%s24727_s2 + $0xfcc] ss:$24 sps:$4 sm:$0xff]  }
 0x12d   :  { %4312 = vmatpush1.bf16.msra.mxu0 %v16972_v30  ;;  %v17028_v30 = vld [vmem:[%s24727_s2 + $0xa0] ss:$24 sps:$4 sm:$0xff]  }
 0x12e   :  { %4313 = vmatprep.subr.bf16.mxu0 %v16980_v32  ;;  %v17036_v32 = vld [vmem:[%s24727_s2 + $0xd4] ss:$24 sps:$4 sm:$0xff]  }
 0x12f   :  { %2490 = vmatpush1.bf16.msra.mxu1 %v16975_v31  ;;  %v17031_v31 = vld [vmem:[%s24727_s2 + $0xfc8] ss:$24 sps:$4 sm:$0xff]  }
 0x130   :  { %2491 = vmatprep.subr.bf16.mxu1 %v16983_v35  ;;  %v17037_v35 = vld [vmem:[%s24727_s2 + $0xff8] ss:$24 sps:$4 sm:$0xff]  }
 0x131   :  { %4314 = vmatpush1.bf16.msra.mxu0 %v16978_v36  ;;  %v17042_v36 = vld [vmem:[%s24727_s2 + $0x104] ss:$24 sps:$4 sm:$0xff]  }
 0x132   :  { %4315 = vmatprep.subr.bf16.mxu0 %v16986_v39  ;;  %v17040_v39 = vld [vmem:[%s24727_s2 + $0x100] ss:$24 sps:$4 sm:$0xff]  }
 0x133   :  { %2492 = vmatpush1.bf16.msra.mxu1 %v16981_v38  ;;  %v17045_v38 = vld [vmem:[%s24727_s2 + $0x102c] ss:$24 sps:$4 sm:$0xff]  }
 0x134   :  { %2493 = vmatprep.subr.bf16.mxu1 %v16989_v41  ;;  %v17043_v41 = vld [vmem:[%s24727_s2 + $0x1028] ss:$24 sps:$4 sm:$0xff]  }
 0x135   :  { %4316 = vmatpush1.bf16.msra.mxu0 %v16984_v43  ;;  %v17048_v43 = vld [vmem:[%s24727_s2 + $0x134] ss:$24 sps:$4 sm:$0xff]  }
 0x136   :  { %4317 = vmatprep.subr.bf16.mxu0 %v16992_v45  ;;  %v17046_v45 = vld [vmem:[%s24727_s2 + $0x130] ss:$24 sps:$4 sm:$0xff]  }
 0x137   :  { %2494 = vmatpush1.bf16.msra.mxu1 %v16987_v44  ;;  %v17051_v44 = vld [vmem:[%s24727_s2 + $0x105c] ss:$24 sps:$4 sm:$0xff]  }
 0x138   :  { %2495 = vmatprep.subr.bf16.mxu1 %v16995_v56  ;;  %v17049_v56 = vld [vmem:[%s24727_s2 + $0x1058] ss:$24 sps:$4 sm:$0xff]  }
 0x139   :  { %4318 = vmatpush1.bf16.msra.mxu0 %v16990_v46  ;;  %v17054_v46 = vld [vmem:[%s24727_s2 + $0x164] ss:$24 sps:$4 sm:$0xff]  }
 0x13a   :  { %4319 = vmatprep.subr.bf16.mxu0 %v16999_v49  ;;  %v17052_v49 = vld [vmem:[%s24727_s2 + $0x160] ss:$24 sps:$4 sm:$0xff]  }
 0x13b   :  { %2496 = vmatpush1.bf16.msra.mxu1 %v16993_v47  ;;  %v17057_v47 = vld [vmem:[%s24727_s2 + $0x108c] ss:$24 sps:$4 sm:$0xff]  }
 0x13c   :  { %2497 = vmatprep.subr.bf16.mxu1 %v17003_v51  ;;  %v17055_v51 = vld [vmem:[%s24727_s2 + $0x1088] ss:$24 sps:$4 sm:$0xff]  }
 0x13d   :  { %4320 = vmatpush1.bf16.msra.mxu0 %v16997_v52  ;;  %v17060_v52 = vld [vmem:[%s24727_s2 + $0x194] ss:$24 sps:$4 sm:$0xff]  }
 0x13e   :  { %4321 = vmatprep.subr.bf16.mxu0 %v17006_v55  ;;  %v17058_v55 = vld [vmem:[%s24727_s2 + $0x190] ss:$24 sps:$4 sm:$0xff]  }
 0x13f   :  { %2498 = vmatpush1.bf16.msra.mxu1 %v17001_v54  ;;  %v17063_v54 = vld [vmem:[%s24727_s2 + $0x10bc] ss:$24 sps:$4 sm:$0xff]  }
 0x140   :  { %2518 = vmatprep.subr.bf16.mxu1 %v17009_v57  ;;  %v17061_v57 = vld [vmem:[%s24727_s2 + $0x10b8] ss:$24 sps:$4 sm:$0xff]  }
 0x141   :  { %4322 = vmatpush1.bf16.msra.mxu0 %v17004_v61  ;;  %v17066_v61 = vld [vmem:[%s24727_s2 + $0x1c4] ss:$24 sps:$4 sm:$0xff]  }
 0x142   :  { %4495 = vmatprep.subr.bf16.mxu0 %v17012_v0  ;;  %2500 = vmatmul.mubr.bf16.vlgmr.msra.gmra.mrb[8].mxu1 %v19369_v1  ;;  %v17024_v1 = vld [vmem:[%s24727_s2 + $0x74] ss:$24 sps:$4 sm:$0xff]   ;;  %v17064_v0 = vld [vmem:[%s24727_s2 + $0x1c0] ss:$24 sps:$4 sm:$0xff]  }
 0x143   :  { %2519 = vmatpush1.bf16.msra.mxu1 %v17007_v63  ;;  %2509 = vmatprep.mubr.bf16.mxu1 %v19361_v62  ;;  %v17027_v62 = vld [vmem:[%s24727_s2 + $0xf9c] ss:$24 sps:$4 sm:$0xff]   ;;  %v17069_v63 = vld [vmem:[%s24727_s2 + $0x10ec] ss:$24 sps:$4 sm:$0xff]  }
 0x144   :  { %4324 = vmatmul.mubr.bf16.vlgmr.msra.gmra.mrb[8].mxu0 %v19539_v28  ;;  %2520 = vmatprep.subr.bf16.mxu1 %v17015_v4  ;;  %v17067_v4 = vld [vmem:[%s24727_s2 + $0x10e8] ss:$24 sps:$4 sm:$0xff]  }
 0x145   :  { %4496 = vmatpush1.bf16.msra.mxu0 %v17010_v6  ;;  %4333 = vmatprep.mubr.bf16.mxu0 %v20218_v12  ;;  %v17075_v6 = vld [vmem:[%s24727_s2 + $0x111c] ss:$24 sps:$4 sm:$0xff]  }
 0x146   :  { %4497 = vmatprep.subr.bf16.mxu0 %v17018_v9  ;;  %v17073_v9 = vld [vmem:[%s24727_s2 + $0x1118] ss:$24 sps:$4 sm:$0xff]  }
 0x147   :  { %2521 = vmatpush1.bf16.msra.mxu1 %v17013_v8  ;;  %v17070_v8 = vld [vmem:[%s24727_s2 + $0x1f0] ss:$24 sps:$4 sm:$0xff]  }
 0x148   :  { %2522 = vmatprep.subr.bf16.mxu1 %v17021_v13  ;;  %v17078_v13 = vld [vmem:[%s24727_s2 + $0x224] ss:$24 sps:$4 sm:$0xff]  }
 0x149   :  { %4498 = vmatpush1.bf16.msra.mxu0 %v17016_v16  ;;  %v17081_v16 = vld [vmem:[%s24727_s2 + $0x114c] ss:$24 sps:$4 sm:$0xff]  }
 0x14a   :  { %4499 = vmatprep.subr.bf16.mxu0 %v17024_v1  ;;  %2510 = vmatmul.mubr.bf16.gmra.mrb[12].mxu1 %v19395_v10  ;;  %v17039_v10 = vld [vmem:[%s24727_s2 + $0xffc] ss:$24 sps:$4 sm:$0xff]   ;;  %v17079_v1 = vld [vmem:[%s24727_s2 + $0x1148] ss:$24 sps:$4 sm:$0xff]  }
 0x14b   :  { %2523 = vmatpush1.bf16.msra.mxu1 %v17019_v18  ;;  %2550 = vmatprep.mubr.bf16.mxu1 %v19534_v25  ;;  %v17034_v25 = vld [vmem:[%s24727_s2 + $0xd0] ss:$24 sps:$4 sm:$0xff]   ;;  %v17076_v18 = vld [vmem:[%s24727_s2 + $0x220] ss:$24 sps:$4 sm:$0xff]  }
 0x14c   :  { %2524 = vmatprep.subr.bf16.mxu1 %v17027_v62  ;;  %4334 = vmatmul.mubr.bf16.gmra.mrb[12].mxu0 %v20239_v20  ;;  %v17084_v62 = vld [vmem:[%s24727_s2 + $0x254] ss:$24 sps:$4 sm:$0xff]  }
 0x14d   :  { %4500 = vmatpush1.bf16.msra.mxu0 %v17022_v21  ;;  %4527 = vmatprep.mubr.bf16.mxu0 %v19294_v14  ;;  %v17087_v21 = vld [vmem:[%s24727_s2 + $0x117c] ss:$24 sps:$4 sm:$0xff]  }
 0x14e   :  { %4501 = vmatprep.subr.bf16.mxu0 %v17030_v27  ;;  %v17085_v27 = vld [vmem:[%s24727_s2 + $0x1178] ss:$24 sps:$4 sm:$0xff]  }
 0x14f   :  { %2525 = vmatpush1.bf16.msra.mxu1 %v17025_v22  ;;  %v17082_v22 = vld [vmem:[%s24727_s2 + $0x250] ss:$24 sps:$4 sm:$0xff]  }
 0x150   :  { %2526 = vmatprep.subr.bf16.mxu1 %v17033_v29  ;;  %v17090_v29 = vld [vmem:[%s24727_s2 + $0x284] ss:$24 sps:$4 sm:$0xff]  }
 0x151   :  { %4502 = vmatpush1.bf16.msra.mxu0 %v17028_v30  ;;  %v17093_v30 = vld [vmem:[%s24727_s2 + $0x11ac] ss:$24 sps:$4 sm:$0xff]  }
 0x152   :  { %4503 = vmatprep.subr.bf16.mxu0 %v17036_v32  ;;  %v17091_v32 = vld [vmem:[%s24727_s2 + $0x11a8] ss:$24 sps:$4 sm:$0xff]  }
 0x153   :  { %2527 = vmatpush1.bf16.msra.mxu1 %v17031_v31  ;;  %v17088_v31 = vld [vmem:[%s24727_s2 + $0x280] ss:$24 sps:$4 sm:$0xff]  }
 0x154   :  { %2528 = vmatprep.subr.bf16.mxu1 %v17039_v10  ;;  %v17097_v10 = vld [vmem:[%s24727_s2 + $0x2b4] ss:$24 sps:$4 sm:$0xff]  }
 0x155   :  { %4504 = vmatpush1.bf16.msra.mxu0 %v17034_v25  ;;  %v17101_v25 = vld [vmem:[%s24727_s2 + $0x11dc] ss:$24 sps:$4 sm:$0xff]  }
 0x156   :  { %4505 = vmatprep.subr.bf16.mxu0 %v17042_v36  ;;  %v17099_v36 = vld [vmem:[%s24727_s2 + $0x11d8] ss:$24 sps:$4 sm:$0xff]  }
 0x157   :  { %2529 = vmatpush1.bf16.msra.mxu1 %v17037_v35  ;;  %v17095_v35 = vld [vmem:[%s24727_s2 + $0x2b0] ss:$24 sps:$4 sm:$0xff]  }
 0x158   :  { %2530 = vmatprep.subr.bf16.mxu1 %v17045_v38  ;;  %v17104_v38 = vld [vmem:[%s24727_s2 + $0x2e4] ss:$24 sps:$4 sm:$0xff]  }
 0x159   :  { %4506 = vmatpush1.bf16.msra.mxu0 %v17040_v39  ;;  %v17107_v39 = vld [vmem:[%s24727_s2 + $0x914] ss:$24 sps:$4 sm:$0xff]  }
 0x15a   :  { %4507 = vmatprep.subr.bf16.mxu0 %v17048_v43  ;;  %v17105_v43 = vld [vmem:[%s24727_s2 + $0x910] ss:$24 sps:$4 sm:$0xff]  }
 0x15b   :  { %2531 = vmatpush1.bf16.msra.mxu1 %v17043_v41  ;;  %v17102_v41 = vld [vmem:[%s24727_s2 + $0x2e0] ss:$24 sps:$4 sm:$0xff]  }
 0x15c   :  { %2532 = vmatprep.subr.bf16.mxu1 %v17051_v44  ;;  %v17110_v44 = vld [vmem:[%s24727_s2 + $0x314] ss:$24 sps:$4 sm:$0xff]  }
 0x15d   :  { %4508 = vmatpush1.bf16.msra.mxu0 %v17046_v45  ;;  %v17113_v45 = vld [vmem:[%s24727_s2 + $0x944] ss:$24 sps:$4 sm:$0xff]  }
 0x15e   :  { %4509 = vmatprep.subr.bf16.mxu0 %v17054_v46  ;;  %v17111_v46 = vld [vmem:[%s24727_s2 + $0x940] ss:$24 sps:$4 sm:$0xff]  }
 0x15f   :  { %2533 = vmatpush1.bf16.msra.mxu1 %v17049_v56  ;;  %v17108_v56 = vld [vmem:[%s24727_s2 + $0x310] ss:$24 sps:$4 sm:$0xff]  }
 0x160   :  { %2534 = vmatprep.subr.bf16.mxu1 %v17057_v47  ;;  %v17116_v47 = vld [vmem:[%s24727_s2 + $0x344] ss:$24 sps:$4 sm:$0xff]  }
 0x161   :  { %4510 = vmatpush1.bf16.msra.mxu0 %v17052_v49  ;;  %v17119_v49 = vld [vmem:[%s24727_s2 + $0x974] ss:$24 sps:$4 sm:$0xff]  }
 0x162   :  { %4511 = vmatprep.subr.bf16.mxu0 %v17060_v52  ;;  %v17117_v52 = vld [vmem:[%s24727_s2 + $0x970] ss:$24 sps:$4 sm:$0xff]  }
 0x163   :  { %2535 = vmatpush1.bf16.msra.mxu1 %v17055_v51  ;;  %v17114_v51 = vld [vmem:[%s24727_s2 + $0x340] ss:$24 sps:$4 sm:$0xff]  }
 0x164   :  { %2536 = vmatprep.subr.bf16.mxu1 %v17063_v54  ;;  %v17120_v54 = vld [vmem:[%s24727_s2 + $0x370] ss:$24 sps:$4 sm:$0xff]  }
 0x165   :  { %4512 = vmatpush1.bf16.msra.mxu0 %v17058_v55  ;;  %v17123_v55 = vld [vmem:[%s24727_s2 + $0x9a0] ss:$24 sps:$4 sm:$0xff]  }
 0x166   :  { %4513 = vmatprep.subr.bf16.mxu0 %v17066_v61  ;;  %v17131_v61 = vld [vmem:[%s24727_s2 + $0x9d4] ss:$24 sps:$4 sm:$0xff]  }
 0x167   :  { %2537 = vmatpush1.bf16.msra.mxu1 %v17061_v57  ;;  %v17128_v57 = vld [vmem:[%s24727_s2 + $0x3a4] ss:$24 sps:$4 sm:$0xff]  }
 0x168   :  { %2538 = vmatprep.subr.bf16.mxu1 %v17069_v63  ;;  %v17126_v63 = vld [vmem:[%s24727_s2 + $0x3a0] ss:$24 sps:$4 sm:$0xff]  }
 0x169   :  { %4514 = vmatpush1.bf16.msra.mxu0 %v17064_v0  ;;  %v17129_v0 = vld [vmem:[%s24727_s2 + $0x9d0] ss:$24 sps:$4 sm:$0xff]  }
 0x16a   :  { %4515 = vmatprep.subr.bf16.mxu0 %v17072_v5  ;;  %v17135_v5 = vld [vmem:[%s24727_s2 + $0xa00] ss:$24 sps:$4 sm:$0xff]  }
 0x16b   :  { %2539 = vmatpush1.bf16.msra.mxu1 %v17067_v4  ;;  %v17134_v4 = vld [vmem:[%s24727_s2 + $0x3d4] ss:$24 sps:$4 sm:$0xff]  }
 0x16c   :  { %2540 = vmatprep.subr.bf16.mxu1 %v17075_v6  ;;  %v17140_v6 = vld [vmem:[%s24727_s2 + $0x404] ss:$24 sps:$4 sm:$0xff]  }
 0x16d   :  { %4516 = vmatpush1.bf16.msra.mxu0 %v17070_v8  ;;  %v17143_v8 = vld [vmem:[%s24727_s2 + $0xa34] ss:$24 sps:$4 sm:$0xff]  }
 0x16e   :  { %4517 = vmatprep.subr.bf16.mxu0 %v17078_v13  ;;  %v17141_v13 = vld [vmem:[%s24727_s2 + $0xa30] ss:$24 sps:$4 sm:$0xff]  }
 0x16f   :  { %2541 = vmatpush1.bf16.msra.mxu1 %v17073_v9  ;;  %v17138_v9 = vld [vmem:[%s24727_s2 + $0x400] ss:$24 sps:$4 sm:$0xff]  }
 0x170   :  { %2542 = vmatprep.subr.bf16.mxu1 %v17081_v16  ;;  %v17146_v16 = vld [vmem:[%s24727_s2 + $0x434] ss:$24 sps:$4 sm:$0xff]  }
 0x171   :  { %4518 = vmatpush1.bf16.msra.mxu0 %v17076_v18  ;;  %v17149_v18 = vld [vmem:[%s24727_s2 + $0xa64] ss:$24 sps:$4 sm:$0xff]  }
 0x172   :  { %4519 = vmatprep.subr.bf16.mxu0 %v17084_v62  ;;  %v17147_v62 = vld [vmem:[%s24727_s2 + $0xa60] ss:$24 sps:$4 sm:$0xff]  }
 0x173   :  { %2543 = vmatpush1.bf16.msra.mxu1 %v17079_v1  ;;  %v17144_v1 = vld [vmem:[%s24727_s2 + $0x430] ss:$24 sps:$4 sm:$0xff]  }
 0x174   :  { %2544 = vmatprep.subr.bf16.mxu1 %v17087_v21  ;;  %v17152_v21 = vld [vmem:[%s24727_s2 + $0x464] ss:$24 sps:$4 sm:$0xff]  }
 0x175   :  { %4520 = vmatpush1.bf16.msra.mxu0 %v17082_v22  ;;  %v17155_v22 = vld [vmem:[%s24727_s2 + $0xa94] ss:$24 sps:$4 sm:$0xff]  }
 0x176   :  { %4521 = vmatprep.subr.bf16.mxu0 %v17090_v29  ;;  %v17153_v29 = vld [vmem:[%s24727_s2 + $0xa90] ss:$24 sps:$4 sm:$0xff]  }
 0x177   :  { %2545 = vmatpush1.bf16.msra.mxu1 %v17085_v27  ;;  %v17150_v27 = vld [vmem:[%s24727_s2 + $0x460] ss:$24 sps:$4 sm:$0xff]  }
 0x178   :  { %2546 = vmatprep.subr.bf16.mxu1 %v17093_v30  ;;  %v17158_v30 = vld [vmem:[%s24727_s2 + $0x494] ss:$24 sps:$4 sm:$0xff]  }
 0x179   :  { %4522 = vmatpush1.bf16.msra.mxu0 %v17088_v31  ;;  %v17161_v31 = vld [vmem:[%s24727_s2 + $0xac4] ss:$24 sps:$4 sm:$0xff]  }
 0x17a   :  { %4523 = vmatprep.subr.bf16.mxu0 %v17097_v10  ;;  %v17159_v10 = vld [vmem:[%s24727_s2 + $0xac0] ss:$24 sps:$4 sm:$0xff]  }
 0x17b   :  { %2547 = vmatpush1.bf16.msra.mxu1 %v17091_v32  ;;  %v17156_v32 = vld [vmem:[%s24727_s2 + $0x490] ss:$24 sps:$4 sm:$0xff]  }
 0x17c   :  { %2548 = vmatprep.subr.bf16.mxu1 %v17101_v25  ;;  %v17164_v25 = vld [vmem:[%s24727_s2 + $0x4c4] ss:$24 sps:$4 sm:$0xff]  }
 0x17d   :  { %4524 = vmatpush1.bf16.msra.mxu0 %v17095_v35  ;;  %v17167_v35 = vld [vmem:[%s24727_s2 + $0xaf4] ss:$24 sps:$4 sm:$0xff]  }
 0x17e   :  { %4525 = vmatprep.subr.bf16.mxu0 %v17104_v38  ;;  %v17165_v38 = vld [vmem:[%s24727_s2 + $0xaf0] ss:$24 sps:$4 sm:$0xff]  }
 0x17f   :  { %2549 = vmatpush1.bf16.msra.mxu1 %v17099_v36  ;;  %v17162_v36 = vld [vmem:[%s24727_s2 + $0x4c0] ss:$24 sps:$4 sm:$0xff]  }
 0x180   :  { %2569 = vmatprep.subr.bf16.mxu1 %v17107_v39  ;;  %v17170_v39 = vld [vmem:[%s24727_s2 + $0x4f4] ss:$24 sps:$4 sm:$0xff]  }
 0x181   :  { %4526 = vmatpush1.bf16.msra.mxu0 %v17102_v41  ;;  %v17173_v41 = vld [vmem:[%s24727_s2 + $0xb24] ss:$24 sps:$4 sm:$0xff]  }
 0x182   :  { %4546 = vmatprep.subr.bf16.mxu0 %v17110_v44  ;;  %2551 = vmatmul.mubr.bf16.vlgmr.msra.gmra.mrb[8].mxu1 %v19597_v58  ;;  %v17122_v58 = vld [vmem:[%s24727_s2 + $0x374] ss:$24 sps:$4 sm:$0xff]   ;;  %v17171_v44 = vld [vmem:[%s24727_s2 + $0xb20] ss:$24 sps:$4 sm:$0xff]  }
 0x183   :  { %2570 = vmatpush1.bf16.msra.mxu1 %v17105_v43  ;;  %2560 = vmatprep.mubr.bf16.mxu1 %v19599_v60  ;;  %v17125_v60 = vld [vmem:[%s24727_s2 + $0x9a4] ss:$24 sps:$4 sm:$0xff]   ;;  %v17168_v43 = vld [vmem:[%s24727_s2 + $0x4f0] ss:$24 sps:$4 sm:$0xff]  }
 0x184   :  { %4528 = vmatmul.mubr.bf16.vlgmr.msra.gmra.mrb[0].mxu0 %v19296_v15  ;;  %2571 = vmatprep.subr.bf16.mxu1 %v17113_v45  ;;  %v17176_v45 = vld [vmem:[%s24727_s2 + $0x524] ss:$24 sps:$4 sm:$0xff]  }
 0x185   :  { %4547 = vmatpush1.bf16.msra.mxu0 %v17108_v56  ;;  %4537 = vmatprep.mubr.bf16.mxu0 %v19804_v40  ;;  %v17179_v56 = vld [vmem:[%s24727_s2 + $0xb54] ss:$24 sps:$4 sm:$0xff]  }
 0x186   :  { %4548 = vmatprep.subr.bf16.mxu0 %v17116_v47  ;;  %v17177_v47 = vld [vmem:[%s24727_s2 + $0xb50] ss:$24 sps:$4 sm:$0xff]  }
 0x187   :  { %2572 = vmatpush1.bf16.msra.mxu1 %v17111_v46  ;;  %v17174_v46 = vld [vmem:[%s24727_s2 + $0x520] ss:$24 sps:$4 sm:$0xff]  }
 0x188   :  { %2573 = vmatprep.subr.bf16.mxu1 %v17119_v49  ;;  %v17182_v49 = vld [vmem:[%s24727_s2 + $0x554] ss:$24 sps:$4 sm:$0xff]  }
 0x189   :  { %4549 = vmatpush1.bf16.msra.mxu0 %v17114_v51  ;;  %v17185_v51 = vld [vmem:[%s24727_s2 + $0xb84] ss:$24 sps:$4 sm:$0xff]  }
 0x18a   :  { %4550 = vmatprep.subr.bf16.mxu0 %v17122_v58  ;;  %2561 = vmatmul.mubr.bf16.gmra.mrb[12].mxu1 %v19627_v11  ;;  %v17132_v11 = vld [vmem:[%s24727_s2 + $0x3d0] ss:$24 sps:$4 sm:$0xff]   ;;  %v17183_v58 = vld [vmem:[%s24727_s2 + $0xb80] ss:$24 sps:$4 sm:$0xff]  }
 0x18b   :  { %2574 = vmatpush1.bf16.msra.mxu1 %v17117_v52  ;;  %2601 = vmatprep.mubr.bf16.mxu1 %v19337_v48  ;;  %v17137_v48 = vld [vmem:[%s24727_s2 + $0xa04] ss:$24 sps:$4 sm:$0xff]   ;;  %v17180_v52 = vld [vmem:[%s24727_s2 + $0x550] ss:$24 sps:$4 sm:$0xff]  }
 0x18c   :  { %2575 = vmatprep.subr.bf16.mxu1 %v17125_v60  ;;  %4538 = vmatmul.mubr.bf16.gmra.mrb[4].mxu0 %v19831_v50  ;;  %v17188_v60 = vld [vmem:[%s24727_s2 + $0x584] ss:$24 sps:$4 sm:$0xff]  }
 0x18d   :  { %4551 = vmatpush1.bf16.msra.mxu0 %v17120_v54  ;;  %4578 = vmatprep.mubr.bf16.mxu0 %v19307_v23  ;;  %v17191_v54 = vld [vmem:[%s24727_s2 + $0xbb4] ss:$24 sps:$4 sm:$0xff]  }
 0x18e   :  { %4552 = vmatprep.subr.bf16.mxu0 %v17128_v57  ;;  %v17189_v57 = vld [vmem:[%s24727_s2 + $0xbb0] ss:$24 sps:$4 sm:$0xff]  }
 0x18f   :  { %2576 = vmatpush1.bf16.msra.mxu1 %v17123_v55  ;;  %v17186_v55 = vld [vmem:[%s24727_s2 + $0x580] ss:$24 sps:$4 sm:$0xff]  }
 0x190   :  { %2577 = vmatprep.subr.bf16.mxu1 %v17131_v61  ;;  %v17194_v61 = vld [vmem:[%s24727_s2 + $0x5b4] ss:$24 sps:$4 sm:$0xff]  }
 0x191   :  { %4553 = vmatpush1.bf16.msra.mxu0 %v17126_v63  ;;  %v17197_v63 = vld [vmem:[%s24727_s2 + $0xbe4] ss:$24 sps:$4 sm:$0xff]  }
 0x192   :  { %4554 = vmatprep.subr.bf16.mxu0 %v17134_v4  ;;  %v17195_v4 = vld [vmem:[%s24727_s2 + $0xbe0] ss:$24 sps:$4 sm:$0xff]  }
 0x193   :  { %2578 = vmatpush1.bf16.msra.mxu1 %v17129_v0  ;;  %v17192_v0 = vld [vmem:[%s24727_s2 + $0x5b0] ss:$24 sps:$4 sm:$0xff]  }
 0x194   :  { %2579 = vmatprep.subr.bf16.mxu1 %v17137_v48  ;;  %v17200_v48 = vld [vmem:[%s24727_s2 + $0x5e4] ss:$24 sps:$4 sm:$0xff]  }
 0x195   :  { %4555 = vmatpush1.bf16.msra.mxu0 %v17132_v11  ;;  %v17203_v11 = vld [vmem:[%s24727_s2 + $0xc] ss:$24 sps:$4 sm:$0xff]  }
 0x196   :  { %4556 = vmatprep.subr.bf16.mxu0 %v17140_v6  ;;  %v17201_v6 = vld [vmem:[%s24727_s2 + $0x8] ss:$24 sps:$4 sm:$0xff]  }
 0x197   :  { %2580 = vmatpush1.bf16.msra.mxu1 %v17135_v5  ;;  %v17198_v5 = vld [vmem:[%s24727_s2 + $0x5e0] ss:$24 sps:$4 sm:$0xff]  }
 0x198   :  { %2581 = vmatprep.subr.bf16.mxu1 %v17143_v8  ;;  %v17206_v8 = vld [vmem:[%s24727_s2 + $0x614] ss:$24 sps:$4 sm:$0xff]  }
 0x199   :  { %4557 = vmatpush1.bf16.msra.mxu0 %v17138_v9  ;;  %v17209_v9 = vld [vmem:[%s24727_s2 + $0x3c] ss:$24 sps:$4 sm:$0xff]  }
 0x19a   :  { %4558 = vmatprep.subr.bf16.mxu0 %v17146_v16  ;;  %v17207_v16 = vld [vmem:[%s24727_s2 + $0x38] ss:$24 sps:$4 sm:$0xff]  }
 0x19b   :  { %2582 = vmatpush1.bf16.msra.mxu1 %v17141_v13  ;;  %v17204_v13 = vld [vmem:[%s24727_s2 + $0x610] ss:$24 sps:$4 sm:$0xff]  }
 0x19c   :  { %2583 = vmatprep.subr.bf16.mxu1 %v17149_v18  ;;  %v17212_v18 = vld [vmem:[%s24727_s2 + $0x644] ss:$24 sps:$4 sm:$0xff]  }
 0x19d   :  { %4559 = vmatpush1.bf16.msra.mxu0 %v17144_v1  ;;  %v17215_v1 = vld [vmem:[%s24727_s2 + $0x6c] ss:$24 sps:$4 sm:$0xff]  }
 0x19e   :  { %4560 = vmatprep.subr.bf16.mxu0 %v17152_v21  ;;  %v17218_v21 = vld [vmem:[%s24727_s2 + $0x674] ss:$24 sps:$4 sm:$0xff]  }
 0x19f   :  { %2584 = vmatpush1.bf16.msra.mxu1 %v17147_v62  ;;  %v17213_v62 = vld [vmem:[%s24727_s2 + $0x68] ss:$24 sps:$4 sm:$0xff]  }
 0x1a0   :  { %2585 = vmatprep.subr.bf16.mxu1 %v17155_v22  ;;  %v17216_v22 = vld [vmem:[%s24727_s2 + $0x670] ss:$24 sps:$4 sm:$0xff]  }
 0x1a1   :  { %4561 = vmatpush1.bf16.msra.mxu0 %v17150_v27  ;;  %v17219_v27 = vld [vmem:[%s24727_s2 + $0x98] ss:$24 sps:$4 sm:$0xff]  }
 0x1a2   :  { %4562 = vmatprep.subr.bf16.mxu0 %v17158_v30  ;;  %v17227_v30 = vld [vmem:[%s24727_s2 + $0xcc] ss:$24 sps:$4 sm:$0xff]  }
 0x1a3   :  { %2586 = vmatpush1.bf16.msra.mxu1 %v17153_v29  ;;  %v17224_v29 = vld [vmem:[%s24727_s2 + $0x6a4] ss:$24 sps:$4 sm:$0xff]  }
 0x1a4   :  { %2587 = vmatprep.subr.bf16.mxu1 %v17161_v31  ;;  %v17222_v31 = vld [vmem:[%s24727_s2 + $0x6a0] ss:$24 sps:$4 sm:$0xff]  }
 0x1a5   :  { %4563 = vmatpush1.bf16.msra.mxu0 %v17156_v32  ;;  %v17225_v32 = vld [vmem:[%s24727_s2 + $0xc8] ss:$24 sps:$4 sm:$0xff]  }
 0x1a6   :  { %4564 = vmatprep.subr.bf16.mxu0 %v17164_v25  ;;  %v17231_v25 = vld [vmem:[%s24727_s2 + $0xf8] ss:$24 sps:$4 sm:$0xff]  }
 0x1a7   :  { %2588 = vmatpush1.bf16.msra.mxu1 %v17159_v10  ;;  %v17230_v10 = vld [vmem:[%s24727_s2 + $0x6d4] ss:$24 sps:$4 sm:$0xff]  }
 0x1a8   :  { %2589 = vmatprep.subr.bf16.mxu1 %v17167_v35  ;;  %v17236_v35 = vld [vmem:[%s24727_s2 + $0x704] ss:$24 sps:$4 sm:$0xff]  }
 0x1a9   :  { %4565 = vmatpush1.bf16.msra.mxu0 %v17162_v36  ;;  %v17239_v36 = vld [vmem:[%s24727_s2 + $0x12c] ss:$24 sps:$4 sm:$0xff]  }
 0x1aa   :  { %4566 = vmatprep.subr.bf16.mxu0 %v17170_v39  ;;  %v17237_v39 = vld [vmem:[%s24727_s2 + $0x128] ss:$24 sps:$4 sm:$0xff]  }
 0x1ab   :  { %2590 = vmatpush1.bf16.msra.mxu1 %v17165_v38  ;;  %v17234_v38 = vld [vmem:[%s24727_s2 + $0x700] ss:$24 sps:$4 sm:$0xff]  }
 0x1ac   :  { %2591 = vmatprep.subr.bf16.mxu1 %v17173_v41  ;;  %v17242_v41 = vld [vmem:[%s24727_s2 + $0x734] ss:$24 sps:$4 sm:$0xff]  }
 0x1ad   :  { %4567 = vmatpush1.bf16.msra.mxu0 %v17168_v43  ;;  %v17245_v43 = vld [vmem:[%s24727_s2 + $0x15c] ss:$24 sps:$4 sm:$0xff]  }
 0x1ae   :  { %4568 = vmatprep.subr.bf16.mxu0 %v17176_v45  ;;  %v17243_v45 = vld [vmem:[%s24727_s2 + $0x158] ss:$24 sps:$4 sm:$0xff]  }
 0x1af   :  { %2592 = vmatpush1.bf16.msra.mxu1 %v17171_v44  ;;  %v17240_v44 = vld [vmem:[%s24727_s2 + $0x730] ss:$24 sps:$4 sm:$0xff]  }
 0x1b0   :  { %2593 = vmatprep.subr.bf16.mxu1 %v17179_v56  ;;  %v17248_v56 = vld [vmem:[%s24727_s2 + $0x764] ss:$24 sps:$4 sm:$0xff]  }
 0x1b1   :  { %4569 = vmatpush1.bf16.msra.mxu0 %v17174_v46  ;;  %v17251_v46 = vld [vmem:[%s24727_s2 + $0x18c] ss:$24 sps:$4 sm:$0xff]  }
 0x1b2   :  { %4570 = vmatprep.subr.bf16.mxu0 %v17182_v49  ;;  %v17249_v49 = vld [vmem:[%s24727_s2 + $0x188] ss:$24 sps:$4 sm:$0xff]  }
 0x1b3   :  { %2594 = vmatpush1.bf16.msra.mxu1 %v17177_v47  ;;  %v17246_v47 = vld [vmem:[%s24727_s2 + $0x760] ss:$24 sps:$4 sm:$0xff]  }
 0x1b4   :  { %2595 = vmatprep.subr.bf16.mxu1 %v17185_v51  ;;  %v17254_v51 = vld [vmem:[%s24727_s2 + $0x794] ss:$24 sps:$4 sm:$0xff]  }
 0x1b5   :  { %4571 = vmatpush1.bf16.msra.mxu0 %v17180_v52  ;;  %v17257_v52 = vld [vmem:[%s24727_s2 + $0x1bc] ss:$24 sps:$4 sm:$0xff]  }
 0x1b6   :  { %4572 = vmatprep.subr.bf16.mxu0 %v17188_v60  ;;  %v17255_v60 = vld [vmem:[%s24727_s2 + $0x1b8] ss:$24 sps:$4 sm:$0xff]  }
 0x1b7   :  { %2596 = vmatpush1.bf16.msra.mxu1 %v17183_v58  ;;  %v17252_v58 = vld [vmem:[%s24727_s2 + $0x790] ss:$24 sps:$4 sm:$0xff]  }
 0x1b8   :  { %2597 = vmatprep.subr.bf16.mxu1 %v17191_v54  ;;  %v17260_v54 = vld [vmem:[%s24727_s2 + $0x7c4] ss:$24 sps:$4 sm:$0xff]  }
 0x1b9   :  { %4573 = vmatpush1.bf16.msra.mxu0 %v17186_v55  ;;  %v17263_v55 = vld [vmem:[%s24727_s2 + $0x1ec] ss:$24 sps:$4 sm:$0xff]  }
 0x1ba   :  { %4574 = vmatprep.subr.bf16.mxu0 %v17194_v61  ;;  %v17261_v61 = vld [vmem:[%s24727_s2 + $0x1e8] ss:$24 sps:$4 sm:$0xff]  }
 0x1bb   :  { %2598 = vmatpush1.bf16.msra.mxu1 %v17189_v57  ;;  %v17258_v57 = vld [vmem:[%s24727_s2 + $0x7c0] ss:$24 sps:$4 sm:$0xff]  }
 0x1bc   :  { %2599 = vmatprep.subr.bf16.mxu1 %v17197_v63  ;;  %v17266_v63 = vld [vmem:[%s24727_s2 + $0x7f4] ss:$24 sps:$4 sm:$0xff]  }
 0x1bd   :  { %4575 = vmatpush1.bf16.msra.mxu0 %v17192_v0  ;;  %v17269_v0 = vld [vmem:[%s24727_s2 + $0x21c] ss:$24 sps:$4 sm:$0xff]  }
 0x1be   :  { %4576 = vmatprep.subr.bf16.mxu0 %v17200_v48  ;;  %v17267_v48 = vld [vmem:[%s24727_s2 + $0x218] ss:$24 sps:$4 sm:$0xff]  }
 0x1bf   :  { %2600 = vmatpush1.bf16.msra.mxu1 %v17195_v4  ;;  %v17264_v4 = vld [vmem:[%s24727_s2 + $0x7f0] ss:$24 sps:$4 sm:$0xff]  }
 0x1c0   :  { %4342 = vmatprep.subr.bf16.mxu1 %v17203_v11  ;;  %v17272_v11 = vld [vmem:[%s24727_s2 + $0x824] ss:$24 sps:$4 sm:$0xff]  }
 0x1c1   :  { %4577 = vmatpush1.bf16.msra.mxu0 %v17198_v5  ;;  %v17275_v5 = vld [vmem:[%s24727_s2 + $0x24c] ss:$24 sps:$4 sm:$0xff]  }
 0x1c2   :  { %4597 = vmatprep.subr.bf16.mxu0 %v17206_v8  ;;  %2602 = vmatmul.mubr.bf16.vlgmr.msra.gmra.mrb[16].mxu1 %v19345_v53  ;;  %v17210_v53 = vld [vmem:[%s24727_s2 + $0x640] ss:$24 sps:$4 sm:$0xff]  }
 0x1c3   :  { %4343 = vmatpush1.bf16.msra.mxu1 %v17201_v6  ;;  %2611 = vmatprep.mubr.bf16.mxu1 %v19355_v59  ;;  %v17221_v59 = vld [vmem:[%s24727_s2 + $0x9c] ss:$24 sps:$4 sm:$0xff]   ;;  %v17270_v6 = vld [vmem:[%s24727_s2 + $0x820] ss:$24 sps:$4 sm:$0xff]  }
 0x1c4   :  { %4579 = vmatmul.mubr.bf16.vlgmr.msra.gmra.mrb[0].mxu0 %v19320_v33  ;;  %4344 = vmatprep.subr.bf16.mxu1 %v17209_v9  ;;  %v17273_v8 = vld [vmem:[%s24727_s2 + $0x248] ss:$24 sps:$4 sm:$0xff]   ;;  %v17278_v9 = vld [vmem:[%s24727_s2 + $0x854] ss:$24 sps:$4 sm:$0xff]  }
 0x1c5   :  { %4598 = vmatpush1.bf16.msra.mxu0 %v17204_v13  ;;  %4588 = vmatprep.mubr.bf16.mxu0 %v20008_v24  ;;  %v17281_v13 = vld [vmem:[%s24727_s2 + $0x27c] ss:$24 sps:$4 sm:$0xff]  }
 0x1c6   :  { %4599 = vmatprep.subr.bf16.mxu0 %v17212_v18  ;;  %v17279_v18 = vld [vmem:[%s24727_s2 + $0x278] ss:$24 sps:$4 sm:$0xff]  }
 0x1c7   :  { %4345 = vmatpush1.bf16.msra.mxu1 %v17207_v16  ;;  %v17276_v16 = vld [vmem:[%s24727_s2 + $0x850] ss:$24 sps:$4 sm:$0xff]  }
 0x1c8   :  { %4346 = vmatprep.subr.bf16.mxu1 %v17215_v1  ;;  %v17284_v1 = vld [vmem:[%s24727_s2 + $0x884] ss:$24 sps:$4 sm:$0xff]  }
 0x1c9   :  { %4600 = vmatpush1.bf16.msra.mxu0 %v17210_v53  ;;  %v17287_v53 = vld [vmem:[%s24727_s2 + $0x2ac] ss:$24 sps:$4 sm:$0xff]  }
 0x1ca   :  { %4601 = vmatprep.subr.bf16.mxu0 %v17218_v21  ;;  %2612 = vmatmul.mubr.bf16.gmra.mrb[20].mxu1 %v19387_v7  ;;  %v17228_v7 = vld [vmem:[%s24727_s2 + $0x6d0] ss:$24 sps:$4 sm:$0xff]  }
 0x1cb   :  { %4347 = vmatpush1.bf16.msra.mxu1 %v17213_v62  ;;  %4374 = vmatprep.mubr.bf16.mxu1 %v19294_v14  ;;  %v17233_v14 = vld [vmem:[%s24727_s2 + $0xfc] ss:$24 sps:$4 sm:$0xff]   ;;  %v17282_v62 = vld [vmem:[%s24727_s2 + $0x880] ss:$24 sps:$4 sm:$0xff]  }
 0x1cc   :  { %4348 = vmatprep.subr.bf16.mxu1 %v17221_v59  ;;  %4589 = vmatmul.mubr.bf16.gmra.mrb[4].mxu0 %v20035_v37  ;;  %v17285_v21 = vld [vmem:[%s24727_s2 + $0x2a8] ss:$24 sps:$4 sm:$0xff]   ;;  %v17290_v59 = vld [vmem:[%s24727_s2 + $0x8b4] ss:$24 sps:$4 sm:$0xff]  }
 0x1cd   :  { %4602 = vmatpush1.bf16.msra.mxu0 %v17216_v22  ;;  %4629 = vmatprep.mubr.bf16.mxu0 %v19502_v2  ;;  %v17293_v22 = vld [vmem:[%s24727_s2 + $0x2dc] ss:$24 sps:$4 sm:$0xff]  }
 0x1ce   :  { %4603 = vmatprep.subr.bf16.mxu0 %v17224_v29  ;;  %v17291_v29 = vld [vmem:[%s24727_s2 + $0x2d8] ss:$24 sps:$4 sm:$0xff]  }
 0x1cf   :  { %4349 = vmatpush1.bf16.msra.mxu1 %v17219_v27  ;;  %v17288_v27 = vld [vmem:[%s24727_s2 + $0x8b0] ss:$24 sps:$4 sm:$0xff]  }
 0x1d0   :  { %4350 = vmatprep.subr.bf16.mxu1 %v17227_v30  ;;  %v17296_v30 = vld [vmem:[%s24727_s2 + $0x8e4] ss:$24 sps:$4 sm:$0xff]  }
 0x1d1   :  { %4604 = vmatpush1.bf16.msra.mxu0 %v17222_v31  ;;  %v17299_v31 = vld [vmem:[%s24727_s2 + $0x30c] ss:$24 sps:$4 sm:$0xff]  }
 0x1d2   :  { %4605 = vmatprep.subr.bf16.mxu0 %v17230_v10  ;;  %v17297_v10 = vld [vmem:[%s24727_s2 + $0x308] ss:$24 sps:$4 sm:$0xff]  }
 0x1d3   :  { %4351 = vmatpush1.bf16.msra.mxu1 %v17225_v32  ;;  %v17294_v32 = vld [vmem:[%s24727_s2 + $0x8e0] ss:$24 sps:$4 sm:$0xff]  }
 0x1d4   :  { %4352 = vmatprep.subr.bf16.mxu1 %v17233_v14  ;;  %v17302_v14 = vld [vmem:[%s24727_s2 + $0x1204] ss:$24 sps:$4 sm:$0xff]  }
 0x1d5   :  { %4606 = vmatpush1.bf16.msra.mxu0 %v17228_v7  ;;  %v17305_v7 = vld [vmem:[%s24727_s2 + $0x33c] ss:$24 sps:$4 sm:$0xff]  }
 0x1d6   :  { %4607 = vmatprep.subr.bf16.mxu0 %v17236_v35  ;;  %v17300_v35 = vld [vmem:[%s24727_s2 + $0x1200] ss:$24 sps:$4 sm:$0xff]  }
 0x1d7   :  { %4353 = vmatpush1.bf16.msra.mxu1 %v17231_v25  ;;  %v20813_v25 = vld [vmem:[#allocation2] sm:$0xee] }
 0x1d8   :  { %4354 = vmatprep.subr.bf16.mxu1 %v17239_v36  ;;  %v17303_v36 = vld [vmem:[%s24727_s2 + $0x338] ss:$24 sps:$4 sm:$0xff]  }
 0x1d9   :  { %4608 = vmatpush1.bf16.msra.mxu0 %v17234_v38  ;;  %v17308_v38 = vld [vmem:[%s24727_s2 + $0x1234] ss:$24 sps:$4 sm:$0xff]  }
 0x1da   :  { %4609 = vmatprep.subr.bf16.mxu0 %v17242_v41  ;;  %v20828_v41 = vld [vmem:[#allocation2 + $0x18] sm:$0xff] }
 0x1db   :  { %4355 = vmatpush1.bf16.msra.mxu1 %v17237_v39  ;;  %v17311_v39 = vld [vmem:[%s24727_s2 + $0x36c] ss:$24 sps:$4 sm:$0xff]  }
 0x1dc   :  { %4356 = vmatprep.subr.bf16.mxu1 %v17245_v43  ;;  %v20832_v43 = vcombine.high %v20813_v25, %v20828_v41 }
 0x1dd   :  { %4610 = vmatpush1.bf16.msra.mxu0 %v17240_v44  ;;  %v17309_v44 = vld [vmem:[%s24727_s2 + $0x368] ss:$24 sps:$4 sm:$0xff]  }
 0x1de   :  { %4611 = vmatprep.subr.bf16.mxu0 %v17248_v56  ;;  %v17317_v56 = vld [vmem:[%s24727_s2 + $0x39c] ss:$24 sps:$4 sm:$0xff]  }
 0x1df   :  { %4357 = vmatpush1.bf16.msra.mxu1 %v17243_v45  ;;  %v17314_v45 = vld [vmem:[%s24727_s2 + $0x1264] ss:$24 sps:$4 sm:$0xff]  }
 0x1e0   :  { %4358 = vmatprep.subr.bf16.mxu1 %v17251_v46  ;;  %v20851_v46 = vrot.slane %v19301_v17, 1  ;;  %v17323_v17 = vld [vmem:[%s24727_s2 + $0x3cc] ss:$24 sps:$4 sm:$0xff]  }
 0x1e1   :  { %4612 = vmatpush1.bf16.msra.mxu0 %v17246_v47  ;;  %v17312_v47 = vld [vmem:[%s24727_s2 + $0x1260] ss:$24 sps:$4 sm:$0xff]  }
 0x1e2   :  { %4613 = vmatprep.subr.bf16.mxu0 %v17254_v51  ;;  %v17320_v51 = vld [vmem:[%s24727_s2 + $0x1294] ss:$24 sps:$4 sm:$0xff]  }
 0x1e3   :  { %4359 = vmatpush1.bf16.msra.mxu1 %v17249_v49  ;;  %v17315_v49 = vld [vmem:[%s24727_s2 + $0x398] ss:$24 sps:$4 sm:$0xff]  }
 0x1e4   :  { %4360 = vmatprep.subr.bf16.mxu1 %v17257_v52 }
 0x1e5   :  { %4614 = vmatpush1.bf16.msra.mxu0 %v17252_v58  ;;  %v17318_v58 = vld [vmem:[%s24727_s2 + $0x1290] ss:$24 sps:$4 sm:$0xff]  }
 0x1e6   :  { %4615 = vmatprep.subr.bf16.mxu0 %v17260_v54  ;;  %v17324_v54 = vld [vmem:[%s24727_s2 + $0x12c0] ss:$24 sps:$4 sm:$0xff]  }
 0x1e7   :  { %4361 = vmatpush1.bf16.msra.mxu1 %v17255_v60  ;;  %v17321_v60 = vld [vmem:[%s24727_s2 + $0x3c8] ss:$24 sps:$4 sm:$0xff]  }
 0x1e8   :  { %4362 = vmatprep.subr.bf16.mxu1 %v17263_v55  ;;  %v17327_v55 = vld [vmem:[%s24727_s2 + $0x3f8] ss:$24 sps:$4 sm:$0xff]  }
 0x1e9   :  { %4616 = vmatpush1.bf16.msra.mxu0 %v17258_v57  ;;  %v17332_v57 = vld [vmem:[%s24727_s2 + $0x12f4] ss:$24 sps:$4 sm:$0xff]  }
 0x1ea   :  { %4617 = vmatprep.subr.bf16.mxu0 %v17266_v63  ;;  %v17330_v63 = vld [vmem:[%s24727_s2 + $0x12f0] ss:$24 sps:$4 sm:$0xff]  }
 0x1eb   :  { %4363 = vmatpush1.bf16.msra.mxu1 %v17261_v61  ;;  %v17335_v61 = vld [vmem:[%s24727_s2 + $0x42c] ss:$24 sps:$4 sm:$0xff]  }
 0x1ec   :  { %4364 = vmatprep.subr.bf16.mxu1 %v17269_v0  ;;  %v17333_v0 = vld [vmem:[%s24727_s2 + $0x428] ss:$24 sps:$4 sm:$0xff]  }
 0x1ed   :  { %4618 = vmatpush1.bf16.msra.mxu0 %v17264_v4  ;;  %v20903_v4 = vpop.f32.mrb[0].mxu1 }
 0x1ee   :  { %4619 = vmatprep.subr.bf16.mxu0 %v17272_v11  ;;  %v17341_v11 = vld [vmem:[%s24727_s2 + $0x45c] ss:$24 sps:$4 sm:$0xff]  }
 0x1ef   :  { %4365 = vmatpush1.bf16.msra.mxu1 %v17267_v48  ;;  %v17338_v48 = vld [vmem:[%s24727_s2 + $0x1324] ss:$24 sps:$4 sm:$0xff]  }
 0x1f0   :  { %4366 = vmatprep.subr.bf16.mxu1 %v17275_v5  ;;  %v20911_v5 = vpop.f32.mrb[1].mxu1 }
 0x1f1   :  { %4620 = vmatpush1.bf16.msra.mxu0 %v17270_v6  ;;  %v20913_v6 = vpop.f32.mrb[2].mxu1 }
 0x1f2   :  { %4621 = vmatprep.subr.bf16.mxu0 %v17278_v9  ;;  %v17339_v9 = vld [vmem:[%s24727_s2 + $0x458] ss:$24 sps:$4 sm:$0xff]  }
 0x1f3   :  { %4367 = vmatpush1.bf16.msra.mxu1 %v17273_v8  ;;  %v17336_v8 = vld [vmem:[%s24727_s2 + $0x1320] ss:$24 sps:$4 sm:$0xff]  }
 0x1f4   :  { %4368 = vmatprep.subr.bf16.mxu1 %v17281_v13  ;;  %v20921_v13 = vpop.f32.mrb[3].mxu1 }
 0x1f5   :  { %4622 = vmatpush1.bf16.msra.mxu0 %v17276_v16  ;;  %v17344_v16 = vld [vmem:[%s24727_s2 + $0x1354] ss:$24 sps:$4 sm:$0xff]  }
 0x1f6   :  { %4623 = vmatprep.subr.bf16.mxu0 %v17284_v1  ;;  %v17342_v1 = vld [vmem:[%s24727_s2 + $0x1350] ss:$24 sps:$4 sm:$0xff]  }
 0x1f7   :  { %4369 = vmatpush1.bf16.msra.mxu1 %v17279_v18  ;;  %v17347_v18 = vld [vmem:[%s24727_s2 + $0x48c] ss:$24 sps:$4 sm:$0xff]  }
 0x1f8   :  { %4370 = vmatprep.subr.bf16.mxu1 %v17287_v53  ;;  %v17345_v53 = vld [vmem:[%s24727_s2 + $0x488] ss:$24 sps:$4 sm:$0xff]  }
 0x1f9   :  { %4624 = vmatpush1.bf16.msra.mxu0 %v17282_v62  ;;  %v17350_v62 = vld [vmem:[%s24727_s2 + $0x1384] ss:$24 sps:$4 sm:$0xff]  }
 0x1fa   :  { %4625 = vmatprep.subr.bf16.mxu0 %v17290_v59  ;;  %v17348_v59 = vld [vmem:[%s24727_s2 + $0x1380] ss:$24 sps:$4 sm:$0xff]  }
 0x1fb   :  { %4371 = vmatpush1.bf16.msra.mxu1 %v17285_v21  ;;  %v17353_v21 = vld [vmem:[%s24727_s2 + $0x4bc] ss:$24 sps:$4 sm:$0xff]  }
 0x1fc   :  { %4372 = vmatprep.subr.bf16.mxu1 %v17293_v22  ;;  %v17351_v22 = vld [vmem:[%s24727_s2 + $0x4b8] ss:$24 sps:$4 sm:$0xff]  }
 0x1fd   :  { %4626 = vmatpush1.bf16.msra.mxu0 %v17288_v27  ;;  %v17356_v27 = vld [vmem:[%s24727_s2 + $0x13b4] ss:$24 sps:$4 sm:$0xff]  }
 0x1fe   :  { %4627 = vmatprep.subr.bf16.mxu0 %v17296_v30  ;;  %v17354_v30 = vld [vmem:[%s24727_s2 + $0x13b0] ss:$24 sps:$4 sm:$0xff]  }
 0x1ff   :  { %4373 = vmatpush1.bf16.msra.mxu1 %v17291_v29  ;;  %v17359_v29 = vld [vmem:[%s24727_s2 + $0x4ec] ss:$24 sps:$4 sm:$0xff]  }
 0x200   :  { %4393 = vmatprep.subr.bf16.mxu1 %v17299_v31  ;;  %v17357_v31 = vld [vmem:[%s24727_s2 + $0x4e8] ss:$24 sps:$4 sm:$0xff]  }
 0x201   :  { %4628 = vmatpush1.bf16.msra.mxu0 %v17294_v32  ;;  %v17362_v32 = vld [vmem:[%s24727_s2 + $0x13e4] ss:$24 sps:$4 sm:$0xff]  }
 0x202   :  { %6426 = vmatprep.subr.bf16.mxu0 %v17302_v14  ;;  %4375 = vmatmul.mubr.bf16.vlgmr.msra.gmra.mrb[8].mxu1 %v19296_v15  ;;  %v17306_v15 = vld [vmem:[%s24727_s2 + $0x1230] ss:$24 sps:$4 sm:$0xff]   ;;  %v17360_v14 = vld [vmem:[%s24727_s2 + $0x13e0] ss:$24 sps:$4 sm:$0xff]  }
 0x203   :  { %4394 = vmatpush1.bf16.msra.mxu1 %v17297_v10  ;;  %4384 = vmatprep.mubr.bf16.mxu1 %v19804_v40  ;;  %v4959_v40 = vrot.slane %v20832_v43, 1  ;;  %v17365_v10 = vld [vmem:[%s24727_s2 + $0x51c] ss:$24 sps:$4 sm:$0xff]  }
 0x204   :  { %4630 = vmatmul.mubr.bf16.vlgmr.msra.gmra.mrb[0].mxu0 %v19539_v28  ;;  %4395 = vmatprep.subr.bf16.mxu1 %v17305_v7  ;;  %v17363_v7 = vld [vmem:[%s24727_s2 + $0x518] ss:$24 sps:$4 sm:$0xff]  }
 0x205   :  { %6427 = vmatpush1.bf16.msra.mxu0 %v17300_v35  ;;  %4639 = vmatprep.mubr.bf16.mxu0 %v20218_v12  ;;  %v20868_v52 = vsel %vm4955_vm1, %v4959_v40, %v20851_v46  ;;  %v17368_v35 = vld [vmem:[%s24727_s2 + $0x1414] ss:$24 sps:$4 sm:$0xff]  }
 0x206   :  { %6428 = vmatprep.subr.bf16.mxu0 %v17308_v38  ;;  %v17366_v38 = vld [vmem:[%s24727_s2 + $0x1410] ss:$24 sps:$4 sm:$0xff]   ;;  %v17380_v40 = vld [vmem:[%s24727_s2 + $0x1474] ss:$24 sps:$4 sm:$0xff]  }
 0x207   :  { %4396 = vmatpush1.bf16.msra.mxu1 %v17303_v36  ;;  %v17371_v36 = vld [vmem:[%s24727_s2 + $0x54c] ss:$24 sps:$4 sm:$0xff]  }
 0x208   :  { %4397 = vmatprep.subr.bf16.mxu1 %v17311_v39  ;;  %v17369_v39 = vld [vmem:[%s24727_s2 + $0x548] ss:$24 sps:$4 sm:$0xff]  }
 0x209   :  { %6429 = vmatpush1.bf16.msra.mxu0 %v17306_v15  ;;  %v17374_v15 = vld [vmem:[%s24727_s2 + $0x1444] ss:$24 sps:$4 sm:$0xff]  }
 0x20a   :  { %6430 = vmatprep.subr.bf16.mxu0 %v17314_v45  ;;  %4385 = vmatmul.mubr.bf16.gmra.mrb[12].mxu1 %v19831_v50  ;;  %v17326_v50 = vld [vmem:[%s24727_s2 + $0x12c4] ss:$24 sps:$4 sm:$0xff]   ;;  %v17372_v45 = vld [vmem:[%s24727_s2 + $0x1440] ss:$24 sps:$4 sm:$0xff]  }
 0x20b   :  { %4398 = vmatpush1.bf16.msra.mxu1 %v17309_v44  ;;  %4425 = vmatprep.mubr.bf16.mxu1 %v19307_v23  ;;  %v17329_v23 = vld [vmem:[%s24727_s2 + $0x3fc] ss:$24 sps:$4 sm:$0xff]  }
 0x20c   :  { %4399 = vmatprep.subr.bf16.mxu1 %v17317_v56  ;;  %4640 = vmatmul.mubr.bf16.gmra.mrb[4].mxu0 %v20239_v20  ;;  %v17377_v44 = vld [vmem:[%s24727_s2 + $0x57c] ss:$24 sps:$4 sm:$0xff]   ;;  %v17375_v56 = vld [vmem:[%s24727_s2 + $0x578] ss:$24 sps:$4 sm:$0xff]  }
 0x20d   :  { %6431 = vmatpush1.bf16.msra.mxu0 %v17312_v47  ;;  %6458 = vmatprep.mubr.bf16.mxu0 %v20868_v52  ;;  %v17383_v47 = vld [vmem:[%s24727_s2 + $0x5ac] ss:$24 sps:$4 sm:$0xff]  }
 0x20e   :  { %6432 = vmatprep.subr.bf16.mxu0 %v17320_v51  ;;  %v17381_v51 = vld [vmem:[%s24727_s2 + $0x5a8] ss:$24 sps:$4 sm:$0xff]  }
 0x20f   :  { %4400 = vmatpush1.bf16.msra.mxu1 %v17315_v49  ;;  %v17378_v49 = vld [vmem:[%s24727_s2 + $0x1470] ss:$24 sps:$4 sm:$0xff]  }
 0x210   :  { %4401 = vmatprep.subr.bf16.mxu1 %v17323_v17  ;;  %v17386_v17 = vld [vmem:[%s24727_s2 + $0x14a4] ss:$24 sps:$4 sm:$0xff]  }
 0x211   :  { %6433 = vmatpush1.bf16.msra.mxu0 %v17318_v58  ;;  %v17389_v58 = vld [vmem:[%s24727_s2 + $0x5dc] ss:$24 sps:$4 sm:$0xff]  }
 0x212   :  { %6434 = vmatprep.subr.bf16.mxu0 %v17326_v50  ;;  %v17387_v50 = vld [vmem:[%s24727_s2 + $0x5d8] ss:$24 sps:$4 sm:$0xff]  }
 0x213   :  { %4402 = vmatpush1.bf16.msra.mxu1 %v17321_v60  ;;  %v17384_v60 = vld [vmem:[%s24727_s2 + $0x14a0] ss:$24 sps:$4 sm:$0xff]  }
 0x214   :  { %4403 = vmatprep.subr.bf16.mxu1 %v17329_v23  ;;  %v21021_v23 = vcombine.low %v20813_v25, %v20828_v41  ;;  %v17393_v25 = vld [vmem:[%s24727_s2 + $0x608] ss:$24 sps:$4 sm:$0xff]  }
 0x215   :  { %6435 = vmatpush1.bf16.msra.mxu0 %v17324_v54  ;;  %v17392_v54 = vld [vmem:[%s24727_s2 + $0x14d4] ss:$24 sps:$4 sm:$0xff]  }
 0x216   :  { %6436 = vmatprep.subr.bf16.mxu0 %v17332_v57  ;;  %v17390_v57 = vld [vmem:[%s24727_s2 + $0x14d0] ss:$24 sps:$4 sm:$0xff]   ;;  %v4956_v41 = vrot.slane %v21021_v23, 1 }
 0x217   :  { %4404 = vmatpush1.bf16.msra.mxu1 %v17327_v55  ;;  %v17395_v55 = vld [vmem:[%s24727_s2 + $0x60c] ss:$24 sps:$4 sm:$0xff]  }
 0x218   :  { %4405 = vmatprep.subr.bf16.mxu1 %v17335_v61  ;;  %v21037_v61 = vrot.slane %v19303_v19, 1 }
 0x219   :  { %6437 = vmatpush1.bf16.msra.mxu0 %v17330_v63  ;;  %v17400_v63 = vld [vmem:[%s24727_s2 + $0x1504] ss:$24 sps:$4 sm:$0xff]  }
 0x21a   :  { %6438 = vmatprep.subr.bf16.mxu0 %v17338_v48  ;;  %v21045_v48 = vld [vmem:[#allocation2 + $0x8] sm:$0xee]  ;;  %v21052_v19 = vsel %vm4955_vm1, %v4956_v41, %v21037_v61 }
 0x21b   :  { %4406 = vmatpush1.bf16.msra.mxu1 %v17333_v0  ;;  %v17403_v0 = vld [vmem:[%s24727_s2 + $0x63c] ss:$24 sps:$4 sm:$0xff]   ;;  %v17457_v41 = vld [vmem:[%s24727_s2 + $0x7ec] ss:$24 sps:$4 sm:$0xff]  }
 0x21c   :  { %4407 = vmatprep.subr.bf16.mxu1 %v17341_v11  ;;  %v17398_v11 = vld [vmem:[%s24727_s2 + $0x1500] ss:$24 sps:$4 sm:$0xff]  }
 0x21d   :  { %6439 = vmatpush1.bf16.msra.mxu0 %v17336_v8  ;;  %v17401_v8 = vld [vmem:[%s24727_s2 + $0x638] ss:$24 sps:$4 sm:$0xff]  }
 0x21e   :  { %6440 = vmatprep.subr.bf16.mxu0 %v17344_v16  ;;  %v17409_v16 = vld [vmem:[%s24727_s2 + $0x66c] ss:$24 sps:$4 sm:$0xff]  }
 0x21f   :  { %4408 = vmatpush1.bf16.msra.mxu1 %v17339_v9  ;;  %v17406_v9 = vld [vmem:[%s24727_s2 + $0x1534] ss:$24 sps:$4 sm:$0xff]  }
 0x220   :  { %4409 = vmatprep.subr.bf16.mxu1 %v17347_v18  ;;  %v21064_v18 = vld [vmem:[#allocation2 + $0x20] sm:$0xff] }
 0x221   :  { %6441 = vmatpush1.bf16.msra.mxu0 %v17342_v1  ;;  %v21068_v1 = vcombine.high %v21045_v48, %v21064_v18 }
 0x222   :  { %6442 = vmatprep.subr.bf16.mxu0 %v17350_v62  ;;  %v17412_v62 = vld [vmem:[%s24727_s2 + $0x1564] ss:$24 sps:$4 sm:$0xff]  }
 0x223   :  { %4410 = vmatpush1.bf16.msra.mxu1 %v17345_v53  ;;  %v17407_v53 = vld [vmem:[%s24727_s2 + $0x668] ss:$24 sps:$4 sm:$0xff]  }
 0x224   :  { %4411 = vmatprep.subr.bf16.mxu1 %v17353_v21  ;;  %v4965_v21 = vrot.slane %v21068_v1, 1 }
 0x225   :  { %6443 = vmatpush1.bf16.msra.mxu0 %v17348_v59  ;;  %v21087_v59 = vrot.slane %v19311_v26, 1  ;;  %v17421_v26 = vld [vmem:[%s24727_s2 + $0x6cc] ss:$24 sps:$4 sm:$0xff]  }
 0x226   :  { %6444 = vmatprep.subr.bf16.mxu0 %v17356_v27  ;;  %v17413_v27 = vld [vmem:[%s24727_s2 + $0x698] ss:$24 sps:$4 sm:$0xff]  }
 0x227   :  { %4412 = vmatpush1.bf16.msra.mxu1 %v17351_v22  ;;  %v17410_v22 = vld [vmem:[%s24727_s2 + $0x1560] ss:$24 sps:$4 sm:$0xff]  }
 0x228   :  { %4413 = vmatprep.subr.bf16.mxu1 %v17359_v29  ;;  %v17418_v29 = vld [vmem:[%s24727_s2 + $0x1594] ss:$24 sps:$4 sm:$0xff]  }
 0x229   :  { %6445 = vmatpush1.bf16.msra.mxu0 %v17354_v30  ;;  %v21104_v30 = vsel %vm4955_vm1, %v4965_v21, %v21087_v59  ;;  %v17472_v21 = vld [vmem:[%s24727_s2 + $0x1744] ss:$24 sps:$4 sm:$0xff]  }
 0x22a   :  { %6446 = vmatprep.subr.bf16.mxu0 %v17362_v32  ;;  %v17419_v32 = vld [vmem:[%s24727_s2 + $0x6c8] ss:$24 sps:$4 sm:$0xff]  }
 0x22b   :  { %4414 = vmatpush1.bf16.msra.mxu1 %v17357_v31  ;;  %v17416_v31 = vld [vmem:[%s24727_s2 + $0x1590] ss:$24 sps:$4 sm:$0xff]  }
 0x22c   :  { %4415 = vmatprep.subr.bf16.mxu1 %v17365_v10  ;;  %v17427_v10 = vld [vmem:[%s24727_s2 + $0x6fc] ss:$24 sps:$4 sm:$0xff]  }
 0x22d   :  { %6447 = vmatpush1.bf16.msra.mxu0 %v17360_v14 }
 0x22e   :  { %6448 = vmatprep.subr.bf16.mxu0 %v17368_v35 }
 0x22f   :  { %4416 = vmatpush1.bf16.msra.mxu1 %v17363_v7 }
 0x230   :  { %4417 = vmatprep.subr.bf16.mxu1 %v17371_v36  ;;  %v17422_v36 = vld [vmem:[%s24727_s2 + $0x15c0] ss:$24 sps:$4 sm:$0xff]  }
 0x231   :  { %6449 = vmatpush1.bf16.msra.mxu0 %v17366_v38  ;;  %v17425_v38 = vld [vmem:[%s24727_s2 + $0x6f8] ss:$24 sps:$4 sm:$0xff]  }
 0x232   :  { %6450 = vmatprep.subr.bf16.mxu0 %v17374_v15  ;;  %v17433_v15 = vld [vmem:[%s24727_s2 + $0x72c] ss:$24 sps:$4 sm:$0xff]  }
 0x233   :  { %4418 = vmatpush1.bf16.msra.mxu1 %v17369_v39  ;;  %v17430_v39 = vld [vmem:[%s24727_s2 + $0x15f4] ss:$24 sps:$4 sm:$0xff]  }
 0x234   :  { %4419 = vmatprep.subr.bf16.mxu1 %v17377_v44  ;;  %v17428_v44 = vld [vmem:[%s24727_s2 + $0x15f0] ss:$24 sps:$4 sm:$0xff]  }
 0x235   :  { %6451 = vmatpush1.bf16.msra.mxu0 %v17372_v45  ;;  %v17431_v45 = vld [vmem:[%s24727_s2 + $0x728] ss:$24 sps:$4 sm:$0xff]  }
 0x236   :  { %6452 = vmatprep.subr.bf16.mxu0 %v17380_v40  ;;  %v17439_v40 = vld [vmem:[%s24727_s2 + $0x75c] ss:$24 sps:$4 sm:$0xff]  }
 0x237   :  { %4420 = vmatpush1.bf16.msra.mxu1 %v17375_v56  ;;  %v17436_v56 = vld [vmem:[%s24727_s2 + $0x1624] ss:$24 sps:$4 sm:$0xff]  }
 0x238   :  { %4421 = vmatprep.subr.bf16.mxu1 %v17383_v47  ;;  %v17434_v47 = vld [vmem:[%s24727_s2 + $0x1620] ss:$24 sps:$4 sm:$0xff]  }
 0x239   :  { %6453 = vmatpush1.bf16.msra.mxu0 %v17378_v49  ;;  %v17437_v49 = vld [vmem:[%s24727_s2 + $0x758] ss:$24 sps:$4 sm:$0xff]  }
 0x23a   :  { %6454 = vmatprep.subr.bf16.mxu0 %v17386_v17  ;;  %v17445_v17 = vld [vmem:[%s24727_s2 + $0x78c] ss:$24 sps:$4 sm:$0xff]  }
 0x23b   :  { %4422 = vmatpush1.bf16.msra.mxu1 %v17381_v51  ;;  %v17442_v51 = vld [vmem:[%s24727_s2 + $0x1654] ss:$24 sps:$4 sm:$0xff]  }
 0x23c   :  { %4423 = vmatprep.subr.bf16.mxu1 %v17389_v58  ;;  %v17440_v58 = vld [vmem:[%s24727_s2 + $0x1650] ss:$24 sps:$4 sm:$0xff]  }
 0x23d   :  { %6455 = vmatpush1.bf16.msra.mxu0 %v17384_v60  ;;  %v17443_v60 = vld [vmem:[%s24727_s2 + $0x788] ss:$24 sps:$4 sm:$0xff]  }
 0x23e   :  { %6456 = vmatprep.subr.bf16.mxu0 %v17392_v54  ;;  %v17451_v54 = vld [vmem:[%s24727_s2 + $0x7bc] ss:$24 sps:$4 sm:$0xff]  }
 0x23f   :  { %4424 = vmatpush1.bf16.msra.mxu1 %v17387_v50  ;;  %v17448_v50 = vld [vmem:[%s24727_s2 + $0x1684] ss:$24 sps:$4 sm:$0xff]  }
 0x240   :  { %4444 = vmatprep.subr.bf16.mxu1 %v17395_v55  ;;  %v17446_v55 = vld [vmem:[%s24727_s2 + $0x1680] ss:$24 sps:$4 sm:$0xff]  }
 0x241   :  { %6457 = vmatpush1.bf16.msra.mxu0 %v17390_v57  ;;  %v17449_v57 = vld [vmem:[%s24727_s2 + $0x7b8] ss:$24 sps:$4 sm:$0xff]  }
 0x242   :  { %6477 = vmatprep.subr.bf16.mxu0 %v17400_v63  ;;  %4426 = vmatmul.mubr.bf16.vlgmr.msra.gmra.mrb[8].mxu1 %v19320_v33  ;;  %v17404_v33 = vld [vmem:[%s24727_s2 + $0x1530] ss:$24 sps:$4 sm:$0xff]  }
 0x243   :  { %4445 = vmatpush1.bf16.msra.mxu1 %v17393_v25  ;;  %4435 = vmatprep.mubr.bf16.mxu1 %v20008_v24  ;;  %v17415_v24 = vld [vmem:[%s24727_s2 + $0x69c] ss:$24 sps:$4 sm:$0xff]   ;;  %v17452_v63 = vld [vmem:[%s24727_s2 + $0x16b0] ss:$24 sps:$4 sm:$0xff]  }
 0x244   :  { %6459 = vmatmul.mubr.bf16.vlgmr.msra.gmra.mrb[8].mxu0 %v21052_v19  ;;  %4446 = vmatprep.subr.bf16.mxu1 %v17403_v0  ;;  %v17454_v25 = vld [vmem:[%s24727_s2 + $0x16b4] ss:$24 sps:$4 sm:$0xff]   ;;  %v17455_v0 = vld [vmem:[%s24727_s2 + $0x7e8] ss:$24 sps:$4 sm:$0xff]  }
 0x245   :  { %6478 = vmatpush1.bf16.msra.mxu0 %v17398_v11  ;;  %6468 = vmatprep.mubr.bf16.mxu0 %v20851_v46  ;;  %v17460_v11 = vld [vmem:[%s24727_s2 + $0x16e4] ss:$24 sps:$4 sm:$0xff]  }
 0x246   :  { %6479 = vmatprep.subr.bf16.mxu0 %v17406_v9  ;;  %v17458_v9 = vld [vmem:[%s24727_s2 + $0x16e0] ss:$24 sps:$4 sm:$0xff]  }
 0x247   :  { %4447 = vmatpush1.bf16.msra.mxu1 %v17401_v8  ;;  %v17463_v8 = vld [vmem:[%s24727_s2 + $0x81c] ss:$24 sps:$4 sm:$0xff]  }
 0x248   :  { %4448 = vmatprep.subr.bf16.mxu1 %v17409_v16  ;;  %v17461_v16 = vld [vmem:[%s24727_s2 + $0x818] ss:$24 sps:$4 sm:$0xff]  }
 0x249   :  { %6480 = vmatpush1.bf16.msra.mxu0 %v17404_v33  ;;  %v17466_v33 = vld [vmem:[%s24727_s2 + $0x1714] ss:$24 sps:$4 sm:$0xff]  }
 0x24a   :  { %6481 = vmatprep.subr.bf16.mxu0 %v17412_v62  ;;  %4436 = vmatmul.mubr.bf16.gmra.mrb[12].mxu1 %v20035_v37  ;;  %v21115_v37 = vpop.f32.mrb[4].mxu1  ;;  %v17464_v62 = vld [vmem:[%s24727_s2 + $0x1710] ss:$24 sps:$4 sm:$0xff]  }
 0x24b   :  { %4449 = vmatpush1.bf16.msra.mxu1 %v17407_v53  ;;  %4476 = vmatprep.mubr.bf16.mxu1 %v19502_v2  ;;  %v17424_v2 = vld [vmem:[%s24727_s2 + $0x15c4] ss:$24 sps:$4 sm:$0xff]   ;;  %v21123_v14 = vpop.f32.mrb[5].mxu1 }
 0x24c   :  { %4450 = vmatprep.subr.bf16.mxu1 %v17415_v24  ;;  %6469 = vmatmul.mubr.bf16.gmra.mrb[12].mxu0 %v21037_v61  ;;  %v2413_v7 = vpop.f32.mrb[6].mxu1  ;;  %v17469_v53 = vld [vmem:[%s24727_s2 + $0x84c] ss:$24 sps:$4 sm:$0xff]   ;;  %v17467_v24 = vld [vmem:[%s24727_s2 + $0x848] ss:$24 sps:$4 sm:$0xff]  }
 0x24d   :  { %6482 = vmatpush1.bf16.msra.mxu0 %v17410_v22  ;;  %6509 = vmatprep.mubr.bf16.mxu0 %v21104_v30  ;;  %v2414_v35 = vpop.f32.mrb[7].mxu1  ;;  %v17475_v22 = vld [vmem:[%s24727_s2 + $0x87c] ss:$24 sps:$4 sm:$0xff]  }
 0x24e   :  { %6483 = vmatprep.subr.bf16.mxu0 %v17418_v29  ;;  %v17473_v29 = vld [vmem:[%s24727_s2 + $0x878] ss:$24 sps:$4 sm:$0xff]   ;;  %v17487_v7 = vld [vmem:[%s24727_s2 + $0x8dc] ss:$24 sps:$4 sm:$0xff]  }
 0x24f   :  { %4451 = vmatpush1.bf16.msra.mxu1 %v17413_v27  ;;  %v17470_v27 = vld [vmem:[%s24727_s2 + $0x1740] ss:$24 sps:$4 sm:$0xff]  }
 0x250   :  { %4452 = vmatprep.subr.bf16.mxu1 %v17421_v26  ;;  %v17478_v26 = vld [vmem:[%s24727_s2 + $0x1774] ss:$24 sps:$4 sm:$0xff]   ;;  %v17482_v35 = vld [vmem:[%s24727_s2 + $0x17a0] ss:$24 sps:$4 sm:$0xff]  }
 0x251   :  { %6484 = vmatpush1.bf16.msra.mxu0 %v17416_v31  ;;  %v17481_v31 = vld [vmem:[%s24727_s2 + $0x8ac] ss:$24 sps:$4 sm:$0xff]  }
 0x252   :  { %6485 = vmatprep.subr.bf16.mxu0 %v17424_v2  ;;  %v17479_v2 = vld [vmem:[%s24727_s2 + $0x8a8] ss:$24 sps:$4 sm:$0xff]  }
 0x253   :  { %4453 = vmatpush1.bf16.msra.mxu1 %v17419_v32  ;;  %v17476_v32 = vld [vmem:[%s24727_s2 + $0x1770] ss:$24 sps:$4 sm:$0xff]  }
 0x254   :  { %4454 = vmatprep.subr.bf16.mxu1 %v17427_v10  ;;  %v17484_v10 = vld [vmem:[%s24727_s2 + $0x17a4] ss:$24 sps:$4 sm:$0xff]  }
 0x255   :  { %6486 = vmatpush1.bf16.msra.mxu0 %v17422_v36  ;;  %v17485_v36 = vld [vmem:[%s24727_s2 + $0x8d8] ss:$24 sps:$4 sm:$0xff]  }
 0x256   :  { %6487 = vmatprep.subr.bf16.mxu0 %v17430_v39  ;;  %v21256_v39 = vcombine.low %v21045_v48, %v21064_v18  ;;  %v17496_v48 = vld [vmem:[%s24727_s2 + $0x1208] ss:$24 sps:$4 sm:$0xff]  }
 0x257   :  { %4455 = vmatpush1.bf16.msra.mxu1 %v17425_v38  ;;  %v17490_v38 = vld [vmem:[%s24727_s2 + $0x17d4] ss:$24 sps:$4 sm:$0xff]  }
 0x258   :  { %4456 = vmatprep.subr.bf16.mxu1 %v17433_v15  ;;  %v17498_v15 = vld [vmem:[%s24727_s2 + $0x120c] ss:$24 sps:$4 sm:$0xff]   ;;  %v4962_v18 = vrot.slane %v21256_v39, 1 }
 0x259   :  { %6488 = vmatpush1.bf16.msra.mxu0 %v17428_v44  ;;  %v17488_v44 = vld [vmem:[%s24727_s2 + $0x17d0] ss:$24 sps:$4 sm:$0xff]  }
 0x25a   :  { %6489 = vmatprep.subr.bf16.mxu0 %v17436_v56  ;;  %v21272_v56 = vrot.slane %v19329_v42, 1  ;;  %v17501_v42 = vld [vmem:[%s24727_s2 + $0x1834] ss:$24 sps:$4 sm:$0xff]  }
 0x25b   :  { %4457 = vmatpush1.bf16.msra.mxu1 %v17431_v45  ;;  %v17495_v45 = vld [vmem:[%s24727_s2 + $0x1804] ss:$24 sps:$4 sm:$0xff]  }
 0x25c   :  { %4458 = vmatprep.subr.bf16.mxu1 %v17439_v40  ;;  %v17504_v40 = vld [vmem:[%s24727_s2 + $0x123c] ss:$24 sps:$4 sm:$0xff]  }
 0x25d   :  { %6490 = vmatpush1.bf16.msra.mxu0 %v17434_v47  ;;  %v21277_v47 = vld [vmem:[#allocation2 + $0x10] sm:$0xee] }
 0x25e   :  { %6491 = vmatprep.subr.bf16.mxu0 %v17442_v51  ;;  %v21284_v51 = vsel %vm4955_vm1, %v4962_v18, %v21272_v56  ;;  %v17555_v18 = vld [vmem:[%s24727_s2 + $0x19e4] ss:$24 sps:$4 sm:$0xff]  }
 0x25f   :  { %4459 = vmatpush1.bf16.msra.mxu1 %v17437_v49  ;;  %v17493_v49 = vld [vmem:[%s24727_s2 + $0x1800] ss:$24 sps:$4 sm:$0xff]  }
 0x260   :  { %4460 = vmatprep.subr.bf16.mxu1 %v17445_v17  ;;  %v17502_v17 = vld [vmem:[%s24727_s2 + $0x1238] ss:$24 sps:$4 sm:$0xff]  }
 0x261   :  { %6492 = vmatpush1.bf16.msra.mxu0 %v17440_v58  ;;  %v17510_v58 = vld [vmem:[%s24727_s2 + $0x126c] ss:$24 sps:$4 sm:$0xff]  }
 0x262   :  { %6493 = vmatprep.subr.bf16.mxu0 %v17448_v50 }
 0x263   :  { %4461 = vmatpush1.bf16.msra.mxu1 %v17443_v60  ;;  %v21296_v60 = vld [vmem:[#allocation2 + $0x28] sm:$0xff] }
 0x264   :  { %4462 = vmatprep.subr.bf16.mxu1 %v17451_v54  ;;  %v21300_v50 = vcombine.high %v21277_v47, %v21296_v60  ;;  %v17507_v54 = vld [vmem:[%s24727_s2 + $0x1864] ss:$24 sps:$4 sm:$0xff]  }
 0x265   :  { %6494 = vmatpush1.bf16.msra.mxu0 %v17446_v55  ;;  %v17508_v55 = vld [vmem:[%s24727_s2 + $0x1268] ss:$24 sps:$4 sm:$0xff]  }
 0x266   :  { %6495 = vmatprep.subr.bf16.mxu0 %v17454_v25  ;;  %v21319_v25 = vrot.slane %v19504_v3, 1  ;;  %v17522_v3 = vld [vmem:[%s24727_s2 + $0x12cc] ss:$24 sps:$4 sm:$0xff]  }
 0x267   :  { %4463 = vmatpush1.bf16.msra.mxu1 %v17449_v57  ;;  %v4971_v57 = vrot.slane %v21300_v50, 1 }
 0x268   :  { %4464 = vmatprep.subr.bf16.mxu1 %v17457_v41  ;;  %v17505_v41 = vld [vmem:[%s24727_s2 + $0x1860] ss:$24 sps:$4 sm:$0xff]  }
 0x269   :  { %6496 = vmatpush1.bf16.msra.mxu0 %v17452_v63  ;;  %v17513_v63 = vld [vmem:[%s24727_s2 + $0x1894] ss:$24 sps:$4 sm:$0xff]  }
 0x26a   :  { %6497 = vmatprep.subr.bf16.mxu0 %v17460_v11  ;;  %v21336_v11 = vsel %vm4955_vm1, %v4971_v57, %v21319_v25  ;;  %v17576_v57 = vld [vmem:[%s24727_s2 + $0x147c] ss:$24 sps:$4 sm:$0xff]  }
 0x26b   :  { %4465 = vmatpush1.bf16.msra.mxu1 %v17455_v0  ;;  %v17514_v0 = vld [vmem:[%s24727_s2 + $0x1298] ss:$24 sps:$4 sm:$0xff]  }
 0x26c   :  { %4466 = vmatprep.subr.bf16.mxu1 %v17463_v8  ;;  %v17511_v8 = vld [vmem:[%s24727_s2 + $0x1890] ss:$24 sps:$4 sm:$0xff]  }
 0x26d   :  { %6498 = vmatpush1.bf16.msra.mxu0 %v17458_v9  ;;  %v17519_v9 = vld [vmem:[%s24727_s2 + $0x18c4] ss:$24 sps:$4 sm:$0xff]  }
 0x26e   :  { %6499 = vmatprep.subr.bf16.mxu0 %v17466_v33  ;;  %v17517_v33 = vld [vmem:[%s24727_s2 + $0x18c0] ss:$24 sps:$4 sm:$0xff]  }
 0x26f   :  { %4467 = vmatpush1.bf16.msra.mxu1 %v17461_v16  ;;  %v17528_v16 = vld [vmem:[%s24727_s2 + $0x12fc] ss:$24 sps:$4 sm:$0xff]  }
 0x270   :  { %4468 = vmatprep.subr.bf16.mxu1 %v17469_v53  ;;  %v17525_v53 = vld [vmem:[%s24727_s2 + $0x18f4] ss:$24 sps:$4 sm:$0xff]  }
 0x271   :  { %6500 = vmatpush1.bf16.msra.mxu0 %v17464_v62  ;;  %v17526_v62 = vld [vmem:[%s24727_s2 + $0x12f8] ss:$24 sps:$4 sm:$0xff]  }
 0x272   :  { %6501 = vmatprep.subr.bf16.mxu0 %v17472_v21  ;;  %v17523_v21 = vld [vmem:[%s24727_s2 + $0x18f0] ss:$24 sps:$4 sm:$0xff]  }
 0x273   :  { %4469 = vmatpush1.bf16.msra.mxu1 %v17467_v24  ;;  %v17534_v24 = vld [vmem:[%s24727_s2 + $0x132c] ss:$24 sps:$4 sm:$0xff]  }
 0x274   :  { %4470 = vmatprep.subr.bf16.mxu1 %v17475_v22  ;;  %v17531_v22 = vld [vmem:[%s24727_s2 + $0x1924] ss:$24 sps:$4 sm:$0xff]  }
 0x275   :  { %6502 = vmatpush1.bf16.msra.mxu0 %v17470_v27  ;;  %v17532_v27 = vld [vmem:[%s24727_s2 + $0x1328] ss:$24 sps:$4 sm:$0xff]  }
 0x276   :  { %6503 = vmatprep.subr.bf16.mxu0 %v17478_v26  ;;  %v17529_v26 = vld [vmem:[%s24727_s2 + $0x1920] ss:$24 sps:$4 sm:$0xff]  }
 0x277   :  { %4471 = vmatpush1.bf16.msra.mxu1 %v17473_v29  ;;  %v17540_v29 = vld [vmem:[%s24727_s2 + $0x135c] ss:$24 sps:$4 sm:$0xff]  }
 0x278   :  { %4472 = vmatprep.subr.bf16.mxu1 %v17481_v31  ;;  %v17537_v31 = vld [vmem:[%s24727_s2 + $0x1954] ss:$24 sps:$4 sm:$0xff]  }
 0x279   :  { %6504 = vmatpush1.bf16.msra.mxu0 %v17476_v32  ;;  %v17538_v32 = vld [vmem:[%s24727_s2 + $0x1358] ss:$24 sps:$4 sm:$0xff]  }
 0x27a   :  { %6505 = vmatprep.subr.bf16.mxu0 %v17484_v10  ;;  %v17535_v10 = vld [vmem:[%s24727_s2 + $0x1950] ss:$24 sps:$4 sm:$0xff]  }
 0x27b   :  { %4473 = vmatpush1.bf16.msra.mxu1 %v17479_v2  ;;  %v17546_v2 = vld [vmem:[%s24727_s2 + $0x138c] ss:$24 sps:$4 sm:$0xff]  }
 0x27c   :  { %4474 = vmatprep.subr.bf16.mxu1 %v17487_v7  ;;  %v17543_v7 = vld [vmem:[%s24727_s2 + $0x1984] ss:$24 sps:$4 sm:$0xff]  }
 0x27d   :  { %6506 = vmatpush1.bf16.msra.mxu0 %v17482_v35  ;;  %v17544_v35 = vld [vmem:[%s24727_s2 + $0x1388] ss:$24 sps:$4 sm:$0xff]  }
 0x27e   :  { %6507 = vmatprep.subr.bf16.mxu0 %v17490_v38  ;;  %v17541_v38 = vld [vmem:[%s24727_s2 + $0x1980] ss:$24 sps:$4 sm:$0xff]  }
 0x27f   :  { %4475 = vmatpush1.bf16.msra.mxu1 %v17485_v36  ;;  %v17552_v36 = vld [vmem:[%s24727_s2 + $0x13bc] ss:$24 sps:$4 sm:$0xff]  }
 0x280   :  { %6579 = vmatprep.subr.bf16.mxu1 %v17498_v15  ;;  %v17549_v15 = vld [vmem:[%s24727_s2 + $0x19b4] ss:$24 sps:$4 sm:$0xff]  }
 0x281   :  { %6508 = vmatpush1.bf16.msra.mxu0 %v17488_v44  ;;  %v17550_v44 = vld [vmem:[%s24727_s2 + $0x13b8] ss:$24 sps:$4 sm:$0xff]  }
 0x282   :  { %6528 = vmatprep.subr.bf16.mxu0 %v17495_v45  ;;  %4477 = vmatmul.mubr.bf16.vlgmr.msra.gmra.mrb[8].mxu1 %v19539_v28  ;;  %v17499_v28 = vld [vmem:[%s24727_s2 + $0x1830] ss:$24 sps:$4 sm:$0xff]   ;;  %v17558_v45 = vld [vmem:[%s24727_s2 + $0x13ec] ss:$24 sps:$4 sm:$0xff]  }
 0x283   :  { %6580 = vmatpush1.bf16.msra.mxu1 %v17496_v48  ;;  %4486 = vmatprep.mubr.bf16.mxu1 %v20218_v12  ;;  %v17516_v12 = vld [vmem:[%s24727_s2 + $0x129c] ss:$24 sps:$4 sm:$0xff]   ;;  %v17547_v48 = vld [vmem:[%s24727_s2 + $0x19b0] ss:$24 sps:$4 sm:$0xff]  }
 0x284   :  { %6510 = vmatmul.mubr.bf16.vlgmr.msra.gmra.mrb[8].mxu0 %v21284_v51  ;;  %6581 = vmatprep.subr.bf16.mxu1 %v17504_v40  ;;  %v17556_v40 = vld [vmem:[%s24727_s2 + $0x13e8] ss:$24 sps:$4 sm:$0xff]  }
 0x285   :  { %6529 = vmatpush1.bf16.msra.mxu0 %v17493_v49  ;;  %6519 = vmatprep.mubr.bf16.mxu0 %v21087_v59  ;;  %v17564_v49 = vld [vmem:[%s24727_s2 + $0x141c] ss:$24 sps:$4 sm:$0xff]  }
 0x286   :  { %6530 = vmatprep.subr.bf16.mxu0 %v17501_v42  ;;  %v17553_v42 = vld [vmem:[%s24727_s2 + $0x19e0] ss:$24 sps:$4 sm:$0xff]  }
 0x287   :  { %6582 = vmatpush1.bf16.msra.mxu1 %v17502_v17  ;;  %v17561_v17 = vld [vmem:[%s24727_s2 + $0x1a14] ss:$24 sps:$4 sm:$0xff]  }
 0x288   :  { %6583 = vmatprep.subr.bf16.mxu1 %v17510_v58  ;;  %v17562_v58 = vld [vmem:[%s24727_s2 + $0x1418] ss:$24 sps:$4 sm:$0xff]  }
 0x289   :  { %6531 = vmatpush1.bf16.msra.mxu0 %v17499_v28  ;;  %v17570_v28 = vld [vmem:[%s24727_s2 + $0x144c] ss:$24 sps:$4 sm:$0xff]  }
 0x28a   :  { %6532 = vmatprep.subr.bf16.mxu0 %v17507_v54  ;;  %4487 = vmatmul.mubr.bf16.gmra.mrb[12].mxu1 %v20239_v20  ;;  %v17520_v20 = vld [vmem:[%s24727_s2 + $0x12c8] ss:$24 sps:$4 sm:$0xff]  }
 0x28b   :  { %6584 = vmatpush1.bf16.msra.mxu1 %v17508_v55  ;;  %6611 = vmatprep.mubr.bf16.mxu1 %v20868_v52  ;;  %v17559_v54 = vld [vmem:[%s24727_s2 + $0x1a10] ss:$24 sps:$4 sm:$0xff]   ;;  %v17567_v55 = vld [vmem:[%s24727_s2 + $0x1a44] ss:$24 sps:$4 sm:$0xff]  }
 0x28c   :  { %6585 = vmatprep.subr.bf16.mxu1 %v17516_v12  ;;  %6520 = vmatmul.mubr.bf16.gmra.mrb[12].mxu0 %v21272_v56  ;;  %v17568_v12 = vld [vmem:[%s24727_s2 + $0x1448] ss:$24 sps:$4 sm:$0xff]  }
 0x28d   :  { %6533 = vmatpush1.bf16.msra.mxu0 %v17505_v41  ;;  %6560 = vmatprep.mubr.bf16.mxu0 %v21336_v11  ;;  %v17565_v41 = vld [vmem:[%s24727_s2 + $0x1a40] ss:$24 sps:$4 sm:$0xff]  }
 0x28e   :  { %6534 = vmatprep.subr.bf16.mxu0 %v17513_v63  ;;  %v17573_v63 = vld [vmem:[%s24727_s2 + $0x1a74] ss:$24 sps:$4 sm:$0xff]  }
 0x28f   :  { %6586 = vmatpush1.bf16.msra.mxu1 %v17514_v0  ;;  %v17574_v0 = vld [vmem:[%s24727_s2 + $0x1478] ss:$24 sps:$4 sm:$0xff]  }
 0x290   :  { %6587 = vmatprep.subr.bf16.mxu1 %v17522_v3  ;;  %v17582_v3 = vld [vmem:[%s24727_s2 + $0x14ac] ss:$24 sps:$4 sm:$0xff]  }
 0x291   :  { %6535 = vmatpush1.bf16.msra.mxu0 %v17511_v8  ;;  %v17571_v8 = vld [vmem:[%s24727_s2 + $0x1a70] ss:$24 sps:$4 sm:$0xff]  }
 0x292   :  { %6536 = vmatprep.subr.bf16.mxu0 %v17519_v9  ;;  %v17579_v9 = vld [vmem:[%s24727_s2 + $0x1aa4] ss:$24 sps:$4 sm:$0xff]  }
 0x293   :  { %6588 = vmatpush1.bf16.msra.mxu1 %v17520_v20  ;;  %v17580_v20 = vld [vmem:[%s24727_s2 + $0x14a8] ss:$24 sps:$4 sm:$0xff]  }
 0x294   :  { %6589 = vmatprep.subr.bf16.mxu1 %v17528_v16  ;;  %v17588_v16 = vld [vmem:[%s24727_s2 + $0x14dc] ss:$24 sps:$4 sm:$0xff]  }
 0x295   :  { %6537 = vmatpush1.bf16.msra.mxu0 %v17517_v33  ;;  %v17577_v33 = vld [vmem:[%s24727_s2 + $0x1aa0] ss:$24 sps:$4 sm:$0xff]  }
 0x296   :  { %6538 = vmatprep.subr.bf16.mxu0 %v17525_v53  ;;  %v17585_v53 = vld [vmem:[%s24727_s2 + $0x1ad4] ss:$24 sps:$4 sm:$0xff]  }
 0x297   :  { %6590 = vmatpush1.bf16.msra.mxu1 %v17526_v62  ;;  %v17586_v62 = vld [vmem:[%s24727_s2 + $0x14d8] ss:$24 sps:$4 sm:$0xff]  }
 0x298   :  { %6591 = vmatprep.subr.bf16.mxu1 %v17534_v24  ;;  %v21484_v24 = vcombine.low %v21277_v47, %v21296_v60  ;;  %v17596_v47 = vld [vmem:[%s24727_s2 + $0x1214] ss:$24 sps:$4 sm:$0xff]  }
 0x299   :  { %6539 = vmatpush1.bf16.msra.mxu0 %v17523_v21  ;;  %v17593_v21 = vld [vmem:[%s24727_s2 + $0x150c] ss:$24 sps:$4 sm:$0xff]  }
 0x29a   :  { %6540 = vmatprep.subr.bf16.mxu0 %v17531_v22  ;;  %v17583_v22 = vld [vmem:[%s24727_s2 + $0x1ad0] ss:$24 sps:$4 sm:$0xff]   ;;  %v4968_v60 = vrot.slane %v21484_v24, 1 }
 0x29b   :  { %6592 = vmatpush1.bf16.msra.mxu1 %v17532_v27  ;;  %v17591_v27 = vld [vmem:[%s24727_s2 + $0x1508] ss:$24 sps:$4 sm:$0xff]  }
 0x29c   :  { %6593 = vmatprep.subr.bf16.mxu1 %v17540_v29  ;;  %v21500_v29 = vrot.slane %v19554_v34, 1  ;;  %v17597_v34 = vld [vmem:[%s24727_s2 + $0x1538] ss:$24 sps:$4 sm:$0xff]  }
 0x29d   :  { %6541 = vmatpush1.bf16.msra.mxu0 %v17529_v26  ;;  %v17599_v26 = vld [vmem:[%s24727_s2 + $0x153c] ss:$24 sps:$4 sm:$0xff]  }
 0x29e   :  { %6542 = vmatprep.subr.bf16.mxu0 %v17537_v31  ;;  %v17594_v31 = vld [vmem:[%s24727_s2 + $0x1210] ss:$24 sps:$4 sm:$0xff]  }
 0x29f   :  { %6594 = vmatpush1.bf16.msra.mxu1 %v17538_v32  ;;  %v21510_v32 = vsel %vm4955_vm1, %v4968_v60, %v21500_v29  ;;  %v17659_v60 = vld [vmem:[%s24727_s2 + $0x171c] ss:$24 sps:$4 sm:$0xff]  }
 0x2a0   :  { %6595 = vmatprep.subr.bf16.mxu1 %v17546_v2  ;;  %v17602_v2 = vld [vmem:[%s24727_s2 + $0x1244] ss:$24 sps:$4 sm:$0xff]  }
 0x2a1   :  { %6543 = vmatpush1.bf16.msra.mxu0 %v17535_v10  ;;  %v17605_v10 = vld [vmem:[%s24727_s2 + $0x156c] ss:$24 sps:$4 sm:$0xff]  }
 0x2a2   :  { %6544 = vmatprep.subr.bf16.mxu0 %v17543_v7  ;;  %v17600_v7 = vld [vmem:[%s24727_s2 + $0x1240] ss:$24 sps:$4 sm:$0xff]  }
 0x2a3   :  { %6596 = vmatpush1.bf16.msra.mxu1 %v17544_v35  ;;  %v17603_v35 = vld [vmem:[%s24727_s2 + $0x1568] ss:$24 sps:$4 sm:$0xff]  }
 0x2a4   :  { %6597 = vmatprep.subr.bf16.mxu1 %v17552_v36  ;;  %v17608_v36 = vld [vmem:[%s24727_s2 + $0x1274] ss:$24 sps:$4 sm:$0xff]  }
 0x2a5   :  { %6545 = vmatpush1.bf16.msra.mxu0 %v17541_v38  ;;  %v17611_v38 = vld [vmem:[%s24727_s2 + $0x159c] ss:$24 sps:$4 sm:$0xff]  }
 0x2a6   :  { %6546 = vmatprep.subr.bf16.mxu0 %v17549_v15  ;;  %v17606_v15 = vld [vmem:[%s24727_s2 + $0x1270] ss:$24 sps:$4 sm:$0xff]  }
 0x2a7   :  { %6598 = vmatpush1.bf16.msra.mxu1 %v17550_v44  ;;  %v17609_v44 = vld [vmem:[%s24727_s2 + $0x1598] ss:$24 sps:$4 sm:$0xff]  }
 0x2a8   :  { %6599 = vmatprep.subr.bf16.mxu1 %v17558_v45  ;;  %v17614_v45 = vld [vmem:[%s24727_s2 + $0x12a4] ss:$24 sps:$4 sm:$0xff]  }
 0x2a9   :  { %6547 = vmatpush1.bf16.msra.mxu0 %v17547_v48  ;;  %v17617_v48 = vld [vmem:[%s24727_s2 + $0x15cc] ss:$24 sps:$4 sm:$0xff]  }
 0x2aa   :  { %6548 = vmatprep.subr.bf16.mxu0 %v17555_v18  ;;  %v17612_v18 = vld [vmem:[%s24727_s2 + $0x12a0] ss:$24 sps:$4 sm:$0xff]  }
 0x2ab   :  { %6600 = vmatpush1.bf16.msra.mxu1 %v17556_v40  ;;  %v17615_v40 = vld [vmem:[%s24727_s2 + $0x15c8] ss:$24 sps:$4 sm:$0xff]  }
 0x2ac   :  { %6601 = vmatprep.subr.bf16.mxu1 %v17564_v49  ;;  %v17620_v49 = vld [vmem:[%s24727_s2 + $0x12d4] ss:$24 sps:$4 sm:$0xff]  }
 0x2ad   :  { %6549 = vmatpush1.bf16.msra.mxu0 %v17553_v42  ;;  %v17623_v42 = vld [vmem:[%s24727_s2 + $0x15fc] ss:$24 sps:$4 sm:$0xff]  }
 0x2ae   :  { %6550 = vmatprep.subr.bf16.mxu0 %v17561_v17  ;;  %v17618_v17 = vld [vmem:[%s24727_s2 + $0x12d0] ss:$24 sps:$4 sm:$0xff]  }
 0x2af   :  { %6602 = vmatpush1.bf16.msra.mxu1 %v17562_v58  ;;  %v17626_v58 = vld [vmem:[%s24727_s2 + $0x1304] ss:$24 sps:$4 sm:$0xff]  }
 0x2b0   :  { %6603 = vmatprep.subr.bf16.mxu1 %v17570_v28  ;;  %v17629_v28 = vld [vmem:[%s24727_s2 + $0x162c] ss:$24 sps:$4 sm:$0xff]  }
 0x2b1   :  { %6551 = vmatpush1.bf16.msra.mxu0 %v17559_v54  ;;  %v17624_v54 = vld [vmem:[%s24727_s2 + $0x1300] ss:$24 sps:$4 sm:$0xff]  }
 0x2b2   :  { %6552 = vmatprep.subr.bf16.mxu0 %v17567_v55  ;;  %v17627_v55 = vld [vmem:[%s24727_s2 + $0x1628] ss:$24 sps:$4 sm:$0xff]  }
 0x2b3   :  { %6604 = vmatpush1.bf16.msra.mxu1 %v17568_v12  ;;  %v17632_v12 = vld [vmem:[%s24727_s2 + $0x1334] ss:$24 sps:$4 sm:$0xff]  }
 0x2b4   :  { %6605 = vmatprep.subr.bf16.mxu1 %v17576_v57  ;;  %v17635_v57 = vld [vmem:[%s24727_s2 + $0x165c] ss:$24 sps:$4 sm:$0xff]  }
 0x2b5   :  { %6553 = vmatpush1.bf16.msra.mxu0 %v17565_v41  ;;  %v17630_v41 = vld [vmem:[%s24727_s2 + $0x1330] ss:$24 sps:$4 sm:$0xff]  }
 0x2b6   :  { %6554 = vmatprep.subr.bf16.mxu0 %v17573_v63  ;;  %v17633_v63 = vld [vmem:[%s24727_s2 + $0x1658] ss:$24 sps:$4 sm:$0xff]  }
 0x2b7   :  { %6606 = vmatpush1.bf16.msra.mxu1 %v17574_v0  ;;  %v17638_v0 = vld [vmem:[%s24727_s2 + $0x1364] ss:$24 sps:$4 sm:$0xff]  }
 0x2b8   :  { %6607 = vmatprep.subr.bf16.mxu1 %v17582_v3  ;;  %v17641_v3 = vld [vmem:[%s24727_s2 + $0x168c] ss:$24 sps:$4 sm:$0xff]  }
 0x2b9   :  { %6555 = vmatpush1.bf16.msra.mxu0 %v17571_v8  ;;  %v17636_v8 = vld [vmem:[%s24727_s2 + $0x1360] ss:$24 sps:$4 sm:$0xff]  }
 0x2ba   :  { %6556 = vmatprep.subr.bf16.mxu0 %v17579_v9  ;;  %v17639_v9 = vld [vmem:[%s24727_s2 + $0x1688] ss:$24 sps:$4 sm:$0xff]  }
 0x2bb   :  { %6608 = vmatpush1.bf16.msra.mxu1 %v17580_v20  ;;  %v17644_v20 = vld [vmem:[%s24727_s2 + $0x1394] ss:$24 sps:$4 sm:$0xff]  }
 0x2bc   :  { %6609 = vmatprep.subr.bf16.mxu1 %v17588_v16  ;;  %v17647_v16 = vld [vmem:[%s24727_s2 + $0x16bc] ss:$24 sps:$4 sm:$0xff]  }
 0x2bd   :  { %6557 = vmatpush1.bf16.msra.mxu0 %v17577_v33  ;;  %v17642_v33 = vld [vmem:[%s24727_s2 + $0x1390] ss:$24 sps:$4 sm:$0xff]  }
 0x2be   :  { %6558 = vmatprep.subr.bf16.mxu0 %v17585_v53  ;;  %v17645_v53 = vld [vmem:[%s24727_s2 + $0x16b8] ss:$24 sps:$4 sm:$0xff]  }
 0x2bf   :  { %6610 = vmatpush1.bf16.msra.mxu1 %v17586_v62  ;;  %v17650_v62 = vld [vmem:[%s24727_s2 + $0x13c4] ss:$24 sps:$4 sm:$0xff]  }
 0x2c0   :  { %6630 = vmatprep.subr.bf16.mxu1 %v17593_v21  ;;  %v17653_v21 = vld [vmem:[%s24727_s2 + $0x16ec] ss:$24 sps:$4 sm:$0xff]  }
 0x2c1   :  { %6559 = vmatpush1.bf16.msra.mxu0 %v17583_v22  ;;  %v17648_v22 = vld [vmem:[%s24727_s2 + $0x13c0] ss:$24 sps:$4 sm:$0xff]  }
 0x2c2   :  { %6732 = vmatprep.subr.bf16.mxu0 %v17596_v47  ;;  %6612 = vmatmul.mubr.bf16.vlgmr.msra.gmra.mrb[8].mxu1 %v21052_v19  ;;  %v17656_v47 = vld [vmem:[%s24727_s2 + $0x13f4] ss:$24 sps:$4 sm:$0xff]  }
 0x2c3   :  { %6631 = vmatpush1.bf16.msra.mxu1 %v17591_v27  ;;  %6621 = vmatprep.mubr.bf16.mxu1 %v20851_v46  ;;  %v17651_v27 = vld [vmem:[%s24727_s2 + $0x16e8] ss:$24 sps:$4 sm:$0xff]  }
 0x2c4   :  { %6561 = vmatmul.mubr.bf16.vlgmr.msra.gmra.mrb[8].mxu0 %v21510_v32  ;;  %6632 = vmatprep.subr.bf16.mxu1 %v17599_v26  ;;  %v17654_v26 = vld [vmem:[%s24727_s2 + $0x13f0] ss:$24 sps:$4 sm:$0xff]  }
 0x2c5   :  { %6733 = vmatpush1.bf16.msra.mxu0 %v17594_v31  ;;  %6570 = vmatprep.mubr.bf16.mxu0 %v21319_v25  ;;  %v17657_v31 = vld [vmem:[%s24727_s2 + $0x1718] ss:$24 sps:$4 sm:$0xff]  }
 0x2c6   :  { %6734 = vmatprep.subr.bf16.mxu0 %v17602_v2  ;;  %v17665_v2 = vld [vmem:[%s24727_s2 + $0x174c] ss:$24 sps:$4 sm:$0xff]  }
 0x2c7   :  { %6633 = vmatpush1.bf16.msra.mxu1 %v17597_v34  ;;  %v17662_v34 = vld [vmem:[%s24727_s2 + $0x1424] ss:$24 sps:$4 sm:$0xff]  }
 0x2c8   :  { %6634 = vmatprep.subr.bf16.mxu1 %v17605_v10  ;;  %v17660_v10 = vld [vmem:[%s24727_s2 + $0x1420] ss:$24 sps:$4 sm:$0xff]  }
 0x2c9   :  { %6735 = vmatpush1.bf16.msra.mxu0 %v17600_v7  ;;  %v17663_v7 = vld [vmem:[%s24727_s2 + $0x1748] ss:$24 sps:$4 sm:$0xff]  }
 0x2ca   :  { %6736 = vmatprep.subr.bf16.mxu0 %v17608_v36  ;;  %6622 = vmatmul.mubr.bf16.gmra.mrb[12].mxu1 %v21037_v61  ;;  %v17671_v36 = vld [vmem:[%s24727_s2 + $0x177c] ss:$24 sps:$4 sm:$0xff]  }
 0x2cb   :  { %6635 = vmatpush1.bf16.msra.mxu1 %v17603_v35  ;;  %6662 = vmatprep.mubr.bf16.mxu1 %v21104_v30  ;;  %v17668_v35 = vld [vmem:[%s24727_s2 + $0x1454] ss:$24 sps:$4 sm:$0xff]  }
 0x2cc   :  { %6636 = vmatprep.subr.bf16.mxu1 %v17611_v38  ;;  %6571 = vmatmul.mubr.bf16.gmra.mrb[12].mxu0 %v21500_v29  ;;  %v17666_v38 = vld [vmem:[%s24727_s2 + $0x1450] ss:$24 sps:$4 sm:$0xff]  }
 0x2cd   :  { %6737 = vmatpush1.bf16.msra.mxu0 %v17606_v15  ;;  %6764 = vmatprep.mubr.bf16.mxu0 %v20868_v52  ;;  %v17621_v52 = vld [vmem:[%s24727_s2 + $0x15f8] ss:$24 sps:$4 sm:$0xff]  }
 0x2ce   :  { %6738 = vmatprep.subr.bf16.mxu0 %v17614_v45  ;;  %v17669_v15 = vld [vmem:[%s24727_s2 + $0x1778] ss:$24 sps:$4 sm:$0xff]   ;;  %v17677_v45 = vld [vmem:[%s24727_s2 + $0x17ac] ss:$24 sps:$4 sm:$0xff]  }
 0x2cf   :  { %6637 = vmatpush1.bf16.msra.mxu1 %v17609_v44  ;;  %v17674_v44 = vld [vmem:[%s24727_s2 + $0x1484] ss:$24 sps:$4 sm:$0xff]  }
 0x2d0   :  { %6638 = vmatprep.subr.bf16.mxu1 %v17617_v48  ;;  %v17672_v48 = vld [vmem:[%s24727_s2 + $0x1480] ss:$24 sps:$4 sm:$0xff]  }
 0x2d1   :  { %6739 = vmatpush1.bf16.msra.mxu0 %v17612_v18  ;;  %v17675_v18 = vld [vmem:[%s24727_s2 + $0x17a8] ss:$24 sps:$4 sm:$0xff]  }
 0x2d2   :  { %6740 = vmatprep.subr.bf16.mxu0 %v17620_v49  ;;  %v17683_v49 = vld [vmem:[%s24727_s2 + $0x17dc] ss:$24 sps:$4 sm:$0xff]  }
 0x2d3   :  { %6639 = vmatpush1.bf16.msra.mxu1 %v17615_v40  ;;  %v17680_v40 = vld [vmem:[%s24727_s2 + $0x14b4] ss:$24 sps:$4 sm:$0xff]  }
 0x2d4   :  { %6640 = vmatprep.subr.bf16.mxu1 %v17623_v42  ;;  %v17678_v42 = vld [vmem:[%s24727_s2 + $0x14b0] ss:$24 sps:$4 sm:$0xff]  }
 0x2d5   :  { %6741 = vmatpush1.bf16.msra.mxu0 %v17618_v17  ;;  %v17681_v17 = vld [vmem:[%s24727_s2 + $0x17d8] ss:$24 sps:$4 sm:$0xff]  }
 0x2d6   :  { %6742 = vmatprep.subr.bf16.mxu0 %v17626_v58  ;;  %v17689_v58 = vld [vmem:[%s24727_s2 + $0x180c] ss:$24 sps:$4 sm:$0xff]  }
 0x2d7   :  { %6641 = vmatpush1.bf16.msra.mxu1 %v17621_v52  ;;  %v17686_v52 = vld [vmem:[%s24727_s2 + $0x14e4] ss:$24 sps:$4 sm:$0xff]  }
 0x2d8   :  { %6642 = vmatprep.subr.bf16.mxu1 %v17629_v28  ;;  %v17684_v28 = vld [vmem:[%s24727_s2 + $0x14e0] ss:$24 sps:$4 sm:$0xff]  }
 0x2d9   :  { %6743 = vmatpush1.bf16.msra.mxu0 %v17624_v54  ;;  %v17692_v54 = vld [vmem:[%s24727_s2 + $0x1514] ss:$24 sps:$4 sm:$0xff]  }
 0x2da   :  { %6744 = vmatprep.subr.bf16.mxu0 %v17632_v12  ;;  %v17695_v12 = vld [vmem:[%s24727_s2 + $0x183c] ss:$24 sps:$4 sm:$0xff]  }
 0x2db   :  { %6643 = vmatpush1.bf16.msra.mxu1 %v17627_v55  ;;  %v17687_v55 = vld [vmem:[%s24727_s2 + $0x1808] ss:$24 sps:$4 sm:$0xff]  }
 0x2dc   :  { %6644 = vmatprep.subr.bf16.mxu1 %v17635_v57  ;;  %v17690_v57 = vld [vmem:[%s24727_s2 + $0x1510] ss:$24 sps:$4 sm:$0xff]  }
 0x2dd   :  { %6745 = vmatpush1.bf16.msra.mxu0 %v17630_v41  ;;  %v17693_v41 = vld [vmem:[%s24727_s2 + $0x1838] ss:$24 sps:$4 sm:$0xff]  }
 0x2de   :  { %6746 = vmatprep.subr.bf16.mxu0 %v17638_v0  ;;  %v17701_v0 = vld [vmem:[%s24727_s2 + $0x186c] ss:$24 sps:$4 sm:$0xff]  }
 0x2df   :  { %6645 = vmatpush1.bf16.msra.mxu1 %v17633_v63  ;;  %v17698_v63 = vld [vmem:[%s24727_s2 + $0x1544] ss:$24 sps:$4 sm:$0xff]  }
 0x2e0   :  { %6646 = vmatprep.subr.bf16.mxu1 %v17641_v3  ;;  %v17696_v3 = vld [vmem:[%s24727_s2 + $0x1540] ss:$24 sps:$4 sm:$0xff]  }
 0x2e1   :  { %6747 = vmatpush1.bf16.msra.mxu0 %v17636_v8  ;;  %v17699_v8 = vld [vmem:[%s24727_s2 + $0x1868] ss:$24 sps:$4 sm:$0xff]  }
 0x2e2   :  { %6748 = vmatprep.subr.bf16.mxu0 %v17644_v20  ;;  %v17702_v20 = vld [vmem:[%s24727_s2 + $0x1570] ss:$24 sps:$4 sm:$0xff]  }
 0x2e3   :  { %6647 = vmatpush1.bf16.msra.mxu1 %v17639_v9  ;;  %v17704_v9 = vld [vmem:[%s24727_s2 + $0x1574] ss:$24 sps:$4 sm:$0xff]  }
 0x2e4   :  { %6648 = vmatprep.subr.bf16.mxu1 %v17647_v16  ;;  %v17710_v16 = vld [vmem:[%s24727_s2 + $0x15a4] ss:$24 sps:$4 sm:$0xff]  }
 0x2e5   :  { %6749 = vmatpush1.bf16.msra.mxu0 %v17642_v33  ;;  %v17713_v33 = vld [vmem:[%s24727_s2 + $0x18cc] ss:$24 sps:$4 sm:$0xff]  }
 0x2e6   :  { %6750 = vmatprep.subr.bf16.mxu0 %v17650_v62  ;;  %v17711_v62 = vld [vmem:[%s24727_s2 + $0x18c8] ss:$24 sps:$4 sm:$0xff]  }
 0x2e7   :  { %6649 = vmatpush1.bf16.msra.mxu1 %v17645_v53  ;;  %v17708_v53 = vld [vmem:[%s24727_s2 + $0x15a0] ss:$24 sps:$4 sm:$0xff]  }
 0x2e8   :  { %6650 = vmatprep.subr.bf16.mxu1 %v17653_v21  ;;  %v17716_v21 = vld [vmem:[%s24727_s2 + $0x15d4] ss:$24 sps:$4 sm:$0xff]  }
 0x2e9   :  { %6751 = vmatpush1.bf16.msra.mxu0 %v17648_v22  ;;  %v17714_v22 = vld [vmem:[%s24727_s2 + $0x15d0] ss:$24 sps:$4 sm:$0xff]  }
 0x2ea   :  { %6752 = vmatprep.subr.bf16.mxu0 %v17656_v47  ;;  %v17725_v47 = vld [vmem:[%s24727_s2 + $0x192c] ss:$24 sps:$4 sm:$0xff]  }
 0x2eb   :  { %6651 = vmatpush1.bf16.msra.mxu1 %v17651_v27  ;;  %v17722_v27 = vld [vmem:[%s24727_s2 + $0x1604] ss:$24 sps:$4 sm:$0xff]  }
 0x2ec   :  { %6652 = vmatprep.subr.bf16.mxu1 %v17659_v60  ;;  %v17720_v60 = vld [vmem:[%s24727_s2 + $0x1600] ss:$24 sps:$4 sm:$0xff]  }
 0x2ed   :  { %6753 = vmatpush1.bf16.msra.mxu0 %v17654_v26  ;;  %v17723_v26 = vld [vmem:[%s24727_s2 + $0x1928] ss:$24 sps:$4 sm:$0xff]  }
 0x2ee   :  { %6754 = vmatprep.subr.bf16.mxu0 %v17662_v34  ;;  %v17731_v34 = vld [vmem:[%s24727_s2 + $0x195c] ss:$24 sps:$4 sm:$0xff]  }
 0x2ef   :  { %6653 = vmatpush1.bf16.msra.mxu1 %v17657_v31  ;;  %v17728_v31 = vld [vmem:[%s24727_s2 + $0x1634] ss:$24 sps:$4 sm:$0xff]  }
 0x2f0   :  { %6654 = vmatprep.subr.bf16.mxu1 %v17665_v2  ;;  %v17726_v2 = vld [vmem:[%s24727_s2 + $0x1630] ss:$24 sps:$4 sm:$0xff]  }
 0x2f1   :  { %6755 = vmatpush1.bf16.msra.mxu0 %v17660_v10  ;;  %v17729_v10 = vld [vmem:[%s24727_s2 + $0x1958] ss:$24 sps:$4 sm:$0xff]  }
 0x2f2   :  { %6756 = vmatprep.subr.bf16.mxu0 %v17668_v35  ;;  %v17737_v35 = vld [vmem:[%s24727_s2 + $0x198c] ss:$24 sps:$4 sm:$0xff]  }
 0x2f3   :  { %6655 = vmatpush1.bf16.msra.mxu1 %v17663_v7  ;;  %v17734_v7 = vld [vmem:[%s24727_s2 + $0x1664] ss:$24 sps:$4 sm:$0xff]  }
 0x2f4   :  { %6656 = vmatprep.subr.bf16.mxu1 %v17671_v36  ;;  %v17732_v36 = vld [vmem:[%s24727_s2 + $0x1660] ss:$24 sps:$4 sm:$0xff]  }
 0x2f5   :  { %6757 = vmatpush1.bf16.msra.mxu0 %v17666_v38  ;;  %v17735_v38 = vld [vmem:[%s24727_s2 + $0x1988] ss:$24 sps:$4 sm:$0xff]  }
 0x2f6   :  { %6758 = vmatprep.subr.bf16.mxu0 %v17674_v44  ;;  %v17743_v44 = vld [vmem:[%s24727_s2 + $0x19bc] ss:$24 sps:$4 sm:$0xff]  }
 0x2f7   :  { %6657 = vmatpush1.bf16.msra.mxu1 %v17669_v15  ;;  %v17740_v15 = vld [vmem:[%s24727_s2 + $0x1694] ss:$24 sps:$4 sm:$0xff]  }
 0x2f8   :  { %6658 = vmatprep.subr.bf16.mxu1 %v17677_v45  ;;  %v17738_v45 = vld [vmem:[%s24727_s2 + $0x1690] ss:$24 sps:$4 sm:$0xff]  }
 0x2f9   :  { %6759 = vmatpush1.bf16.msra.mxu0 %v17672_v48  ;;  %v17741_v48 = vld [vmem:[%s24727_s2 + $0x19b8] ss:$24 sps:$4 sm:$0xff]  }
 0x2fa   :  { %6760 = vmatprep.subr.bf16.mxu0 %v17680_v40  ;;  %v17749_v40 = vld [vmem:[%s24727_s2 + $0x19ec] ss:$24 sps:$4 sm:$0xff]  }
 0x2fb   :  { %6659 = vmatpush1.bf16.msra.mxu1 %v17675_v18  ;;  %v17746_v18 = vld [vmem:[%s24727_s2 + $0x16c4] ss:$24 sps:$4 sm:$0xff]  }
 0x2fc   :  { %6660 = vmatprep.subr.bf16.mxu1 %v17683_v49  ;;  %v17744_v49 = vld [vmem:[%s24727_s2 + $0x16c0] ss:$24 sps:$4 sm:$0xff]  }
 0x2fd   :  { %6761 = vmatpush1.bf16.msra.mxu0 %v17678_v42  ;;  %v17747_v42 = vld [vmem:[%s24727_s2 + $0x19e8] ss:$24 sps:$4 sm:$0xff]  }
 0x2fe   :  { %6762 = vmatprep.subr.bf16.mxu0 %v17686_v52  ;;  %v17755_v52 = vld [vmem:[%s24727_s2 + $0x1a1c] ss:$24 sps:$4 sm:$0xff]  }
 0x2ff   :  { %6661 = vmatpush1.bf16.msra.mxu1 %v17681_v17  ;;  %v17752_v17 = vld [vmem:[%s24727_s2 + $0x16f4] ss:$24 sps:$4 sm:$0xff]  }
 0x300   :  { %6681 = vmatprep.subr.bf16.mxu1 %v17689_v58  ;;  %v17750_v58 = vld [vmem:[%s24727_s2 + $0x16f0] ss:$24 sps:$4 sm:$0xff]  }
 0x301   :  { %6763 = vmatpush1.bf16.msra.mxu0 %v17684_v28  ;;  %v17753_v28 = vld [vmem:[%s24727_s2 + $0x1a18] ss:$24 sps:$4 sm:$0xff]  }
 0x302   :  { %6783 = vmatprep.subr.bf16.mxu0 %v17692_v54  ;;  %6663 = vmatmul.mubr.bf16.vlgmr.msra.gmra.mrb[8].mxu1 %v21284_v51  ;;  %v17758_v54 = vld [vmem:[%s24727_s2 + $0x1724] ss:$24 sps:$4 sm:$0xff]  }
 0x303   :  { %6682 = vmatpush1.bf16.msra.mxu1 %v17687_v55  ;;  %6672 = vmatprep.mubr.bf16.mxu1 %v21087_v59  ;;  %v17761_v55 = vld [vmem:[%s24727_s2 + $0x1a4c] ss:$24 sps:$4 sm:$0xff]  }
 0x304   :  { %6765 = vmatmul.mubr.bf16.vlgmr.msra.gmra.mrb[0].mxu0 %v21052_v19  ;;  %6683 = vmatprep.subr.bf16.mxu1 %v17695_v12  ;;  %v17707_v19 = vld [vmem:[%s24727_s2 + $0x189c] ss:$24 sps:$4 sm:$0xff]   ;;  %v17756_v12 = vld [vmem:[%s24727_s2 + $0x1720] ss:$24 sps:$4 sm:$0xff]  }
 0x305   :  { %6784 = vmatpush1.bf16.msra.mxu0 %v17690_v57  ;;  %6774 = vmatprep.mubr.bf16.mxu0 %v20851_v46  ;;  %v17705_v46 = vld [vmem:[%s24727_s2 + $0x1898] ss:$24 sps:$4 sm:$0xff]   ;;  %v17759_v57 = vld [vmem:[%s24727_s2 + $0x1a48] ss:$24 sps:$4 sm:$0xff]  }
 0x306   :  { %6785 = vmatprep.subr.bf16.mxu0 %v17698_v63  ;;  %v17767_v63 = vld [vmem:[%s24727_s2 + $0x1a7c] ss:$24 sps:$4 sm:$0xff]  }
 0x307   :  { %6684 = vmatpush1.bf16.msra.mxu1 %v17693_v41  ;;  %v17764_v41 = vld [vmem:[%s24727_s2 + $0x1754] ss:$24 sps:$4 sm:$0xff]  }
 0x308   :  { %6685 = vmatprep.subr.bf16.mxu1 %v17701_v0  ;;  %v17762_v0 = vld [vmem:[%s24727_s2 + $0x1750] ss:$24 sps:$4 sm:$0xff]  }
 0x309   :  { %6786 = vmatpush1.bf16.msra.mxu0 %v17696_v3  ;;  %v17765_v3 = vld [vmem:[%s24727_s2 + $0x1a78] ss:$24 sps:$4 sm:$0xff]  }
 0x30a   :  { %6787 = vmatprep.subr.bf16.mxu0 %v17704_v9  ;;  %6673 = vmatmul.mubr.bf16.gmra.mrb[12].mxu1 %v21272_v56  ;;  %v17773_v9 = vld [vmem:[%s24727_s2 + $0x1aac] ss:$24 sps:$4 sm:$0xff]  }
 0x30b   :  { %6686 = vmatpush1.bf16.msra.mxu1 %v17699_v8  ;;  %6713 = vmatprep.mubr.bf16.mxu1 %v21336_v11  ;;  %v17770_v8 = vld [vmem:[%s24727_s2 + $0x1784] ss:$24 sps:$4 sm:$0xff]  }
 0x30c   :  { %6687 = vmatprep.subr.bf16.mxu1 %v17707_v19  ;;  %6775 = vmatmul.mubr.bf16.gmra.mrb[4].mxu0 %v21037_v61  ;;  %v17719_v61 = vld [vmem:[%s24727_s2 + $0x18fc] ss:$24 sps:$4 sm:$0xff]   ;;  %v17768_v19 = vld [vmem:[%s24727_s2 + $0x1780] ss:$24 sps:$4 sm:$0xff]  }
 0x30d   :  { %6788 = vmatpush1.bf16.msra.mxu0 %v17702_v20  ;;  %6815 = vmatprep.mubr.bf16.mxu0 %v21104_v30  ;;  %v17717_v30 = vld [vmem:[%s24727_s2 + $0x18f8] ss:$24 sps:$4 sm:$0xff]   ;;  %v17771_v20 = vld [vmem:[%s24727_s2 + $0x1aa8] ss:$24 sps:$4 sm:$0xff]  }
 0x30e   :  { %6789 = vmatprep.subr.bf16.mxu0 %v17710_v16  ;;  %v17776_v16 = vld [vmem:[%s24727_s2 + $0x17b4] ss:$24 sps:$4 sm:$0xff]  }
 0x30f   :  { %6688 = vmatpush1.bf16.msra.mxu1 %v17705_v46  ;;  %v21879_v46 = vld [vmem:[#allocation2 + $0x30] sm:$0xff] }
 0x310   :  { %6689 = vmatprep.subr.bf16.mxu1 %v17713_v33  ;;  %v17779_v33 = vld [vmem:[%s24727_s2 + $0x1adc] ss:$24 sps:$4 sm:$0xff]  }
 0x311   :  { %6790 = vmatpush1.bf16.msra.mxu0 %v17708_v53  ;;  %v21889_v53 = vcombine.high %v21879_v46, %v21879_v46 }
 0x312   :  { %6791 = vmatprep.subr.bf16.mxu0 %v17716_v21  ;;  %v17777_v21 = vld [vmem:[%s24727_s2 + $0x1ad8] ss:$24 sps:$4 sm:$0xff]  }
 0x313   :  { %6690 = vmatpush1.bf16.msra.mxu1 %v17711_v62  ;;  %v17774_v62 = vld [vmem:[%s24727_s2 + $0x17b0] ss:$24 sps:$4 sm:$0xff]  }
 0x314   :  { %6691 = vmatprep.subr.bf16.mxu1 %v17719_v61  ;;  %v17782_v61 = vld [vmem:[%s24727_s2 + $0x17e4] ss:$24 sps:$4 sm:$0xff]  }
 0x315   :  { %6792 = vmatpush1.bf16.msra.mxu0 %v17714_v22  ;;  %v17788_v22 = vld [vmem:[%s24727_s2 + $0x1b0c] ss:$24 sps:$4 sm:$0xff]  }
 0x316   :  { %6793 = vmatprep.subr.bf16.mxu0 %v17722_v27  ;;  %v7232_v27 = vshll.u32 %v20832_v43, 16 }
 0x317   :  { %6692 = vmatpush1.bf16.msra.mxu1 %v17717_v30  ;;  %v7229_v30 = vshrl.u32 %v20832_v43, 16  ;;  %v17794_v43 = vld [vmem:[%s24727_s2 + $0x1b3c] ss:$24 sps:$4 sm:$0xff]  }
 0x318   :  { %6693 = vmatprep.subr.bf16.mxu1 %v17725_v47  ;;  %v7237_v47 = vshrl.u32 %v21889_v53, 16 }
 0x319   :  { %6794 = vmatpush1.bf16.msra.mxu0 %v17720_v60  ;;  %v7240_v60 = vshll.u32 %v21889_v53, 16 }
 0x31a   :  { %6795 = vmatprep.subr.bf16.mxu0 %v17728_v31  ;;  %v17785_v31 = vld [vmem:[%s24727_s2 + $0x1814] ss:$24 sps:$4 sm:$0xff]  }
 0x31b   :  { %6694 = vmatpush1.bf16.msra.mxu1 %v17723_v26  ;;  %v17780_v26 = vld [vmem:[%s24727_s2 + $0x17e0] ss:$24 sps:$4 sm:$0xff]  }
 0x31c   :  { %6695 = vmatprep.subr.bf16.mxu1 %v17731_v34  ;;  %v17786_v34 = vld [vmem:[%s24727_s2 + $0x1b08] ss:$24 sps:$4 sm:$0xff]  }
 0x31d   :  { %6796 = vmatpush1.bf16.msra.mxu0 %v17726_v2  ;;  %v7231_v2 = vrot.slane %v7229_v30, 1  ;;  %v17839_v30 = vld [vmem:[%s24727_s2 + $0x19c4] ss:$24 sps:$4 sm:$0xff]  }
 0x31e   :  { %6797 = vmatprep.subr.bf16.mxu0 %v17734_v7  ;;  %v7239_v7 = vrot.slane %v7237_v47, 1  ;;  %v17848_v47 = vld [vmem:[%s24727_s2 + $0x1cec] ss:$24 sps:$4 sm:$0xff]  }
 0x31f   :  { %6696 = vmatpush1.bf16.msra.mxu1 %v17729_v10  ;;  %v7234_v10 = vrot.slane %v7232_v27, 2  ;;  %v17840_v27 = vld [vmem:[%s24727_s2 + $0x1cb8] ss:$24 sps:$4 sm:$0xff]  }
 0x320   :  { %6697 = vmatprep.subr.bf16.mxu1 %v17737_v35  ;;  %v7242_v35 = vrot.slane %v7240_v60, 2  ;;  %v17837_v60 = vld [vmem:[%s24727_s2 + $0x19c0] ss:$24 sps:$4 sm:$0xff]  }
 0x321   :  { %6798 = vmatpush1.bf16.msra.mxu0 %v17732_v36  ;;  %v17783_v36 = vld [vmem:[%s24727_s2 + $0x1810] ss:$24 sps:$4 sm:$0xff]  }
 0x322   :  { %6799 = vmatprep.subr.bf16.mxu0 %v17740_v15  ;;  %v17792_v15 = vld [vmem:[%s24727_s2 + $0x1b38] ss:$24 sps:$4 sm:$0xff]  }
 0x323   :  { %6698 = vmatpush1.bf16.msra.mxu1 %v17735_v38  ;;  %v17791_v38 = vld [vmem:[%s24727_s2 + $0x1844] ss:$24 sps:$4 sm:$0xff]  }
 0x324   :  { %6699 = vmatprep.subr.bf16.mxu1 %v17743_v44  ;;  %v17800_v44 = vld [vmem:[%s24727_s2 + $0x1b6c] ss:$24 sps:$4 sm:$0xff]  }
 0x325   :  { %6800 = vmatpush1.bf16.msra.mxu0 %v17738_v45  ;;  %v17789_v45 = vld [vmem:[%s24727_s2 + $0x1840] ss:$24 sps:$4 sm:$0xff]  }
 0x326   :  { %6801 = vmatprep.subr.bf16.mxu0 %v17746_v18  ;;  %v21937_v18 = vor.u32 %v7242_v35, %v7239_v7  ;;  %v17860_v7 = vld [vmem:[%s24727_s2 + $0x1d4c] ss:$24 sps:$4 sm:$0xff]   ;;  %v17849_v35 = vld [vmem:[%s24727_s2 + $0x1a20] ss:$24 sps:$4 sm:$0xff]  }
 0x327   :  { %6700 = vmatpush1.bf16.msra.mxu1 %v17741_v48  ;;  %v7235_v48 = vor.u32 %v7234_v10, %v7231_v2  ;;  %v17851_v2 = vld [vmem:[%s24727_s2 + $0x1a24] ss:$24 sps:$4 sm:$0xff]   ;;  %v17852_v10 = vld [vmem:[%s24727_s2 + $0x1d18] ss:$24 sps:$4 sm:$0xff]  }
 0x328   :  { %6701 = vmatprep.subr.bf16.mxu1 %v17749_v40  ;;  %v17797_v40 = vld [vmem:[%s24727_s2 + $0x1874] ss:$24 sps:$4 sm:$0xff]  }
 0x329   :  { %6802 = vmatpush1.bf16.msra.mxu0 %v17744_v49  ;;  %v17798_v49 = vld [vmem:[%s24727_s2 + $0x1b68] ss:$24 sps:$4 sm:$0xff]  }
 0x32a   :  { %6803 = vmatprep.subr.bf16.mxu0 %v17752_v17  ;;  %v17803_v17 = vld [vmem:[%s24727_s2 + $0x18a4] ss:$24 sps:$4 sm:$0xff]  }
 0x32b   :  { %6702 = vmatpush1.bf16.msra.mxu1 %v17747_v42  ;;  %v21951_v42 = vsel %vm7210_vm2, %v7235_v48, %v21937_v18  ;;  %v17863_v48 = vld [vmem:[%s24727_s2 + $0x1a84] ss:$24 sps:$4 sm:$0xff]  }
 0x32c   :  { %6703 = vmatprep.subr.bf16.mxu1 %v17755_v52  ;;  %v17804_v52 = vld [vmem:[%s24727_s2 + $0x1b98] ss:$24 sps:$4 sm:$0xff]  }
 0x32d   :  { %6804 = vmatpush1.bf16.msra.mxu0 %v17750_v58  ;;  %v17812_v58 = vld [vmem:[%s24727_s2 + $0x1bcc] ss:$24 sps:$4 sm:$0xff]  }
 0x32e   :  { %6805 = vmatprep.subr.bf16.mxu0 %v17758_v54  ;;  %v17809_v54 = vld [vmem:[%s24727_s2 + $0x18d4] ss:$24 sps:$4 sm:$0xff]  }
 0x32f   :  { %6704 = vmatpush1.bf16.msra.mxu1 %v17753_v28  ;;  %v17801_v28 = vld [vmem:[%s24727_s2 + $0x18a0] ss:$24 sps:$4 sm:$0xff]  }
 0x330   :  { %6705 = vmatprep.subr.bf16.mxu1 %v17761_v55  ;;  %v17810_v55 = vld [vmem:[%s24727_s2 + $0x1bc8] ss:$24 sps:$4 sm:$0xff]  }
 0x331   :  { %6806 = vmatpush1.bf16.msra.mxu0 %v17756_v12  ;;  %v17807_v12 = vld [vmem:[%s24727_s2 + $0x18d0] ss:$24 sps:$4 sm:$0xff]  }
 0x332   :  { %6807 = vmatprep.subr.bf16.mxu0 %v17764_v41  ;;  %v17824_v41 = vld [vmem:[%s24727_s2 + $0x1c2c] ss:$24 sps:$4 sm:$0xff]  }
 0x333   :  { %6706 = vmatpush1.bf16.msra.mxu1 %v17759_v57  ;;  %v17816_v57 = vld [vmem:[%s24727_s2 + $0x1bf8] ss:$24 sps:$4 sm:$0xff]  }
 0x334   :  { %6707 = vmatprep.subr.bf16.mxu1 %v17767_v63  ;;  %v17813_v63 = vld [vmem:[%s24727_s2 + $0x1900] ss:$24 sps:$4 sm:$0xff]  }
 0x335   :  { %6808 = vmatpush1.bf16.msra.mxu0 %v17762_v0  ;;  %v17821_v0 = vld [vmem:[%s24727_s2 + $0x1934] ss:$24 sps:$4 sm:$0xff]  }
 0x336   :  { %6809 = vmatprep.subr.bf16.mxu0 %v17770_v8  ;;  %v17830_v8 = vld [vmem:[%s24727_s2 + $0x1c5c] ss:$24 sps:$4 sm:$0xff]  }
 0x337   :  { %6708 = vmatpush1.bf16.msra.mxu1 %v17765_v3  ;;  %v17822_v3 = vld [vmem:[%s24727_s2 + $0x1c28] ss:$24 sps:$4 sm:$0xff]  }
 0x338   :  { %6709 = vmatprep.subr.bf16.mxu1 %v17773_v9  ;;  %v17819_v9 = vld [vmem:[%s24727_s2 + $0x1930] ss:$24 sps:$4 sm:$0xff]  }
 0x339   :  { %6810 = vmatpush1.bf16.msra.mxu0 %v17768_v19  ;;  %v17827_v19 = vld [vmem:[%s24727_s2 + $0x1964] ss:$24 sps:$4 sm:$0xff]  }
 0x33a   :  { %6811 = vmatprep.subr.bf16.mxu0 %v17776_v16  ;;  %v17836_v16 = vld [vmem:[%s24727_s2 + $0x1c8c] ss:$24 sps:$4 sm:$0xff]  }
 0x33b   :  { %6710 = vmatpush1.bf16.msra.mxu1 %v17771_v20  ;;  %v17828_v20 = vld [vmem:[%s24727_s2 + $0x1c58] ss:$24 sps:$4 sm:$0xff]  }
 0x33c   :  { %6711 = vmatprep.subr.bf16.mxu1 %v17779_v33  ;;  %v17825_v33 = vld [vmem:[%s24727_s2 + $0x1960] ss:$24 sps:$4 sm:$0xff]  }
 0x33d   :  { %6812 = vmatpush1.bf16.msra.mxu0 %v17774_v62  ;;  %v17833_v62 = vld [vmem:[%s24727_s2 + $0x1994] ss:$24 sps:$4 sm:$0xff]  }
 0x33e   :  { %6813 = vmatprep.subr.bf16.mxu0 %v17782_v61  ;;  %v17842_v61 = vld [vmem:[%s24727_s2 + $0x1cbc] ss:$24 sps:$4 sm:$0xff]  }
 0x33f   :  { %6712 = vmatpush1.bf16.msra.mxu1 %v17777_v21  ;;  %v17834_v21 = vld [vmem:[%s24727_s2 + $0x1c88] ss:$24 sps:$4 sm:$0xff]  }
 0x340   :  { %8918 = vmatprep.subr.bf16.mxu1 %v17788_v22  ;;  %v17831_v22 = vld [vmem:[%s24727_s2 + $0x1990] ss:$24 sps:$4 sm:$0xff]  }
 0x341   :  { %6814 = vmatpush1.bf16.msra.mxu0 %v17780_v26  ;;  %v17845_v26 = vld [vmem:[%s24727_s2 + $0x19f4] ss:$24 sps:$4 sm:$0xff]  }
 0x342   :  { %6834 = vmatprep.subr.bf16.mxu0 %v17785_v31  ;;  %6714 = vmatmul.mubr.bf16.vlgmr.msra.gmra.mrb[8].mxu1 %v21510_v32  ;;  %v17846_v31 = vld [vmem:[%s24727_s2 + $0x1ce8] ss:$24 sps:$4 sm:$0xff]  }
 0x343   :  { %8919 = vmatpush1.bf16.msra.mxu1 %v17786_v34  ;;  %6723 = vmatprep.mubr.bf16.mxu1 %v21319_v25  ;;  %v17854_v34 = vld [vmem:[%s24727_s2 + $0x1d1c] ss:$24 sps:$4 sm:$0xff]  }
 0x344   :  { %6816 = vmatmul.mubr.bf16.vlgmr.msra.gmra.mrb[0].mxu0 %v21284_v51  ;;  %8920 = vmatprep.subr.bf16.mxu1 %v17794_v43  ;;  %v17806_v51 = vld [vmem:[%s24727_s2 + $0x1b9c] ss:$24 sps:$4 sm:$0xff]   ;;  %v17843_v43 = vld [vmem:[%s24727_s2 + $0x19f0] ss:$24 sps:$4 sm:$0xff]  }
 0x345   :  { %6835 = vmatpush1.bf16.msra.mxu0 %v17783_v36  ;;  %6825 = vmatprep.mubr.bf16.mxu0 %v21087_v59  ;;  %v17795_v59 = vld [vmem:[%s24727_s2 + $0x1870] ss:$24 sps:$4 sm:$0xff]   ;;  %v17857_v36 = vld [vmem:[%s24727_s2 + $0x1a54] ss:$24 sps:$4 sm:$0xff]  }
 0x346   :  { %6836 = vmatprep.subr.bf16.mxu0 %v17791_v38  ;;  %v17858_v38 = vld [vmem:[%s24727_s2 + $0x1d48] ss:$24 sps:$4 sm:$0xff]  }
 0x347   :  { %8921 = vmatpush1.bf16.msra.mxu1 %v17792_v15  ;;  %v17866_v15 = vld [vmem:[%s24727_s2 + $0x1d7c] ss:$24 sps:$4 sm:$0xff]  }
 0x348   :  { %8922 = vmatprep.subr.bf16.mxu1 %v17800_v44  ;;  %v22079_v44 = vcombine.low %v21879_v46, %v21879_v46  ;;  %v17872_v46 = vld [vmem:[%s24727_s2 + $0x1dac] ss:$24 sps:$4 sm:$0xff]  }
 0x349   :  { %6837 = vmatpush1.bf16.msra.mxu0 %v17789_v45  ;;  %v17855_v45 = vld [vmem:[%s24727_s2 + $0x1a50] ss:$24 sps:$4 sm:$0xff]  }
 0x34a   :  { %6838 = vmatprep.subr.bf16.mxu0 %v17797_v40  ;;  %6724 = vmatmul.mubr.bf16.gmra.mrb[12].mxu1 %v21500_v29  ;;  %v17864_v40 = vld [vmem:[%s24727_s2 + $0x1d78] ss:$24 sps:$4 sm:$0xff]  }
 0x34b   :  { %8923 = vmatpush1.bf16.msra.mxu1 %v17798_v49  ;;  %8950 = vmatprep.mubr.bf16.mxu1 %v21951_v42  ;;  %v7212_v49 = vshrl.u32 %v21021_v23, 16 }
 0x34c   :  { %8924 = vmatprep.subr.bf16.mxu1 %v17806_v51  ;;  %6826 = vmatmul.mubr.bf16.gmra.mrb[4].mxu0 %v21272_v56  ;;  %v17818_v56 = vld [vmem:[%s24727_s2 + $0x1bfc] ss:$24 sps:$4 sm:$0xff]   ;;  %v17861_v51 = vld [vmem:[%s24727_s2 + $0x1a80] ss:$24 sps:$4 sm:$0xff]  }
 0x34d   :  { %6839 = vmatpush1.bf16.msra.mxu0 %v17795_v59  ;;  %6866 = vmatprep.mubr.bf16.mxu0 %v21336_v11  ;;  %v17815_v11 = vld [vmem:[%s24727_s2 + $0x1904] ss:$24 sps:$4 sm:$0xff]   ;;  %v7215_v59 = vshll.u32 %v21021_v23, 16 }
 0x34e   :  { %6840 = vmatprep.subr.bf16.mxu0 %v17803_v17  ;;  %v7220_v17 = vshrl.u32 %v22079_v44, 16  ;;  %v17878_v23 = vld [vmem:[%s24727_s2 + $0x1ddc] ss:$24 sps:$4 sm:$0xff]  }
 0x34f   :  { %8925 = vmatpush1.bf16.msra.mxu1 %v17804_v52  ;;  %v7223_v52 = vshll.u32 %v22079_v44, 16 }
 0x350   :  { %8926 = vmatprep.subr.bf16.mxu1 %v17812_v58  ;;  %v17869_v58 = vld [vmem:[%s24727_s2 + $0x1ab4] ss:$24 sps:$4 sm:$0xff]  }
 0x351   :  { %6841 = vmatpush1.bf16.msra.mxu0 %v17801_v28  ;;  %v22103_v28 = vld [vmem:[#allocation2 + $0x38] sm:$0xff] }
 0x352   :  { %6842 = vmatprep.subr.bf16.mxu0 %v17809_v54  ;;  %v17870_v54 = vld [vmem:[%s24727_s2 + $0x1da8] ss:$24 sps:$4 sm:$0xff]  }
 0x353   :  { %8927 = vmatpush1.bf16.msra.mxu1 %v17810_v55  ;;  %v7214_v55 = vrot.slane %v7212_v49, 1  ;;  %v17908_v49 = vld [vmem:[%s24727_s2 + $0x1ec8] ss:$24 sps:$4 sm:$0xff]  }
 0x354   :  { %8928 = vmatprep.subr.bf16.mxu1 %v17818_v56  ;;  %v7217_v56 = vrot.slane %v7215_v59, 2  ;;  %v17913_v59 = vld [vmem:[%s24727_s2 + $0x1bf4] ss:$24 sps:$4 sm:$0xff]  }
 0x355   :  { %6843 = vmatpush1.bf16.msra.mxu0 %v17807_v12  ;;  %v7222_v12 = vrot.slane %v7220_v17, 1  ;;  %v17914_v17 = vld [vmem:[%s24727_s2 + $0x1ef8] ss:$24 sps:$4 sm:$0xff]  }
 0x356   :  { %6844 = vmatprep.subr.bf16.mxu0 %v17815_v11  ;;  %v7225_v11 = vrot.slane %v7223_v52, 2  ;;  %v17922_v52 = vld [vmem:[%s24727_s2 + $0x1f2c] ss:$24 sps:$4 sm:$0xff]  }
 0x357   :  { %8929 = vmatpush1.bf16.msra.mxu1 %v17816_v57  ;;  %v22113_v57 = vcombine.high %v22103_v28, %v22103_v28 }
 0x358   :  { %8930 = vmatprep.subr.bf16.mxu1 %v17824_v41  ;;  %v17867_v41 = vld [vmem:[%s24727_s2 + $0x1ab0] ss:$24 sps:$4 sm:$0xff]  }
 0x359   :  { %6845 = vmatpush1.bf16.msra.mxu0 %v17813_v63  ;;  %v17875_v63 = vld [vmem:[%s24727_s2 + $0x1ae4] ss:$24 sps:$4 sm:$0xff]  }
 0x35a   :  { %6846 = vmatprep.subr.bf16.mxu0 %v17821_v0  ;;  %v17876_v0 = vld [vmem:[%s24727_s2 + $0x1dd8] ss:$24 sps:$4 sm:$0xff]  }
 0x35b   :  { %8931 = vmatpush1.bf16.msra.mxu1 %v17822_v3  ;;  %v17886_v3 = vld [vmem:[%s24727_s2 + $0x1e0c] ss:$24 sps:$4 sm:$0xff]  }
 0x35c   :  { %8932 = vmatprep.subr.bf16.mxu1 %v17830_v8  ;;  %v7218_v8 = vor.u32 %v7217_v56, %v7214_v55  ;;  %v17920_v55 = vld [vmem:[%s24727_s2 + $0x1f28] ss:$24 sps:$4 sm:$0xff]   ;;  %v17928_v56 = vld [vmem:[%s24727_s2 + $0x1f5c] ss:$24 sps:$4 sm:$0xff]  }
 0x35d   :  { %6847 = vmatpush1.bf16.msra.mxu0 %v17819_v9  ;;  %v22127_v9 = vor.u32 %v7225_v11, %v7222_v12 }
 0x35e   :  { %6848 = vmatprep.subr.bf16.mxu0 %v17827_v19  ;;  %v7263_v19 = vshrl.u32 %v21068_v1, 16 }
 0x35f   :  { %8933 = vmatpush1.bf16.msra.mxu1 %v17828_v20  ;;  %v7266_v20 = vshll.u32 %v21068_v1, 16  ;;  %v22144_v1 = vsel %vm7210_vm2, %v7218_v8, %v22127_v9  ;;  %v17934_v8 = vld [vmem:[%s24727_s2 + $0x1f8c] ss:$24 sps:$4 sm:$0xff]  }
 0x360   :  { %8934 = vmatprep.subr.bf16.mxu1 %v17836_v16  ;;  %v7271_v16 = vshrl.u32 %v22113_v57, 16 }
 0x361   :  { %6849 = vmatpush1.bf16.msra.mxu0 %v17825_v33  ;;  %v7274_v33 = vshll.u32 %v22113_v57, 16 }
 0x362   :  { %6850 = vmatprep.subr.bf16.mxu0 %v17833_v62  ;;  %v17873_v62 = vld [vmem:[%s24727_s2 + $0x1ae0] ss:$24 sps:$4 sm:$0xff]  }
 0x363   :  { %8935 = vmatpush1.bf16.msra.mxu1 %v17834_v21  ;;  %v17881_v21 = vld [vmem:[%s24727_s2 + $0x1b04] ss:$24 sps:$4 sm:$0xff]  }
 0x364   :  { %8936 = vmatprep.subr.bf16.mxu1 %v17842_v61  ;;  %v17884_v61 = vld [vmem:[%s24727_s2 + $0x1e08] ss:$24 sps:$4 sm:$0xff]  }
 0x365   :  { %6851 = vmatpush1.bf16.msra.mxu0 %v17831_v22  ;;  %v17892_v22 = vld [vmem:[%s24727_s2 + $0x1e3c] ss:$24 sps:$4 sm:$0xff]  }
 0x366   :  { %6852 = vmatprep.subr.bf16.mxu0 %v17839_v30  ;;  %v7265_v30 = vrot.slane %v7263_v19, 1  ;;  %v17923_v19 = vld [vmem:[%s24727_s2 + $0x1c50] ss:$24 sps:$4 sm:$0xff]  }
 0x367   :  { %8937 = vmatpush1.bf16.msra.mxu1 %v17840_v27  ;;  %v7268_v27 = vrot.slane %v7266_v20, 2  ;;  %v17931_v20 = vld [vmem:[%s24727_s2 + $0x1c84] ss:$24 sps:$4 sm:$0xff]  }
 0x368   :  { %8938 = vmatprep.subr.bf16.mxu1 %v17848_v47  ;;  %v7273_v47 = vrot.slane %v7271_v16, 1 }
 0x369   :  { %6853 = vmatpush1.bf16.msra.mxu0 %v17837_v60  ;;  %v7276_v60 = vrot.slane %v7274_v33, 2 }
 0x36a   :  { %6854 = vmatprep.subr.bf16.mxu0 %v17845_v26  ;;  %v17879_v26 = vld [vmem:[%s24727_s2 + $0x1b00] ss:$24 sps:$4 sm:$0xff]  }
 0x36b   :  { %8939 = vmatpush1.bf16.msra.mxu1 %v17846_v31  ;;  %v17889_v31 = vld [vmem:[%s24727_s2 + $0x1b34] ss:$24 sps:$4 sm:$0xff]  }
 0x36c   :  { %8940 = vmatprep.subr.bf16.mxu1 %v17854_v34  ;;  %v17890_v34 = vld [vmem:[%s24727_s2 + $0x1e38] ss:$24 sps:$4 sm:$0xff]  }
 0x36d   :  { %6855 = vmatpush1.bf16.msra.mxu0 %v17843_v43  ;;  %v17898_v43 = vld [vmem:[%s24727_s2 + $0x1e6c] ss:$24 sps:$4 sm:$0xff]  }
 0x36e   :  { %6856 = vmatprep.subr.bf16.mxu0 %v17851_v2  ;;  %v7269_v2 = vor.u32 %v7268_v27, %v7265_v30 }
 0x36f   :  { %8941 = vmatpush1.bf16.msra.mxu1 %v17852_v10  ;;  %v22164_v10 = vor.u32 %v7276_v60, %v7273_v47 }
 0x370   :  { %8942 = vmatprep.subr.bf16.mxu1 %v17860_v7  ;;  %v17887_v7 = vld [vmem:[%s24727_s2 + $0x1b30] ss:$24 sps:$4 sm:$0xff]  }
 0x371   :  { %6857 = vmatpush1.bf16.msra.mxu0 %v17849_v35  ;;  %v17895_v35 = vld [vmem:[%s24727_s2 + $0x1b64] ss:$24 sps:$4 sm:$0xff]  }
 0x372   :  { %6858 = vmatprep.subr.bf16.mxu0 %v17857_v36  ;;  %v17904_v36 = vld [vmem:[%s24727_s2 + $0x1e9c] ss:$24 sps:$4 sm:$0xff]  }
 0x373   :  { %8943 = vmatpush1.bf16.msra.mxu1 %v17858_v38  ;;  %v22181_v38 = vsel %vm7210_vm2, %v7269_v2, %v22164_v10 }
 0x374   :  { %8944 = vmatprep.subr.bf16.mxu1 %v17866_v15  ;;  %v17901_v15 = vld [vmem:[%s24727_s2 + $0x1b94] ss:$24 sps:$4 sm:$0xff]  }
 0x375   :  { %6859 = vmatpush1.bf16.msra.mxu0 %v17855_v45  ;;  %v17902_v45 = vld [vmem:[%s24727_s2 + $0x1e98] ss:$24 sps:$4 sm:$0xff]  }
 0x376   :  { %6860 = vmatprep.subr.bf16.mxu0 %v17863_v48  ;;  %v17910_v48 = vld [vmem:[%s24727_s2 + $0x1ecc] ss:$24 sps:$4 sm:$0xff]  }
 0x377   :  { %8945 = vmatpush1.bf16.msra.mxu1 %v17864_v40  ;;  %v17899_v40 = vld [vmem:[%s24727_s2 + $0x1b90] ss:$24 sps:$4 sm:$0xff]  }
 0x378   :  { %8946 = vmatprep.subr.bf16.mxu1 %v17872_v46  ;;  %v17907_v46 = vld [vmem:[%s24727_s2 + $0x1bc4] ss:$24 sps:$4 sm:$0xff]  }
 0x379   :  { %6861 = vmatpush1.bf16.msra.mxu0 %v17861_v51  ;;  %v17905_v51 = vld [vmem:[%s24727_s2 + $0x1bc0] ss:$24 sps:$4 sm:$0xff]  }
 0x37a   :  { %6862 = vmatprep.subr.bf16.mxu0 %v17869_v58  ;;  %v17911_v58 = vld [vmem:[%s24727_s2 + $0x1bf0] ss:$24 sps:$4 sm:$0xff]  }
 0x37b   :  { %8947 = vmatpush1.bf16.msra.mxu1 %v17870_v54  ;;  %v17919_v54 = vld [vmem:[%s24727_s2 + $0x1c24] ss:$24 sps:$4 sm:$0xff]  }
 0x37c   :  { %8948 = vmatprep.subr.bf16.mxu1 %v17878_v23  ;;  %v22229_v23 = vpop.f32.mrb[16].mxu1 }
 0x37d   :  { %6863 = vmatpush1.bf16.msra.mxu0 %v17867_v41  ;;  %v22237_v12 = vpop.f32.mrb[17].mxu1  ;;  %v17917_v41 = vld [vmem:[%s24727_s2 + $0x1c20] ss:$24 sps:$4 sm:$0xff]  }
 0x37e   :  { %6864 = vmatprep.subr.bf16.mxu0 %v17875_v63  ;;  %v22239_v11 = vpop.f32.mrb[18].mxu1  ;;  %v17925_v63 = vld [vmem:[%s24727_s2 + $0x1c54] ss:$24 sps:$4 sm:$0xff]  }
 0x37f   :  { %8949 = vmatpush1.bf16.msra.mxu1 %v17876_v0  ;;  %v22247_v0 = vpop.f32.mrb[19].mxu1 }
 0x380   :  { %8969 = vmatprep.subr.bf16.mxu1 %v17886_v3  ;;  %v17926_v3 = vld [vmem:[%s24727_s2 + $0x1f58] ss:$24 sps:$4 sm:$0xff]  }
 0x381   :  { %6865 = vmatpush1.bf16.msra.mxu0 %v17873_v62 }
 0x382   :  { %8765 = vmatprep.subr.bf16.mxu0 %v17881_v21  ;;  %8951 = vmatmul.mubr.bf16.vlgmr.msra.gmra.mrb[8].mxu1 %v22144_v1 }
 0x383   :  { %8970 = vmatpush1.bf16.msra.mxu1 %v17884_v61  ;;  %8960 = vmatprep.mubr.bf16.mxu1 %v21937_v18 }
 0x384   :  { %6867 = vmatmul.mubr.bf16.vlgmr.msra.gmra.mrb[0].mxu0 %v21510_v32  ;;  %8971 = vmatprep.subr.bf16.mxu1 %v17892_v22  ;;  %v17896_v32 = vld [vmem:[%s24727_s2 + $0x1e68] ss:$24 sps:$4 sm:$0xff]  }
 0x385   :  { %8766 = vmatpush1.bf16.msra.mxu0 %v17879_v26  ;;  %6876 = vmatprep.mubr.bf16.mxu0 %v21319_v25  ;;  %v17893_v25 = vld [vmem:[%s24727_s2 + $0x1b60] ss:$24 sps:$4 sm:$0xff]  }
 0x386   :  { %8767 = vmatprep.subr.bf16.mxu0 %v17889_v31 }
 0x387   :  { %8972 = vmatpush1.bf16.msra.mxu1 %v17890_v34 }
 0x388   :  { %8973 = vmatprep.subr.bf16.mxu1 %v17898_v43 }
 0x389   :  { %8768 = vmatpush1.bf16.msra.mxu0 %v17887_v7 }
 0x38a   :  { %8769 = vmatprep.subr.bf16.mxu0 %v17895_v35  ;;  %8961 = vmatmul.mubr.bf16.gmra.mrb[12].mxu1 %v22127_v9 }
 0x38b   :  { %8974 = vmatpush1.bf16.msra.mxu1 %v17896_v32  ;;  %9001 = vmatprep.mubr.bf16.mxu1 %v22181_v38 }
 0x38c   :  { %8975 = vmatprep.subr.bf16.mxu1 %v17904_v36  ;;  %6877 = vmatmul.mubr.bf16.gmra.mrb[4].mxu0 %v21500_v29  ;;  %v17916_v29 = vld [vmem:[%s24727_s2 + $0x1efc] ss:$24 sps:$4 sm:$0xff]  }
 0x38d   :  { %8770 = vmatpush1.bf16.msra.mxu0 %v17893_v25  ;;  %8797 = vmatprep.mubr.bf16.mxu0 %v21951_v42 }
 0x38e   :  { %8771 = vmatprep.subr.bf16.mxu0 %v17901_v15 }
 0x38f   :  { %8976 = vmatpush1.bf16.msra.mxu1 %v17902_v45 }
 0x390   :  { %8977 = vmatprep.subr.bf16.mxu1 %v17910_v48 }
 0x391   :  { %8772 = vmatpush1.bf16.msra.mxu0 %v17899_v40 }
 0x392   :  { %8773 = vmatprep.subr.bf16.mxu0 %v17907_v46 }
 0x393   :  { %8978 = vmatpush1.bf16.msra.mxu1 %v17908_v49 }
 0x394   :  { %8979 = vmatprep.subr.bf16.mxu1 %v17916_v29 }
 0x395   :  { %8774 = vmatpush1.bf16.msra.mxu0 %v17905_v51 }
 0x396   :  { %8775 = vmatprep.subr.bf16.mxu0 %v17913_v59 }
 0x397   :  { %8980 = vmatpush1.bf16.msra.mxu1 %v17914_v17 }
 0x398   :  { %8981 = vmatprep.subr.bf16.mxu1 %v17922_v52 }
 0x399   :  { %8776 = vmatpush1.bf16.msra.mxu0 %v17911_v58 }
 0x39a   :  { %8777 = vmatprep.subr.bf16.mxu0 %v17919_v54 }
 0x39b   :  { %8982 = vmatpush1.bf16.msra.mxu1 %v17920_v55 }
 0x39c   :  { %8983 = vmatprep.subr.bf16.mxu1 %v17928_v56 }
 0x39d   :  { %8778 = vmatpush1.bf16.msra.mxu0 %v17917_v41 }
 0x39e   :  { %8779 = vmatprep.subr.bf16.mxu0 %v17925_v63 }
 0x39f   :  { %14 = vsyncpa [#allocation4], 0  ;;  %8984 = vmatpush1.bf16.msra.mxu1 %v17926_v3  ;;  %v17932_v16 = vld [vmem:[%s24727_s2 + $0x1f88] ss:$24 sps:$4 sm:$0xff]   ;;  %v17940_v33 = vld [vmem:[%s24727_s2 + $0x1fbc] ss:$24 sps:$4 sm:$0xff]   ;;  %v22314_v32 = vcombine.low %v22103_v28, %v22103_v28 }
 0x3a0   :  { %8985 = vmatprep.subr.bf16.mxu1 %v17934_v8  ;;  %v17929_v62 = vld [vmem:[%s24727_s2 + $0x1c80] ss:$24 sps:$4 sm:$0xff]   ;;  %v17937_v21 = vld [vmem:[%s24727_s2 + $0x1cb4] ss:$24 sps:$4 sm:$0xff]   ;;  %v17935_v30 = vld [vmem:[%s24727_s2 + $0x1cb0] ss:$24 sps:$4 sm:$0xff]  }
 0x3a1   :  { %8780 = vmatpush1.bf16.msra.mxu0 %v17923_v19  ;;  %v17938_v61 = vld [vmem:[%s24727_s2 + $0x1fb8] ss:$24 sps:$4 sm:$0xff]   ;;  %v17946_v22 = vld [vmem:[%s24727_s2 + $0x1fec] ss:$24 sps:$4 sm:$0xff]   ;;  %v17944_v47 = vld [vmem:[%s24727_s2 + $0x1fe8] ss:$24 sps:$4 sm:$0xff]  }
 0x3a2   :  { %8781 = vmatprep.subr.bf16.mxu0 %v17931_v20  ;;  %v17943_v27 = vld [vmem:[%s24727_s2 + $0x1ce4] ss:$24 sps:$4 sm:$0xff]   ;;  %v17941_v26 = vld [vmem:[%s24727_s2 + $0x1ce0] ss:$24 sps:$4 sm:$0xff]   ;;  %v17949_v31 = vld [vmem:[%s24727_s2 + $0x1d14] ss:$24 sps:$4 sm:$0xff]  }
 0x3a3   :  { %8986 = vmatpush1.bf16.msra.mxu1 %v17932_v16  ;;  %v17952_v60 = vld [vmem:[%s24727_s2 + $0x201c] ss:$24 sps:$4 sm:$0xff]   ;;  %v17950_v34 = vld [vmem:[%s24727_s2 + $0x2018] ss:$24 sps:$4 sm:$0xff]   ;;  %v17958_v43 = vld [vmem:[%s24727_s2 + $0x204c] ss:$24 sps:$4 sm:$0xff]  }
 0x3a4   :  { %8987 = vmatprep.subr.bf16.mxu1 %v17940_v33  ;;  %v17947_v2 = vld [vmem:[%s24727_s2 + $0x1d10] ss:$24 sps:$4 sm:$0xff]   ;;  %v17955_v7 = vld [vmem:[%s24727_s2 + $0x1d44] ss:$24 sps:$4 sm:$0xff]   ;;  %v17953_v25 = vld [vmem:[%s24727_s2 + $0x1d40] ss:$24 sps:$4 sm:$0xff]  }
 0x3a5   :  { %8782 = vmatpush1.bf16.msra.mxu0 %v17929_v62  ;;  %v17956_v35 = vld [vmem:[%s24727_s2 + $0x2048] ss:$24 sps:$4 sm:$0xff]   ;;  %v17964_v36 = vld [vmem:[%s24727_s2 + $0x207c] ss:$24 sps:$4 sm:$0xff]   ;;  %v17962_v28 = vld [vmem:[%s24727_s2 + $0x2078] ss:$24 sps:$4 sm:$0xff]  }
 0x3a6   :  { %8783 = vmatprep.subr.bf16.mxu0 %v17937_v21  ;;  %v17961_v15 = vld [vmem:[%s24727_s2 + $0x1d74] ss:$24 sps:$4 sm:$0xff]   ;;  %v7246_v45 = vshrl.u32 %v21256_v39, 16  ;;  %v7249_v48 = vshll.u32 %v21256_v39, 16  ;;  %v7254_v40 = vshrl.u32 %v22314_v32, 16  ;;  %v7257_v46 = vshll.u32 %v22314_v32, 16 }
 0x3a7   :  { %8988 = vmatpush1.bf16.msra.mxu1 %v17938_v61  ;;  %v17970_v49 = vld [vmem:[%s24727_s2 + $0x20ac] ss:$24 sps:$4 sm:$0xff]   ;;  %v17959_v29 = vld [vmem:[%s24727_s2 + $0x1d70] ss:$24 sps:$4 sm:$0xff]   ;;  %v17976_v55 = vld [vmem:[%s24727_s2 + $0x20dc] ss:$24 sps:$4 sm:$0xff]  }
 0x3a8   :  { %8989 = vmatprep.subr.bf16.mxu1 %v17946_v22  ;;  %v22338_v51 = vld [vmem:[#allocation2 + $0x40] sm:$0xff]  ;;  %v7248_v17 = vrot.slane %v7246_v45, 1  ;;  %v7251_v52 = vrot.slane %v7249_v48, 2  ;;  %v7256_v58 = vrot.slane %v7254_v40, 1  ;;  %v7259_v54 = vrot.slane %v7257_v46, 2 }
 0x3a9   :  { %8784 = vmatpush1.bf16.msra.mxu0 %v17935_v30  ;;  %v17967_v39 = vld [vmem:[%s24727_s2 + $0x1da4] ss:$24 sps:$4 sm:$0xff]   ;;  %v17968_v59 = vld [vmem:[%s24727_s2 + $0x20a8] ss:$24 sps:$4 sm:$0xff]   ;;  %v22351_v56 = vcombine.high %v22338_v51, %v22338_v51  ;;  %v17973_v63 = vld [vmem:[%s24727_s2 + $0x1dd4] ss:$24 sps:$4 sm:$0xff]  }
 0x3aa   :  { %8785 = vmatprep.subr.bf16.mxu0 %v17943_v27  ;;  %v17965_v41 = vld [vmem:[%s24727_s2 + $0x1da0] ss:$24 sps:$4 sm:$0xff]   ;;  %v7252_v8 = vor.u32 %v7251_v52, %v7248_v17  ;;  %v22362_v19 = vor.u32 %v7259_v54, %v7256_v58  ;;  %v17984_v20 = vld [vmem:[%s24727_s2 + $0x210c] ss:$24 sps:$4 sm:$0xff]   ;;  %v7297_v16 = vshrl.u32 %v21300_v50, 16  ;;  %v7300_v33 = vshll.u32 %v21300_v50, 16 }
 0x3ab   :  { %8990 = vmatpush1.bf16.msra.mxu1 %v17944_v47  ;;  %v17974_v3 = vld [vmem:[%s24727_s2 + $0x20d8] ss:$24 sps:$4 sm:$0xff]   ;;  %v7305_v62 = vshrl.u32 %v22351_v56, 16  ;;  %v7308_v21 = vshll.u32 %v22351_v56, 16  ;;  %v17979_v22 = vld [vmem:[%s24727_s2 + $0x1e04] ss:$24 sps:$4 sm:$0xff]  }
 0x3ac   :  { %8991 = vmatprep.subr.bf16.mxu1 %v17952_v60  ;;  %v17971_v61 = vld [vmem:[%s24727_s2 + $0x1dd0] ss:$24 sps:$4 sm:$0xff]   ;;  %v22382_v50 = vsel %vm7210_vm2, %v7252_v8, %v22362_v19  ;;  %v17990_v27 = vld [vmem:[%s24727_s2 + $0x213c] ss:$24 sps:$4 sm:$0xff]   ;;  %v7299_v47 = vrot.slane %v7297_v16, 1  ;;  %v7302_v60 = vrot.slane %v7300_v33, 2 }
 0x3ad   :  { %8786 = vmatpush1.bf16.msra.mxu0 %v17941_v26  ;;  %v17982_v30 = vld [vmem:[%s24727_s2 + $0x2108] ss:$24 sps:$4 sm:$0xff]   ;;  %v7307_v26 = vrot.slane %v7305_v62, 1  ;;  %v18002_v45 = vld [vmem:[%s24727_s2 + $0x219c] ss:$24 sps:$4 sm:$0xff]   ;;  %vm9549_vm3 = vcmask 1045504  }
 0x3ae   :  { %8787 = vmatprep.subr.bf16.mxu0 %v17949_v31  ;;  %v7310_v31 = vrot.slane %v7308_v21, 2  ;;  %v17991_v40 = vld [vmem:[%s24727_s2 + $0x1e60] ss:$24 sps:$4 sm:$0xff]   ;;  %v17999_v46 = vld [vmem:[%s24727_s2 + $0x1e94] ss:$24 sps:$4 sm:$0xff]   ;;  %vm11533_vm4 = vcmask 1047554  }
 0x3af   :  { %8992 = vmatpush1.bf16.msra.mxu1 %v17950_v34  ;;  %v17977_v34 = vld [vmem:[%s24727_s2 + $0x1e00] ss:$24 sps:$4 sm:$0xff]   ;;  %v18005_v17 = vld [vmem:[%s24727_s2 + $0x1ec4] ss:$24 sps:$4 sm:$0xff]   ;;  %v18009_v16 = vld [vmem:[%s24727_s2 + $0x1ef0] ss:$24 sps:$4 sm:$0xff]  }
 0x3b0   :  { %8993 = vmatprep.subr.bf16.mxu1 %v17958_v43  ;;  %v17987_v43 = vld [vmem:[%s24727_s2 + $0x1e34] ss:$24 sps:$4 sm:$0xff]   ;;  %v18006_v58 = vld [vmem:[%s24727_s2 + $0x21c8] ss:$24 sps:$4 sm:$0xff]   ;;  %v18012_v8 = vld [vmem:[%s24727_s2 + $0x21f8] ss:$24 sps:$4 sm:$0xff]  }
 0x3b1   :  { %8788 = vmatpush1.bf16.msra.mxu0 %v17947_v2  ;;  %v17988_v2 = vld [vmem:[%s24727_s2 + $0x2138] ss:$24 sps:$4 sm:$0xff]   ;;  %v18017_v33 = vld [vmem:[%s24727_s2 + $0x1f24] ss:$24 sps:$4 sm:$0xff]   ;;  %v18018_v62 = vld [vmem:[%s24727_s2 + $0x2228] ss:$24 sps:$4 sm:$0xff]  }
 0x3b2   :  { %8789 = vmatprep.subr.bf16.mxu0 %v17955_v7  ;;  %v17996_v7 = vld [vmem:[%s24727_s2 + $0x216c] ss:$24 sps:$4 sm:$0xff]   ;;  %v18026_v21 = vld [vmem:[%s24727_s2 + $0x225c] ss:$24 sps:$4 sm:$0xff]   ;;  %vm11535_vm5 = vcmask 1041408   ;;  %vm11589_vm6 = vcmask 1040384  }
 0x3b3   :  { %8994 = vmatpush1.bf16.msra.mxu1 %v17956_v35  ;;  %v7303_v35 = vor.u32 %v7302_v60, %v7299_v47  ;;  %v18021_v47 = vld [vmem:[%s24727_s2 + $0x1f50] ss:$24 sps:$4 sm:$0xff]   ;;  %v18029_v60 = vld [vmem:[%s24727_s2 + $0x1f84] ss:$24 sps:$4 sm:$0xff]  }
 0x3b4   :  { %8995 = vmatprep.subr.bf16.mxu1 %v17964_v36  ;;  %v22402_v36 = vor.u32 %v7310_v31, %v7307_v26  ;;  %v18030_v26 = vld [vmem:[%s24727_s2 + $0x2288] ss:$24 sps:$4 sm:$0xff]   ;;  %v18038_v31 = vld [vmem:[%s24727_s2 + $0x22bc] ss:$24 sps:$4 sm:$0xff]  }
 0x3b5   :  { %8790 = vmatpush1.bf16.msra.mxu0 %v17953_v25  ;;  %v17985_v25 = vld [vmem:[%s24727_s2 + $0x1e30] ss:$24 sps:$4 sm:$0xff]  }
 0x3b6   :  { %8791 = vmatprep.subr.bf16.mxu0 %v17961_v15  ;;  %v17993_v15 = vld [vmem:[%s24727_s2 + $0x1e64] ss:$24 sps:$4 sm:$0xff]   ;;  %v22419_v48 = vsel %vm7210_vm2, %v7303_v35, %v22402_v36  ;;  %v18033_v35 = vld [vmem:[%s24727_s2 + $0x1fb0] ss:$24 sps:$4 sm:$0xff]  }
 0x3b7   :  { %8996 = vmatpush1.bf16.msra.mxu1 %v17962_v28  ;;  %v17994_v28 = vld [vmem:[%s24727_s2 + $0x2168] ss:$24 sps:$4 sm:$0xff]  }
 0x3b8   :  { %8997 = vmatprep.subr.bf16.mxu1 %v17970_v49  ;;  %v18000_v49 = vld [vmem:[%s24727_s2 + $0x2198] ss:$24 sps:$4 sm:$0xff]  }
 0x3b9   :  { %8792 = vmatpush1.bf16.msra.mxu0 %v17959_v29  ;;  %v18008_v29 = vld [vmem:[%s24727_s2 + $0x21cc] ss:$24 sps:$4 sm:$0xff]  }
 0x3ba   :  { %8793 = vmatprep.subr.bf16.mxu0 %v17967_v39  ;;  %v17997_v39 = vld [vmem:[%s24727_s2 + $0x1e90] ss:$24 sps:$4 sm:$0xff]  }
 0x3bb   :  { %8998 = vmatpush1.bf16.msra.mxu1 %v17968_v59  ;;  %v22440_v59 = vpop.f32.mrb[20].mxu1 }
 0x3bc   :  { %8999 = vmatprep.subr.bf16.mxu1 %v17976_v55  ;;  %v22445_v52 = vpop.f32.mrb[21].mxu1  ;;  %v18014_v55 = vld [vmem:[%s24727_s2 + $0x21fc] ss:$24 sps:$4 sm:$0xff]  }
 0x3bd   :  { %8794 = vmatpush1.bf16.msra.mxu0 %v17965_v41  ;;  %v2617_v54 = vpop.f32.mrb[22].mxu1 }
 0x3be   :  { %8795 = vmatprep.subr.bf16.mxu0 %v17973_v63  ;;  %v2618_v41 = vpop.f32.mrb[23].mxu1  ;;  %v18003_v63 = vld [vmem:[%s24727_s2 + $0x1ec0] ss:$24 sps:$4 sm:$0xff]   ;;  %v18062_v54 = vld [vmem:[%s24727_s2 + $0x237c] ss:$24 sps:$4 sm:$0xff]  }
 0x3bf   :  { %9000 = vmatpush1.bf16.msra.mxu1 %v17974_v3  ;;  %v18011_v3 = vld [vmem:[%s24727_s2 + $0x1ef4] ss:$24 sps:$4 sm:$0xff]  }
 0x3c0   :  { %9020 = vmatprep.subr.bf16.mxu1 %v17984_v20  ;;  %v18020_v20 = vld [vmem:[%s24727_s2 + $0x222c] ss:$24 sps:$4 sm:$0xff]  }
 0x3c1   :  { %8796 = vmatpush1.bf16.msra.mxu0 %v17971_v61  ;;  %v18015_v61 = vld [vmem:[%s24727_s2 + $0x1f20] ss:$24 sps:$4 sm:$0xff]   ;;  %v18059_v41 = vld [vmem:[%s24727_s2 + $0x2074] ss:$24 sps:$4 sm:$0xff]  }
 0x3c2   :  { %8816 = vmatprep.subr.bf16.mxu0 %v17979_v22  ;;  %9002 = vmatmul.mubr.bf16.vlgmr.msra.gmra.mrb[8].mxu1 %v22382_v50  ;;  %v18023_v22 = vld [vmem:[%s24727_s2 + $0x1f54] ss:$24 sps:$4 sm:$0xff]  }
 0x3c3   :  { %9021 = vmatpush1.bf16.msra.mxu1 %v17982_v30  ;;  %9011 = vmatprep.mubr.bf16.mxu1 %v22164_v10  ;;  %v18024_v30 = vld [vmem:[%s24727_s2 + $0x2258] ss:$24 sps:$4 sm:$0xff]  }
 0x3c4   :  { %8798 = vmatmul.mubr.bf16.vlgmr.msra.gmra.mrb[8].mxu0 %v22144_v1  ;;  %9022 = vmatprep.subr.bf16.mxu1 %v17990_v27  ;;  %v18032_v27 = vld [vmem:[%s24727_s2 + $0x228c] ss:$24 sps:$4 sm:$0xff]  }
 0x3c5   :  { %8817 = vmatpush1.bf16.msra.mxu0 %v17977_v34  ;;  %8807 = vmatprep.mubr.bf16.mxu0 %v21937_v18  ;;  %v18027_v34 = vld [vmem:[%s24727_s2 + $0x1f80] ss:$24 sps:$4 sm:$0xff]  }
 0x3c6   :  { %8818 = vmatprep.subr.bf16.mxu0 %v17987_v43  ;;  %v18035_v43 = vld [vmem:[%s24727_s2 + $0x1fb4] ss:$24 sps:$4 sm:$0xff]  }
 0x3c7   :  { %9023 = vmatpush1.bf16.msra.mxu1 %v17988_v2  ;;  %v18036_v2 = vld [vmem:[%s24727_s2 + $0x22b8] ss:$24 sps:$4 sm:$0xff]  }
 0x3c8   :  { %9024 = vmatprep.subr.bf16.mxu1 %v17996_v7  ;;  %v18044_v7 = vld [vmem:[%s24727_s2 + $0x22ec] ss:$24 sps:$4 sm:$0xff]  }
 0x3c9   :  { %8819 = vmatpush1.bf16.msra.mxu0 %v17985_v25  ;;  %v18041_v25 = vld [vmem:[%s24727_s2 + $0x1fe4] ss:$24 sps:$4 sm:$0xff]  }
 0x3ca   :  { %8820 = vmatprep.subr.bf16.mxu0 %v17993_v15  ;;  %9012 = vmatmul.mubr.bf16.gmra.mrb[12].mxu1 %v22362_v19  ;;  %v18042_v15 = vld [vmem:[%s24727_s2 + $0x22e8] ss:$24 sps:$4 sm:$0xff]  }
 0x3cb   :  { %9025 = vmatpush1.bf16.msra.mxu1 %v17994_v28  ;;  %9052 = vmatprep.mubr.bf16.mxu1 %v22419_v48  ;;  %v18050_v28 = vld [vmem:[%s24727_s2 + $0x231c] ss:$24 sps:$4 sm:$0xff]  }
 0x3cc   :  { %9026 = vmatprep.subr.bf16.mxu1 %v18002_v45  ;;  %8808 = vmatmul.mubr.bf16.gmra.mrb[12].mxu0 %v22127_v9  ;;  %v18039_v45 = vld [vmem:[%s24727_s2 + $0x1fe0] ss:$24 sps:$4 sm:$0xff]  }
 0x3cd   :  { %8821 = vmatpush1.bf16.msra.mxu0 %v17991_v40  ;;  %8848 = vmatprep.mubr.bf16.mxu0 %v22181_v38  ;;  %v18047_v40 = vld [vmem:[%s24727_s2 + $0x2014] ss:$24 sps:$4 sm:$0xff]  }
 0x3ce   :  { %8822 = vmatprep.subr.bf16.mxu0 %v17999_v46  ;;  %v18048_v46 = vld [vmem:[%s24727_s2 + $0x2318] ss:$24 sps:$4 sm:$0xff]  }
 0x3cf   :  { %9027 = vmatpush1.bf16.msra.mxu1 %v18000_v49  ;;  %v18056_v49 = vld [vmem:[%s24727_s2 + $0x234c] ss:$24 sps:$4 sm:$0xff]  }
 0x3d0   :  { %9028 = vmatprep.subr.bf16.mxu1 %v18008_v29  ;;  %v18045_v29 = vld [vmem:[%s24727_s2 + $0x2010] ss:$24 sps:$4 sm:$0xff]  }
 0x3d1   :  { %8823 = vmatpush1.bf16.msra.mxu0 %v17997_v39  ;;  %v18053_v39 = vld [vmem:[%s24727_s2 + $0x2044] ss:$24 sps:$4 sm:$0xff]  }
 0x3d2   :  { %8824 = vmatprep.subr.bf16.mxu0 %v18005_v17  ;;  %v18054_v17 = vld [vmem:[%s24727_s2 + $0x2348] ss:$24 sps:$4 sm:$0xff]  }
 0x3d3   :  { %9029 = vmatpush1.bf16.msra.mxu1 %v18006_v58  ;;  %v22548_v58 = vcombine.low %v22338_v51, %v22338_v51  ;;  %v18060_v51 = vld [vmem:[%s24727_s2 + $0x2378] ss:$24 sps:$4 sm:$0xff]  }
 0x3d4   :  { %9030 = vmatprep.subr.bf16.mxu1 %v18014_v55  ;;  %v18051_v55 = vld [vmem:[%s24727_s2 + $0x2040] ss:$24 sps:$4 sm:$0xff]  }
 0x3d5   :  { %8825 = vmatpush1.bf16.msra.mxu0 %v18003_v63  ;;  %v7280_v63 = vshrl.u32 %v21484_v24, 16 }
 0x3d6   :  { %8826 = vmatprep.subr.bf16.mxu0 %v18011_v3  ;;  %v7283_v3 = vshll.u32 %v21484_v24, 16  ;;  %v18066_v24 = vld [vmem:[%s24727_s2 + $0x23a8] ss:$24 sps:$4 sm:$0xff]  }
 0x3d7   :  { %9031 = vmatpush1.bf16.msra.mxu1 %v18012_v8  ;;  %v7288_v8 = vshrl.u32 %v22548_v58, 16 }
 0x3d8   :  { %9032 = vmatprep.subr.bf16.mxu1 %v18020_v20  ;;  %v7291_v20 = vshll.u32 %v22548_v58, 16 }
 0x3d9   :  { %8827 = vmatpush1.bf16.msra.mxu0 %v18009_v16  ;;  %v18068_v16 = vld [vmem:[%s24727_s2 + $0x23ac] ss:$24 sps:$4 sm:$0xff]  }
 0x3da   :  { %8828 = vmatprep.subr.bf16.mxu0 %v18017_v33  ;;  %v18057_v33 = vld [vmem:[%s24727_s2 + $0x2070] ss:$24 sps:$4 sm:$0xff]  }
 0x3db   :  { %9033 = vmatpush1.bf16.msra.mxu1 %v18018_v62  ;;  %v18065_v62 = vld [vmem:[%s24727_s2 + $0x20a4] ss:$24 sps:$4 sm:$0xff]  }
 0x3dc   :  { %9034 = vmatprep.subr.bf16.mxu1 %v18026_v21  ;;  %v7282_v21 = vrot.slane %v7280_v63, 1 }
 0x3dd   :  { %8829 = vmatpush1.bf16.msra.mxu0 %v18015_v61  ;;  %v7285_v61 = vrot.slane %v7283_v3, 2  ;;  %v18089_v3 = vld [vmem:[%s24727_s2 + $0x2160] ss:$24 sps:$4 sm:$0xff]  }
 0x3de   :  { %8830 = vmatprep.subr.bf16.mxu0 %v18023_v22  ;;  %v7290_v22 = vrot.slane %v7288_v8, 1  ;;  %v18097_v8 = vld [vmem:[%s24727_s2 + $0x2194] ss:$24 sps:$4 sm:$0xff]  }
 0x3df   :  { %9035 = vmatpush1.bf16.msra.mxu1 %v18024_v30  ;;  %v7293_v30 = vrot.slane %v7291_v20, 2  ;;  %v18098_v20 = vld [vmem:[%s24727_s2 + $0x2498] ss:$24 sps:$4 sm:$0xff]  }
 0x3e0   :  { %9036 = vmatprep.subr.bf16.mxu1 %v18032_v27  ;;  %v18074_v27 = vld [vmem:[%s24727_s2 + $0x23dc] ss:$24 sps:$4 sm:$0xff]  }
 0x3e1   :  { %8831 = vmatpush1.bf16.msra.mxu0 %v18021_v47  ;;  %v18063_v47 = vld [vmem:[%s24727_s2 + $0x20a0] ss:$24 sps:$4 sm:$0xff]  }
 0x3e2   :  { %8832 = vmatprep.subr.bf16.mxu0 %v18029_v60  ;;  %v18071_v60 = vld [vmem:[%s24727_s2 + $0x20d4] ss:$24 sps:$4 sm:$0xff]  }
 0x3e3   :  { %9037 = vmatpush1.bf16.msra.mxu1 %v18030_v26  ;;  %v18072_v26 = vld [vmem:[%s24727_s2 + $0x23d8] ss:$24 sps:$4 sm:$0xff]  }
 0x3e4   :  { %9038 = vmatprep.subr.bf16.mxu1 %v18038_v31  ;;  %v7286_v31 = vor.u32 %v7285_v61, %v7282_v21  ;;  %v18112_v21 = vld [vmem:[%s24727_s2 + $0x24fc] ss:$24 sps:$4 sm:$0xff]   ;;  %v18101_v61 = vld [vmem:[%s24727_s2 + $0x21c0] ss:$24 sps:$4 sm:$0xff]  }
 0x3e5   :  { %8833 = vmatpush1.bf16.msra.mxu0 %v18027_v34  ;;  %v22590_v34 = vor.u32 %v7293_v30, %v7290_v22  ;;  %v18109_v22 = vld [vmem:[%s24727_s2 + $0x21f4] ss:$24 sps:$4 sm:$0xff]   ;;  %v18110_v30 = vld [vmem:[%s24727_s2 + $0x24f8] ss:$24 sps:$4 sm:$0xff]  }
 0x3e6   :  { %8834 = vmatprep.subr.bf16.mxu0 %v18035_v43  ;;  %v18082_v43 = vld [vmem:[%s24727_s2 + $0x240c] ss:$24 sps:$4 sm:$0xff]  }
 0x3e7   :  { %9039 = vmatpush1.bf16.msra.mxu1 %v18036_v2  ;;  %v18069_v2 = vld [vmem:[%s24727_s2 + $0x20d0] ss:$24 sps:$4 sm:$0xff]  }
 0x3e8   :  { %9040 = vmatprep.subr.bf16.mxu1 %v18044_v7  ;;  %v22598_v7 = vld [vmem:[#allocation2] sm:$0xcc] }
 0x3e9   :  { %8835 = vmatpush1.bf16.msra.mxu0 %v18033_v35  ;;  %v18077_v35 = vld [vmem:[%s24727_s2 + $0x2104] ss:$24 sps:$4 sm:$0xff]  }
 0x3ea   :  { %8836 = vmatprep.subr.bf16.mxu0 %v18041_v25  ;;  %v18080_v25 = vld [vmem:[%s24727_s2 + $0x2408] ss:$24 sps:$4 sm:$0xff]  }
 0x3eb   :  { %9041 = vmatpush1.bf16.msra.mxu1 %v18042_v15  ;;  %v22608_v15 = vsel %vm7210_vm2, %v7286_v31, %v22590_v34  ;;  %v18124_v31 = vld [vmem:[%s24727_s2 + $0x255c] ss:$24 sps:$4 sm:$0xff]  }
 0x3ec   :  { %9042 = vmatprep.subr.bf16.mxu1 %v18050_v28  ;;  %v18088_v28 = vld [vmem:[%s24727_s2 + $0x243c] ss:$24 sps:$4 sm:$0xff]  }
 0x3ed   :  { %8837 = vmatpush1.bf16.msra.mxu0 %v18039_v45  ;;  %v22613_v45 = vld [vmem:[#allocation2 + $0x18] sm:$0xff] }
 0x3ee   :  { %8838 = vmatprep.subr.bf16.mxu0 %v18047_v40  ;;  %v15651_v40 = vcombine.high %v22598_v7, %v22613_v45 }
 0x3ef   :  { %9043 = vmatpush1.bf16.msra.mxu1 %v18048_v46  ;;  %v18075_v46 = vld [vmem:[%s24727_s2 + $0x2100] ss:$24 sps:$4 sm:$0xff]  }
 0x3f0   :  { %9044 = vmatprep.subr.bf16.mxu1 %v18056_v49  ;;  %v18085_v49 = vld [vmem:[%s24727_s2 + $0x2134] ss:$24 sps:$4 sm:$0xff]  }
 0x3f1   :  { %8839 = vmatpush1.bf16.msra.mxu0 %v18045_v29  ;;  %v18086_v29 = vld [vmem:[%s24727_s2 + $0x2438] ss:$24 sps:$4 sm:$0xff]  }
 0x3f2   :  { %8840 = vmatprep.subr.bf16.mxu0 %v18053_v39  ;;  %v18094_v39 = vld [vmem:[%s24727_s2 + $0x246c] ss:$24 sps:$4 sm:$0xff]  }
 0x3f3   :  { %9045 = vmatpush1.bf16.msra.mxu1 %v18054_v17  ;;  %v9553_v17 = vrot.slane %v15651_v40, 2  ;;  %v18127_v40 = vld [vmem:[%s24727_s2 + $0x2284] ss:$24 sps:$4 sm:$0xff]  }
 0x3f4   :  { %9046 = vmatprep.subr.bf16.mxu1 %v18062_v54  ;;  %v22633_v54 = vrot.slane %v21889_v53, 2  ;;  %v18100_v53 = vld [vmem:[%s24727_s2 + $0x249c] ss:$24 sps:$4 sm:$0xff]  }
 0x3f5   :  { %8841 = vmatpush1.bf16.msra.mxu0 %v18051_v55  ;;  %v18083_v55 = vld [vmem:[%s24727_s2 + $0x2130] ss:$24 sps:$4 sm:$0xff]  }
 0x3f6   :  { %8842 = vmatprep.subr.bf16.mxu0 %v18059_v41  ;;  %v18091_v41 = vld [vmem:[%s24727_s2 + $0x2164] ss:$24 sps:$4 sm:$0xff]   ;;  %v22650_v63 = vsel %vm9549_vm3, %v9553_v17, %v22633_v54  ;;  %v18134_v17 = vld [vmem:[%s24727_s2 + $0x25b8] ss:$24 sps:$4 sm:$0xff]  }
 0x3f7   :  { %9047 = vmatpush1.bf16.msra.mxu1 %v18060_v51  ;;  %v18092_v51 = vld [vmem:[%s24727_s2 + $0x2468] ss:$24 sps:$4 sm:$0xff]  }
 0x3f8   :  { %9048 = vmatprep.subr.bf16.mxu1 %v18068_v16  ;;  %v18106_v16 = vld [vmem:[%s24727_s2 + $0x24cc] ss:$24 sps:$4 sm:$0xff]  }
 0x3f9   :  { %8843 = vmatpush1.bf16.msra.mxu0 %v18057_v33  ;;  %v18095_v33 = vld [vmem:[%s24727_s2 + $0x2190] ss:$24 sps:$4 sm:$0xff]  }
 0x3fa   :  { %8844 = vmatprep.subr.bf16.mxu0 %v18065_v62  ;;  %v18103_v62 = vld [vmem:[%s24727_s2 + $0x21c4] ss:$24 sps:$4 sm:$0xff]  }
 0x3fb   :  { %9049 = vmatpush1.bf16.msra.mxu1 %v18066_v24  ;;  %v18104_v24 = vld [vmem:[%s24727_s2 + $0x24c8] ss:$24 sps:$4 sm:$0xff]  }
 0x3fc   :  { %9050 = vmatprep.subr.bf16.mxu1 %v18074_v27  ;;  %v18118_v27 = vld [vmem:[%s24727_s2 + $0x252c] ss:$24 sps:$4 sm:$0xff]  }
 0x3fd   :  { %8845 = vmatpush1.bf16.msra.mxu0 %v18063_v47  ;;  %v18107_v47 = vld [vmem:[%s24727_s2 + $0x21f0] ss:$24 sps:$4 sm:$0xff]  }
 0x3fe   :  { %8846 = vmatprep.subr.bf16.mxu0 %v18071_v60  ;;  %v18115_v60 = vld [vmem:[%s24727_s2 + $0x2224] ss:$24 sps:$4 sm:$0xff]  }
 0x3ff   :  { %9051 = vmatpush1.bf16.msra.mxu1 %v18072_v26  ;;  %v18116_v26 = vld [vmem:[%s24727_s2 + $0x2528] ss:$24 sps:$4 sm:$0xff]  }
 0x400   :  { %11173 = vmatprep.subr.bf16.mxu1 %v18082_v43  ;;  %v18113_v43 = vld [vmem:[%s24727_s2 + $0x2220] ss:$24 sps:$4 sm:$0xff]  }
 0x401   :  { %8847 = vmatpush1.bf16.msra.mxu0 %v18069_v2  ;;  %v18121_v2 = vld [vmem:[%s24727_s2 + $0x2254] ss:$24 sps:$4 sm:$0xff]  }
 0x402   :  { %8867 = vmatprep.subr.bf16.mxu0 %v18077_v35  ;;  %9053 = vmatmul.mubr.bf16.vlgmr.msra.gmra.mrb[8].mxu1 %v22608_v15  ;;  %v18122_v35 = vld [vmem:[%s24727_s2 + $0x2558] ss:$24 sps:$4 sm:$0xff]  }
 0x403   :  { %11174 = vmatpush1.bf16.msra.mxu1 %v18080_v25  ;;  %9062 = vmatprep.mubr.bf16.mxu1 %v22402_v36  ;;  %v18130_v25 = vld [vmem:[%s24727_s2 + $0x258c] ss:$24 sps:$4 sm:$0xff]  }
 0x404   :  { %8849 = vmatmul.mubr.bf16.vlgmr.msra.gmra.mrb[8].mxu0 %v22382_v50  ;;  %11175 = vmatprep.subr.bf16.mxu1 %v18088_v28  ;;  %v18119_v28 = vld [vmem:[%s24727_s2 + $0x2250] ss:$24 sps:$4 sm:$0xff]  }
 0x405   :  { %8868 = vmatpush1.bf16.msra.mxu0 %v18075_v46  ;;  %8858 = vmatprep.mubr.bf16.mxu0 %v22164_v10  ;;  %v18128_v46 = vld [vmem:[%s24727_s2 + $0x2588] ss:$24 sps:$4 sm:$0xff]  }
 0x406   :  { %8869 = vmatprep.subr.bf16.mxu0 %v18085_v49  ;;  %v18136_v49 = vld [vmem:[%s24727_s2 + $0x25bc] ss:$24 sps:$4 sm:$0xff]  }
 0x407   :  { %11176 = vmatpush1.bf16.msra.mxu1 %v18086_v29  ;;  %v18125_v29 = vld [vmem:[%s24727_s2 + $0x2280] ss:$24 sps:$4 sm:$0xff]  }
 0x408   :  { %11177 = vmatprep.subr.bf16.mxu1 %v18094_v39  ;;  %v18133_v39 = vld [vmem:[%s24727_s2 + $0x22b4] ss:$24 sps:$4 sm:$0xff]  }
 0x409   :  { %8870 = vmatpush1.bf16.msra.mxu0 %v18083_v55  ;;  %v18142_v55 = vld [vmem:[%s24727_s2 + $0x25ec] ss:$24 sps:$4 sm:$0xff]  }
 0x40a   :  { %8871 = vmatprep.subr.bf16.mxu0 %v18091_v41  ;;  %9063 = vmatmul.mubr.bf16.gmra.mrb[12].mxu1 %v22590_v34  ;;  %v18131_v41 = vld [vmem:[%s24727_s2 + $0x22b0] ss:$24 sps:$4 sm:$0xff]  }
 0x40b   :  { %11178 = vmatpush1.bf16.msra.mxu1 %v18092_v51  ;;  %11205 = vmatprep.mubr.bf16.mxu1 %v22650_v63  ;;  %v18139_v51 = vld [vmem:[%s24727_s2 + $0x22e4] ss:$24 sps:$4 sm:$0xff]  }
 0x40c   :  { %11179 = vmatprep.subr.bf16.mxu1 %v18100_v53  ;;  %8859 = vmatmul.mubr.bf16.gmra.mrb[12].mxu0 %v22362_v19  ;;  %v18140_v53 = vld [vmem:[%s24727_s2 + $0x25e8] ss:$24 sps:$4 sm:$0xff]  }
 0x40d   :  { %8872 = vmatpush1.bf16.msra.mxu0 %v18089_v3  ;;  %8899 = vmatprep.mubr.bf16.mxu0 %v22419_v48  ;;  %v18148_v3 = vld [vmem:[%s24727_s2 + $0x261c] ss:$24 sps:$4 sm:$0xff]  }
 0x40e   :  { %8873 = vmatprep.subr.bf16.mxu0 %v18097_v8  ;;  %v18137_v8 = vld [vmem:[%s24727_s2 + $0x22e0] ss:$24 sps:$4 sm:$0xff]  }
 0x40f   :  { %11180 = vmatpush1.bf16.msra.mxu1 %v18098_v20  ;;  %v18145_v20 = vld [vmem:[%s24727_s2 + $0x2314] ss:$24 sps:$4 sm:$0xff]  }
 0x410   :  { %11181 = vmatprep.subr.bf16.mxu1 %v18106_v16  ;;  %v18146_v16 = vld [vmem:[%s24727_s2 + $0x2618] ss:$24 sps:$4 sm:$0xff]  }
 0x411   :  { %8874 = vmatpush1.bf16.msra.mxu0 %v18095_v33  ;;  %v18154_v33 = vld [vmem:[%s24727_s2 + $0x264c] ss:$24 sps:$4 sm:$0xff]  }
 0x412   :  { %8875 = vmatprep.subr.bf16.mxu0 %v18103_v62  ;;  %v18143_v62 = vld [vmem:[%s24727_s2 + $0x2310] ss:$24 sps:$4 sm:$0xff]  }
 0x413   :  { %11182 = vmatpush1.bf16.msra.mxu1 %v18104_v24  ;;  %v18151_v24 = vld [vmem:[%s24727_s2 + $0x2344] ss:$24 sps:$4 sm:$0xff]  }
 0x414   :  { %11183 = vmatprep.subr.bf16.mxu1 %v18112_v21  ;;  %v18152_v21 = vld [vmem:[%s24727_s2 + $0x2648] ss:$24 sps:$4 sm:$0xff]  }
 0x415   :  { %8876 = vmatpush1.bf16.msra.mxu0 %v18101_v61  ;;  %v18160_v61 = vld [vmem:[%s24727_s2 + $0x267c] ss:$24 sps:$4 sm:$0xff]  }
 0x416   :  { %8877 = vmatprep.subr.bf16.mxu0 %v18109_v22  ;;  %v18149_v22 = vld [vmem:[%s24727_s2 + $0x2340] ss:$24 sps:$4 sm:$0xff]  }
 0x417   :  { %11184 = vmatpush1.bf16.msra.mxu1 %v18110_v30  ;;  %v18157_v30 = vld [vmem:[%s24727_s2 + $0x2374] ss:$24 sps:$4 sm:$0xff]  }
 0x418   :  { %11185 = vmatprep.subr.bf16.mxu1 %v18118_v27  ;;  %v18158_v27 = vld [vmem:[%s24727_s2 + $0x2678] ss:$24 sps:$4 sm:$0xff]  }
 0x419   :  { %8878 = vmatpush1.bf16.msra.mxu0 %v18107_v47  ;;  %v18166_v47 = vld [vmem:[%s24727_s2 + $0x26ac] ss:$24 sps:$4 sm:$0xff]  }
 0x41a   :  { %8879 = vmatprep.subr.bf16.mxu0 %v18115_v60  ;;  %v18155_v60 = vld [vmem:[%s24727_s2 + $0x2370] ss:$24 sps:$4 sm:$0xff]  }
 0x41b   :  { %11186 = vmatpush1.bf16.msra.mxu1 %v18116_v26  ;;  %v18163_v26 = vld [vmem:[%s24727_s2 + $0x23a4] ss:$24 sps:$4 sm:$0xff]  }
 0x41c   :  { %11187 = vmatprep.subr.bf16.mxu1 %v18124_v31  ;;  %v18164_v31 = vld [vmem:[%s24727_s2 + $0x26a8] ss:$24 sps:$4 sm:$0xff]  }
 0x41d   :  { %8880 = vmatpush1.bf16.msra.mxu0 %v18113_v43  ;;  %v15650_v43 = vcombine.low %v22598_v7, %v22613_v45  ;;  %v18170_v7 = vld [vmem:[%s24727_s2 + $0x26d8] ss:$24 sps:$4 sm:$0xff]  }
 0x41e   :  { %8881 = vmatprep.subr.bf16.mxu0 %v18121_v2  ;;  %v18172_v2 = vld [vmem:[%s24727_s2 + $0x26dc] ss:$24 sps:$4 sm:$0xff]  }
 0x41f   :  { %11188 = vmatpush1.bf16.msra.mxu1 %v18122_v35  ;;  %v18161_v35 = vld [vmem:[%s24727_s2 + $0x23a0] ss:$24 sps:$4 sm:$0xff]   ;;  %v9550_v45 = vrot.slane %v15650_v43, 2  ;;  %v18207_v43 = vld [vmem:[%s24727_s2 + $0x1c04] ss:$24 sps:$4 sm:$0xff]  }
 0x420   :  { %11189 = vmatprep.subr.bf16.mxu1 %v18130_v25  ;;  %v18169_v25 = vld [vmem:[%s24727_s2 + $0x23d4] ss:$24 sps:$4 sm:$0xff]  }
 0x421   :  { %8882 = vmatpush1.bf16.msra.mxu0 %v18119_v28  ;;  %v22812_v28 = vrot.slane %v22079_v44, 2  ;;  %v18178_v44 = vld [vmem:[%s24727_s2 + $0x2708] ss:$24 sps:$4 sm:$0xff]  }
 0x422   :  { %8883 = vmatprep.subr.bf16.mxu0 %v18127_v40  ;;  %v18180_v40 = vld [vmem:[%s24727_s2 + $0x270c] ss:$24 sps:$4 sm:$0xff]  }
 0x423   :  { %11190 = vmatpush1.bf16.msra.mxu1 %v18128_v46  ;;  %v18167_v46 = vld [vmem:[%s24727_s2 + $0x23d0] ss:$24 sps:$4 sm:$0xff]  }
 0x424   :  { %11191 = vmatprep.subr.bf16.mxu1 %v18136_v49  ;;  %v22820_v49 = vld [vmem:[#allocation2 + $0x8] sm:$0xcc] }
 0x425   :  { %8884 = vmatpush1.bf16.msra.mxu0 %v18125_v29  ;;  %v18175_v29 = vld [vmem:[%s24727_s2 + $0x1b14] ss:$24 sps:$4 sm:$0xff]  }
 0x426   :  { %8885 = vmatprep.subr.bf16.mxu0 %v18133_v39  ;;  %v22830_v39 = vsel %vm9549_vm3, %v9550_v45, %v22812_v28  ;;  %v18214_v45 = vld [vmem:[%s24727_s2 + $0x2828] ss:$24 sps:$4 sm:$0xff]  }
 0x427   :  { %11192 = vmatpush1.bf16.msra.mxu1 %v18134_v17  ;;  %v18186_v17 = vld [vmem:[%s24727_s2 + $0x273c] ss:$24 sps:$4 sm:$0xff]  }
 0x428   :  { %11193 = vmatprep.subr.bf16.mxu1 %v18142_v55  ;;  %v22835_v55 = vld [vmem:[#allocation2 + $0x20] sm:$0xff] }
 0x429   :  { %8886 = vmatpush1.bf16.msra.mxu0 %v18131_v41  ;;  %v15653_v41 = vcombine.high %v22820_v49, %v22835_v55 }
 0x42a   :  { %8887 = vmatprep.subr.bf16.mxu0 %v18139_v51  ;;  %v18173_v51 = vld [vmem:[%s24727_s2 + $0x1b10] ss:$24 sps:$4 sm:$0xff]  }
 0x42b   :  { %11194 = vmatpush1.bf16.msra.mxu1 %v18140_v53  ;;  %v18183_v53 = vld [vmem:[%s24727_s2 + $0x1b44] ss:$24 sps:$4 sm:$0xff]  }
 0x42c   :  { %11195 = vmatprep.subr.bf16.mxu1 %v18148_v3  ;;  %v18184_v3 = vld [vmem:[%s24727_s2 + $0x2738] ss:$24 sps:$4 sm:$0xff]  }
 0x42d   :  { %8888 = vmatpush1.bf16.msra.mxu0 %v18137_v8  ;;  %v18192_v8 = vld [vmem:[%s24727_s2 + $0x276c] ss:$24 sps:$4 sm:$0xff]  }
 0x42e   :  { %8889 = vmatprep.subr.bf16.mxu0 %v18145_v20  ;;  %v9559_v20 = vrot.slane %v15653_v41, 2  ;;  %v18217_v41 = vld [vmem:[%s24727_s2 + $0x1c60] ss:$24 sps:$4 sm:$0xff]  }
 0x42f   :  { %11196 = vmatpush1.bf16.msra.mxu1 %v18146_v16  ;;  %v22855_v16 = vrot.slane %v22113_v57, 2  ;;  %v18198_v57 = vld [vmem:[%s24727_s2 + $0x279c] ss:$24 sps:$4 sm:$0xff]  }
 0x430   :  { %11197 = vmatprep.subr.bf16.mxu1 %v18154_v33  ;;  %v18181_v33 = vld [vmem:[%s24727_s2 + $0x1b40] ss:$24 sps:$4 sm:$0xff]  }
 0x431   :  { %8890 = vmatpush1.bf16.msra.mxu0 %v18143_v62  ;;  %v18189_v62 = vld [vmem:[%s24727_s2 + $0x1b74] ss:$24 sps:$4 sm:$0xff]  }
 0x432   :  { %8891 = vmatprep.subr.bf16.mxu0 %v18151_v24  ;;  %v18190_v24 = vld [vmem:[%s24727_s2 + $0x2768] ss:$24 sps:$4 sm:$0xff]  }
 0x433   :  { %11198 = vmatpush1.bf16.msra.mxu1 %v18152_v21  ;;  %v22872_v21 = vsel %vm9549_vm3, %v9559_v20, %v22855_v16  ;;  %v18231_v20 = vld [vmem:[%s24727_s2 + $0x1cc4] ss:$24 sps:$4 sm:$0xff]  }
 0x434   :  { %11199 = vmatprep.subr.bf16.mxu1 %v18160_v61  ;;  %v18187_v61 = vld [vmem:[%s24727_s2 + $0x1b70] ss:$24 sps:$4 sm:$0xff]  }
 0x435   :  { %8892 = vmatpush1.bf16.msra.mxu0 %v18149_v22  ;;  %v18195_v22 = vld [vmem:[%s24727_s2 + $0x1ba4] ss:$24 sps:$4 sm:$0xff]  }
 0x436   :  { %8893 = vmatprep.subr.bf16.mxu0 %v18157_v30  ;;  %v18196_v30 = vld [vmem:[%s24727_s2 + $0x2798] ss:$24 sps:$4 sm:$0xff]  }
 0x437   :  { %11200 = vmatpush1.bf16.msra.mxu1 %v18158_v27  ;;  %v18204_v27 = vld [vmem:[%s24727_s2 + $0x27cc] ss:$24 sps:$4 sm:$0xff]  }
 0x438   :  { %11201 = vmatprep.subr.bf16.mxu1 %v18166_v47  ;;  %v18193_v47 = vld [vmem:[%s24727_s2 + $0x1ba0] ss:$24 sps:$4 sm:$0xff]  }
 0x439   :  { %8894 = vmatpush1.bf16.msra.mxu0 %v18155_v60  ;;  %v18201_v60 = vld [vmem:[%s24727_s2 + $0x1bd4] ss:$24 sps:$4 sm:$0xff]  }
 0x43a   :  { %8895 = vmatprep.subr.bf16.mxu0 %v18163_v26  ;;  %v18202_v26 = vld [vmem:[%s24727_s2 + $0x27c8] ss:$24 sps:$4 sm:$0xff]  }
 0x43b   :  { %11202 = vmatpush1.bf16.msra.mxu1 %v18164_v31  ;;  %v18210_v31 = vld [vmem:[%s24727_s2 + $0x27fc] ss:$24 sps:$4 sm:$0xff]  }
 0x43c   :  { %11203 = vmatprep.subr.bf16.mxu1 %v18172_v2  ;;  %v18208_v2 = vld [vmem:[%s24727_s2 + $0x27f8] ss:$24 sps:$4 sm:$0xff]  }
 0x43d   :  { %8896 = vmatpush1.bf16.msra.mxu0 %v18161_v35  ;;  %v18216_v35 = vld [vmem:[%s24727_s2 + $0x282c] ss:$24 sps:$4 sm:$0xff]  }
 0x43e   :  { %8897 = vmatprep.subr.bf16.mxu0 %v18169_v25  ;;  %v18205_v25 = vld [vmem:[%s24727_s2 + $0x1c00] ss:$24 sps:$4 sm:$0xff]  }
 0x43f   :  { %11204 = vmatpush1.bf16.msra.mxu1 %v18170_v7  ;;  %v18213_v7 = vld [vmem:[%s24727_s2 + $0x1c34] ss:$24 sps:$4 sm:$0xff]  }
 0x440   :  { %11224 = vmatprep.subr.bf16.mxu1 %v18180_v40  ;;  %v18222_v40 = vld [vmem:[%s24727_s2 + $0x285c] ss:$24 sps:$4 sm:$0xff]  }
 0x441   :  { %8898 = vmatpush1.bf16.msra.mxu0 %v18167_v46  ;;  %v18211_v46 = vld [vmem:[%s24727_s2 + $0x1c30] ss:$24 sps:$4 sm:$0xff]  }
 0x442   :  { %9071 = vmatprep.subr.bf16.mxu0 %v18175_v29  ;;  %11206 = vmatmul.mubr.bf16.vlgmr.msra.gmra.mrb[8].mxu1 %v22830_v39  ;;  %v18219_v29 = vld [vmem:[%s24727_s2 + $0x1c64] ss:$24 sps:$4 sm:$0xff]  }
 0x443   :  { %11225 = vmatpush1.bf16.msra.mxu1 %v18178_v44  ;;  %11215 = vmatprep.mubr.bf16.mxu1 %v22633_v54  ;;  %v18220_v44 = vld [vmem:[%s24727_s2 + $0x2858] ss:$24 sps:$4 sm:$0xff]  }
 0x444   :  { %8900 = vmatmul.mubr.bf16.vlgmr.msra.gmra.mrb[8].mxu0 %v22608_v15  ;;  %11226 = vmatprep.subr.bf16.mxu1 %v18186_v17  ;;  %v18228_v17 = vld [vmem:[%s24727_s2 + $0x288c] ss:$24 sps:$4 sm:$0xff]  }
 0x445   :  { %9072 = vmatpush1.bf16.msra.mxu0 %v18173_v51  ;;  %8909 = vmatprep.mubr.bf16.mxu0 %v22402_v36  ;;  %v18225_v51 = vld [vmem:[%s24727_s2 + $0x1c94] ss:$24 sps:$4 sm:$0xff]  }
 0x446   :  { %9073 = vmatprep.subr.bf16.mxu0 %v18183_v53  ;;  %v18226_v53 = vld [vmem:[%s24727_s2 + $0x2888] ss:$24 sps:$4 sm:$0xff]  }
 0x447   :  { %11227 = vmatpush1.bf16.msra.mxu1 %v18184_v3  ;;  %v18234_v3 = vld [vmem:[%s24727_s2 + $0x28bc] ss:$24 sps:$4 sm:$0xff]  }
 0x448   :  { %11228 = vmatprep.subr.bf16.mxu1 %v18192_v8  ;;  %v18223_v8 = vld [vmem:[%s24727_s2 + $0x1c90] ss:$24 sps:$4 sm:$0xff]  }
 0x449   :  { %9074 = vmatpush1.bf16.msra.mxu0 %v18181_v33  ;;  %v18232_v33 = vld [vmem:[%s24727_s2 + $0x28b8] ss:$24 sps:$4 sm:$0xff]  }
 0x44a   :  { %9075 = vmatprep.subr.bf16.mxu0 %v18189_v62  ;;  %11216 = vmatmul.mubr.bf16.gmra.mrb[12].mxu1 %v22812_v28  ;;  %v18240_v62 = vld [vmem:[%s24727_s2 + $0x28ec] ss:$24 sps:$4 sm:$0xff]  }
 0x44b   :  { %11229 = vmatpush1.bf16.msra.mxu1 %v18190_v24  ;;  %11256 = vmatprep.mubr.bf16.mxu1 %v22872_v21  ;;  %v18229_v24 = vld [vmem:[%s24727_s2 + $0x1cc0] ss:$24 sps:$4 sm:$0xff]  }
 0x44c   :  { %11230 = vmatprep.subr.bf16.mxu1 %v18198_v57  ;;  %8910 = vmatmul.mubr.bf16.gmra.mrb[12].mxu0 %v22590_v34  ;;  %v18237_v57 = vld [vmem:[%s24727_s2 + $0x1cf4] ss:$24 sps:$4 sm:$0xff]  }
 0x44d   :  { %9076 = vmatpush1.bf16.msra.mxu0 %v18187_v61  ;;  %9103 = vmatprep.mubr.bf16.mxu0 %v21951_v42  ;;  %v18199_v42 = vld [vmem:[%s24727_s2 + $0x1bd0] ss:$24 sps:$4 sm:$0xff]  }
 0x44e   :  { %9077 = vmatprep.subr.bf16.mxu0 %v18195_v22  ;;  %v18238_v61 = vld [vmem:[%s24727_s2 + $0x28e8] ss:$24 sps:$4 sm:$0xff]   ;;  %v18246_v22 = vld [vmem:[%s24727_s2 + $0x291c] ss:$24 sps:$4 sm:$0xff]  }
 0x44f   :  { %11231 = vmatpush1.bf16.msra.mxu1 %v18196_v30  ;;  %v18235_v30 = vld [vmem:[%s24727_s2 + $0x1cf0] ss:$24 sps:$4 sm:$0xff]  }
 0x450   :  { %11232 = vmatprep.subr.bf16.mxu1 %v18204_v27  ;;  %v18243_v27 = vld [vmem:[%s24727_s2 + $0x1d24] ss:$24 sps:$4 sm:$0xff]  }
 0x451   :  { %9078 = vmatpush1.bf16.msra.mxu0 %v18193_v47  ;;  %v18244_v47 = vld [vmem:[%s24727_s2 + $0x2918] ss:$24 sps:$4 sm:$0xff]  }
 0x452   :  { %9079 = vmatprep.subr.bf16.mxu0 %v18201_v60  ;;  %v18252_v60 = vld [vmem:[%s24727_s2 + $0x294c] ss:$24 sps:$4 sm:$0xff]  }
 0x453   :  { %11233 = vmatpush1.bf16.msra.mxu1 %v18202_v26  ;;  %v18241_v26 = vld [vmem:[%s24727_s2 + $0x1d20] ss:$24 sps:$4 sm:$0xff]  }
 0x454   :  { %11234 = vmatprep.subr.bf16.mxu1 %v18210_v31  ;;  %v18249_v31 = vld [vmem:[%s24727_s2 + $0x1d54] ss:$24 sps:$4 sm:$0xff]  }
 0x455   :  { %9080 = vmatpush1.bf16.msra.mxu0 %v18199_v42  ;;  %v18250_v42 = vld [vmem:[%s24727_s2 + $0x2948] ss:$24 sps:$4 sm:$0xff]  }
 0x456   :  { %9081 = vmatprep.subr.bf16.mxu0 %v18207_v43  ;;  %v18258_v43 = vld [vmem:[%s24727_s2 + $0x297c] ss:$24 sps:$4 sm:$0xff]  }
 0x457   :  { %11235 = vmatpush1.bf16.msra.mxu1 %v18208_v2  ;;  %v18247_v2 = vld [vmem:[%s24727_s2 + $0x1d50] ss:$24 sps:$4 sm:$0xff]  }
 0x458   :  { %11236 = vmatprep.subr.bf16.mxu1 %v18216_v35  ;;  %v18255_v35 = vld [vmem:[%s24727_s2 + $0x1d84] ss:$24 sps:$4 sm:$0xff]  }
 0x459   :  { %9082 = vmatpush1.bf16.msra.mxu0 %v18205_v25  ;;  %v18256_v25 = vld [vmem:[%s24727_s2 + $0x2978] ss:$24 sps:$4 sm:$0xff]  }
 0x45a   :  { %9083 = vmatprep.subr.bf16.mxu0 %v18213_v7  ;;  %v18264_v7 = vld [vmem:[%s24727_s2 + $0x29ac] ss:$24 sps:$4 sm:$0xff]  }
 0x45b   :  { %11237 = vmatpush1.bf16.msra.mxu1 %v18214_v45  ;;  %v18253_v45 = vld [vmem:[%s24727_s2 + $0x1d80] ss:$24 sps:$4 sm:$0xff]  }
 0x45c   :  { %11238 = vmatprep.subr.bf16.mxu1 %v18222_v40  ;;  %v18261_v40 = vld [vmem:[%s24727_s2 + $0x1db4] ss:$24 sps:$4 sm:$0xff]  }
 0x45d   :  { %9084 = vmatpush1.bf16.msra.mxu0 %v18211_v46  ;;  %v18262_v46 = vld [vmem:[%s24727_s2 + $0x29a8] ss:$24 sps:$4 sm:$0xff]  }
 0x45e   :  { %9085 = vmatprep.subr.bf16.mxu0 %v18219_v29  ;;  %v15652_v29 = vcombine.low %v22820_v49, %v22835_v55  ;;  %v18268_v49 = vld [vmem:[%s24727_s2 + $0x29d8] ss:$24 sps:$4 sm:$0xff]  }
 0x45f   :  { %11239 = vmatpush1.bf16.msra.mxu1 %v18220_v44  ;;  %v18270_v44 = vld [vmem:[%s24727_s2 + $0x29dc] ss:$24 sps:$4 sm:$0xff]  }
 0x460   :  { %11240 = vmatprep.subr.bf16.mxu1 %v18228_v17  ;;  %v18259_v17 = vld [vmem:[%s24727_s2 + $0x1db0] ss:$24 sps:$4 sm:$0xff]   ;;  %v9556_v55 = vrot.slane %v15652_v29, 2  ;;  %v18314_v29 = vld [vmem:[%s24727_s2 + $0x2b2c] ss:$24 sps:$4 sm:$0xff]  }
 0x461   :  { %9086 = vmatpush1.bf16.msra.mxu0 %v18217_v41  ;;  %v18267_v41 = vld [vmem:[%s24727_s2 + $0x1de4] ss:$24 sps:$4 sm:$0xff]  }
 0x462   :  { %9087 = vmatprep.subr.bf16.mxu0 %v18225_v51  ;;  %v23034_v51 = vrot.slane %v22314_v32, 2  ;;  %v18276_v32 = vld [vmem:[%s24727_s2 + $0x2a08] ss:$24 sps:$4 sm:$0xff]  }
 0x463   :  { %11241 = vmatpush1.bf16.msra.mxu1 %v18226_v53  ;;  %v18278_v53 = vld [vmem:[%s24727_s2 + $0x2a0c] ss:$24 sps:$4 sm:$0xff]  }
 0x464   :  { %11242 = vmatprep.subr.bf16.mxu1 %v18234_v3  ;;  %v18265_v3 = vld [vmem:[%s24727_s2 + $0x1de0] ss:$24 sps:$4 sm:$0xff]  }
 0x465   :  { %9088 = vmatpush1.bf16.msra.mxu0 %v18223_v8  ;;  %v23042_v8 = vld [vmem:[#allocation2 + $0x10] sm:$0xcc] }
 0x466   :  { %9089 = vmatprep.subr.bf16.mxu0 %v18231_v20  ;;  %v18273_v20 = vld [vmem:[%s24727_s2 + $0x1e14] ss:$24 sps:$4 sm:$0xff]  }
 0x467   :  { %11243 = vmatpush1.bf16.msra.mxu1 %v18232_v33  ;;  %v23052_v33 = vsel %vm9549_vm3, %v9556_v55, %v23034_v51  ;;  %v18309_v55 = vld [vmem:[%s24727_s2 + $0x1f30] ss:$24 sps:$4 sm:$0xff]  }
 0x468   :  { %11244 = vmatprep.subr.bf16.mxu1 %v18240_v62  ;;  %v18284_v62 = vld [vmem:[%s24727_s2 + $0x2a3c] ss:$24 sps:$4 sm:$0xff]  }
 0x469   :  { %9090 = vmatpush1.bf16.msra.mxu0 %v18229_v24  ;;  %v23057_v24 = vld [vmem:[#allocation2 + $0x28] sm:$0xff] }
 0x46a   :  { %9091 = vmatprep.subr.bf16.mxu0 %v18237_v57  ;;  %v15655_v57 = vcombine.high %v23042_v8, %v23057_v24 }
 0x46b   :  { %11245 = vmatpush1.bf16.msra.mxu1 %v18238_v61  ;;  %v18271_v61 = vld [vmem:[%s24727_s2 + $0x1e10] ss:$24 sps:$4 sm:$0xff]  }
 0x46c   :  { %11246 = vmatprep.subr.bf16.mxu1 %v18246_v22  ;;  %v18281_v22 = vld [vmem:[%s24727_s2 + $0x1e44] ss:$24 sps:$4 sm:$0xff]  }
 0x46d   :  { %9092 = vmatpush1.bf16.msra.mxu0 %v18235_v30  ;;  %v18282_v30 = vld [vmem:[%s24727_s2 + $0x2a38] ss:$24 sps:$4 sm:$0xff]  }
 0x46e   :  { %9093 = vmatprep.subr.bf16.mxu0 %v18243_v27  ;;  %v18290_v27 = vld [vmem:[%s24727_s2 + $0x2a6c] ss:$24 sps:$4 sm:$0xff]  }
 0x46f   :  { %11247 = vmatpush1.bf16.msra.mxu1 %v18244_v47  ;;  %v9565_v47 = vrot.slane %v15655_v57, 2  ;;  %v18324_v57 = vld [vmem:[%s24727_s2 + $0x2b88] ss:$24 sps:$4 sm:$0xff]  }
 0x470   :  { %11248 = vmatprep.subr.bf16.mxu1 %v18252_v60  ;;  %v23077_v60 = vrot.slane %v22351_v56, 2  ;;  %v18296_v56 = vld [vmem:[%s24727_s2 + $0x2a9c] ss:$24 sps:$4 sm:$0xff]  }
 0x471   :  { %9094 = vmatpush1.bf16.msra.mxu0 %v18241_v26  ;;  %v18279_v26 = vld [vmem:[%s24727_s2 + $0x1e40] ss:$24 sps:$4 sm:$0xff]  }
 0x472   :  { %9095 = vmatprep.subr.bf16.mxu0 %v18249_v31  ;;  %v18288_v31 = vld [vmem:[%s24727_s2 + $0x2a68] ss:$24 sps:$4 sm:$0xff]  }
 0x473   :  { %11249 = vmatpush1.bf16.msra.mxu1 %v18250_v42  ;;  %v23094_v42 = vsel %vm9549_vm3, %v9565_v47, %v23077_v60  ;;  %v18338_v47 = vld [vmem:[%s24727_s2 + $0x2bec] ss:$24 sps:$4 sm:$0xff]  }
 0x474   :  { %11250 = vmatprep.subr.bf16.mxu1 %v18258_v43  ;;  %v18293_v43 = vld [vmem:[%s24727_s2 + $0x1ea4] ss:$24 sps:$4 sm:$0xff]  }
 0x475   :  { %9096 = vmatpush1.bf16.msra.mxu0 %v18247_v2  ;;  %v18294_v2 = vld [vmem:[%s24727_s2 + $0x2a98] ss:$24 sps:$4 sm:$0xff]  }
 0x476   :  { %9097 = vmatprep.subr.bf16.mxu0 %v18255_v35  ;;  %v18302_v35 = vld [vmem:[%s24727_s2 + $0x2acc] ss:$24 sps:$4 sm:$0xff]  }
 0x477   :  { %11251 = vmatpush1.bf16.msra.mxu1 %v18256_v25  ;;  %v18291_v25 = vld [vmem:[%s24727_s2 + $0x1ea0] ss:$24 sps:$4 sm:$0xff]  }
 0x478   :  { %11252 = vmatprep.subr.bf16.mxu1 %v18264_v7  ;;  %v18299_v7 = vld [vmem:[%s24727_s2 + $0x1ed4] ss:$24 sps:$4 sm:$0xff]  }
 0x479   :  { %9098 = vmatpush1.bf16.msra.mxu0 %v18253_v45  ;;  %v18300_v45 = vld [vmem:[%s24727_s2 + $0x2ac8] ss:$24 sps:$4 sm:$0xff]  }
 0x47a   :  { %9099 = vmatprep.subr.bf16.mxu0 %v18261_v40  ;;  %v18305_v40 = vld [vmem:[%s24727_s2 + $0x1f04] ss:$24 sps:$4 sm:$0xff]  }
 0x47b   :  { %11253 = vmatpush1.bf16.msra.mxu1 %v18262_v46  ;;  %v18306_v46 = vld [vmem:[%s24727_s2 + $0x2af8] ss:$24 sps:$4 sm:$0xff]  }
 0x47c   :  { %11254 = vmatprep.subr.bf16.mxu1 %v18270_v44  ;;  %v18303_v44 = vld [vmem:[%s24727_s2 + $0x1f00] ss:$24 sps:$4 sm:$0xff]  }
 0x47d   :  { %9100 = vmatpush1.bf16.msra.mxu0 %v18259_v17  ;;  %v18311_v17 = vld [vmem:[%s24727_s2 + $0x1f34] ss:$24 sps:$4 sm:$0xff]  }
 0x47e   :  { %9101 = vmatprep.subr.bf16.mxu0 %v18267_v41  ;;  %v18312_v41 = vld [vmem:[%s24727_s2 + $0x2b28] ss:$24 sps:$4 sm:$0xff]  }
 0x47f   :  { %11255 = vmatpush1.bf16.msra.mxu1 %v18268_v49  ;;  %v18320_v49 = vld [vmem:[%s24727_s2 + $0x2b5c] ss:$24 sps:$4 sm:$0xff]  }
 0x480   :  { %11275 = vmatprep.subr.bf16.mxu1 %v18278_v53  ;;  %v18317_v53 = vld [vmem:[%s24727_s2 + $0x1f64] ss:$24 sps:$4 sm:$0xff]  }
 0x481   :  { %9102 = vmatpush1.bf16.msra.mxu0 %v18265_v3  ;;  %v18318_v3 = vld [vmem:[%s24727_s2 + $0x2b58] ss:$24 sps:$4 sm:$0xff]  }
 0x482   :  { %9122 = vmatprep.subr.bf16.mxu0 %v18273_v20  ;;  %11257 = vmatmul.mubr.bf16.vlgmr.msra.gmra.mrb[8].mxu1 %v23052_v33  ;;  %v18326_v20 = vld [vmem:[%s24727_s2 + $0x2b8c] ss:$24 sps:$4 sm:$0xff]  }
 0x483   :  { %11276 = vmatpush1.bf16.msra.mxu1 %v18276_v32  ;;  %11266 = vmatprep.mubr.bf16.mxu1 %v22855_v16  ;;  %v18315_v32 = vld [vmem:[%s24727_s2 + $0x1f60] ss:$24 sps:$4 sm:$0xff]  }
 0x484   :  { %9104 = vmatmul.mubr.bf16.vlgmr.msra.gmra.mrb[0].mxu0 %v22144_v1  ;;  %11277 = vmatprep.subr.bf16.mxu1 %v18284_v62  ;;  %v18287_v1 = vld [vmem:[%s24727_s2 + $0x1e74] ss:$24 sps:$4 sm:$0xff]  }
 0x485   :  { %9123 = vmatpush1.bf16.msra.mxu0 %v18271_v61  ;;  %9113 = vmatprep.mubr.bf16.mxu0 %v21937_v18  ;;  %v18285_v18 = vld [vmem:[%s24727_s2 + $0x1e70] ss:$24 sps:$4 sm:$0xff]   ;;  %v18323_v62 = vld [vmem:[%s24727_s2 + $0x1f94] ss:$24 sps:$4 sm:$0xff]  }
 0x486   :  { %9124 = vmatprep.subr.bf16.mxu0 %v18281_v22  ;;  %v18332_v61 = vld [vmem:[%s24727_s2 + $0x2bbc] ss:$24 sps:$4 sm:$0xff]   ;;  %v18321_v22 = vld [vmem:[%s24727_s2 + $0x1f90] ss:$24 sps:$4 sm:$0xff]  }
 0x487   :  { %11278 = vmatpush1.bf16.msra.mxu1 %v18282_v30  ;;  %v18329_v30 = vld [vmem:[%s24727_s2 + $0x1fc4] ss:$24 sps:$4 sm:$0xff]  }
 0x488   :  { %11279 = vmatprep.subr.bf16.mxu1 %v18290_v27  ;;  %v18330_v27 = vld [vmem:[%s24727_s2 + $0x2bb8] ss:$24 sps:$4 sm:$0xff]  }
 0x489   :  { %9125 = vmatpush1.bf16.msra.mxu0 %v18279_v26  ;;  %v18327_v26 = vld [vmem:[%s24727_s2 + $0x1fc0] ss:$24 sps:$4 sm:$0xff]  }
 0x48a   :  { %9126 = vmatprep.subr.bf16.mxu0 %v18287_v1  ;;  %11267 = vmatmul.mubr.bf16.gmra.mrb[12].mxu1 %v23034_v51  ;;  %v18335_v1 = vld [vmem:[%s24727_s2 + $0x1ff4] ss:$24 sps:$4 sm:$0xff]  }
 0x48b   :  { %11280 = vmatpush1.bf16.msra.mxu1 %v18288_v31  ;;  %11307 = vmatprep.mubr.bf16.mxu1 %v23094_v42  ;;  %v18336_v31 = vld [vmem:[%s24727_s2 + $0x2be8] ss:$24 sps:$4 sm:$0xff]  }
 0x48c   :  { %11281 = vmatprep.subr.bf16.mxu1 %v18296_v56  ;;  %9114 = vmatmul.mubr.bf16.gmra.mrb[4].mxu0 %v22127_v9  ;;  %v18308_v9 = vld [vmem:[%s24727_s2 + $0x2afc] ss:$24 sps:$4 sm:$0xff]  }
 0x48d   :  { %9127 = vmatpush1.bf16.msra.mxu0 %v18285_v18  ;;  %9154 = vmatprep.mubr.bf16.mxu0 %v22181_v38  ;;  %v18297_v38 = vld [vmem:[%s24727_s2 + $0x1ed0] ss:$24 sps:$4 sm:$0xff]   ;;  %v18344_v56 = vld [vmem:[%s24727_s2 + $0x2c1c] ss:$24 sps:$4 sm:$0xff]  }
 0x48e   :  { %9128 = vmatprep.subr.bf16.mxu0 %v18293_v43  ;;  %v18333_v18 = vld [vmem:[%s24727_s2 + $0x1ff0] ss:$24 sps:$4 sm:$0xff]   ;;  %v18341_v43 = vld [vmem:[%s24727_s2 + $0x2024] ss:$24 sps:$4 sm:$0xff]  }
 0x48f   :  { %11282 = vmatpush1.bf16.msra.mxu1 %v18294_v2  ;;  %v18342_v2 = vld [vmem:[%s24727_s2 + $0x2c18] ss:$24 sps:$4 sm:$0xff]  }
 0x490   :  { %11283 = vmatprep.subr.bf16.mxu1 %v18302_v35  ;;  %v18350_v35 = vld [vmem:[%s24727_s2 + $0x2c4c] ss:$24 sps:$4 sm:$0xff]  }
 0x491   :  { %9129 = vmatpush1.bf16.msra.mxu0 %v18291_v25  ;;  %v18339_v25 = vld [vmem:[%s24727_s2 + $0x2020] ss:$24 sps:$4 sm:$0xff]  }
 0x492   :  { %9130 = vmatprep.subr.bf16.mxu0 %v18299_v7  ;;  %v18347_v7 = vld [vmem:[%s24727_s2 + $0x2054] ss:$24 sps:$4 sm:$0xff]  }
 0x493   :  { %11284 = vmatpush1.bf16.msra.mxu1 %v18300_v45  ;;  %v18348_v45 = vld [vmem:[%s24727_s2 + $0x2c48] ss:$24 sps:$4 sm:$0xff]  }
 0x494   :  { %11285 = vmatprep.subr.bf16.mxu1 %v18308_v9  ;;  %v18356_v9 = vld [vmem:[%s24727_s2 + $0x2c7c] ss:$24 sps:$4 sm:$0xff]  }
 0x495   :  { %9131 = vmatpush1.bf16.msra.mxu0 %v18297_v38  ;;  %v18345_v38 = vld [vmem:[%s24727_s2 + $0x2050] ss:$24 sps:$4 sm:$0xff]  }
 0x496   :  { %9132 = vmatprep.subr.bf16.mxu0 %v18305_v40  ;;  %v18353_v40 = vld [vmem:[%s24727_s2 + $0x2084] ss:$24 sps:$4 sm:$0xff]  }
 0x497   :  { %11286 = vmatpush1.bf16.msra.mxu1 %v18306_v46  ;;  %v18354_v46 = vld [vmem:[%s24727_s2 + $0x2c78] ss:$24 sps:$4 sm:$0xff]  }
 0x498   :  { %11287 = vmatprep.subr.bf16.mxu1 %v18314_v29  ;;  %v18362_v29 = vld [vmem:[%s24727_s2 + $0x2cac] ss:$24 sps:$4 sm:$0xff]  }
 0x499   :  { %9133 = vmatpush1.bf16.msra.mxu0 %v18303_v44  ;;  %v18351_v44 = vld [vmem:[%s24727_s2 + $0x2080] ss:$24 sps:$4 sm:$0xff]  }
 0x49a   :  { %9134 = vmatprep.subr.bf16.mxu0 %v18311_v17  ;;  %v18359_v17 = vld [vmem:[%s24727_s2 + $0x20b4] ss:$24 sps:$4 sm:$0xff]  }
 0x49b   :  { %11288 = vmatpush1.bf16.msra.mxu1 %v18312_v41  ;;  %v18360_v41 = vld [vmem:[%s24727_s2 + $0x2ca8] ss:$24 sps:$4 sm:$0xff]  }
 0x49c   :  { %11289 = vmatprep.subr.bf16.mxu1 %v18320_v49  ;;  %v15654_v49 = vcombine.low %v23042_v8, %v23057_v24  ;;  %v18366_v8 = vld [vmem:[%s24727_s2 + $0x2cd8] ss:$24 sps:$4 sm:$0xff]  }
 0x49d   :  { %9135 = vmatpush1.bf16.msra.mxu0 %v18309_v55  ;;  %v18368_v55 = vld [vmem:[%s24727_s2 + $0x2cdc] ss:$24 sps:$4 sm:$0xff]  }
 0x49e   :  { %9136 = vmatprep.subr.bf16.mxu0 %v18317_v53  ;;  %v18357_v53 = vld [vmem:[%s24727_s2 + $0x20b0] ss:$24 sps:$4 sm:$0xff]   ;;  %v9562_v24 = vrot.slane %v15654_v49, 2  ;;  %v18418_v49 = vld [vmem:[%s24727_s2 + $0x23e4] ss:$24 sps:$4 sm:$0xff]  }
 0x49f   :  { %11290 = vmatpush1.bf16.msra.mxu1 %v18318_v3  ;;  %v18365_v3 = vld [vmem:[%s24727_s2 + $0x20e4] ss:$24 sps:$4 sm:$0xff]  }
 0x4a0   :  { %11291 = vmatprep.subr.bf16.mxu1 %v18326_v20  ;;  %v23256_v20 = vrot.slane %v22548_v58, 2  ;;  %v18371_v58 = vld [vmem:[%s24727_s2 + $0x2110] ss:$24 sps:$4 sm:$0xff]  }
 0x4a1   :  { %9137 = vmatpush1.bf16.msra.mxu0 %v18315_v32  ;;  %v18363_v32 = vld [vmem:[%s24727_s2 + $0x20e0] ss:$24 sps:$4 sm:$0xff]  }
 0x4a2   :  { %9138 = vmatprep.subr.bf16.mxu0 %v18323_v62  ;;  %v18373_v62 = vld [vmem:[%s24727_s2 + $0x2114] ss:$24 sps:$4 sm:$0xff]  }
 0x4a3   :  { %11292 = vmatpush1.bf16.msra.mxu1 %v18324_v57  ;;  %v23266_v57 = vsel %vm9549_vm3, %v9562_v24, %v23256_v20  ;;  %v18422_v24 = vld [vmem:[%s24727_s2 + $0x2430] ss:$24 sps:$4 sm:$0xff]  }
 0x4a4   :  { %11293 = vmatprep.subr.bf16.mxu1 %v18332_v61  ;;  %v18376_v61 = vld [vmem:[%s24727_s2 + $0x2144] ss:$24 sps:$4 sm:$0xff]  }
 0x4a5   :  { %9139 = vmatpush1.bf16.msra.mxu0 %v18321_v22  ;;  %v18374_v22 = vld [vmem:[%s24727_s2 + $0x2140] ss:$24 sps:$4 sm:$0xff]  }
 0x4a6   :  { %9140 = vmatprep.subr.bf16.mxu0 %v18329_v30  ;;  %v18379_v30 = vld [vmem:[%s24727_s2 + $0x2174] ss:$24 sps:$4 sm:$0xff]  }
 0x4a7   :  { %11294 = vmatpush1.bf16.msra.mxu1 %v18330_v27  ;;  %v18377_v27 = vld [vmem:[%s24727_s2 + $0x2170] ss:$24 sps:$4 sm:$0xff]  }
 0x4a8   :  { %11295 = vmatprep.subr.bf16.mxu1 %v18338_v47  ;;  %v18385_v47 = vld [vmem:[%s24727_s2 + $0x21d4] ss:$24 sps:$4 sm:$0xff]  }
 0x4a9   :  { %9141 = vmatpush1.bf16.msra.mxu0 %v18327_v26  ;;  %v18383_v26 = vld [vmem:[%s24727_s2 + $0x21d0] ss:$24 sps:$4 sm:$0xff]  }
 0x4aa   :  { %9142 = vmatprep.subr.bf16.mxu0 %v18335_v1  ;;  %v18391_v1 = vld [vmem:[%s24727_s2 + $0x2234] ss:$24 sps:$4 sm:$0xff]  }
 0x4ab   :  { %11296 = vmatpush1.bf16.msra.mxu1 %v18336_v31  ;;  %v18389_v31 = vld [vmem:[%s24727_s2 + $0x2230] ss:$24 sps:$4 sm:$0xff]  }
 0x4ac   :  { %11297 = vmatprep.subr.bf16.mxu1 %v18344_v56  ;;  %v18394_v56 = vld [vmem:[%s24727_s2 + $0x2264] ss:$24 sps:$4 sm:$0xff]  }
 0x4ad   :  { %9143 = vmatpush1.bf16.msra.mxu0 %v18333_v18  ;;  %v18392_v18 = vld [vmem:[%s24727_s2 + $0x2260] ss:$24 sps:$4 sm:$0xff]  }
 0x4ae   :  { %9144 = vmatprep.subr.bf16.mxu0 %v18341_v43  ;;  %v18397_v43 = vld [vmem:[%s24727_s2 + $0x2294] ss:$24 sps:$4 sm:$0xff]  }
 0x4af   :  { %11298 = vmatpush1.bf16.msra.mxu1 %v18342_v2  ;;  %v18395_v2 = vld [vmem:[%s24727_s2 + $0x2290] ss:$24 sps:$4 sm:$0xff]  }
 0x4b0   :  { %11299 = vmatprep.subr.bf16.mxu1 %v18350_v35  ;;  %v18400_v35 = vld [vmem:[%s24727_s2 + $0x22c4] ss:$24 sps:$4 sm:$0xff]  }
 0x4b1   :  { %9145 = vmatpush1.bf16.msra.mxu0 %v18339_v25  ;;  %v18398_v25 = vld [vmem:[%s24727_s2 + $0x22c0] ss:$24 sps:$4 sm:$0xff]  }
 0x4b2   :  { %9146 = vmatprep.subr.bf16.mxu0 %v18347_v7  ;;  %v18403_v7 = vld [vmem:[%s24727_s2 + $0x22f4] ss:$24 sps:$4 sm:$0xff]  }
 0x4b3   :  { %11300 = vmatpush1.bf16.msra.mxu1 %v18348_v45  ;;  %v18401_v45 = vld [vmem:[%s24727_s2 + $0x22f0] ss:$24 sps:$4 sm:$0xff]  }
 0x4b4   :  { %11301 = vmatprep.subr.bf16.mxu1 %v18356_v9  ;;  %v18406_v9 = vld [vmem:[%s24727_s2 + $0x2324] ss:$24 sps:$4 sm:$0xff]  }
 0x4b5   :  { %9147 = vmatpush1.bf16.msra.mxu0 %v18345_v38  ;;  %v18404_v38 = vld [vmem:[%s24727_s2 + $0x2320] ss:$24 sps:$4 sm:$0xff]  }
 0x4b6   :  { %9148 = vmatprep.subr.bf16.mxu0 %v18353_v40  ;;  %v18409_v40 = vld [vmem:[%s24727_s2 + $0x2354] ss:$24 sps:$4 sm:$0xff]  }
 0x4b7   :  { %11302 = vmatpush1.bf16.msra.mxu1 %v18354_v46  ;;  %v18407_v46 = vld [vmem:[%s24727_s2 + $0x2350] ss:$24 sps:$4 sm:$0xff]  }
 0x4b8   :  { %11303 = vmatprep.subr.bf16.mxu1 %v18362_v29  ;;  %v18412_v29 = vld [vmem:[%s24727_s2 + $0x2384] ss:$24 sps:$4 sm:$0xff]  }
 0x4b9   :  { %9149 = vmatpush1.bf16.msra.mxu0 %v18351_v44  ;;  %v18410_v44 = vld [vmem:[%s24727_s2 + $0x2380] ss:$24 sps:$4 sm:$0xff]  }
 0x4ba   :  { %9150 = vmatprep.subr.bf16.mxu0 %v18359_v17  ;;  %v18415_v17 = vld [vmem:[%s24727_s2 + $0x23b4] ss:$24 sps:$4 sm:$0xff]  }
 0x4bb   :  { %11304 = vmatpush1.bf16.msra.mxu1 %v18360_v41  ;;  %v18413_v41 = vld [vmem:[%s24727_s2 + $0x23b0] ss:$24 sps:$4 sm:$0xff]  }
 0x4bc   :  { %11305 = vmatprep.subr.bf16.mxu1 %v18368_v55  ;;  %v18416_v55 = vld [vmem:[%s24727_s2 + $0x23e0] ss:$24 sps:$4 sm:$0xff]  }
 0x4bd   :  { %9151 = vmatpush1.bf16.msra.mxu0 %v18357_v53  ;;  %v18421_v53 = vld [vmem:[%s24727_s2 + $0x2404] ss:$24 sps:$4 sm:$0xff]  }
 0x4be   :  { %9152 = vmatprep.subr.bf16.mxu0 %v18365_v3  ;;  %v18419_v3 = vld [vmem:[%s24727_s2 + $0x2400] ss:$24 sps:$4 sm:$0xff]  }
 0x4bf   :  { %11306 = vmatpush1.bf16.msra.mxu1 %v18366_v8  ;;  %v18424_v8 = vld [vmem:[%s24727_s2 + $0x2434] ss:$24 sps:$4 sm:$0xff]  }
 0x4c1   :  { %9153 = vmatpush1.bf16.msra.mxu0 %v18363_v32  ;;  %v18427_v32 = vld [vmem:[%s24727_s2 + $0x2464] ss:$24 sps:$4 sm:$0xff]  }
 0x4c2   :  { %9173 = vmatprep.subr.bf16.mxu0 %v18373_v62  ;;  %11308 = vmatmul.mubr.bf16.vlgmr.msra.gmra.mrb[8].mxu1 %v23266_v57  ;;  %v18425_v62 = vld [vmem:[%s24727_s2 + $0x2460] ss:$24 sps:$4 sm:$0xff]  }
 0x4c3   :  { %11317 = vmatprep.mubr.bf16.mxu1 %v23077_v60 }
 0x4c4   :  { %9155 = vmatmul.mubr.bf16.vlgmr.msra.gmra.mrb[0].mxu0 %v22382_v50  ;;  %v18382_v50 = vld [vmem:[%s24727_s2 + $0x21a4] ss:$24 sps:$4 sm:$0xff]  }
 0x4c5   :  { %9174 = vmatpush1.bf16.msra.mxu0 %v18371_v58  ;;  %9164 = vmatprep.mubr.bf16.mxu0 %v22164_v10  ;;  %v18380_v10 = vld [vmem:[%s24727_s2 + $0x21a0] ss:$24 sps:$4 sm:$0xff]   ;;  %v18433_v58 = vld [vmem:[%s24727_s2 + $0x24c4] ss:$24 sps:$4 sm:$0xff]  }
 0x4c6   :  { %9175 = vmatprep.subr.bf16.mxu0 %v18376_v61  ;;  %v18431_v61 = vld [vmem:[%s24727_s2 + $0x24c0] ss:$24 sps:$4 sm:$0xff]  }
 0x4c9   :  { %9176 = vmatpush1.bf16.msra.mxu0 %v18374_v22  ;;  %v18434_v22 = vld [vmem:[%s24727_s2 + $0x24f0] ss:$24 sps:$4 sm:$0xff]  }
 0x4ca   :  { %9177 = vmatprep.subr.bf16.mxu0 %v18379_v30  ;;  %11318 = vmatmul.mubr.bf16.gmra.mrb[12].mxu1 %v23256_v20  ;;  %v18439_v30 = vld [vmem:[%s24727_s2 + $0x2524] ss:$24 sps:$4 sm:$0xff]  }
 0x4cc   :  { %9165 = vmatmul.mubr.bf16.gmra.mrb[4].mxu0 %v22362_v19  ;;  %v18388_v19 = vld [vmem:[%s24727_s2 + $0x2204] ss:$24 sps:$4 sm:$0xff]  }
 0x4cd   :  { %9178 = vmatpush1.bf16.msra.mxu0 %v18377_v27  ;;  %9205 = vmatprep.mubr.bf16.mxu0 %v22419_v48  ;;  %v18386_v48 = vld [vmem:[%s24727_s2 + $0x2200] ss:$24 sps:$4 sm:$0xff]  }
 0x4ce   :  { %9179 = vmatprep.subr.bf16.mxu0 %v18382_v50  ;;  %v18437_v27 = vld [vmem:[%s24727_s2 + $0x2520] ss:$24 sps:$4 sm:$0xff]   ;;  %v18442_v50 = vld [vmem:[%s24727_s2 + $0x2554] ss:$24 sps:$4 sm:$0xff]  }
 0x4d1   :  { %9180 = vmatpush1.bf16.msra.mxu0 %v18380_v10  ;;  %v18440_v10 = vld [vmem:[%s24727_s2 + $0x2550] ss:$24 sps:$4 sm:$0xff]  }
 0x4d2   :  { %9181 = vmatprep.subr.bf16.mxu0 %v18385_v47  ;;  %v18445_v47 = vld [vmem:[%s24727_s2 + $0x2584] ss:$24 sps:$4 sm:$0xff]  }
 0x4d5   :  { %9182 = vmatpush1.bf16.msra.mxu0 %v18383_v26  ;;  %v18443_v26 = vld [vmem:[%s24727_s2 + $0x2580] ss:$24 sps:$4 sm:$0xff]  }
 0x4d6   :  { %9183 = vmatprep.subr.bf16.mxu0 %v18388_v19  ;;  %v18448_v19 = vld [vmem:[%s24727_s2 + $0x25b4] ss:$24 sps:$4 sm:$0xff]  }
 0x4d9   :  { %9184 = vmatpush1.bf16.msra.mxu0 %v18386_v48  ;;  %v18446_v48 = vld [vmem:[%s24727_s2 + $0x25b0] ss:$24 sps:$4 sm:$0xff]  }
 0x4da   :  { %9185 = vmatprep.subr.bf16.mxu0 %v18391_v1  ;;  %v18451_v1 = vld [vmem:[%s24727_s2 + $0x25e4] ss:$24 sps:$4 sm:$0xff]  }
 0x4dd   :  { %9186 = vmatpush1.bf16.msra.mxu0 %v18389_v31  ;;  %v18449_v31 = vld [vmem:[%s24727_s2 + $0x25e0] ss:$24 sps:$4 sm:$0xff]  }
 0x4de   :  { %9187 = vmatprep.subr.bf16.mxu0 %v18394_v56  ;;  %v18454_v56 = vld [vmem:[%s24727_s2 + $0x2614] ss:$24 sps:$4 sm:$0xff]  }
 0x4e1   :  { %9188 = vmatpush1.bf16.msra.mxu0 %v18392_v18  ;;  %v18452_v18 = vld [vmem:[%s24727_s2 + $0x2610] ss:$24 sps:$4 sm:$0xff]  }
 0x4e2   :  { %9189 = vmatprep.subr.bf16.mxu0 %v18397_v43  ;;  %v18457_v43 = vld [vmem:[%s24727_s2 + $0x2644] ss:$24 sps:$4 sm:$0xff]  }
 0x4e5   :  { %9190 = vmatpush1.bf16.msra.mxu0 %v18395_v2  ;;  %v18455_v2 = vld [vmem:[%s24727_s2 + $0x2640] ss:$24 sps:$4 sm:$0xff]  }
 0x4e6   :  { %9191 = vmatprep.subr.bf16.mxu0 %v18400_v35  ;;  %v18460_v35 = vld [vmem:[%s24727_s2 + $0x2674] ss:$24 sps:$4 sm:$0xff]  }
 0x4e9   :  { %9192 = vmatpush1.bf16.msra.mxu0 %v18398_v25  ;;  %v18458_v25 = vld [vmem:[%s24727_s2 + $0x2670] ss:$24 sps:$4 sm:$0xff]  }
 0x4ea   :  { %9193 = vmatprep.subr.bf16.mxu0 %v18403_v7  ;;  %v18463_v7 = vld [vmem:[%s24727_s2 + $0x26a4] ss:$24 sps:$4 sm:$0xff]  }
 0x4ed   :  { %9194 = vmatpush1.bf16.msra.mxu0 %v18401_v45  ;;  %v18461_v45 = vld [vmem:[%s24727_s2 + $0x26a0] ss:$24 sps:$4 sm:$0xff]  }
 0x4ee   :  { %9195 = vmatprep.subr.bf16.mxu0 %v18406_v9  ;;  %v18466_v9 = vld [vmem:[%s24727_s2 + $0x26d4] ss:$24 sps:$4 sm:$0xff]  }
 0x4f1   :  { %9196 = vmatpush1.bf16.msra.mxu0 %v18404_v38  ;;  %v18464_v38 = vld [vmem:[%s24727_s2 + $0x26d0] ss:$24 sps:$4 sm:$0xff]  }
 0x4f2   :  { %9197 = vmatprep.subr.bf16.mxu0 %v18409_v40  ;;  %v18469_v40 = vld [vmem:[%s24727_s2 + $0x2704] ss:$24 sps:$4 sm:$0xff]  }
 0x4f5   :  { %9198 = vmatpush1.bf16.msra.mxu0 %v18407_v46  ;;  %v18467_v46 = vld [vmem:[%s24727_s2 + $0x2700] ss:$24 sps:$4 sm:$0xff]  }
 0x4f6   :  { %9199 = vmatprep.subr.bf16.mxu0 %v18412_v29  ;;  %v18472_v29 = vld [vmem:[%s24727_s2 + $0x2734] ss:$24 sps:$4 sm:$0xff]  }
 0x4f9   :  { %9200 = vmatpush1.bf16.msra.mxu0 %v18410_v44  ;;  %v18470_v44 = vld [vmem:[%s24727_s2 + $0x2730] ss:$24 sps:$4 sm:$0xff]  }
 0x4fa   :  { %9201 = vmatprep.subr.bf16.mxu0 %v18415_v17  ;;  %v18475_v17 = vld [vmem:[%s24727_s2 + $0x2764] ss:$24 sps:$4 sm:$0xff]  }
 0x4fd   :  { %9202 = vmatpush1.bf16.msra.mxu0 %v18413_v41  ;;  %v18473_v41 = vld [vmem:[%s24727_s2 + $0x2760] ss:$24 sps:$4 sm:$0xff]  }
 0x4fe   :  { %9203 = vmatprep.subr.bf16.mxu0 %v18418_v49  ;;  %v18478_v49 = vld [vmem:[%s24727_s2 + $0x2794] ss:$24 sps:$4 sm:$0xff]  }
 0x501   :  { %9204 = vmatpush1.bf16.msra.mxu0 %v18416_v55  ;;  %v18476_v55 = vld [vmem:[%s24727_s2 + $0x2790] ss:$24 sps:$4 sm:$0xff]  }
 0x502   :  { %11020 = vmatprep.subr.bf16.mxu0 %v18421_v53  ;;  %v18481_v53 = vld [vmem:[%s24727_s2 + $0x27c4] ss:$24 sps:$4 sm:$0xff]  }
 0x504   :  { %9206 = vmatmul.mubr.bf16.vlgmr.msra.gmra.mrb[0].mxu0 %v22608_v15  ;;  %v18430_v15 = vld [vmem:[%s24727_s2 + $0x2494] ss:$24 sps:$4 sm:$0xff]  }
 0x505   :  { %11021 = vmatpush1.bf16.msra.mxu0 %v18419_v3  ;;  %9215 = vmatprep.mubr.bf16.mxu0 %v22402_v36  ;;  %v18428_v36 = vld [vmem:[%s24727_s2 + $0x2490] ss:$24 sps:$4 sm:$0xff]   ;;  %v18479_v3 = vld [vmem:[%s24727_s2 + $0x27c0] ss:$24 sps:$4 sm:$0xff]  }
 0x506   :  { %11022 = vmatprep.subr.bf16.mxu0 %v18424_v8  ;;  %v18484_v8 = vld [vmem:[%s24727_s2 + $0x27f4] ss:$24 sps:$4 sm:$0xff]  }
 0x509   :  { %11023 = vmatpush1.bf16.msra.mxu0 %v18422_v24  ;;  %v18482_v24 = vld [vmem:[%s24727_s2 + $0x27f0] ss:$24 sps:$4 sm:$0xff]  }
 0x50a   :  { %11024 = vmatprep.subr.bf16.mxu0 %v18427_v32  ;;  %v18487_v32 = vld [vmem:[%s24727_s2 + $0x2824] ss:$24 sps:$4 sm:$0xff]  }
 0x50c   :  { %9216 = vmatmul.mubr.bf16.gmra.mrb[4].mxu0 %v22590_v34  ;;  %v18436_v34 = vld [vmem:[%s24727_s2 + $0x24f4] ss:$24 sps:$4 sm:$0xff]  }
 0x50d   :  { %11025 = vmatpush1.bf16.msra.mxu0 %v18425_v62  ;;  %11052 = vmatprep.mubr.bf16.mxu0 %v22650_v63  ;;  %v18485_v62 = vld [vmem:[%s24727_s2 + $0x2820] ss:$24 sps:$4 sm:$0xff]  }
 0x50e   :  { %11026 = vmatprep.subr.bf16.mxu0 %v18430_v15  ;;  %v18490_v15 = vld [vmem:[%s24727_s2 + $0x2854] ss:$24 sps:$4 sm:$0xff]  }
 0x511   :  { %11027 = vmatpush1.bf16.msra.mxu0 %v18428_v36  ;;  %v18488_v36 = vld [vmem:[%s24727_s2 + $0x2850] ss:$24 sps:$4 sm:$0xff]  }
 0x512   :  { %11028 = vmatprep.subr.bf16.mxu0 %v18433_v58  ;;  %v18493_v58 = vld [vmem:[%s24727_s2 + $0x2884] ss:$24 sps:$4 sm:$0xff]  }
 0x515   :  { %11029 = vmatpush1.bf16.msra.mxu0 %v18431_v61  ;;  %v18491_v61 = vld [vmem:[%s24727_s2 + $0x2880] ss:$24 sps:$4 sm:$0xff]  }
 0x516   :  { %11030 = vmatprep.subr.bf16.mxu0 %v18436_v34  ;;  %v18496_v34 = vld [vmem:[%s24727_s2 + $0x28b4] ss:$24 sps:$4 sm:$0xff]  }
 0x519   :  { %11031 = vmatpush1.bf16.msra.mxu0 %v18434_v22  ;;  %v18494_v22 = vld [vmem:[%s24727_s2 + $0x28b0] ss:$24 sps:$4 sm:$0xff]  }
 0x51a   :  { %11032 = vmatprep.subr.bf16.mxu0 %v18439_v30  ;;  %v18499_v30 = vld [vmem:[%s24727_s2 + $0x28e4] ss:$24 sps:$4 sm:$0xff]  }
 0x51d   :  { %11033 = vmatpush1.bf16.msra.mxu0 %v18437_v27  ;;  %v18497_v27 = vld [vmem:[%s24727_s2 + $0x28e0] ss:$24 sps:$4 sm:$0xff]  }
 0x51e   :  { %11034 = vmatprep.subr.bf16.mxu0 %v18442_v50  ;;  %v18502_v50 = vld [vmem:[%s24727_s2 + $0x2914] ss:$24 sps:$4 sm:$0xff]  }
 0x521   :  { %11035 = vmatpush1.bf16.msra.mxu0 %v18440_v10  ;;  %v18500_v10 = vld [vmem:[%s24727_s2 + $0x2910] ss:$24 sps:$4 sm:$0xff]  }
 0x522   :  { %11036 = vmatprep.subr.bf16.mxu0 %v18445_v47  ;;  %v18505_v47 = vld [vmem:[%s24727_s2 + $0x2944] ss:$24 sps:$4 sm:$0xff]  }
 0x525   :  { %11037 = vmatpush1.bf16.msra.mxu0 %v18443_v26  ;;  %v18503_v26 = vld [vmem:[%s24727_s2 + $0x2940] ss:$24 sps:$4 sm:$0xff]  }
 0x526   :  { %11038 = vmatprep.subr.bf16.mxu0 %v18448_v19  ;;  %v18508_v19 = vld [vmem:[%s24727_s2 + $0x2974] ss:$24 sps:$4 sm:$0xff]  }
 0x529   :  { %11039 = vmatpush1.bf16.msra.mxu0 %v18446_v48  ;;  %v18506_v48 = vld [vmem:[%s24727_s2 + $0x2970] ss:$24 sps:$4 sm:$0xff]  }
 0x52a   :  { %11040 = vmatprep.subr.bf16.mxu0 %v18451_v1  ;;  %v18511_v1 = vld [vmem:[%s24727_s2 + $0x29a4] ss:$24 sps:$4 sm:$0xff]  }
 0x52d   :  { %11041 = vmatpush1.bf16.msra.mxu0 %v18449_v31  ;;  %v18509_v31 = vld [vmem:[%s24727_s2 + $0x29a0] ss:$24 sps:$4 sm:$0xff]  }
 0x52e   :  { %11042 = vmatprep.subr.bf16.mxu0 %v18454_v56  ;;  %v18514_v56 = vld [vmem:[%s24727_s2 + $0x29d4] ss:$24 sps:$4 sm:$0xff]  }
 0x531   :  { %11043 = vmatpush1.bf16.msra.mxu0 %v18452_v18  ;;  %v18512_v18 = vld [vmem:[%s24727_s2 + $0x29d0] ss:$24 sps:$4 sm:$0xff]  }
 0x532   :  { %11044 = vmatprep.subr.bf16.mxu0 %v18457_v43  ;;  %v18517_v43 = vld [vmem:[%s24727_s2 + $0x2a04] ss:$24 sps:$4 sm:$0xff]  }
 0x535   :  { %11045 = vmatpush1.bf16.msra.mxu0 %v18455_v2  ;;  %v18515_v2 = vld [vmem:[%s24727_s2 + $0x2a00] ss:$24 sps:$4 sm:$0xff]  }
 0x536   :  { %11046 = vmatprep.subr.bf16.mxu0 %v18460_v35  ;;  %v18520_v35 = vld [vmem:[%s24727_s2 + $0x2a34] ss:$24 sps:$4 sm:$0xff]  }
 0x539   :  { %11047 = vmatpush1.bf16.msra.mxu0 %v18458_v25  ;;  %v18518_v25 = vld [vmem:[%s24727_s2 + $0x2a30] ss:$24 sps:$4 sm:$0xff]  }
 0x53a   :  { %11048 = vmatprep.subr.bf16.mxu0 %v18463_v7  ;;  %v18523_v7 = vld [vmem:[%s24727_s2 + $0x2a64] ss:$24 sps:$4 sm:$0xff]  }
 0x53d   :  { %11049 = vmatpush1.bf16.msra.mxu0 %v18461_v45  ;;  %v18521_v45 = vld [vmem:[%s24727_s2 + $0x2a60] ss:$24 sps:$4 sm:$0xff]  }
 0x53e   :  { %11050 = vmatprep.subr.bf16.mxu0 %v18466_v9  ;;  %v18526_v9 = vld [vmem:[%s24727_s2 + $0x2a94] ss:$24 sps:$4 sm:$0xff]  }
 0x541   :  { %11051 = vmatpush1.bf16.msra.mxu0 %v18464_v38  ;;  %v18524_v38 = vld [vmem:[%s24727_s2 + $0x2a90] ss:$24 sps:$4 sm:$0xff]  }
 0x542   :  { %11071 = vmatprep.subr.bf16.mxu0 %v18469_v40  ;;  %v18529_v40 = vld [vmem:[%s24727_s2 + $0x2ac4] ss:$24 sps:$4 sm:$0xff]  }
 0x544   :  { %11053 = vmatmul.mubr.bf16.vlgmr.msra.gmra.mrb[8].mxu0 %v22830_v39 }
 0x545   :  { %11072 = vmatpush1.bf16.msra.mxu0 %v18467_v46  ;;  %11062 = vmatprep.mubr.bf16.mxu0 %v22633_v54  ;;  %v18527_v46 = vld [vmem:[%s24727_s2 + $0x2ac0] ss:$24 sps:$4 sm:$0xff]  }
 0x546   :  { %11073 = vmatprep.subr.bf16.mxu0 %v18472_v29  ;;  %v18532_v29 = vld [vmem:[%s24727_s2 + $0x2af4] ss:$24 sps:$4 sm:$0xff]  }
 0x549   :  { %11074 = vmatpush1.bf16.msra.mxu0 %v18470_v44 }
 0x54a   :  { %11075 = vmatprep.subr.bf16.mxu0 %v18475_v17  ;;  %v18530_v17 = vld [vmem:[%s24727_s2 + $0x2af0] ss:$24 sps:$4 sm:$0xff]  }
 0x54c   :  { %11063 = vmatmul.mubr.bf16.gmra.mrb[12].mxu0 %v22812_v28 }
 0x54d   :  { %11076 = vmatpush1.bf16.msra.mxu0 %v18473_v41  ;;  %11103 = vmatprep.mubr.bf16.mxu0 %v22872_v21 }
 0x54e   :  { %11077 = vmatprep.subr.bf16.mxu0 %v18478_v49  ;;  %v18535_v49 = vld [vmem:[%s24727_s2 + $0x2b24] ss:$24 sps:$4 sm:$0xff]  }
 0x551   :  { %11078 = vmatpush1.bf16.msra.mxu0 %v18476_v55 }
 0x552   :  { %11079 = vmatprep.subr.bf16.mxu0 %v18481_v53 }
 0x555   :  { %11080 = vmatpush1.bf16.msra.mxu0 %v18479_v3 }
 0x556   :  { %11081 = vmatprep.subr.bf16.mxu0 %v18484_v8 }
 0x559   :  { %11082 = vmatpush1.bf16.msra.mxu0 %v18482_v24  ;;  %v18533_v24 = vld [vmem:[%s24727_s2 + $0x2b20] ss:$24 sps:$4 sm:$0xff]  }
 0x55a   :  { %11083 = vmatprep.subr.bf16.mxu0 %v18487_v32  ;;  %v18538_v32 = vld [vmem:[%s24727_s2 + $0x2b54] ss:$24 sps:$4 sm:$0xff]  }
 0x55d   :  { %11084 = vmatpush1.bf16.msra.mxu0 %v18485_v62 }
 0x55e   :  { %11085 = vmatprep.subr.bf16.mxu0 %v18490_v15 }
 0x561   :  { %11086 = vmatpush1.bf16.msra.mxu0 %v18488_v36 }
 0x562   :  { %11087 = vmatprep.subr.bf16.mxu0 %v18493_v58  ;;  %v18536_v58 = vld [vmem:[%s24727_s2 + $0x2b50] ss:$24 sps:$4 sm:$0xff]  }
 0x565   :  { %11088 = vmatpush1.bf16.msra.mxu0 %v18491_v61 }
 0x566   :  { %11089 = vmatprep.subr.bf16.mxu0 %v18496_v34 }
 0x569   :  { %11090 = vmatpush1.bf16.msra.mxu0 %v18494_v22 }
 0x56a   :  { %11091 = vmatprep.subr.bf16.mxu0 %v18499_v30  ;;  %v18541_v30 = vld [vmem:[%s24727_s2 + $0x2b84] ss:$24 sps:$4 sm:$0xff]  }
 0x56d   :  { %11092 = vmatpush1.bf16.msra.mxu0 %v18497_v27 }
 0x56e   :  { %11093 = vmatprep.subr.bf16.mxu0 %v18502_v50 }
 0x571   :  { %11094 = vmatpush1.bf16.msra.mxu0 %v18500_v10 }
 0x572   :  { %11095 = vmatprep.subr.bf16.mxu0 %v18505_v47 }
 0x575   :  { %11096 = vmatpush1.bf16.msra.mxu0 %v18503_v26 }
 0x576   :  { %11097 = vmatprep.subr.bf16.mxu0 %v18508_v19 }
 0x579   :  { %11098 = vmatpush1.bf16.msra.mxu0 %v18506_v48 }
 0x57a   :  { %11099 = vmatprep.subr.bf16.mxu0 %v18511_v1 }
 0x57d   :  { %11100 = vmatpush1.bf16.msra.mxu0 %v18509_v31 }
 0x57e   :  { %11101 = vmatprep.subr.bf16.mxu0 %v18514_v56  ;;  %v18539_v56 = vld [vmem:[%s24727_s2 + $0x2b80] ss:$24 sps:$4 sm:$0xff]  }
 0x581   :  { %11102 = vmatpush1.bf16.msra.mxu0 %v18512_v18 }
 0x582   :  { %11122 = vmatprep.subr.bf16.mxu0 %v18517_v43  ;;  %v18544_v43 = vld [vmem:[%s24727_s2 + $0x2bb4] ss:$24 sps:$4 sm:$0xff]  }
 0x584   :  { %11104 = vmatmul.mubr.bf16.vlgmr.msra.gmra.mrb[8].mxu0 %v23052_v33 }
 0x585   :  { %11123 = vmatpush1.bf16.msra.mxu0 %v18515_v2  ;;  %11113 = vmatprep.mubr.bf16.mxu0 %v22855_v16 }
 0x586   :  { %11124 = vmatprep.subr.bf16.mxu0 %v18520_v35 }
 0x589   :  { %11125 = vmatpush1.bf16.msra.mxu0 %v18518_v25 }
 0x58a   :  { %11126 = vmatprep.subr.bf16.mxu0 %v18523_v7 }
 0x58c   :  { %11114 = vmatmul.mubr.bf16.gmra.mrb[12].mxu0 %v23034_v51 }
 0x58d   :  { %11127 = vmatpush1.bf16.msra.mxu0 %v18521_v45  ;;  %11154 = vmatprep.mubr.bf16.mxu0 %v23094_v42 }
 0x58e   :  { %11128 = vmatprep.subr.bf16.mxu0 %v18526_v9  ;;  %v18542_v9 = vld [vmem:[%s24727_s2 + $0x2bb0] ss:$24 sps:$4 sm:$0xff]  }
 0x591   :  { %11129 = vmatpush1.bf16.msra.mxu0 %v18524_v38 }
 0x592   :  { %11130 = vmatprep.subr.bf16.mxu0 %v18529_v40  ;;  %v18547_v40 = vld [vmem:[%s24727_s2 + $0x2be4] ss:$24 sps:$4 sm:$0xff]  }
 0x595   :  { %11131 = vmatpush1.bf16.msra.mxu0 %v18527_v46  ;;  %v11309_v44 = vpop.f32.mrb[8].mxu1 }
 0x596   :  { %11132 = vmatprep.subr.bf16.mxu0 %v18532_v29  ;;  %v11311_v41 = vpop.f32.mrb[9].mxu1  ;;  %v11509_v55 = vrot.slane %v11309_v44, 4 }
 0x597   :  { %v11313_v53 = vpop.f32.mrb[10].mxu1  ;;  %v11515_v3 = vrot.slane %v11311_v41, 4 }
 0x598   :  { %v11315_v8 = vpop.f32.mrb[11].mxu1  ;;  %v11510_v62 = vmax.f32 %v11309_v44, %v11509_v55  ;;  %v11553_v61 = vsel %vm11533_vm4, %v11313_v53, -inf  ;;  %v18550_v53 = vld [vmem:[%s24727_s2 + $0x2c14] ss:$24 sps:$4 sm:$0xff]  }
 0x599   :  { %11133 = vmatpush1.bf16.msra.mxu0 %v18530_v17  ;;  %v11516_v15 = vmax.f32 %v11311_v41, %v11515_v3  ;;  %v11562_v50 = vsel %vm11533_vm4, %v11315_v8, -inf }
 0x59a   :  { %11134 = vmatprep.subr.bf16.mxu0 %v18535_v49  ;;  %v11511_v27 = vrot.slane %v11510_v62, 2  ;;  %v18545_v49 = vld [vmem:[%s24727_s2 + $0x2be0] ss:$24 sps:$4 sm:$0xff]  }
 0x59b   :  { %v11517_v19 = vrot.slane %v11516_v15, 2 }
 0x59c   :  { %v11512_v2 = vmax.f32 %v11510_v62, %v11511_v27  ;;  %v18548_v62 = vld [vmem:[%s24727_s2 + $0x2c10] ss:$24 sps:$4 sm:$0xff]   ;;  %v18557_v27 = vld [vmem:[%s24727_s2 + $0x2ca0] ss:$24 sps:$4 sm:$0xff]  }
 0x59d   :  { %11135 = vmatpush1.bf16.msra.mxu0 %v18533_v24  ;;  %v11319_v36 = vpop.f32.mrb[12].mxu1  ;;  %v11518_v25 = vmax.f32 %v11516_v15, %v11517_v19  ;;  %v18568_v19 = vld [vmem:[%s24727_s2 + $0x2444] ss:$24 sps:$4 sm:$0xff]  }
 0x59e   :  { %v11554_v34 = vsel %vm11535_vm5, %v11319_v36, -inf  ;;  %11136 = vmatprep.subr.bf16.mxu0 %v18538_v32  ;;  %v11321_v22 = vpop.f32.mrb[13].mxu1  ;;  %v11513_v46 = vrot.slane %v11512_v2, 1  ;;  %v18553_v36 = vld [vmem:[%s24727_s2 + $0x2c44] ss:$24 sps:$4 sm:$0xff]  }
 0x59f   :  { %v11555_v10 = vmax.f32 %v11553_v61, %v11554_v34  ;;  %v11563_v47 = vsel %vm11535_vm5, %v11321_v22, -inf  ;;  %v11323_v26 = vpop.f32.mrb[14].mxu1  ;;  %v11519_v44 = vrot.slane %v11518_v25, 1  ;;  %v18551_v61 = vld [vmem:[%s24727_s2 + $0x2c40] ss:$24 sps:$4 sm:$0xff]  }
 0x5a0   :  { %v11564_v48 = vmax.f32 %v11562_v50, %v11563_v47  ;;  %v11324_v1 = vpop.f32.mrb[15].mxu1  ;;  %v11514_v3 = vmax.f32 %v11512_v2, %v11513_v46  ;;  %v18556_v34 = vld [vmem:[%s24727_s2 + $0x2c74] ss:$24 sps:$4 sm:$0xff]   ;;  %v18554_v22 = vld [vmem:[%s24727_s2 + $0x2c70] ss:$24 sps:$4 sm:$0xff]  }
 0x5a1   :  { %v11556_v31 = vrot.slane %v11555_v10, 4  ;;  %11137 = vmatpush1.bf16.msra.mxu0 %v18536_v58  ;;  %v11520_v24 = vmax.f32 %v11518_v25, %v11519_v44  ;;  %v18562_v50 = vld [vmem:[%s24727_s2 + $0x2cd4] ss:$24 sps:$4 sm:$0xff]   ;;  %v18563_v26 = vld [vmem:[%s24727_s2 + $0x2410] ss:$24 sps:$4 sm:$0xff]  }
 0x5a2   :  { %v11565_v18 = vrot.slane %v11564_v48, 4  ;;  %11138 = vmatprep.subr.bf16.mxu0 %v18541_v30  ;;  %v18559_v30 = vld [vmem:[%s24727_s2 + $0x2ca4] ss:$24 sps:$4 sm:$0xff]   ;;  %v18565_v47 = vld [vmem:[%s24727_s2 + $0x2414] ss:$24 sps:$4 sm:$0xff]  }
 0x5a3   :  { %v11557_v35 = vmax.f32 %v11555_v10, %v11556_v31  ;;  %v18560_v10 = vld [vmem:[%s24727_s2 + $0x2cd0] ss:$24 sps:$4 sm:$0xff]   ;;  %v18571_v1 = vld [vmem:[%s24727_s2 + $0x2474] ss:$24 sps:$4 sm:$0xff]   ;;  %v18592_v46 = vld [vmem:[%s24727_s2 + $0x25c4] ss:$24 sps:$4 sm:$0xff]  }
 0x5a4   :  { %v11566_v7 = vmax.f32 %v11564_v48, %v11565_v18  ;;  %v18566_v48 = vld [vmem:[%s24727_s2 + $0x2440] ss:$24 sps:$4 sm:$0xff]   ;;  %v18569_v31 = vld [vmem:[%s24727_s2 + $0x2470] ss:$24 sps:$4 sm:$0xff]   ;;  %v18583_v25 = vld [vmem:[%s24727_s2 + $0x2534] ss:$24 sps:$4 sm:$0xff]  }
 0x5a5   :  { %v11558_v45 = vrot.slane %v11557_v35, 2  ;;  %11139 = vmatpush1.bf16.msra.mxu0 %v18539_v56  ;;  %v18574_v56 = vld [vmem:[%s24727_s2 + $0x24a4] ss:$24 sps:$4 sm:$0xff]   ;;  %v18572_v18 = vld [vmem:[%s24727_s2 + $0x24a0] ss:$24 sps:$4 sm:$0xff]  }
 0x5a6   :  { %v11567_v38 = vrot.slane %v11566_v7, 2  ;;  %11140 = vmatprep.subr.bf16.mxu0 %v18544_v43  ;;  %v18577_v43 = vld [vmem:[%s24727_s2 + $0x24d4] ss:$24 sps:$4 sm:$0xff]   ;;  %v18575_v2 = vld [vmem:[%s24727_s2 + $0x24d0] ss:$24 sps:$4 sm:$0xff]  }
 0x5a7   :  { %v11559_v29 = vmax.f32 %v11557_v35, %v11558_v45  ;;  %v18580_v35 = vld [vmem:[%s24727_s2 + $0x2504] ss:$24 sps:$4 sm:$0xff]   ;;  %v18595_v44 = vld [vmem:[%s24727_s2 + $0x25f4] ss:$24 sps:$4 sm:$0xff]  }
 0x5a8   :  { %v11568_v17 = vmax.f32 %v11566_v7, %v11567_v38  ;;  %v18581_v7 = vld [vmem:[%s24727_s2 + $0x2530] ss:$24 sps:$4 sm:$0xff]   ;;  %v18586_v45 = vld [vmem:[%s24727_s2 + $0x2564] ss:$24 sps:$4 sm:$0xff]   ;;  %v18589_v38 = vld [vmem:[%s24727_s2 + $0x2594] ss:$24 sps:$4 sm:$0xff]  }
 0x5a9   :  { %v11560_v41 = vrot.slane %v11559_v29, 1  ;;  %11141 = vmatpush1.bf16.msra.mxu0 %v18542_v9  ;;  %v18584_v9 = vld [vmem:[%s24727_s2 + $0x2560] ss:$24 sps:$4 sm:$0xff]  }
 0x5aa   :  { %v11569_v55 = vrot.slane %v11568_v17, 1  ;;  %11142 = vmatprep.subr.bf16.mxu0 %v18547_v40  ;;  %v18587_v40 = vld [vmem:[%s24727_s2 + $0x2590] ss:$24 sps:$4 sm:$0xff]  }
 0x5ab   :  { %v11561_v8 = vmax.f32 %v11559_v29, %v11560_v41  ;;  %v18590_v29 = vld [vmem:[%s24727_s2 + $0x25c0] ss:$24 sps:$4 sm:$0xff]   ;;  %v18598_v41 = vld [vmem:[%s24727_s2 + $0x2624] ss:$24 sps:$4 sm:$0xff]  }
 0x5ac   :  { %v11570_v32 = vmax.f32 %v11568_v17, %v11569_v55  ;;  %v18593_v17 = vld [vmem:[%s24727_s2 + $0x25f0] ss:$24 sps:$4 sm:$0xff]   ;;  %v18601_v55 = vld [vmem:[%s24727_s2 + $0x2654] ss:$24 sps:$4 sm:$0xff]  }
 0x5ad   :  { %11143 = vmatpush1.bf16.msra.mxu0 %v18545_v49  ;;  %v23649_v15 = vsel %vm11589_vm6, %v11514_v3, %v11561_v8  ;;  %v18596_v49 = vld [vmem:[%s24727_s2 + $0x2620] ss:$24 sps:$4 sm:$0xff]   ;;  %v18604_v3 = vld [vmem:[%s24727_s2 + $0x2684] ss:$24 sps:$4 sm:$0xff]  }
 0x5ae   :  { %11144 = vmatprep.subr.bf16.mxu0 %v18550_v53  ;;  %v23655_v58 = vsel %vm11589_vm6, %v11520_v24, %v11570_v32  ;;  %v18599_v53 = vld [vmem:[%s24727_s2 + $0x2650] ss:$24 sps:$4 sm:$0xff]   ;;  %v18602_v8 = vld [vmem:[%s24727_s2 + $0x2680] ss:$24 sps:$4 sm:$0xff]   ;;  %v18607_v24 = vld [vmem:[%s24727_s2 + $0x26b4] ss:$24 sps:$4 sm:$0xff]  }
 0x5af   :  { %v18703_v32 = vld [vmem:[%s24730_s5 + $0x4] ss:$8 sps:$4 sm:$0xff]  }
 0x5b0   :  { %12319 = vmatprep.subr.bf16.mxu1 %v18703_v32  ;;  %v18640_v32 = vld [vmem:[%s24727_s2 + $0x28c4] ss:$24 sps:$4 sm:$0xff]  }
 0x5b1   :  { %11145 = vmatpush1.bf16.msra.mxu0 %v18548_v62  ;;  %v18701_v62 = vld [vmem:[%s24730_s5] ss:$8 sps:$4 sm:$0xff]  }
 0x5b2   :  { %11146 = vmatprep.subr.bf16.mxu0 %v18553_v36  ;;  %v18605_v36 = vld [vmem:[%s24727_s2 + $0x26b0] ss:$24 sps:$4 sm:$0xff]   ;;  %12320 = vmatpush1.bf16.msra.mxu1 %v18701_v62  ;;  %v18742_v62 = vld [vmem:[%s24730_s5 + $0xb4] ss:$8 sps:$4 sm:$0xff]  }
 0x5b5   :  { %11147 = vmatpush1.bf16.msra.mxu0 %v18551_v61  ;;  %v18610_v61 = vld [vmem:[%s24727_s2 + $0x26e4] ss:$24 sps:$4 sm:$0xff]  }
 0x5b6   :  { %11148 = vmatprep.subr.bf16.mxu0 %v18556_v34  ;;  %v18709_v34 = vld [vmem:[%s24730_s5 + $0x14] ss:$8 sps:$4 sm:$0xff]  }
 0x5b7   :  { %12321 = vmatprep.subr.bf16.mxu1 %v18709_v34  ;;  %v18643_v34 = vld [vmem:[%s24727_s2 + $0x28f4] ss:$24 sps:$4 sm:$0xff]  }
 0x5b9   :  { %11149 = vmatpush1.bf16.msra.mxu0 %v18554_v22  ;;  %v18707_v22 = vld [vmem:[%s24730_s5 + $0x10] ss:$8 sps:$4 sm:$0xff]  }
 0x5ba   :  { %11150 = vmatprep.subr.bf16.mxu0 %v18559_v30  ;;  %v18608_v30 = vld [vmem:[%s24727_s2 + $0x26e0] ss:$24 sps:$4 sm:$0xff]   ;;  %12322 = vmatpush1.bf16.msra.mxu1 %v18707_v22  ;;  %v18745_v22 = vld [vmem:[%s24730_s5 + $0xc4] ss:$8 sps:$4 sm:$0xff]  }
 0x5bd   :  { %11151 = vmatpush1.bf16.msra.mxu0 %v18557_v27  ;;  %v18613_v27 = vld [vmem:[%s24727_s2 + $0x2714] ss:$24 sps:$4 sm:$0xff]  }
 0x5be   :  { %11152 = vmatprep.subr.bf16.mxu0 %v18562_v50  ;;  %v18715_v50 = vld [vmem:[%s24730_s5 + $0x24] ss:$8 sps:$4 sm:$0xff]  }
 0x5bf   :  { %12323 = vmatprep.subr.bf16.mxu1 %v18715_v50  ;;  %v18646_v50 = vld [vmem:[%s24727_s2 + $0x2924] ss:$24 sps:$4 sm:$0xff]  }
 0x5c1   :  { %11153 = vmatpush1.bf16.msra.mxu0 %v18560_v10  ;;  %v18713_v10 = vld [vmem:[%s24730_s5 + $0x20] ss:$8 sps:$4 sm:$0xff]  }
 0x5c2   :  { %11326 = vmatprep.subr.bf16.mxu0 %v18565_v47  ;;  %v18611_v47 = vld [vmem:[%s24727_s2 + $0x2710] ss:$24 sps:$4 sm:$0xff]   ;;  %12324 = vmatpush1.bf16.msra.mxu1 %v18713_v10  ;;  %v18748_v10 = vld [vmem:[%s24730_s5 + $0xd4] ss:$8 sps:$4 sm:$0xff]  }
 0x5c4   :  { %11155 = vmatmul.mubr.bf16.vlgmr.msra.gmra.mrb[8].mxu0 %v23266_v57 }
 0x5c5   :  { %11327 = vmatpush1.bf16.msra.mxu0 %v18563_v26  ;;  %11164 = vmatprep.mubr.bf16.mxu0 %v23077_v60  ;;  %v18616_v26 = vld [vmem:[%s24727_s2 + $0x2744] ss:$24 sps:$4 sm:$0xff]  }
 0x5c6   :  { %11328 = vmatprep.subr.bf16.mxu0 %v18568_v19  ;;  %v18718_v19 = vld [vmem:[%s24730_s5 + $0x34] ss:$8 sps:$4 sm:$0xff]  }
 0x5c7   :  { %12325 = vmatprep.subr.bf16.mxu1 %v18718_v19  ;;  %v18649_v19 = vld [vmem:[%s24727_s2 + $0x2954] ss:$24 sps:$4 sm:$0xff]  }
 0x5c9   :  { %11329 = vmatpush1.bf16.msra.mxu0 %v18566_v48  ;;  %v18716_v48 = vld [vmem:[%s24730_s5 + $0x30] ss:$8 sps:$4 sm:$0xff]  }
 0x5ca   :  { %11330 = vmatprep.subr.bf16.mxu0 %v18571_v1  ;;  %v18721_v1 = vld [vmem:[%s24730_s5 + $0x44] ss:$8 sps:$4 sm:$0xff]   ;;  %12326 = vmatpush1.bf16.msra.mxu1 %v18716_v48 }
 0x5cb   :  { %12327 = vmatprep.subr.bf16.mxu1 %v18721_v1  ;;  %v18751_v48 = vld [vmem:[%s24730_s5 + $0xe4] ss:$8 sps:$4 sm:$0xff]   ;;  %v18749_v1 = vld [vmem:[%s24730_s5 + $0xe0] ss:$8 sps:$4 sm:$0xff]  }
 0x5cc   :  { %11165 = vmatmul.mubr.bf16.gmra.mrb[12].mxu0 %v23256_v20 }
 0x5cd   :  { %11331 = vmatpush1.bf16.msra.mxu0 %v18569_v31  ;;  %11358 = vmatprep.mubr.bf16.mxu0 %v22650_v63  ;;  %v18578_v63 = vld [vmem:[%s24727_s2 + $0x2500] ss:$24 sps:$4 sm:$0xff]  }
 0x5ce   :  { %11332 = vmatprep.subr.bf16.mxu0 %v18574_v56  ;;  %v18614_v31 = vld [vmem:[%s24727_s2 + $0x2740] ss:$24 sps:$4 sm:$0xff]  }
 0x5cf   :  { %v18719_v56 = vld [vmem:[%s24730_s5 + $0x40] ss:$8 sps:$4 sm:$0xff]  }
 0x5d0   :  { %12328 = vmatpush1.bf16.msra.mxu1 %v18719_v56  ;;  %v18652_v56 = vld [vmem:[%s24727_s2 + $0x2984] ss:$24 sps:$4 sm:$0xff]  }
 0x5d1   :  { %11333 = vmatpush1.bf16.msra.mxu0 %v18572_v18  ;;  %v18617_v18 = vld [vmem:[%s24727_s2 + $0x2770] ss:$24 sps:$4 sm:$0xff]  }
 0x5d2   :  { %11334 = vmatprep.subr.bf16.mxu0 %v18577_v43  ;;  %v18724_v43 = vld [vmem:[%s24730_s5 + $0x54] ss:$8 sps:$4 sm:$0xff]  }
 0x5d3   :  { %12329 = vmatprep.subr.bf16.mxu1 %v18724_v43  ;;  %v18655_v43 = vld [vmem:[%s24727_s2 + $0x29b4] ss:$24 sps:$4 sm:$0xff]  }
 0x5d5   :  { %11335 = vmatpush1.bf16.msra.mxu0 %v18575_v2  ;;  %v18722_v2 = vld [vmem:[%s24730_s5 + $0x50] ss:$8 sps:$4 sm:$0xff]  }
 0x5d6   :  { %11336 = vmatprep.subr.bf16.mxu0 %v18580_v35  ;;  %v18727_v35 = vld [vmem:[%s24730_s5 + $0x64] ss:$8 sps:$4 sm:$0xff]   ;;  %12330 = vmatpush1.bf16.msra.mxu1 %v18722_v2 }
 0x5d7   :  { %12331 = vmatprep.subr.bf16.mxu1 %v18727_v35  ;;  %v18757_v2 = vld [vmem:[%s24730_s5 + $0x104] ss:$8 sps:$4 sm:$0xff]   ;;  %v18653_v35 = vld [vmem:[%s24727_s2 + $0x29b0] ss:$24 sps:$4 sm:$0xff]  }
 0x5d9   :  { %11337 = vmatpush1.bf16.msra.mxu0 %v18578_v63  ;;  %v18620_v63 = vld [vmem:[%s24727_s2 + $0x27a0] ss:$24 sps:$4 sm:$0xff]  }
 0x5da   :  { %11338 = vmatprep.subr.bf16.mxu0 %v18583_v25  ;;  %v18725_v25 = vld [vmem:[%s24730_s5 + $0x60] ss:$8 sps:$4 sm:$0xff]  }
 0x5db   :  { %12332 = vmatpush1.bf16.msra.mxu1 %v18725_v25  ;;  %v18661_v25 = vld [vmem:[%s24727_s2 + $0x2a14] ss:$24 sps:$4 sm:$0xff]  }
 0x5dd   :  { %11339 = vmatpush1.bf16.msra.mxu0 %v18581_v7  ;;  %v18730_v7 = vld [vmem:[%s24730_s5 + $0x74] ss:$8 sps:$4 sm:$0xff]  }
 0x5de   :  { %11340 = vmatprep.subr.bf16.mxu0 %v18586_v45  ;;  %v18628_v45 = vld [vmem:[%s24727_s2 + $0x2804] ss:$24 sps:$4 sm:$0xff]   ;;  %12333 = vmatprep.subr.bf16.mxu1 %v18730_v7  ;;  %v18659_v7 = vld [vmem:[%s24727_s2 + $0x2a10] ss:$24 sps:$4 sm:$0xff]  }
 0x5e1   :  { %11341 = vmatpush1.bf16.msra.mxu0 %v18584_v9  ;;  %v18728_v9 = vld [vmem:[%s24730_s5 + $0x70] ss:$8 sps:$4 sm:$0xff]  }
 0x5e2   :  { %11342 = vmatprep.subr.bf16.mxu0 %v18589_v38  ;;  %v18626_v38 = vld [vmem:[%s24727_s2 + $0x2800] ss:$24 sps:$4 sm:$0xff]   ;;  %12334 = vmatpush1.bf16.msra.mxu1 %v18728_v9  ;;  %v18667_v9 = vld [vmem:[%s24727_s2 + $0x2a74] ss:$24 sps:$4 sm:$0xff]  }
 0x5e5   :  { %11343 = vmatpush1.bf16.msra.mxu0 %v18587_v40  ;;  %v18631_v40 = vld [vmem:[%s24727_s2 + $0x2834] ss:$24 sps:$4 sm:$0xff]  }
 0x5e6   :  { %11344 = vmatprep.subr.bf16.mxu0 %v18592_v46  ;;  %v18733_v46 = vld [vmem:[%s24730_s5 + $0x84] ss:$8 sps:$4 sm:$0xff]  }
 0x5e7   :  { %12335 = vmatprep.subr.bf16.mxu1 %v18733_v46  ;;  %v18671_v46 = vld [vmem:[%s24727_s2 + $0x2ad0] ss:$24 sps:$4 sm:$0xff]  }
 0x5e9   :  { %11345 = vmatpush1.bf16.msra.mxu0 %v18590_v29  ;;  %v18731_v29 = vld [vmem:[%s24730_s5 + $0x80] ss:$8 sps:$4 sm:$0xff]  }
 0x5ea   :  { %11346 = vmatprep.subr.bf16.mxu0 %v18595_v44  ;;  %v18629_v44 = vld [vmem:[%s24727_s2 + $0x2830] ss:$24 sps:$4 sm:$0xff]   ;;  %12336 = vmatpush1.bf16.msra.mxu1 %v18731_v29  ;;  %v18679_v29 = vld [vmem:[%s24727_s2 + $0x2b34] ss:$24 sps:$4 sm:$0xff]  }
 0x5ed   :  { %11347 = vmatpush1.bf16.msra.mxu0 %v18593_v17  ;;  %v18634_v17 = vld [vmem:[%s24727_s2 + $0x2864] ss:$24 sps:$4 sm:$0xff]  }
 0x5ee   :  { %11348 = vmatprep.subr.bf16.mxu0 %v18598_v41  ;;  %v18736_v41 = vld [vmem:[%s24730_s5 + $0x94] ss:$8 sps:$4 sm:$0xff]  }
 0x5ef   :  { %12337 = vmatprep.subr.bf16.mxu1 %v18736_v41  ;;  %v18680_v41 = vld [vmem:[%s24727_s2 + $0x2b60] ss:$24 sps:$4 sm:$0xff]  }
 0x5f1   :  { %11349 = vmatpush1.bf16.msra.mxu0 %v18596_v49  ;;  %v18734_v49 = vld [vmem:[%s24730_s5 + $0x90] ss:$8 sps:$4 sm:$0xff]  }
 0x5f2   :  { %11350 = vmatprep.subr.bf16.mxu0 %v18601_v55  ;;  %v18632_v55 = vld [vmem:[%s24727_s2 + $0x2860] ss:$24 sps:$4 sm:$0xff]   ;;  %12338 = vmatpush1.bf16.msra.mxu1 %v18734_v49  ;;  %v18685_v49 = vld [vmem:[%s24727_s2 + $0x2b94] ss:$24 sps:$4 sm:$0xff]  }
 0x5f5   :  { %11351 = vmatpush1.bf16.msra.mxu0 %v18599_v53  ;;  %v18637_v53 = vld [vmem:[%s24727_s2 + $0x2894] ss:$24 sps:$4 sm:$0xff]  }
 0x5f6   :  { %11352 = vmatprep.subr.bf16.mxu0 %v18604_v3  ;;  %v18739_v3 = vld [vmem:[%s24730_s5 + $0xa4] ss:$8 sps:$4 sm:$0xff]  }
 0x5f7   :  { %12339 = vmatprep.subr.bf16.mxu1 %v18739_v3  ;;  %v18686_v3 = vld [vmem:[%s24727_s2 + $0x2bc0] ss:$24 sps:$4 sm:$0xff]  }
 0x5f9   :  { %11353 = vmatpush1.bf16.msra.mxu0 %v18602_v8  ;;  %v18737_v8 = vld [vmem:[%s24730_s5 + $0xa0] ss:$8 sps:$4 sm:$0xff]  }
 0x5fa   :  { %11354 = vmatprep.subr.bf16.mxu0 %v18607_v24  ;;  %v18635_v24 = vld [vmem:[%s24727_s2 + $0x2890] ss:$24 sps:$4 sm:$0xff]   ;;  %12340 = vmatpush1.bf16.msra.mxu1 %v18737_v8  ;;  %v18691_v8 = vld [vmem:[%s24727_s2 + $0x2bf4] ss:$24 sps:$4 sm:$0xff]  }
 0x5fb   :  { %12341 = vmatprep.subr.bf16.mxu1 %v18742_v62  ;;  %v18692_v62 = vld [vmem:[%s24727_s2 + $0x2c20] ss:$24 sps:$4 sm:$0xff]  }
 0x5fd   :  { %11355 = vmatpush1.bf16.msra.mxu0 %v18605_v36  ;;  %v18740_v36 = vld [vmem:[%s24730_s5 + $0xb0] ss:$8 sps:$4 sm:$0xff]  }
 0x5fe   :  { %11356 = vmatprep.subr.bf16.mxu0 %v18610_v61  ;;  %v18638_v61 = vld [vmem:[%s24727_s2 + $0x28c0] ss:$24 sps:$4 sm:$0xff]   ;;  %12342 = vmatpush1.bf16.msra.mxu1 %v18740_v36  ;;  %v18697_v36 = vld [vmem:[%s24727_s2 + $0x2c54] ss:$24 sps:$4 sm:$0xff]  }
 0x5ff   :  { %12343 = vmatprep.subr.bf16.mxu1 %v18745_v22  ;;  %v18698_v22 = vld [vmem:[%s24727_s2 + $0x2c80] ss:$24 sps:$4 sm:$0xff]  }
 0x601   :  { %11357 = vmatpush1.bf16.msra.mxu0 %v18608_v30  ;;  %v18743_v30 = vld [vmem:[%s24730_s5 + $0xc0] ss:$8 sps:$4 sm:$0xff]  }
 0x602   :  { %11377 = vmatprep.subr.bf16.mxu0 %v18613_v27  ;;  %v18641_v27 = vld [vmem:[%s24727_s2 + $0x28f0] ss:$24 sps:$4 sm:$0xff]   ;;  %12344 = vmatpush1.bf16.msra.mxu1 %v18743_v30  ;;  %v18706_v30 = vld [vmem:[%s24727_s2 + $0x2cb4] ss:$24 sps:$4 sm:$0xff]  }
 0x603   :  { %12345 = vmatprep.subr.bf16.mxu1 %v18748_v10  ;;  %v18710_v10 = vld [vmem:[%s24727_s2 + $0x2ce0] ss:$24 sps:$4 sm:$0xff]  }
 0x604   :  { %11359 = vmatmul.mubr.bf16.vlgmr.msra.gmra.mrb[0].mxu0 %v22830_v39  ;;  %v18619_v39 = vld [vmem:[%s24727_s2 + $0x2774] ss:$24 sps:$4 sm:$0xff]  }
 0x605   :  { %11378 = vmatpush1.bf16.msra.mxu0 %v18611_v47  ;;  %11368 = vmatprep.mubr.bf16.mxu0 %v22633_v54  ;;  %v18622_v54 = vld [vmem:[%s24727_s2 + $0x27a4] ss:$24 sps:$4 sm:$0xff]   ;;  %v18746_v47 = vld [vmem:[%s24730_s5 + $0xd0] ss:$8 sps:$4 sm:$0xff]  }
 0x606   :  { %11379 = vmatprep.subr.bf16.mxu0 %v18616_v26  ;;  %v18644_v26 = vld [vmem:[%s24727_s2 + $0x2920] ss:$24 sps:$4 sm:$0xff]   ;;  %12346 = vmatpush1.bf16.msra.mxu1 %v18746_v47 }
 0x607   :  { %12347 = vmatprep.subr.bf16.mxu1 %v18751_v48 }
 0x609   :  { %11380 = vmatpush1.bf16.msra.mxu0 %v18614_v31  ;;  %v18754_v31 = vld [vmem:[%s24730_s5 + $0xf4] ss:$8 sps:$4 sm:$0xff]  }
 0x60a   :  { %11381 = vmatprep.subr.bf16.mxu0 %v18619_v39  ;;  %v18647_v39 = vld [vmem:[%s24727_s2 + $0x2950] ss:$24 sps:$4 sm:$0xff]   ;;  %12348 = vmatpush1.bf16.msra.mxu1 %v18749_v1 }
 0x60b   :  { %12349 = vmatprep.subr.bf16.mxu1 %v18754_v31 }
 0x60c   :  { %11369 = vmatmul.mubr.bf16.gmra.mrb[4].mxu0 %v22812_v28  ;;  %v18625_v28 = vld [vmem:[%s24727_s2 + $0x27d4] ss:$24 sps:$4 sm:$0xff]  }
 0x60d   :  { %11382 = vmatpush1.bf16.msra.mxu0 %v18617_v18  ;;  %11409 = vmatprep.mubr.bf16.mxu0 %v22872_v21  ;;  %v18623_v21 = vld [vmem:[%s24727_s2 + $0x27d0] ss:$24 sps:$4 sm:$0xff]  }
 0x60e   :  { %11383 = vmatprep.subr.bf16.mxu0 %v18622_v54  ;;  %v18752_v18 = vld [vmem:[%s24730_s5 + $0xf0] ss:$8 sps:$4 sm:$0xff]  }
 0x60f   :  { %v18650_v54 = vld [vmem:[%s24727_s2 + $0x2980] ss:$24 sps:$4 sm:$0xff]   ;;  %12350 = vmatpush1.bf16.msra.mxu1 %v18752_v18 }
 0x610   :  { %12360 = vmatprep.subr.bf16.mxu1 %v18757_v2 }
 0x611   :  { %11384 = vmatpush1.bf16.msra.mxu0 %v18620_v63  ;;  %v18658_v63 = vld [vmem:[%s24727_s2 + $0x29e4] ss:$24 sps:$4 sm:$0xff]  }
 0x612   :  { %11385 = vmatprep.subr.bf16.mxu0 %v18625_v28  ;;  %v18656_v28 = vld [vmem:[%s24727_s2 + $0x29e0] ss:$24 sps:$4 sm:$0xff]  }
 0x615   :  { %11386 = vmatpush1.bf16.msra.mxu0 %v18623_v21  ;;  %v18664_v21 = vld [vmem:[%s24727_s2 + $0x2a44] ss:$24 sps:$4 sm:$0xff]  }
 0x616   :  { %11387 = vmatprep.subr.bf16.mxu0 %v18628_v45  ;;  %v18662_v45 = vld [vmem:[%s24727_s2 + $0x2a40] ss:$24 sps:$4 sm:$0xff]  }
 0x619   :  { %11388 = vmatpush1.bf16.msra.mxu0 %v18626_v38  ;;  %v18665_v38 = vld [vmem:[%s24727_s2 + $0x2a70] ss:$24 sps:$4 sm:$0xff]  }
 0x61a   :  { %11389 = vmatprep.subr.bf16.mxu0 %v18631_v40  ;;  %v18673_v40 = vld [vmem:[%s24727_s2 + $0x2ad4] ss:$24 sps:$4 sm:$0xff]  }
 0x61d   :  { %11390 = vmatpush1.bf16.msra.mxu0 %v18629_v44  ;;  %v18677_v44 = vld [vmem:[%s24727_s2 + $0x2b30] ss:$24 sps:$4 sm:$0xff]  }
 0x61e   :  { %11391 = vmatprep.subr.bf16.mxu0 %v18634_v17  ;;  %v18682_v17 = vld [vmem:[%s24727_s2 + $0x2b64] ss:$24 sps:$4 sm:$0xff]  }
 0x621   :  { %11392 = vmatpush1.bf16.msra.mxu0 %v18632_v55  ;;  %v18683_v55 = vld [vmem:[%s24727_s2 + $0x2b90] ss:$24 sps:$4 sm:$0xff]  }
 0x622   :  { %11393 = vmatprep.subr.bf16.mxu0 %v18637_v53  ;;  %v18688_v53 = vld [vmem:[%s24727_s2 + $0x2bc4] ss:$24 sps:$4 sm:$0xff]  }
 0x625   :  { %11394 = vmatpush1.bf16.msra.mxu0 %v18635_v24  ;;  %v18689_v24 = vld [vmem:[%s24727_s2 + $0x2bf0] ss:$24 sps:$4 sm:$0xff]  }
 0x626   :  { %11395 = vmatprep.subr.bf16.mxu0 %v18640_v32  ;;  %v18694_v32 = vld [vmem:[%s24727_s2 + $0x2c24] ss:$24 sps:$4 sm:$0xff]  }
 0x629   :  { %11396 = vmatpush1.bf16.msra.mxu0 %v18638_v61  ;;  %v18695_v61 = vld [vmem:[%s24727_s2 + $0x2c50] ss:$24 sps:$4 sm:$0xff]  }
 0x62a   :  { %11397 = vmatprep.subr.bf16.mxu0 %v18643_v34  ;;  %v18700_v34 = vld [vmem:[%s24727_s2 + $0x2c84] ss:$24 sps:$4 sm:$0xff]  }
 0x62d   :  { %11398 = vmatpush1.bf16.msra.mxu0 %v18641_v27  ;;  %v18704_v27 = vld [vmem:[%s24727_s2 + $0x2cb0] ss:$24 sps:$4 sm:$0xff]  }
 0x62e   :  { %11399 = vmatprep.subr.bf16.mxu0 %v18646_v50  ;;  %v18712_v50 = vld [vmem:[%s24727_s2 + $0x2ce4] ss:$24 sps:$4 sm:$0xff]  }
 0x631   :  { %11400 = vmatpush1.bf16.msra.mxu0 %v18644_v26 }
 0x632   :  { %11401 = vmatprep.subr.bf16.mxu0 %v18649_v19 }
 0x635   :  { %11402 = vmatpush1.bf16.msra.mxu0 %v18647_v39 }
 0x636   :  { %11403 = vmatprep.subr.bf16.mxu0 %v18652_v56 }
 0x639   :  { %11404 = vmatpush1.bf16.msra.mxu0 %v18650_v54 }
 0x63a   :  { %11405 = vmatprep.subr.bf16.mxu0 %v18655_v43 }
 0x63d   :  { %11406 = vmatpush1.bf16.msra.mxu0 %v18653_v35 }
 0x63e   :  { %11407 = vmatprep.subr.bf16.mxu0 %v18658_v63  ;;  %v11598_v63 = vlaneseq }
 0x641   :  { %11408 = vmatpush1.bf16.msra.mxu0 %v18656_v28 }
 0x642   :  { %11428 = vmatprep.subr.bf16.mxu0 %v18661_v25 }
 0x644   :  { %11410 = vmatmul.mubr.bf16.vlgmr.msra.gmra.mrb[0].mxu0 %v23052_v33  ;;  %v18670_v33 = vld [vmem:[%s24727_s2 + $0x2aa4] ss:$24 sps:$4 sm:$0xff]  }
 0x645   :  { %11429 = vmatpush1.bf16.msra.mxu0 %v18659_v7  ;;  %11419 = vmatprep.mubr.bf16.mxu0 %v22855_v16  ;;  %v18668_v16 = vld [vmem:[%s24727_s2 + $0x2aa0] ss:$24 sps:$4 sm:$0xff]  }
 0x646   :  { %11430 = vmatprep.subr.bf16.mxu0 %v18664_v21 }
 0x649   :  { %11431 = vmatpush1.bf16.msra.mxu0 %v18662_v45 }
 0x64a   :  { %11432 = vmatprep.subr.bf16.mxu0 %v18667_v9 }
 0x64c   :  { %11420 = vmatmul.mubr.bf16.gmra.mrb[4].mxu0 %v23034_v51  ;;  %v18676_v51 = vld [vmem:[%s24727_s2 + $0x2b04] ss:$24 sps:$4 sm:$0xff]  }
 0x64d   :  { %11433 = vmatpush1.bf16.msra.mxu0 %v18665_v38  ;;  %11460 = vmatprep.mubr.bf16.mxu0 %v23094_v42  ;;  %v18674_v42 = vld [vmem:[%s24727_s2 + $0x2b00] ss:$24 sps:$4 sm:$0xff]   ;;  %s19048_s2 = smov [#allocation3]  }
 0x64e   :  { %11434 = vmatprep.subr.bf16.mxu0 %v18670_v33  ;;  %s13305_s0 = sshll.u32 %s19048_s2, 4  ;;  %s13306_s0 = int_to_ptr.vmem [resolvable:$true] %s13305_s0 }
 0x64f   :  { %p19027_p1 = scmp.lt.s32.totalorder %s13306_s0, %s13306_s0 }
 0x651   :  { %11435 = vmatpush1.bf16.msra.mxu0 %v18668_v16 }
 0x652   :  { %11436 = vmatprep.subr.bf16.mxu0 %v18673_v40 }
 0x655   :  { %11437 = vmatpush1.bf16.msra.mxu0 %v18671_v46 }
 0x656   :  { %11438 = vmatprep.subr.bf16.mxu0 %v18676_v51 }
 0x659   :  { %11439 = vmatpush1.bf16.msra.mxu0 %v18674_v42 }
 0x65a   :  { %11440 = vmatprep.subr.bf16.mxu0 %v18679_v29 }
 0x65d   :  { %11441 = vmatpush1.bf16.msra.mxu0 %v18677_v44  ;;  %v24096_v44 = vld [vmem:[%s24728_s3] sm:$0x3f]  ;;  %s19022_s3 = scalar_lea.vmem %s13306_s0, 32 }
 0x65e   :  { %11442 = vmatprep.subr.bf16.mxu0 %v18682_v17  ;;  %p19023_p0 = scmp.ne.s32.totalorder %s13306_s0, %s19022_s3  ;;  %p19028_p2 = scmp.lt.s32.totalorder %s19022_s3, %s19022_s3 }
 0x660   :  { %p19029_p3 = por %p19028_p2, %p19027_p1 }
 0x661   :  { %11443 = vmatpush1.bf16.msra.mxu0 %v18680_v41 }
 0x662   :  { %11444 = vmatprep.subr.bf16.mxu0 %v18685_v49  ;;  %p19030_p4 = pnand %p19029_p3, %p19023_p0 }
 0x665   :  { %11445 = vmatpush1.bf16.msra.mxu0 %v18683_v55 }
 0x666   :  { %11446 = vmatprep.subr.bf16.mxu0 %v18688_v53 }
 0x669   :  { %11447 = vmatpush1.bf16.msra.mxu0 %v18686_v3 }
 0x66a   :  { %11448 = vmatprep.subr.bf16.mxu0 %v18691_v8 }
 0x66d   :  { %11449 = vmatpush1.bf16.msra.mxu0 %v18689_v24 }
 0x66e   :  { %11450 = vmatprep.subr.bf16.mxu0 %v18694_v32 }
 0x671   :  { %11451 = vmatpush1.bf16.msra.mxu0 %v18692_v62 }
 0x672   :  { %11452 = vmatprep.subr.bf16.mxu0 %v18697_v36 }
 0x675   :  { %11453 = vmatpush1.bf16.msra.mxu0 %v18695_v61 }
 0x676   :  { %11454 = vmatprep.subr.bf16.mxu0 %v18700_v34 }
 0x679   :  { %11455 = vmatpush1.bf16.msra.mxu0 %v18698_v22 }
 0x67a   :  { %11456 = vmatprep.subr.bf16.mxu0 %v18706_v30 }
 0x67d   :  { %11457 = vmatpush1.bf16.msra.mxu0 %v18704_v27 }
 0x67e   :  { %11458 = vmatprep.subr.bf16.mxu0 %v18712_v50 }
 0x681   :  { %11459 = vmatpush1.bf16.msra.mxu0 %v18710_v10 }
 0x684   :  { %11461 = vmatmul.mubr.bf16.vlgmr.msra.gmra.mrb[0].mxu0 %v23266_v57 }
 0x685   :  { %11470 = vmatprep.mubr.bf16.mxu0 %v23077_v60 }
 0x68c   :  { %11471 = vmatmul.mubr.bf16.gmra.mrb[4].mxu0 %v23256_v20 }
 0x697   :  { %v11156_v47 = vpop.f32.mrb[8].mxu0 }
 0x698   :  { %v16176_v26 = vadd.f32 %v11156_v47, %v20903_v4  ;;  %v11158_v19 = vpop.f32.mrb[9].mxu0 }
 0x699   :  { %v16177_v48 = vadd.f32 %v11158_v19, %v20911_v5  ;;  %v11160_v1 = vpop.f32.mrb[10].mxu0 }
 0x69a   :  { %v16178_v31 = vadd.f32 %v11160_v1, %v20913_v6  ;;  %v11162_v39 = vpop.f32.mrb[11].mxu0  ;;  %v11497_v56 = vrot.slane %v16176_v26, 4 }
 0x69b   :  { %v16179_v18 = vadd.f32 %v11162_v39, %v20921_v13  ;;  %v11503_v54 = vrot.slane %v16177_v48, 4  ;;  %v18755_v39 = vld [vmem:[%s24730_s5 + $0x100] ss:$8 sps:$4 sm:$0xff]  }
 0x69c   :  { %v11498_v43 = vmax.f32 %v16176_v26, %v11497_v56  ;;  %v11534_v5 = vsel %vm11533_vm4, %v16178_v31, -inf }
 0x69d   :  { %v11504_v2 = vmax.f32 %v16177_v48, %v11503_v54  ;;  %v11544_v7 = vsel %vm11533_vm4, %v16179_v18, -inf  ;;  %v18760_v18 = vld [vmem:[%s24730_s5 + $0x114] ss:$8 sps:$4 sm:$0xff]  }
 0x69e   :  { %v11499_v25 = vrot.slane %v11498_v43, 2 }
 0x69f   :  { %v11166_v57 = vpop.f32.mrb[12].mxu0  ;;  %v11505_v45 = vrot.slane %v11504_v2, 2 }
 0x6a0   :  { %v16180_v60 = vadd.f32 %v11166_v57, %v21115_v37  ;;  %v11168_v20 = vpop.f32.mrb[13].mxu0  ;;  %v24090_v37 = vshrl.u32 %v11598_v63, 7  ;;  %v18761_v57 = vld [vmem:[%s24730_s5 + $0x120] ss:$8 sps:$4 sm:$0xff]   ;;  %v18770_v63 = vld [vmem:[%s24730_s5 + $0x150] ss:$8 sps:$4 sm:$0xff]  }
 0x6a1   :  { %v16181_v35 = vadd.f32 %v11168_v20, %v21123_v14  ;;  %v11170_v4 = vpop.f32.mrb[14].mxu0  ;;  %v11500_v14 = vmax.f32 %v11498_v43, %v11499_v25  ;;  %v11506_v40 = vmax.f32 %v11504_v2, %v11505_v45  ;;  %v18763_v43 = vld [vmem:[%s24730_s5 + $0x124] ss:$8 sps:$4 sm:$0xff]   ;;  %v18766_v2 = vld [vmem:[%s24730_s5 + $0x134] ss:$8 sps:$4 sm:$0xff]  }
 0x6a2   :  { %v11536_v28 = vsel %vm11535_vm5, %v16180_v60, -inf  ;;  %v11171_v6 = vpop.f32.mrb[15].mxu0  ;;  %v11612_v42 = vsub.s32 3, %v24090_v37  ;;  %v11600_v17 = vsub.s32 0, %v24090_v37  ;;  %v11604_v55 = vsub.s32 1, %v24090_v37 }
 0x6a3   :  { %v11537_v13 = vmax.f32 %v11534_v5, %v11536_v28  ;;  %v11545_v21 = vsel %vm11535_vm5, %v16181_v35, -inf  ;;  %v11501_v41 = vrot.slane %v11500_v14, 1  ;;  %v11507_v53 = vrot.slane %v11506_v40, 1  ;;  %v18764_v60 = vld [vmem:[%s24730_s5 + $0x130] ss:$8 sps:$4 sm:$0xff]  }
 0x6a4   :  { %v11546_v9 = vmax.f32 %v11544_v7, %v11545_v21  ;;  %v11613_v24 = vrot.slane %v24096_v44, %v11612_v42  ;;  %v11601_v62 = vrot.slane %v24096_v44, %v11600_v17  ;;  %v11605_v34 = vrot.slane %v24096_v44, %v11604_v55  ;;  %v18769_v20 = vld [vmem:[%s24730_s5 + $0x144] ss:$8 sps:$4 sm:$0xff]   ;;  %v18767_v35 = vld [vmem:[%s24730_s5 + $0x140] ss:$8 sps:$4 sm:$0xff]   ;;  %v18772_v4 = vld [vmem:[%s24730_s5 + $0x154] ss:$8 sps:$4 sm:$0xff]  }
 0x6a5   :  { %v11538_v38 = vrot.slane %v11537_v13, 4  ;;  %v11502_v36 = vmax.f32 %v11500_v14, %v11501_v41  ;;  %v11508_v22 = vmax.f32 %v11506_v40, %v11507_v53  ;;  %v18775_v5 = vld [vmem:[%s24730_s5 + $0x164] ss:$8 sps:$4 sm:$0xff]   ;;  %v18773_v28 = vld [vmem:[%s24730_s5 + $0x160] ss:$8 sps:$4 sm:$0xff]  }
 0x6a6   :  { %v11547_v33 = vrot.slane %v11546_v9, 4  ;;  %v11631_v50 = vadd.f32 %v11613_v24, %v23655_v58  ;;  %v18758_v58 = vld [vmem:[%s24730_s5 + $0x110] ss:$8 sps:$4 sm:$0xff]   ;;  %v18778_v6 = vld [vmem:[%s24730_s5 + $0x174] ss:$8 sps:$4 sm:$0xff]  }
 0x6a7   :  { %v11539_v16 = vmax.f32 %v11537_v13, %v11538_v38  ;;  %v18776_v25 = vld [vmem:[%s24730_s5 + $0x170] ss:$8 sps:$4 sm:$0xff]   ;;  %v18781_v7 = vld [vmem:[%s24730_s5 + $0x184] ss:$8 sps:$4 sm:$0xff]   ;;  %v18779_v13 = vld [vmem:[%s24730_s5 + $0x180] ss:$8 sps:$4 sm:$0xff]  }
 0x6a8   :  { %v11548_v46 = vmax.f32 %v11546_v9, %v11547_v33  ;;  %v11637_v1 = vmax.f32 %v11631_v50, 0.0  ;;  %v18784_v21 = vld [vmem:[%s24730_s5 + $0x194] ss:$8 sps:$4 sm:$0xff]   ;;  %v18782_v45 = vld [vmem:[%s24730_s5 + $0x190] ss:$8 sps:$4 sm:$0xff]  }
 0x6a9   :  { %v11540_v51 = vrot.slane %v11539_v16, 2  ;;  %v18787_v9 = vld [vmem:[%s24730_s5 + $0x1a4] ss:$8 sps:$4 sm:$0xff]   ;;  %v18785_v38 = vld [vmem:[%s24730_s5 + $0x1a0] ss:$8 sps:$4 sm:$0xff]  }
 0x6aa   :  { %v11549_v29 = vrot.slane %v11548_v46, 2  ;;  %v11740_v54 = vpack.c.bf16 %v11637_v1, %v11637_v1  ;;  %v18790_v33 = vld [vmem:[%s24730_s5 + $0x1b4] ss:$8 sps:$4 sm:$0xff]   ;;  %v18788_v14 = vld [vmem:[%s24730_s5 + $0x1b0] ss:$8 sps:$4 sm:$0xff]  }
 0x6ab   :  { %v11541_v49 = vmax.f32 %v11539_v16, %v11540_v51  ;;  %v18793_v16 = vld [vmem:[%s24730_s5 + $0x1c4] ss:$8 sps:$4 sm:$0xff]   ;;  %v18791_v40 = vld [vmem:[%s24730_s5 + $0x1c0] ss:$8 sps:$4 sm:$0xff]   ;;  %v11608_v51 = vsub.s32 2, %v24090_v37 }
 0x6ac   :  { %v11550_v3 = vmax.f32 %v11548_v46, %v11549_v29  ;;  %v18796_v46 = vld [vmem:[%s24730_s5 + $0x1d4] ss:$8 sps:$4 sm:$0xff]   ;;  %v18794_v42 = vld [vmem:[%s24730_s5 + $0x1d0] ss:$8 sps:$4 sm:$0xff]   ;;  %v18799_v29 = vld [vmem:[%s24730_s5 + $0x1e4] ss:$8 sps:$4 sm:$0xff]  }
 0x6ad   :  { %v11542_v8 = vrot.slane %v11541_v49, 1  ;;  %v11609_v41 = vrot.slane %v24096_v44, %v11608_v51  ;;  %v18802_v53 = vld [vmem:[%s24730_s5 + $0x1f4] ss:$8 sps:$4 sm:$0xff]   ;;  %v18817_v50 = vld [vmem:[%s24730_s5 + $0x244] ss:$8 sps:$4 sm:$0xff]  }
 0x6ae   :  { %v11551_v32 = vrot.slane %v11550_v3, 1  ;;  %v18826_v1 = vld [vmem:[%s24730_s5 + $0x274] ss:$8 sps:$4 sm:$0xff]  }
 0x6af   :  { %v11543_v61 = vmax.f32 %v11541_v49, %v11542_v8  ;;  %v18797_v49 = vld [vmem:[%s24730_s5 + $0x1e0] ss:$8 sps:$4 sm:$0xff]   ;;  %v18800_v8 = vld [vmem:[%s24730_s5 + $0x1f0] ss:$8 sps:$4 sm:$0xff]  }
 0x6b0   :  { %v11552_v30 = vmax.f32 %v11550_v3, %v11551_v32  ;;  %v11630_v3 = vadd.f32 %v11609_v41, %v23649_v15  ;;  %v18805_v32 = vld [vmem:[%s24730_s5 + $0x204] ss:$8 sps:$4 sm:$0xff]   ;;  %v18808_v15 = vld [vmem:[%s24730_s5 + $0x214] ss:$8 sps:$4 sm:$0xff]  }
 0x6b1   :  { %v11590_v27 = vsel %vm11589_vm6, %v11502_v36, %v11543_v61  ;;  %v18806_v61 = vld [vmem:[%s24730_s5 + $0x210] ss:$8 sps:$4 sm:$0xff]  }
 0x6b2   :  { %v11591_v10 = vsel %vm11589_vm6, %v11508_v22, %v11552_v30  ;;  %v11628_v47 = vadd.f32 %v11601_v62, %v11590_v27  ;;  %v11636_v24 = vmax.f32 %v11630_v3, 0.0  ;;  %v18803_v62 = vld [vmem:[%s24730_s5 + $0x200] ss:$8 sps:$4 sm:$0xff]   ;;  %v18814_v30 = vld [vmem:[%s24730_s5 + $0x234] ss:$8 sps:$4 sm:$0xff]  }
 0x6b3   :  { %v11629_v26 = vadd.f32 %v11605_v34, %v11591_v10  ;;  %v18811_v34 = vld [vmem:[%s24730_s5 + $0x224] ss:$8 sps:$4 sm:$0xff]   ;;  %v18809_v22 = vld [vmem:[%s24730_s5 + $0x220] ss:$8 sps:$4 sm:$0xff]   ;;  %v18812_v27 = vld [vmem:[%s24730_s5 + $0x230] ss:$8 sps:$4 sm:$0xff]  }
 0x6b4   :  { %v11634_v19 = vmax.f32 %v11628_v47, 0.0  ;;  %v11739_v36 = vpack.c.bf16 %v11636_v24, %v11636_v24  ;;  %v18815_v10 = vld [vmem:[%s24730_s5 + $0x240] ss:$8 sps:$4 sm:$0xff]   ;;  %v18820_v47 = vld [vmem:[%s24730_s5 + $0x254] ss:$8 sps:$4 sm:$0xff]  }
 0x6b5   :  { %v11635_v48 = vmax.f32 %v11629_v26, 0.0  ;;  %v18818_v26 = vld [vmem:[%s24730_s5 + $0x250] ss:$8 sps:$4 sm:$0xff]  }
 0x6b6   :  { %v11737_v56 = vpack.c.bf16 %v11634_v19, %v11634_v19  ;;  %v18823_v19 = vld [vmem:[%s24730_s5 + $0x264] ss:$8 sps:$4 sm:$0xff]  }
 0x6b7   :  { %v11738_v31 = vpack.c.bf16 %v11635_v48, %v11635_v48  ;;  %v18821_v48 = vld [vmem:[%s24730_s5 + $0x260] ss:$8 sps:$4 sm:$0xff]  }
 0x6b9   :  { %12351 = vmatprep.mubr.bf16.mxu1 %v11738_v31  ;;  %v18824_v31 = vld [vmem:[%s24730_s5 + $0x270] ss:$8 sps:$4 sm:$0xff]  }
 0x6ba   :  { %12352 = vmatmul.mubr.bf16.vlgmr.msra.gmra.mrb[24].mxu1 %v11737_v56  ;;  %v18827_v56 = vld [vmem:[%s24730_s5 + $0x280] ss:$8 sps:$4 sm:$0xff]  }
 0x6bb   :  { %12361 = vmatpush1.bf16.msra.mxu1 %v18755_v39  ;;  %12392 = vmatprep.mubr.bf16.mxu1 %v11740_v54  ;;  %v18829_v39 = vld [vmem:[%s24730_s5 + $0x284] ss:$8 sps:$4 sm:$0xff]   ;;  %v18830_v54 = vld [vmem:[%s24730_s5 + $0x290] ss:$8 sps:$4 sm:$0xff]  }
 0x6bc   :  { %12362 = vmatprep.subr.bf16.mxu1 %v18760_v18  ;;  %v18832_v18 = vld [vmem:[%s24730_s5 + $0x294] ss:$8 sps:$4 sm:$0xff]  }
 0x6bf   :  { %12363 = vmatpush1.bf16.msra.mxu1 %v18758_v58  ;;  %v18835_v58 = vld [vmem:[%s24730_s5 + $0x2a4] ss:$8 sps:$4 sm:$0xff]  }
 0x6c0   :  { %12364 = vmatprep.subr.bf16.mxu1 %v18763_v43  ;;  %v18833_v43 = vld [vmem:[%s24730_s5 + $0x2a0] ss:$8 sps:$4 sm:$0xff]  }
 0x6c3   :  { %12365 = vmatpush1.bf16.msra.mxu1 %v18761_v57  ;;  %v18838_v57 = vld [vmem:[%s24730_s5 + $0x2b4] ss:$8 sps:$4 sm:$0xff]  }
 0x6c4   :  { %12366 = vmatprep.subr.bf16.mxu1 %v18766_v2  ;;  %v18836_v2 = vld [vmem:[%s24730_s5 + $0x2b0] ss:$8 sps:$4 sm:$0xff]  }
 0x6c7   :  { %12367 = vmatpush1.bf16.msra.mxu1 %v18764_v60  ;;  %v18841_v60 = vld [vmem:[%s24730_s5 + $0x2c4] ss:$8 sps:$4 sm:$0xff]  }
 0x6c8   :  { %12368 = vmatprep.subr.bf16.mxu1 %v18769_v20  ;;  %v18839_v20 = vld [vmem:[%s24730_s5 + $0x2c0] ss:$8 sps:$4 sm:$0xff]  }
 0x6cb   :  { %12369 = vmatpush1.bf16.msra.mxu1 %v18767_v35  ;;  %v18844_v35 = vld [vmem:[%s24730_s5 + $0x2d4] ss:$8 sps:$4 sm:$0xff]  }
 0x6cc   :  { %12370 = vmatprep.subr.bf16.mxu1 %v18772_v4  ;;  %v18842_v4 = vld [vmem:[%s24730_s5 + $0x2d0] ss:$8 sps:$4 sm:$0xff]  }
 0x6cf   :  { %12371 = vmatpush1.bf16.msra.mxu1 %v18770_v63  ;;  %v18847_v63 = vld [vmem:[%s24730_s5 + $0x2e4] ss:$8 sps:$4 sm:$0xff]  }
 0x6d0   :  { %12372 = vmatprep.subr.bf16.mxu1 %v18775_v5  ;;  %v18845_v5 = vld [vmem:[%s24730_s5 + $0x2e0] ss:$8 sps:$4 sm:$0xff]  }
 0x6d3   :  { %12373 = vmatpush1.bf16.msra.mxu1 %v18773_v28  ;;  %v18850_v28 = vld [vmem:[%s24730_s5 + $0x2f4] ss:$8 sps:$4 sm:$0xff]  }
 0x6d4   :  { %12374 = vmatprep.subr.bf16.mxu1 %v18778_v6  ;;  %v18848_v6 = vld [vmem:[%s24730_s5 + $0x2f0] ss:$8 sps:$4 sm:$0xff]  }
 0x6d7   :  { %12375 = vmatpush1.bf16.msra.mxu1 %v18776_v25  ;;  %v18853_v25 = vld [vmem:[%s24729_s4 + $0x4] ss:$8 sps:$4 sm:$0xff]  }
 0x6d8   :  { %12376 = vmatprep.subr.bf16.mxu1 %v18781_v7 }
 0x6db   :  { %12377 = vmatpush1.bf16.msra.mxu1 %v18779_v13 }
 0x6dc   :  { %12378 = vmatprep.subr.bf16.mxu1 %v18784_v21 }
 0x6df   :  { %12379 = vmatpush1.bf16.msra.mxu1 %v18782_v45 }
 0x6e0   :  { %12380 = vmatprep.subr.bf16.mxu1 %v18787_v9 }
 0x6e3   :  { %12381 = vmatpush1.bf16.msra.mxu1 %v18785_v38 }
 0x6e4   :  { %12382 = vmatprep.subr.bf16.mxu1 %v18790_v33 }
 0x6e7   :  { %12383 = vmatpush1.bf16.msra.mxu1 %v18788_v14 }
 0x6e8   :  { %12384 = vmatprep.subr.bf16.mxu1 %v18793_v16 }
 0x6eb   :  { %12385 = vmatpush1.bf16.msra.mxu1 %v18791_v40 }
 0x6ec   :  { %12386 = vmatprep.subr.bf16.mxu1 %v18796_v46 }
 0x6ef   :  { %12387 = vmatpush1.bf16.msra.mxu1 %v18794_v42 }
 0x6f0   :  { %12388 = vmatprep.subr.bf16.mxu1 %v18799_v29 }
 0x6f3   :  { %12389 = vmatpush1.bf16.msra.mxu1 %v18797_v49 }
 0x6f4   :  { %12390 = vmatprep.subr.bf16.mxu1 %v18802_v53 }
 0x6f7   :  { %12391 = vmatpush1.bf16.msra.mxu1 %v18800_v8 }
 0x6f8   :  { %12401 = vmatprep.subr.bf16.mxu1 %v18805_v32 }
 0x6fa   :  { %12393 = vmatmul.mubr.bf16.vlgmr.msra.gmra.mrb[28].mxu1 %v11739_v36 }
 0x6fb   :  { %12402 = vmatpush1.bf16.msra.mxu1 %v18803_v62 }
 0x6fc   :  { %12403 = vmatprep.subr.bf16.mxu1 %v18808_v15 }
 0x6ff   :  { %12404 = vmatpush1.bf16.msra.mxu1 %v18806_v61 }
 0x700   :  { %12405 = vmatprep.subr.bf16.mxu1 %v18811_v34 }
 0x703   :  { %12406 = vmatpush1.bf16.msra.mxu1 %v18809_v22 }
 0x704   :  { %12407 = vmatprep.subr.bf16.mxu1 %v18814_v30 }
 0x707   :  { %12408 = vmatpush1.bf16.msra.mxu1 %v18812_v27 }
 0x708   :  { %12409 = vmatprep.subr.bf16.mxu1 %v18817_v50 }
 0x70b   :  { %12410 = vmatpush1.bf16.msra.mxu1 %v18815_v10 }
 0x70c   :  { %12411 = vmatprep.subr.bf16.mxu1 %v18820_v47  ;;  %v11616_v47 = vsub.s32 4, %v24090_v37 }
 0x70f   :  { %12412 = vmatpush1.bf16.msra.mxu1 %v18818_v26 }
 0x710   :  { %12413 = vmatprep.subr.bf16.mxu1 %v18823_v19 }
 0x713   :  { %12414 = vmatpush1.bf16.msra.mxu1 %v18821_v48  ;;  %v11620_v48 = vsub.s32 5, %v24090_v37 }
 0x714   :  { %12415 = vmatprep.subr.bf16.mxu1 %v18826_v1 }
 0x717   :  { %12416 = vmatpush1.bf16.msra.mxu1 %v18824_v31 }
 0x718   :  { %12417 = vmatprep.subr.bf16.mxu1 %v18829_v39 }
 0x71b   :  { %12418 = vmatpush1.bf16.msra.mxu1 %v18827_v56  ;;  %v24323_v56 = vld [vmem:[%s24726_s1] sm:$0x3f] }
 0x71c   :  { %12419 = vmatprep.subr.bf16.mxu1 %v18832_v18 }
 0x71f   :  { %12420 = vmatpush1.bf16.msra.mxu1 %v18830_v54 }
 0x720   :  { %12421 = vmatprep.subr.bf16.mxu1 %v18835_v58  ;;  %v11617_v58 = vrot.slane %v24096_v44, %v11616_v47  ;;  %v18896_v47 = vld [vmem:[%s24729_s4 + $0xf0] ss:$8 sps:$4 sm:$0xff]  }
 0x723   :  { %12422 = vmatpush1.bf16.msra.mxu1 %v18833_v43 }
 0x724   :  { %12423 = vmatprep.subr.bf16.mxu1 %v18838_v57 }
 0x727   :  { %12424 = vmatpush1.bf16.msra.mxu1 %v18836_v2  ;;  %v11621_v2 = vrot.slane %v24096_v44, %v11620_v48  ;;  %v18851_v44 = vld [vmem:[%s24729_s4] ss:$8 sps:$4 sm:$0xff]  }
 0x728   :  { %12425 = vmatprep.subr.bf16.mxu1 %v18841_v60  ;;  %v18899_v48 = vld [vmem:[%s24729_s4 + $0x100] ss:$8 sps:$4 sm:$0xff]  }
 0x72b   :  { %12426 = vmatpush1.bf16.msra.mxu1 %v18839_v20 }
 0x72c   :  { %12427 = vmatprep.subr.bf16.mxu1 %v18844_v35 }
 0x72f   :  { %12428 = vmatpush1.bf16.msra.mxu1 %v18842_v4 }
 0x730   :  { %12429 = vmatprep.subr.bf16.mxu1 %v18847_v63 }
 0x733   :  { %12430 = vmatpush1.bf16.msra.mxu1 %v18845_v5 }
 0x734   :  { %12431 = vmatprep.subr.bf16.mxu1 %v18850_v28 }
 0x737   :  { %12432 = vmatpush1.bf16.msra.mxu1 %v18848_v6 }
 0x738   :  { %12976 = vmatprep.subr.bf16.mxu1 %v18853_v25 }
 0x757   :  { %v11462_v7 = vpop.f32.mrb[0].mxu0 }
 0x758   :  { %v16182_v13 = vadd.f32 %v11462_v7, %v22229_v23  ;;  %v11464_v21 = vpop.f32.mrb[1].mxu0 }
 0x759   :  { %v16183_v45 = vadd.f32 %v11464_v21, %v22237_v12  ;;  %v11466_v9 = vpop.f32.mrb[2].mxu0 }
 0x75a   :  { %v16184_v38 = vadd.f32 %v11466_v9, %v22239_v11  ;;  %v11468_v33 = vpop.f32.mrb[3].mxu0  ;;  %v11521_v14 = vrot.slane %v16182_v13, 4  ;;  %v19047_v11 = vmov 1966171168   ;;  %v18856_v9 = vld [vmem:[%s24729_s4 + $0x14] ss:$8 sps:$4 sm:$0xff]  }
 0x75b   :  { %v16185_v16 = vadd.f32 %v11468_v33, %v22247_v0  ;;  %v11527_v40 = vrot.slane %v16183_v45, 4  ;;  %v12445_v8 = vunpack.c.l.s4 %v19047_v11  ;;  %v18859_v33 = vld [vmem:[%s24729_s4 + $0x24] ss:$8 sps:$4 sm:$0xff]   ;;  %v18874_v11 = vld [vmem:[%s24729_s4 + $0x74] ss:$8 sps:$4 sm:$0xff]  }
 0x75c   :  { %v11522_v46 = vmax.f32 %v16182_v13, %v11521_v14  ;;  %v11571_v53 = vsel %vm11533_vm4, %v16184_v38, -inf  ;;  %v18854_v38 = vld [vmem:[%s24729_s4 + $0x10] ss:$8 sps:$4 sm:$0xff]   ;;  %v18857_v14 = vld [vmem:[%s24729_s4 + $0x20] ss:$8 sps:$4 sm:$0xff]  }
 0x75d   :  { %v11528_v42 = vmax.f32 %v16183_v45, %v11527_v40  ;;  %v11580_v0 = vsel %vm11533_vm4, %v16185_v16, -inf  ;;  %v12446_v22 = vunpack.c.0.s8 %v12445_v8  ;;  %v18862_v16 = vld [vmem:[%s24729_s4 + $0x34] ss:$8 sps:$4 sm:$0xff]   ;;  %v18860_v40 = vld [vmem:[%s24729_s4 + $0x30] ss:$8 sps:$4 sm:$0xff]  }
 0x75e   :  { %v11523_v24 = vrot.slane %v11522_v46, 2  ;;  %v18872_v8 = vld [vmem:[%s24729_s4 + $0x70] ss:$8 sps:$4 sm:$0xff]  }
 0x75f   :  { %v11472_v51 = vpop.f32.mrb[4].mxu0  ;;  %v11529_v36 = vrot.slane %v11528_v42, 2  ;;  %v24318_v1 = vsub.s32 %v12446_v22, %v24090_v37  ;;  %v18892_v22 = vld [vmem:[%s24729_s4 + $0xd4] ss:$8 sps:$4 sm:$0xff]  }
 0x760   :  { %v16186_v29 = vadd.f32 %v11472_v51, %v22440_v59  ;;  %v11474_v41 = vpop.f32.mrb[5].mxu0  ;;  %v11524_v34 = vmax.f32 %v11522_v46, %v11523_v24  ;;  %v18865_v46 = vld [vmem:[%s24729_s4 + $0x44] ss:$8 sps:$4 sm:$0xff]   ;;  %v18863_v51 = vld [vmem:[%s24729_s4 + $0x40] ss:$8 sps:$4 sm:$0xff]  }
 0x761   :  { %v16187_v49 = vadd.f32 %v11474_v41, %v22445_v52  ;;  %v11476_v23 = vpop.f32.mrb[6].mxu0  ;;  %v11530_v30 = vmax.f32 %v11528_v42, %v11529_v36  ;;  %v24329_v60 = vrot.slane %v24323_v56, %v24318_v1  ;;  %v18868_v42 = vld [vmem:[%s24729_s4 + $0x54] ss:$8 sps:$4 sm:$0xff]   ;;  %v18871_v41 = vld [vmem:[%s24729_s4 + $0x64] ss:$8 sps:$4 sm:$0xff]  }
 0x762   :  { %v11572_v12 = vsel %vm11535_vm5, %v16186_v29, -inf  ;;  %v11477_v3 = vpop.f32.mrb[7].mxu0  ;;  %v11525_v26 = vrot.slane %v11524_v34, 1  ;;  %v18866_v29 = vld [vmem:[%s24729_s4 + $0x50] ss:$8 sps:$4 sm:$0xff]  }
 0x763   :  { %v11573_v32 = vmax.f32 %v11571_v53, %v11572_v12  ;;  %v11581_v62 = vsel %vm11535_vm5, %v16187_v49, -inf  ;;  %v11531_v31 = vrot.slane %v11530_v30, 1  ;;  %v12458_v6 = vcombine.high %v24329_v60, %v24329_v60  ;;  %v18869_v12 = vld [vmem:[%s24729_s4 + $0x60] ss:$8 sps:$4 sm:$0xff]   ;;  %v18877_v24 = vld [vmem:[%s24729_s4 + $0x84] ss:$8 sps:$4 sm:$0xff]  }
 0x764   :  { %v11582_v15 = vmax.f32 %v11580_v0, %v11581_v62  ;;  %v11526_v43 = vmax.f32 %v11524_v34, %v11525_v26  ;;  %v18875_v0 = vld [vmem:[%s24729_s4 + $0x80] ss:$8 sps:$4 sm:$0xff]   ;;  %v18878_v62 = vld [vmem:[%s24729_s4 + $0x90] ss:$8 sps:$4 sm:$0xff]   ;;  %v18883_v36 = vld [vmem:[%s24729_s4 + $0xa4] ss:$8 sps:$4 sm:$0xff]  }
 0x765   :  { %v11574_v59 = vrot.slane %v11573_v32, 4  ;;  %v11532_v20 = vmax.f32 %v11530_v30, %v11531_v31  ;;  %v24339_v21 = vrot.slane %v12458_v6, %v24318_v1  ;;  %v18889_v34 = vld [vmem:[%s24729_s4 + $0xc4] ss:$8 sps:$4 sm:$0xff]   ;;  %v18890_v30 = vld [vmem:[%s24729_s4 + $0xd0] ss:$8 sps:$4 sm:$0xff]  }
 0x766   :  { %v11583_v61 = vrot.slane %v11582_v15, 4  ;;  %v18901_v26 = vld [vmem:[%s24729_s4 + $0x104] ss:$8 sps:$4 sm:$0xff]  }
 0x767   :  { %v11575_v52 = vmax.f32 %v11573_v32, %v11574_v59  ;;  %v18880_v32 = vld [vmem:[%s24729_s4 + $0x94] ss:$8 sps:$4 sm:$0xff]   ;;  %v12489_v31 = vcombine.high %v24339_v21, %v24339_v21 }
 0x768   :  { %v11584_v27 = vmax.f32 %v11582_v15, %v11583_v61  ;;  %v18881_v15 = vld [vmem:[%s24729_s4 + $0xa0] ss:$8 sps:$4 sm:$0xff]   ;;  %v18886_v59 = vld [vmem:[%s24729_s4 + $0xb4] ss:$8 sps:$4 sm:$0xff]   ;;  %v18884_v61 = vld [vmem:[%s24729_s4 + $0xb0] ss:$8 sps:$4 sm:$0xff]  }
 0x769   :  { %v11576_v50 = vrot.slane %v11575_v52, 2 }
 0x76a   :  { %v11585_v10 = vrot.slane %v11584_v27, 2 }
 0x76b   :  { %v11577_v19 = vmax.f32 %v11575_v52, %v11576_v50  ;;  %v18887_v52 = vld [vmem:[%s24729_s4 + $0xc0] ss:$8 sps:$4 sm:$0xff]  }
 0x76c   :  { %v11586_v39 = vmax.f32 %v11584_v27, %v11585_v10  ;;  %v18895_v27 = vld [vmem:[%s24729_s4 + $0xe4] ss:$8 sps:$4 sm:$0xff]   ;;  %v18893_v50 = vld [vmem:[%s24729_s4 + $0xe0] ss:$8 sps:$4 sm:$0xff]   ;;  %v18898_v10 = vld [vmem:[%s24729_s4 + $0xf4] ss:$8 sps:$4 sm:$0xff]  }
 0x76d   :  { %v11578_v18 = vrot.slane %v11577_v19, 1 }
 0x76e   :  { %v11587_v54 = vrot.slane %v11586_v39, 1 }
 0x76f   :  { %v11579_v57 = vmax.f32 %v11577_v19, %v11578_v18  ;;  %v24441_v19 = vrot.slane %v24329_v60, %v24318_v1  ;;  %v18902_v18 = vld [vmem:[%s24729_s4 + $0x110] ss:$8 sps:$4 sm:$0xff]   ;;  %v18911_v60 = vld [vmem:[%s24729_s4 + $0x140] ss:$8 sps:$4 sm:$0xff]  }
 0x770   :  { %v11588_v35 = vmax.f32 %v11586_v39, %v11587_v54  ;;  %v18904_v39 = vld [vmem:[%s24729_s4 + $0x114] ss:$8 sps:$4 sm:$0xff]   ;;  %v18907_v54 = vld [vmem:[%s24729_s4 + $0x124] ss:$8 sps:$4 sm:$0xff]  }
 0x771   :  { %v11594_v4 = vsel %vm11589_vm6, %v11526_v43, %v11579_v57  ;;  %v18910_v43 = vld [vmem:[%s24729_s4 + $0x134] ss:$8 sps:$4 sm:$0xff]   ;;  %v18908_v57 = vld [vmem:[%s24729_s4 + $0x130] ss:$8 sps:$4 sm:$0xff]  }
 0x772   :  { %v11595_v63 = vsel %vm11589_vm6, %v11532_v20, %v11588_v35  ;;  %v11632_v5 = vadd.f32 %v11617_v58, %v11594_v4  ;;  %v18905_v58 = vld [vmem:[%s24729_s4 + $0x120] ss:$8 sps:$4 sm:$0xff]   ;;  %v18916_v20 = vld [vmem:[%s24729_s4 + $0x154] ss:$8 sps:$4 sm:$0xff]   ;;  %v18914_v35 = vld [vmem:[%s24729_s4 + $0x150] ss:$8 sps:$4 sm:$0xff]  }
 0x773   :  { %v11633_v28 = vadd.f32 %v11621_v2, %v11595_v63  ;;  %v18913_v2 = vld [vmem:[%s24729_s4 + $0x144] ss:$8 sps:$4 sm:$0xff]  }
 0x774   :  { %v11638_v25 = vmax.f32 %v11632_v5, 0.0  ;;  %v18919_v4 = vld [vmem:[%s24729_s4 + $0x164] ss:$8 sps:$4 sm:$0xff]  }
 0x775   :  { %v11639_v7 = vmax.f32 %v11633_v28, 0.0 }
 0x776   :  { %v11741_v45 = vpack.c.bf16 %v11638_v25, %v11638_v25 }
 0x777   :  { %v11742_v13 = vpack.c.bf16 %v11639_v7, %v11639_v7  ;;  %v18917_v7 = vld [vmem:[%s24729_s4 + $0x160] ss:$8 sps:$4 sm:$0xff]  }
 0x779   :  { %12433 = vmatprep.mubr.bf16.mxu1 %v11742_v13 }
 0x77a   :  { %12434 = vmatmul.mubr.bf16.vlgmr.msra.gmra.mrb[32].mxu1 %v11741_v45  ;;  %v18925_v45 = vld [vmem:[%s24729_s4 + $0x184] ss:$8 sps:$4 sm:$0xff]  }
 0x77b   :  { %12977 = vmatpush1.bf16.msra.mxu1 %v18851_v44  ;;  %13008 = vmatprep.mubr.bf16.mxu1 %v24339_v21  ;;  %v18922_v44 = vld [vmem:[%s24729_s4 + $0x174] ss:$8 sps:$4 sm:$0xff]   ;;  %v18920_v21 = vld [vmem:[%s24729_s4 + $0x170] ss:$8 sps:$4 sm:$0xff]  }
 0x77c   :  { %12978 = vmatprep.subr.bf16.mxu1 %v18856_v9  ;;  %v18923_v9 = vld [vmem:[%s24729_s4 + $0x180] ss:$8 sps:$4 sm:$0xff]  }
 0x77f   :  { %12979 = vmatpush1.bf16.msra.mxu1 %v18854_v38  ;;  %v18928_v38 = vld [vmem:[%s24729_s4 + $0x194] ss:$8 sps:$4 sm:$0xff]  }
 0x780   :  { %12980 = vmatprep.subr.bf16.mxu1 %v18859_v33  ;;  %v18926_v33 = vld [vmem:[%s24729_s4 + $0x190] ss:$8 sps:$4 sm:$0xff]  }
 0x783   :  { %12981 = vmatpush1.bf16.msra.mxu1 %v18857_v14  ;;  %v18931_v14 = vld [vmem:[%s24729_s4 + $0x1a4] ss:$8 sps:$4 sm:$0xff]  }
 0x784   :  { %12982 = vmatprep.subr.bf16.mxu1 %v18862_v16  ;;  %v18929_v16 = vld [vmem:[%s24729_s4 + $0x1a0] ss:$8 sps:$4 sm:$0xff]  }
 0x787   :  { %12983 = vmatpush1.bf16.msra.mxu1 %v18860_v40  ;;  %v18934_v40 = vld [vmem:[%s24729_s4 + $0x1b4] ss:$8 sps:$4 sm:$0xff]  }
 0x788   :  { %12984 = vmatprep.subr.bf16.mxu1 %v18865_v46  ;;  %v18932_v46 = vld [vmem:[%s24729_s4 + $0x1b0] ss:$8 sps:$4 sm:$0xff]  }
 0x78b   :  { %12985 = vmatpush1.bf16.msra.mxu1 %v18863_v51  ;;  %v18937_v51 = vld [vmem:[%s24729_s4 + $0x1c4] ss:$8 sps:$4 sm:$0xff]  }
 0x78c   :  { %12986 = vmatprep.subr.bf16.mxu1 %v18868_v42  ;;  %v18935_v42 = vld [vmem:[%s24729_s4 + $0x1c0] ss:$8 sps:$4 sm:$0xff]  }
 0x78d   :  { %v24375_v49 = vpop.f32.mrb[24].mxu1 }
 0x78e   :  { %v24377_v23 = vpop.f32.mrb[25].mxu1 }
 0x78f   :  { %12987 = vmatpush1.bf16.msra.mxu1 %v18866_v29  ;;  %v12357_v53 = vpop.f32.mrb[26].mxu1  ;;  %v18940_v29 = vld [vmem:[%s24729_s4 + $0x1d4] ss:$8 sps:$4 sm:$0xff]  }
 0x790   :  { %v12358_v3 = vpop.f32.mrb[27].mxu1  ;;  %12988 = vmatprep.subr.bf16.mxu1 %v18871_v41  ;;  %v18938_v41 = vld [vmem:[%s24729_s4 + $0x1d0] ss:$8 sps:$4 sm:$0xff]   ;;  %v18941_v53 = vld [vmem:[%s24729_s4 + $0x1e0] ss:$8 sps:$4 sm:$0xff]  }
 0x791   :  { %v18946_v3 = vld [vmem:[%s24729_s4 + $0x1f4] ss:$8 sps:$4 sm:$0xff]  }
 0x793   :  { %12989 = vmatpush1.bf16.msra.mxu1 %v18869_v12 }
 0x794   :  { %12990 = vmatprep.subr.bf16.mxu1 %v18874_v11 }
 0x797   :  { %12991 = vmatpush1.bf16.msra.mxu1 %v18872_v8  ;;  %v18949_v8 = vld [vmem:[%s24729_s4 + $0x204] ss:$8 sps:$4 sm:$0xff]  }
 0x798   :  { %12992 = vmatprep.subr.bf16.mxu1 %v18877_v24  ;;  %v12488_v24 = vcombine.high %v24441_v19, %v24441_v19 }
 0x79b   :  { %12993 = vmatpush1.bf16.msra.mxu1 %v18875_v0  ;;  %v18947_v0 = vld [vmem:[%s24729_s4 + $0x200] ss:$8 sps:$4 sm:$0xff]  }
 0x79c   :  { %12994 = vmatprep.subr.bf16.mxu1 %v18880_v32 }
 0x79f   :  { %12995 = vmatpush1.bf16.msra.mxu1 %v18878_v62  ;;  %v18952_v62 = vld [vmem:[%s24729_s4 + $0x214] ss:$8 sps:$4 sm:$0xff]  }
 0x7a0   :  { %12996 = vmatprep.subr.bf16.mxu1 %v18883_v36  ;;  %v18950_v36 = vld [vmem:[%s24729_s4 + $0x210] ss:$8 sps:$4 sm:$0xff]  }
 0x7a3   :  { %12997 = vmatpush1.bf16.msra.mxu1 %v18881_v15  ;;  %v18955_v15 = vld [vmem:[%s24729_s4 + $0x224] ss:$8 sps:$4 sm:$0xff]  }
 0x7a4   :  { %12998 = vmatprep.subr.bf16.mxu1 %v18886_v59  ;;  %v18953_v59 = vld [vmem:[%s24729_s4 + $0x220] ss:$8 sps:$4 sm:$0xff]  }
 0x7a7   :  { %12999 = vmatpush1.bf16.msra.mxu1 %v18884_v61  ;;  %v18958_v61 = vld [vmem:[%s24729_s4 + $0x234] ss:$8 sps:$4 sm:$0xff]  }
 0x7a8   :  { %13000 = vmatprep.subr.bf16.mxu1 %v18889_v34  ;;  %v18956_v34 = vld [vmem:[%s24729_s4 + $0x230] ss:$8 sps:$4 sm:$0xff]  }
 0x7ab   :  { %13001 = vmatpush1.bf16.msra.mxu1 %v18887_v52  ;;  %v18961_v52 = vld [vmem:[%s24729_s4 + $0x244] ss:$8 sps:$4 sm:$0xff]  }
 0x7ac   :  { %13002 = vmatprep.subr.bf16.mxu1 %v18892_v22  ;;  %v18959_v22 = vld [vmem:[%s24729_s4 + $0x240] ss:$8 sps:$4 sm:$0xff]  }
 0x7af   :  { %13003 = vmatpush1.bf16.msra.mxu1 %v18890_v30  ;;  %v18964_v30 = vld [vmem:[%s24729_s4 + $0x254] ss:$8 sps:$4 sm:$0xff]  }
 0x7b0   :  { %13004 = vmatprep.subr.bf16.mxu1 %v18895_v27  ;;  %v18962_v27 = vld [vmem:[%s24729_s4 + $0x250] ss:$8 sps:$4 sm:$0xff]  }
 0x7b3   :  { %13005 = vmatpush1.bf16.msra.mxu1 %v18893_v50  ;;  %v18967_v50 = vld [vmem:[%s24729_s4 + $0x264] ss:$8 sps:$4 sm:$0xff]  }
 0x7b4   :  { %13006 = vmatprep.subr.bf16.mxu1 %v18898_v10  ;;  %v18965_v10 = vld [vmem:[%s24729_s4 + $0x260] ss:$8 sps:$4 sm:$0xff]  }
 0x7b7   :  { %13007 = vmatpush1.bf16.msra.mxu1 %v18896_v47  ;;  %v18970_v47 = vld [vmem:[%s24729_s4 + $0x274] ss:$8 sps:$4 sm:$0xff]  }
 0x7b8   :  { %13017 = vmatprep.subr.bf16.mxu1 %v18901_v26  ;;  %v18968_v26 = vld [vmem:[%s24729_s4 + $0x270] ss:$8 sps:$4 sm:$0xff]  }
 0x7ba   :  { %13009 = vmatmul.mubr.bf16.vlgmr.msra.gmra.mrb[36].mxu1 %v24441_v19  ;;  %v18973_v19 = vld [vmem:[%s24729_s4 + $0x284] ss:$8 sps:$4 sm:$0xff]  }
 0x7bb   :  { %13018 = vmatpush1.bf16.msra.mxu1 %v18899_v48  ;;  %13049 = vmatprep.mubr.bf16.mxu1 %v12489_v31  ;;  %v18971_v48 = vld [vmem:[%s24729_s4 + $0x280] ss:$8 sps:$4 sm:$0xff]   ;;  %v18976_v31 = vld [vmem:[%s24729_s4 + $0x294] ss:$8 sps:$4 sm:$0xff]  }
 0x7bc   :  { %13019 = vmatprep.subr.bf16.mxu1 %v18904_v39  ;;  %v18974_v39 = vld [vmem:[%s24729_s4 + $0x290] ss:$8 sps:$4 sm:$0xff]  }
 0x7bf   :  { %13020 = vmatpush1.bf16.msra.mxu1 %v18902_v18  ;;  %v18979_v18 = vld [vmem:[%s24729_s4 + $0x2a4] ss:$8 sps:$4 sm:$0xff]  }
 0x7c0   :  { %13021 = vmatprep.subr.bf16.mxu1 %v18907_v54  ;;  %v18977_v54 = vld [vmem:[%s24729_s4 + $0x2a0] ss:$8 sps:$4 sm:$0xff]  }
 0x7c3   :  { %13022 = vmatpush1.bf16.msra.mxu1 %v18905_v58  ;;  %v18982_v58 = vld [vmem:[%s24729_s4 + $0x2b4] ss:$8 sps:$4 sm:$0xff]  }
 0x7c4   :  { %13023 = vmatprep.subr.bf16.mxu1 %v18910_v43  ;;  %v18980_v43 = vld [vmem:[%s24729_s4 + $0x2b0] ss:$8 sps:$4 sm:$0xff]  }
 0x7c7   :  { %13024 = vmatpush1.bf16.msra.mxu1 %v18908_v57  ;;  %v18985_v57 = vld [vmem:[%s24729_s4 + $0x2c4] ss:$8 sps:$4 sm:$0xff]  }
 0x7c8   :  { %13025 = vmatprep.subr.bf16.mxu1 %v18913_v2  ;;  %v18983_v2 = vld [vmem:[%s24729_s4 + $0x2c0] ss:$8 sps:$4 sm:$0xff]  }
 0x7cb   :  { %13026 = vmatpush1.bf16.msra.mxu1 %v18911_v60  ;;  %v18988_v60 = vld [vmem:[%s24729_s4 + $0x2d4] ss:$8 sps:$4 sm:$0xff]  }
 0x7cc   :  { %13027 = vmatprep.subr.bf16.mxu1 %v18916_v20  ;;  %v18986_v20 = vld [vmem:[%s24729_s4 + $0x2d0] ss:$8 sps:$4 sm:$0xff]  }
 0x7cd   :  { %v12394_v63 = vpop.f32.mrb[28].mxu1 }
 0x7ce   :  { %v24483_v5 = vadd.f32 %v12394_v63, %v24375_v49  ;;  %v12396_v28 = vpop.f32.mrb[29].mxu1  ;;  %v12443_v49 = vcombine.high %v24323_v56, %v24323_v56  ;;  %v18944_v56 = vld [vmem:[%s24729_s4 + $0x1f0] ss:$8 sps:$4 sm:$0xff]   ;;  %v18994_v63 = vld [vmem:[%s24729_s4 + $0x2f4] ss:$8 sps:$4 sm:$0xff]  }
 0x7cf   :  { %v24486_v6 = vadd.f32 %v12396_v28, %v24377_v23  ;;  %v12398_v25 = vpop.f32.mrb[30].mxu1  ;;  %13028 = vmatpush1.bf16.msra.mxu1 %v18914_v35  ;;  %v18943_v23 = vld [vmem:[%s24729_s4 + $0x1e4] ss:$8 sps:$4 sm:$0xff]   ;;  %v18992_v28 = vld [vmem:[%s24729_s4 + $0x2f0] ss:$8 sps:$4 sm:$0xff]  }
 0x7d0   :  { %v12399_v13 = vpop.f32.mrb[31].mxu1  ;;  %13029 = vmatprep.subr.bf16.mxu1 %v18919_v4  ;;  %v24542_v12 = vrot.slane %v12443_v49, %v24318_v1  ;;  %v18991_v35 = vld [vmem:[%s24729_s4 + $0x2e4] ss:$8 sps:$4 sm:$0xff]   ;;  %v18989_v4 = vld [vmem:[%s24729_s4 + $0x2e0] ss:$8 sps:$4 sm:$0xff]  }
 0x7d2   :  { %v12459_v11 = vcombine.high %v24542_v12, %v24542_v12  ;;  %v12473_v25 = vrot.slane %v24542_v12, %v24318_v1 }
 0x7d3   :  { %13030 = vmatpush1.bf16.msra.mxu1 %v18917_v7 }
 0x7d4   :  { %13031 = vmatprep.subr.bf16.mxu1 %v18922_v44  ;;  %v12487_v32 = vrot.slane %v12459_v11, %v24318_v1  ;;  %v18998_v1 = vld [vmem:[%s24732_s7 + $0x48] sm:$0xff]  }
 0x7d7   :  { %13032 = vmatpush1.bf16.msra.mxu1 %v18920_v21 }
 0x7d8   :  { %13033 = vmatprep.subr.bf16.mxu1 %v18925_v45 }
 0x7db   :  { %13034 = vmatpush1.bf16.msra.mxu1 %v18923_v9 }
 0x7dc   :  { %13035 = vmatprep.subr.bf16.mxu1 %v18928_v38  ;;  %v18996_v38 = vld [vmem:[%s24732_s7 + $0x40] sm:$0xff]  }
 0x7df   :  { %13036 = vmatpush1.bf16.msra.mxu1 %v18926_v33  ;;  %v18997_v33 = vld [vmem:[%s24732_s7] sm:$0xff]  }
 0x7e0   :  { %13037 = vmatprep.subr.bf16.mxu1 %v18931_v14  ;;  %v19001_v14 = vld [vmem:[%s24732_s7 + $0x10] sm:$0xff]  }
 0x7e3   :  { %13038 = vmatpush1.bf16.msra.mxu1 %v18929_v16  ;;  %v19002_v16 = vld [vmem:[%s24732_s7 + $0x58] sm:$0xff]  }
 0x7e4   :  { %13039 = vmatprep.subr.bf16.mxu1 %v18934_v40  ;;  %v19003_v40 = vld [vmem:[%s24732_s7 + $0x18] sm:$0xff]  }
 0x7e7   :  { %13040 = vmatpush1.bf16.msra.mxu1 %v18932_v46  ;;  %v19004_v46 = vld [vmem:[%s24732_s7 + $0x60] sm:$0xff]  }
 0x7e8   :  { %13041 = vmatprep.subr.bf16.mxu1 %v18937_v51  ;;  %v19005_v51 = vld [vmem:[%s24732_s7 + $0x20] sm:$0xff]  }
 0x7eb   :  { %13042 = vmatpush1.bf16.msra.mxu1 %v18935_v42  ;;  %v19006_v42 = vld [vmem:[%s24732_s7 + $0x68] sm:$0xff]  }
 0x7ec   :  { %13043 = vmatprep.subr.bf16.mxu1 %v18940_v29  ;;  %v19007_v29 = vld [vmem:[%s24732_s7 + $0x28] sm:$0xff]  }
 0x7ef   :  { %13044 = vmatpush1.bf16.msra.mxu1 %v18938_v41 }
 0x7f0   :  { %13045 = vmatprep.subr.bf16.mxu1 %v18943_v23 }
 0x7f3   :  { %13046 = vmatpush1.bf16.msra.mxu1 %v18941_v53  ;;  %v19008_v53 = vld [vmem:[%s24732_s7 + $0x70] sm:$0xff]  }
 0x7f4   :  { %13047 = vmatprep.subr.bf16.mxu1 %v18946_v3 }
 0x7f7   :  { %13048 = vmatpush1.bf16.msra.mxu1 %v18944_v56  ;;  %v19009_v56 = vld [vmem:[%s24732_s7 + $0x30] sm:$0xff]  }
 0x7f8   :  { %13058 = vmatprep.subr.bf16.mxu1 %v18949_v8  ;;  %v19010_v8 = vld [vmem:[%s24732_s7 + $0x78] sm:$0xff]  }
 0x7fa   :  { %13050 = vmatmul.mubr.bf16.vlgmr.msra.gmra.mrb[40].mxu1 %v12488_v24  ;;  %v19011_v24 = vld [vmem:[%s24732_s7 + $0x38] sm:$0xff]  }
 0x7fb   :  { %13059 = vmatpush1.bf16.msra.mxu1 %v18947_v0  ;;  %13090 = vmatprep.mubr.bf16.mxu1 %v12487_v32 }
 0x7fc   :  { %13060 = vmatprep.subr.bf16.mxu1 %v18952_v62 }
 0x7ff   :  { %13061 = vmatpush1.bf16.msra.mxu1 %v18950_v36 }
 0x800   :  { %13062 = vmatprep.subr.bf16.mxu1 %v18955_v15 }
 0x803   :  { %13063 = vmatpush1.bf16.msra.mxu1 %v18953_v59 }
 0x804   :  { %13064 = vmatprep.subr.bf16.mxu1 %v18958_v61  ;;  %v13099_v61 = vld [vmem:[%s24731_s6] sm:$0x3] }
 0x807   :  { %13065 = vmatpush1.bf16.msra.mxu1 %v18956_v34  ;;  %v13104_v34 = vrot.slane %v13099_v61, %v11600_v17  ;;  %v16136_v17 = vld [vmem:[%s24733_s8] ss:$0 sm:$0xff] }
 0x808   :  { %13066 = vmatprep.subr.bf16.mxu1 %v18961_v52 }
 0x80b   :  { %13067 = vmatpush1.bf16.msra.mxu1 %v18959_v22  ;;  %v13108_v22 = vrot.slane %v13099_v61, %v11604_v55 }
 0x80c   :  { %13068 = vmatprep.subr.bf16.mxu1 %v18964_v30 }
 0x80f   :  { %13069 = vmatpush1.bf16.msra.mxu1 %v18962_v27 }
 0x810   :  { %13070 = vmatprep.subr.bf16.mxu1 %v18967_v50 }
 0x813   :  { %13071 = vmatpush1.bf16.msra.mxu1 %v18965_v10 }
 0x814   :  { %13072 = vmatprep.subr.bf16.mxu1 %v18970_v47 }
 0x817   :  { %13073 = vmatpush1.bf16.msra.mxu1 %v18968_v26 }
 0x818   :  { %13074 = vmatprep.subr.bf16.mxu1 %v18973_v19 }
 0x81b   :  { %13075 = vmatpush1.bf16.msra.mxu1 %v18971_v48 }
 0x81c   :  { %13076 = vmatprep.subr.bf16.mxu1 %v18976_v31 }
 0x81f   :  { %13077 = vmatpush1.bf16.msra.mxu1 %v18974_v39 }
 0x820   :  { %13078 = vmatprep.subr.bf16.mxu1 %v18979_v18 }
 0x823   :  { %13079 = vmatpush1.bf16.msra.mxu1 %v18977_v54 }
 0x824   :  { %13080 = vmatprep.subr.bf16.mxu1 %v18982_v58 }
 0x827   :  { %13081 = vmatpush1.bf16.msra.mxu1 %v18980_v43 }
 0x828   :  { %13082 = vmatprep.subr.bf16.mxu1 %v18985_v57 }
 0x82b   :  { %13083 = vmatpush1.bf16.msra.mxu1 %v18983_v2 }
 0x82c   :  { %13084 = vmatprep.subr.bf16.mxu1 %v18988_v60 }
 0x82f   :  { %13085 = vmatpush1.bf16.msra.mxu1 %v18986_v20 }
 0x830   :  { %13086 = vmatprep.subr.bf16.mxu1 %v18991_v35 }
 0x833   :  { %13087 = vmatpush1.bf16.msra.mxu1 %v18989_v4 }
 0x834   :  { %13088 = vmatprep.subr.bf16.mxu1 %v18994_v63 }
 0x837   :  { %13089 = vmatpush1.bf16.msra.mxu1 %v18992_v28 }
 0x838   :  { %16154 = vmatprep.subr.bf16.mxu1 %v18996_v38 }
 0x83a   :  { %13091 = vmatmul.mubr.bf16.vlgmr.msra.gmra.mrb[44].mxu1 %v12473_v25 }
 0x83b   :  { %16155 = vmatpush3.bf16.msra.mxu1 %v18997_v33 }
 0x83c   :  { %16156 = vmatprep.subr.bf16.mxu1 %v18998_v1 }
 0x84d   :  { %v12435_v7 = vpop.f32.mrb[32].mxu1 }
 0x84e   :  { %v12436_v13 = vadd.f32 %v12435_v7, %v24483_v5  ;;  %v12437_v44 = vpop.f32.mrb[33].mxu1  ;;  %v18999_v5 = vld [vmem:[%s24732_s7 + $0x8] sm:$0xff]  }
 0x84f   :  { %v12438_v21 = vadd.f32 %v12437_v44, %v24486_v6  ;;  %v12439_v45 = vpop.f32.mrb[34].mxu1  ;;  %v19000_v6 = vld [vmem:[%s24732_s7 + $0x50] sm:$0xff]   ;;  %16157 = vmatpush3.bf16.msra.mxu1 %v18999_v5 }
 0x850   :  { %v12440_v9 = vpop.f32.mrb[35].mxu1  ;;  %16158 = vmatprep.subr.bf16.mxu1 %v19000_v6 }
 0x853   :  { %16159 = vmatpush3.bf16.msra.mxu1 %v19001_v14 }
 0x854   :  { %16160 = vmatprep.subr.bf16.mxu1 %v19002_v16 }
 0x857   :  { %16161 = vmatpush3.bf16.msra.mxu1 %v19003_v40 }
 0x858   :  { %16162 = vmatprep.subr.bf16.mxu1 %v19004_v46 }
 0x85b   :  { %16163 = vmatpush3.bf16.msra.mxu1 %v19005_v51 }
 0x85c   :  { %16164 = vmatprep.subr.bf16.mxu1 %v19006_v42 }
 0x85f   :  { %16165 = vmatpush3.bf16.msra.mxu1 %v19007_v29 }
 0x860   :  { %16166 = vmatprep.subr.bf16.mxu1 %v19008_v53 }
 0x863   :  { %16167 = vmatpush3.bf16.msra.mxu1 %v19009_v56 }
 0x864   :  { %16168 = vmatprep.subr.bf16.mxu1 %v19010_v8 }
 0x867   :  { %16169 = vmatpush3.bf16.msra.mxu1 %v19011_v24 }
 0x88d   :  { %v13010_v41 = vpop.f32.mrb[36].mxu1 }
 0x88e   :  { %v13011_v49 = vadd.f32 %v13010_v41, %v12436_v13  ;;  %v13012_v23 = vpop.f32.mrb[37].mxu1 }
 0x88f   :  { %v13013_v12 = vadd.f32 %v13012_v23, %v12438_v21  ;;  %v13014_v3 = vpop.f32.mrb[38].mxu1 }
 0x890   :  { %v13015_v11 = vpop.f32.mrb[39].mxu1 }
 0x8cd   :  { %v13051_v0 = vpop.f32.mrb[40].mxu1 }
 0x8ce   :  { %v13052_v32 = vadd.f32 %v13051_v0, %v13011_v49  ;;  %v13053_v62 = vpop.f32.mrb[41].mxu1 }
 0x8cf   :  { %v13054_v36 = vadd.f32 %v13053_v62, %v13013_v12  ;;  %v13055_v15 = vpop.f32.mrb[42].mxu1 }
 0x8d0   :  { %v13056_v59 = vpop.f32.mrb[43].mxu1 }
 0x90d   :  { %v13092_v52 = vpop.f32.mrb[44].mxu1 }
 0x90e   :  { %v13093_v30 = vadd.f32 %v13092_v52, %v13052_v32  ;;  %v13094_v27 = vpop.f32.mrb[45].mxu1 }
 0x90f   :  { %v13095_v50 = vadd.f32 %v13094_v27, %v13054_v36  ;;  %v13096_v10 = vpop.f32.mrb[46].mxu1 }
 0x910   :  { %v13111_v47 = vadd.f32 %v13104_v34, %v13093_v30  ;;  %v13097_v26 = vpop.f32.mrb[47].mxu1 }
 0x911   :  { %v13112_v19 = vadd.f32 %v13108_v22, %v13095_v50 }
 0x912   :  { %v13113_v48 = vmax.f32 %v13111_v47, 0.0 }
 0x913   :  { %v13114_v31 = vmax.f32 %v13112_v19, 0.0 }
 0x914   :  { %v13115_v18 = vpack.c.bf16 %v13113_v48, %v13113_v48 }
 0x915   :  { %v13116_v39 = vpack.c.bf16 %v13114_v31, %v13114_v31 }
 0x917   :  { %13284 = vmatprep.mubr.bf16.mxu1 %v13116_v39 }
 0x918   :  { %13285 = vmatmul.mubr.bf16.vlgmr.msra.gmra.mrb[48].mxu1 %v13115_v18 }
 0x9eb   :  { %v16170_v54 = vpop.f32.mrb[48].mxu1 }
 0x9ec   :  { %v16171_v37 = vpop.f32.mrb[49].mxu1 }
 0x9ed   :  { %v16172_v55 = vadd.f32 %v16171_v37, %v16170_v54  ;;  %v16173_v58 = vpop.f32.mrb[50].mxu1 }
 0x9ee   :  { %v16174_v43 = vpop.f32.mrb[51].mxu1 }
 0x9ef   :  { %v13287_v57 = vadd.f32 %v16172_v55, %v16136_v17 }
 0x9f1   :  { %v16153_v2 = vmul.f32 -1.442695, %v13287_v57 }
 0x9f3   :  { %19012 = vpow2.f32 %v16153_v2 }
 0x9fd   :  { %v19013_v60 = vpop.eup %19012 }
 0x9fe   :  { %v13295_v20 = vadd.f32 1.0, %v19013_v60 }
 0xa00   :  { %19014 = vrcp.f32 %v13295_v20 }
 0xa0a   :  { %v19015_v35 = vpop.eup %19014 }
 0xa0b   :  { %13298 = vst [vmem:[#allocation3] sm:$0x3] %v19015_v35 }
 0xa0c   :  { %19033 = shalt.err (!%p19030_p4)
}
 0xa0d   :  { %s19034_s29 = scalar_lea.hbm %s24734_s9, 32 }
 0xa0e   :  { %p19035_p5 = scmp.ne.s32.totalorder %s24734_s9, %s19034_s29  ;;  %p19038_p6 = scmp.lt.u32.totalorder %s19034_s29, %s24734_s9 }
 0xa10   :  { %p19040_p7 = pnand %p19038_p6, %p19035_p5 }
 0xa12   :  { %19043 = shalt.err (!%p19040_p7)
}
 0xa13   :  { %13308 = dma.vmem_to_hbm [thread:$0]  %s13306_s0, 32, %s24734_s9, [#allocation4]  }
 0xa14   :  { %19044 = dma.done.wait [#allocation4], 32  }
 0xa15   :  { %19045 = vsyncadd [#allocation4], 4294967264 }
 0xa16   :  { %13312 = vsyncpa [#allocation4], 1 }

</bundles_post_ra>
